<compile_context>
chip_gen: v7x
topology: tpu7x:2x2x1
jax: 0.10.0
libtpu: 0.0.40
codegen_flags: <defaults>
</compile_context>

<pallas_src>
import functools

import jax
import jax.numpy as jnp
from jax.experimental import pallas as pl
from jax.experimental.pallas import tpu as pltpu

KSIZE = 5     # conv kernel size (both convs)
COP = 128     # conv output channels padded to a full lane group
CLSP = 128    # classifier output padded to a full lane group


def _round8(v):
    return (v + 7) // 8 * 8


def _round128(v):
    return (v + 127) // 128 * 128


def _pick_hidden_tile(hidden):
    for cand in (512, 256, 1024, 128, 64):
        if hidden % cand == 0 and hidden // cand >= 2:
            return cand
    return hidden


def _compute_dims(C, H, W):
    """Static layout constants shared by the wrapper, params prep and kernel."""
    K = KSIZE
    KK = K * K
    OH1, OW1 = H - K + 1, W - K + 1
    assert OH1 % 2 == 0 and OW1 % 2 == 0, "pool1 expects even conv1 output"
    PH1, PW1 = OH1 // 2, OW1 // 2
    OH2, OW2 = PH1 - K + 1, PW1 - K + 1
    assert OH2 % 2 == 0 and OW2 % 2 == 0, "pool2 expects even conv2 output"
    PH2, PW2 = OH2 // 2, OW2 // 2
    PR = OH1 * OW1                       # conv1 / im2col rows per image
    PKC = _round128(KK * C)              # im2col contraction dim, lane padded
    PITCH = PW1                          # pooled-1 map row pitch (dense -> no garbage rows)
    P1S = PH1 * PITCH                    # pooled-1 rows per image
    ROWS2 = (OH2 - 1) * PITCH + OW2      # conv2 shifted-window rows per image
    FLATP = PH2 * PW2 * COP              # per-image flattened (lane-padded) feature width
    # conv2 tap reads stay inside this image's pooled-1 rows:
    assert (K - 1) * PITCH + (K - 1) + ROWS2 <= P1S
    # pool2 only reads valid conv2 rows:
    assert (OH2 - 1) * PITCH + (OW2 - 1) < ROWS2
    return dict(C=C, H=H, W=W, KK=KK, OH1=OH1, OW1=OW1, PH1=PH1, PW1=PW1,
                OH2=OH2, OW2=OW2, PH2=PH2, PW2=PW2, PR=PR, PKC=PKC,
                PITCH=PITCH, P1S=P1S, ROWS2=ROWS2, FLATP=FLATP)


# ---------------------------------------------------------------------------
# Fused kernel: conv1 -> pool1 -> conv2 -> pool2 -> flatten -> fc1 -> fc2
# grid = (hidden // TH,)   (fc1 hidden-dim tiles; features computed on step 0)
# ---------------------------------------------------------------------------
def _make_fused_kernel(N, d):
    K = KSIZE
    OW1, PH1, PW1 = d["OW1"], d["PH1"], d["PW1"]
    PH2, PW2 = d["PH2"], d["PW2"]
    PR, PITCH, P1S, ROWS2 = d["PR"], d["PITCH"], d["P1S"], d["ROWS2"]

    def kernel(patches_ref, w1_ref, b1_ref, w2_ref, b2_ref,
               fc1w_ref, fc1b_ref, fc2w_ref, fc2b_ref, out_ref,
               acc1, p1, acc2s, feat2):
        # -------- step 0: whole feature extractor into VMEM scratch --------
        @pl.when(pl.program_id(0) == 0)
        def _features():
            # conv1: ONE im2col matmul over all images (M = N*PR), one store.
            acc1[...] = jnp.dot(patches_ref[...], w1_ref[...],
                                preferred_element_type=jnp.float32)
            b1v = b1_ref[...]                                    # (1, COP) f32
            b2v = b2_ref[...]                                    # (1, COP) f32
            for n in range(N):
                # pool1 (2x2/2): 4 strided reads + 3 max per output row;
                # bias folded in after the max (commutes per-lane).
                for i in range(PH1):
                    base = n * PR + 2 * i * OW1
                    r00 = acc1[pl.ds(base, PW1, stride=2), :]
                    r01 = acc1[pl.ds(base + 1, PW1, stride=2), :]
                    r10 = acc1[pl.ds(base + OW1, PW1, stride=2), :]
                    r11 = acc1[pl.ds(base + OW1 + 1, PW1, stride=2), :]
                    m = jnp.maximum(jnp.maximum(r00, r01),
                                    jnp.maximum(r10, r11))
                    p1[pl.ds(n * P1S + i * PITCH, PW1), :] = m + b1v

                # conv2: 25 shifted matmuls on the dense pooled-1 map,
                # accumulated in vregs; single store of the result.
                acc2 = jnp.zeros((ROWS2, COP), jnp.float32)
                for kh in range(K):
                    for kw in range(K):
                        src = p1[pl.ds(n * P1S + kh * PITCH + kw, ROWS2), :]
                        acc2 = acc2 + jnp.dot(
                            src.astype(jnp.bfloat16), w2_ref[kh * K + kw],
                            preferred_element_type=jnp.float32)
                acc2s[pl.ds(0, ROWS2), :] = acc2

                # pool2 (2x2/2) + bias, written straight into the flattened
                # (h, w, c128) feature layout fc1's weight was repacked for.
                for i in range(PH2):
                    base = 2 * i * PITCH
                    r00 = acc2s[pl.ds(base, PW2, stride=2), :]
                    r01 = acc2s[pl.ds(base + 1, PW2, stride=2), :]
                    r10 = acc2s[pl.ds(base + PITCH, PW2, stride=2), :]
                    r11 = acc2s[pl.ds(base + PITCH + 1, PW2, stride=2), :]
                    m = jnp.maximum(jnp.maximum(r00, r01),
                                    jnp.maximum(r10, r11)) + b2v   # (PW2, COP)
                    for j in range(PW2):
                        feat2[pl.ds(n, 1),
                              pl.ds((i * PW2 + j) * COP, COP)] = m[j:j + 1, :]

            # initialize the resident output accumulator with the fc2 bias
            out_ref[...] = jnp.broadcast_to(fc2b_ref[...], out_ref.shape)

        # -------- every step: one hidden tile of fc1 -> fc2, accumulated ----
        h = jnp.dot(feat2[...].astype(jnp.bfloat16), fc1w_ref[...],
                    preferred_element_type=jnp.float32) + fc1b_ref[...]
        out_ref[...] += jnp.dot(h.astype(jnp.bfloat16), fc2w_ref[...],
                                preferred_element_type=jnp.float32)

    return kernel


# ---------------------------------------------------------------------------
# Parameter preparation (one-time, outside the jitted hot path)
# ---------------------------------------------------------------------------
def prepare_params(params, H, W):
    """Repack PyTorch-shaped params into lane-padded bf16 TPU layouts."""
    K = KSIZE
    KK = K * K
    co1, cin = params["w1"].shape[0], params["w1"].shape[1]
    co2 = params["w2"].shape[0]
    hidden = params["fc1_w"].shape[1]
    ncls = params["fc2_w"].shape[1]
    d = _compute_dims(cin, H, W)
    PKC, PH2, PW2 = d["PKC"], d["PH2"], d["PW2"]

    # conv1 -> single im2col weight matrix: row = (kh*K + kw)*C + c, col = out.
    w1 = jnp.transpose(params["w1"], (2, 3, 1, 0)).reshape(KK * cin, co1)
    w1 = jnp.pad(w1, ((0, PKC - KK * cin), (0, COP - co1))).astype(jnp.bfloat16)
    b1 = jnp.pad(params["b1"], (0, COP - co1)).reshape(1, COP).astype(jnp.float32)

    # conv2 -> per-tap (kh*K+kw, cin_pad128, cout_pad128)
    w2 = jnp.transpose(params["w2"], (2, 3, 1, 0)).reshape(KK, co1, co2)
    w2 = jnp.pad(w2, ((0, 0), (0, COP - co1), (0, COP - co2))).astype(jnp.bfloat16)
    b2 = jnp.pad(params["b2"], (0, COP - co2)).reshape(1, COP).astype(jnp.float32)

    # fc1: torch flatten order is (c, h, w); permute rows to the kernel's
    # (h, w, c_padded128) feature order so the in-kernel flatten is free.
    fc1 = params["fc1_w"].reshape(co2, PH2, PW2, hidden)
    fc1 = jnp.transpose(fc1, (1, 2, 0, 3))
    fc1 = jnp.pad(fc1, ((0, 0), (0, 0), (0, COP - co2), (0, 0)))
    fc1 = fc1.reshape(PH2 * PW2 * COP, hidden).astype(jnp.bfloat16)
    fc1_b = params["fc1_b"].reshape(1, hidden).astype(jnp.float32)

    fc2 = jnp.pad(params["fc2_w"], ((0, 0), (0, CLSP - ncls))).astype(jnp.bfloat16)
    fc2_b = jnp.pad(params["fc2_b"], (0, CLSP - ncls)).reshape(1, CLSP).astype(jnp.float32)
    return {"w1": w1, "b1": b1, "w2": w2, "b2": b2,
            "fc1_w": fc1, "fc1_b": fc1_b, "fc2_w": fc2, "fc2_b": fc2_b}


# ---------------------------------------------------------------------------
# Model forward
# ---------------------------------------------------------------------------
@functools.partial(jax.jit, static_argnames=("num_classes",))
def imu_signal_image_forward(x_nchw, p, *, num_classes):
    """Forward pass of ImuSignalImageModel (variant 'v1'), one Pallas call."""
    N, C, H, W = x_nchw.shape
    d = _compute_dims(C, H, W)
    K, KK = KSIZE, d["KK"]
    OH1, OW1, PR, PKC = d["OH1"], d["OW1"], d["PR"], d["PKC"]
    ROWS2, P1S, FLATP = d["ROWS2"], d["P1S"], d["FLATP"]
    hidden = p["fc1_w"].shape[1]
    TH = _pick_hidden_tile(hidden)
    n_tiles = hidden // TH

    # ---- im2col in the wrapper (input is tiny; only XLA glue in the model) --
    xh = jnp.transpose(x_nchw, (0, 2, 3, 1))                     # (N, H, W, C)
    taps = [xh[:, kh:kh + OH1, kw:kw + OW1, :]
            for kh in range(K) for kw in range(K)]
    patches = jnp.stack(taps, axis=3)                  # (N, OH1, OW1, KK, C)
    patches = patches.reshape(N * PR, KK * C)
    patches = jnp.pad(patches, ((0, 0), (0, PKC - KK * C)))
    patches = patches.astype(jnp.bfloat16)             # bf16 MXU operand

    flops = int(2 * N * (PR * PKC * COP + KK * ROWS2 * COP * COP
                         + FLATP * hidden + hidden * CLSP))
    bytes_accessed = int(
        N * PR * PKC * 2 + PKC * COP * 2 + KK * COP * COP * 2
        + FLATP * hidden * 2 + hidden * CLSP * 2
        + (2 * COP + hidden + CLSP) * 4 + N * CLSP * 4)

    kernel = _make_fused_kernel(N, d)
    out = pl.pallas_call(
        kernel,
        out_shape=jax.ShapeDtypeStruct((N, CLSP), jnp.float32),
        grid=(n_tiles,),
        in_specs=[
            pl.BlockSpec((N * PR, PKC), lambda j: (0, 0)),       # im2col patches
            pl.BlockSpec((PKC, COP), lambda j: (0, 0)),          # conv1 weight
            pl.BlockSpec((1, COP), lambda j: (0, 0)),            # conv1 bias
            pl.BlockSpec((KK, COP, COP), lambda j: (0, 0, 0)),   # conv2 weight
            pl.BlockSpec((1, COP), lambda j: (0, 0)),            # conv2 bias
            pl.BlockSpec((FLATP, TH), lambda j: (0, j)),         # fc1 weight tile
            pl.BlockSpec((1, TH), lambda j: (0, j)),             # fc1 bias tile
            pl.BlockSpec((TH, CLSP), lambda j: (j, 0)),          # fc2 weight tile
            pl.BlockSpec((1, CLSP), lambda j: (0, 0)),           # fc2 bias
        ],
        out_specs=pl.BlockSpec((N, CLSP), lambda j: (0, 0)),
        scratch_shapes=[
            pltpu.VMEM((N * PR, COP), jnp.float32),              # conv1 output
            pltpu.VMEM((_round8(N * P1S), COP), jnp.float32),    # pooled-1 map
            pltpu.VMEM((_round8(ROWS2), COP), jnp.float32),      # conv2 output
            pltpu.VMEM((N, FLATP), jnp.float32),                 # flattened features
        ],
        compiler_params=pltpu.CompilerParams(
            dimension_semantics=("arbitrary",)),
        cost_estimate=pl.CostEstimate(flops=flops, transcendentals=0,
                                      bytes_accessed=bytes_accessed),
    )(patches, p["w1"], p["b1"], p["w2"], p["b2"],
      p["fc1_w"], p["fc1_b"], p["fc2_w"], p["fc2_b"])
    return out[:, :num_classes]


# ---------------------------------------------------------------------------
# Main
# ---------------------------------------------------------------------------
if __name__ == "__main__":
    # data_shape = {'inertial': (3, 24, 24)} -> num_channels = 3 (len > 2)
    #   24x24 -> conv5 -> 20x20 -> pool2 -> 10x10 -> conv5 -> 6x6 -> pool2 -> 3x3
    #   flatten = 100 * 3 * 3 = 900 -> fc1 (900 -> 2048) -> fc2 (2048 -> 10)
    N, C, H, W = 2, 3, 24, 24
    num_classes = 10
    hidden = 2048
    flat_dim = 100 * 3 * 3

    key = jax.random.PRNGKey(0)
    ks = jax.random.split(key, 9)

    x = jax.random.normal(ks[0], (N, C, H, W), dtype=jnp.float32)  # NCHW input

    # Deterministic synthetic parameters (PyTorch conv shapes; fc weights are
    # stored as (in_features, out_features) so the kernel computes x @ W + b).
    params = {
        "w1": jax.random.normal(ks[1], (50, C, 5, 5), jnp.float32) * 0.05,
        "b1": jax.random.normal(ks[2], (50,), jnp.float32) * 0.05,
        "w2": jax.random.normal(ks[3], (100, 50, 5, 5), jnp.float32) * 0.02,
        "b2": jax.random.normal(ks[4], (100,), jnp.float32) * 0.02,
        "fc1_w": jax.random.normal(ks[5], (flat_dim, hidden), jnp.float32) * 0.02,
        "fc1_b": jax.random.normal(ks[6], (hidden,), jnp.float32) * 0.02,
        "fc2_w": jax.random.normal(ks[7], (hidden, num_classes), jnp.float32) * 0.02,
        "fc2_b": jax.random.normal(ks[8], (num_classes,), jnp.float32) * 0.02,
    }

    prepped = prepare_params(params, H, W)   # one-time repack, outside the hot path

    out = imu_signal_image_forward(x, prepped, num_classes=num_classes)
    out = jax.block_until_ready(out)

    assert out.shape == (N, num_classes), out.shape
    assert out.dtype == jnp.float32
    assert bool(jnp.all(jnp.isfinite(out)))
    print("KERNEL_OK")
</pallas_src>

<mosaic_0001>
module attributes {stable_mosaic.version = 11 : i64} {
  func.func @kernel(%arg0: i32, %arg1: memref<800x128xbf16, #tpu.memory_space<vmem>>, %arg2: memref<128x128xbf16, #tpu.memory_space<vmem>>, %arg3: memref<1x128xf32, #tpu.memory_space<vmem>>, %arg4: memref<25x128x128xbf16, #tpu.memory_space<vmem>>, %arg5: memref<1x128xf32, #tpu.memory_space<vmem>>, %arg6: memref<1152x512xbf16, #tpu.memory_space<vmem>>, %arg7: memref<1x512xf32, #tpu.memory_space<vmem>>, %arg8: memref<512x128xbf16, #tpu.memory_space<vmem>>, %arg9: memref<1x128xf32, #tpu.memory_space<vmem>>, %arg10: memref<2x128xf32, #tpu.memory_space<vmem>>, %arg11: memref<800x128xf32, #tpu.memory_space<vmem>>, %arg12: memref<200x128xf32, #tpu.memory_space<vmem>>, %arg13: memref<56x128xf32, #tpu.memory_space<vmem>>, %arg14: memref<2x1152xf32, #tpu.memory_space<vmem>>) attributes {dimension_semantics = [#tpu.dimension_semantics<arbitrary>], iteration_bounds = array<i64: 4>, scalar_prefetch = 0 : i64, scratch_operands = 4 : i64, tpu.core_type = #tpu.core_type<tc>, window_params = [{pipeline_mode = #tpu.pipeline_mode<synchronous>, transform_indices = @transform_0, window_bounds = array<i64: 800, 128>}, {pipeline_mode = #tpu.pipeline_mode<synchronous>, transform_indices = @transform_1, window_bounds = array<i64: 128, 128>}, {pipeline_mode = #tpu.pipeline_mode<synchronous>, transform_indices = @transform_2, window_bounds = array<i64: 1, 128>}, {pipeline_mode = #tpu.pipeline_mode<synchronous>, transform_indices = @transform_3, window_bounds = array<i64: 25, 128, 128>}, {pipeline_mode = #tpu.pipeline_mode<synchronous>, transform_indices = @transform_4, window_bounds = array<i64: 1, 128>}, {transform_indices = @transform_5, window_bounds = array<i64: 1152, 512>}, {transform_indices = @transform_6, window_bounds = array<i64: 1, 512>}, {transform_indices = @transform_7, window_bounds = array<i64: 512, 128>}, {pipeline_mode = #tpu.pipeline_mode<synchronous>, transform_indices = @transform_8, window_bounds = array<i64: 1, 128>}, {pipeline_mode = #tpu.pipeline_mode<synchronous>, transform_indices = @transform_9, window_bounds = array<i64: 2, 128>}]} {
    %c0_i32 = arith.constant 0 : i32
    %0 = arith.cmpi eq, %arg0, %c0_i32 : i32
    %1 = arith.extui %0 : i1 to i32
    %c0_i32_0 = arith.constant 0 : i32
    %2 = arith.cmpi ne, %1, %c0_i32_0 : i32
    scf.if %2 {
      %c0_13 = arith.constant 0 : index
      %c0_14 = arith.constant 0 : index
      %16 = vector.load %arg1[%c0_13, %c0_14] : memref<800x128xbf16, #tpu.memory_space<vmem>>, vector<800x128xbf16>
      %c0_15 = arith.constant 0 : index
      %c0_16 = arith.constant 0 : index
      %17 = vector.load %arg2[%c0_15, %c0_16] : memref<128x128xbf16, #tpu.memory_space<vmem>>, vector<128x128xbf16>
      %cst_17 = arith.constant dense<0.000000e+00> : vector<800x128xf32>
      %18 = tpu.matmul %16, %17, %cst_17 {dimension_numbers = #tpu.dot_dimension_numbers<[1], [0], [0], [1], [0, 0, 1, 1], [], []>} : vector<800x128xbf16>, vector<128x128xbf16>, vector<800x128xf32> -> vector<800x128xf32>
      %c0_18 = arith.constant 0 : index
      %c0_19 = arith.constant 0 : index
      %19 = vector.load %arg11[%c0_18, %c0_19] : memref<800x128xf32, #tpu.memory_space<vmem>>, vector<800x128xf32>
      tpu.vector_store %arg11[%c0_18, %c0_19], %18 {strides = array<i32>} : memref<800x128xf32, #tpu.memory_space<vmem>>, vector<800x128xf32>,
      %c0_20 = arith.constant 0 : index
      %c0_21 = arith.constant 0 : index
      %20 = vector.load %arg3[%c0_20, %c0_21] : memref<1x128xf32, #tpu.memory_space<vmem>>, vector<1x128xf32>
      %c0_22 = arith.constant 0 : index
      %c0_23 = arith.constant 0 : index
      %21 = vector.load %arg5[%c0_22, %c0_23] : memref<1x128xf32, #tpu.memory_space<vmem>>, vector<1x128xf32>
      %c0_24 = arith.constant 0 : index
      %c0_25 = arith.constant 0 : index
      %22 = tpu.strided_load %arg11[%c0_24, %c0_25] {strides = array<i32: 2, 1>} : memref<800x128xf32, #tpu.memory_space<vmem>>, vector<10x128xf32>
      %c1 = arith.constant 1 : index
      %c0_26 = arith.constant 0 : index
      %23 = tpu.strided_load %arg11[%c1, %c0_26] {strides = array<i32: 2, 1>} : memref<800x128xf32, #tpu.memory_space<vmem>>, vector<10x128xf32>
      %c20 = arith.constant 20 : index
      %c0_27 = arith.constant 0 : index
      %24 = tpu.strided_load %arg11[%c20, %c0_27] {strides = array<i32: 2, 1>} : memref<800x128xf32, #tpu.memory_space<vmem>>, vector<10x128xf32>
      %c21 = arith.constant 21 : index
      %c0_28 = arith.constant 0 : index
      %25 = tpu.strided_load %arg11[%c21, %c0_28] {strides = array<i32: 2, 1>} : memref<800x128xf32, #tpu.memory_space<vmem>>, vector<10x128xf32>
      %26 = arith.maximumf %22, %23 : vector<10x128xf32>
      %27 = arith.maximumf %24, %25 : vector<10x128xf32>
      %28 = arith.maximumf %26, %27 : vector<10x128xf32>
      %29 = vector.broadcast %20 : vector<1x128xf32> to vector<10x128xf32>
      %30 = arith.addf %28, %29 : vector<10x128xf32>
      %c0_29 = arith.constant 0 : index
      %c0_30 = arith.constant 0 : index
      %31 = vector.load %arg12[%c0_29, %c0_30] : memref<200x128xf32, #tpu.memory_space<vmem>>, vector<10x128xf32>
      tpu.vector_store %arg12[%c0_29, %c0_30], %30 {strides = array<i32>} : memref<200x128xf32, #tpu.memory_space<vmem>>, vector<10x128xf32>,
      %c40 = arith.constant 40 : index
      %c0_31 = arith.constant 0 : index
      %32 = tpu.strided_load %arg11[%c40, %c0_31] {strides = array<i32: 2, 1>} : memref<800x128xf32, #tpu.memory_space<vmem>>, vector<10x128xf32>
      %c41 = arith.constant 41 : index
      %c0_32 = arith.constant 0 : index
      %33 = tpu.strided_load %arg11[%c41, %c0_32] {strides = array<i32: 2, 1>} : memref<800x128xf32, #tpu.memory_space<vmem>>, vector<10x128xf32>
      %c60 = arith.constant 60 : index
      %c0_33 = arith.constant 0 : index
      %34 = tpu.strided_load %arg11[%c60, %c0_33] {strides = array<i32: 2, 1>} : memref<800x128xf32, #tpu.memory_space<vmem>>, vector<10x128xf32>
      %c61 = arith.constant 61 : index
      %c0_34 = arith.constant 0 : index
      %35 = tpu.strided_load %arg11[%c61, %c0_34] {strides = array<i32: 2, 1>} : memref<800x128xf32, #tpu.memory_space<vmem>>, vector<10x128xf32>
      %36 = arith.maximumf %32, %33 : vector<10x128xf32>
      %37 = arith.maximumf %34, %35 : vector<10x128xf32>
      %38 = arith.maximumf %36, %37 : vector<10x128xf32>
      %39 = vector.broadcast %20 : vector<1x128xf32> to vector<10x128xf32>
      %40 = arith.addf %38, %39 : vector<10x128xf32>
      %c10 = arith.constant 10 : index
      %c0_35 = arith.constant 0 : index
      %41 = vector.load %arg12[%c10, %c0_35] : memref<200x128xf32, #tpu.memory_space<vmem>>, vector<10x128xf32>
      tpu.vector_store %arg12[%c10, %c0_35], %40 {strides = array<i32>} : memref<200x128xf32, #tpu.memory_space<vmem>>, vector<10x128xf32>,
      %c80 = arith.constant 80 : index
      %c0_36 = arith.constant 0 : index
      %42 = tpu.strided_load %arg11[%c80, %c0_36] {strides = array<i32: 2, 1>} : memref<800x128xf32, #tpu.memory_space<vmem>>, vector<10x128xf32>
      %c81 = arith.constant 81 : index
      %c0_37 = arith.constant 0 : index
      %43 = tpu.strided_load %arg11[%c81, %c0_37] {strides = array<i32: 2, 1>} : memref<800x128xf32, #tpu.memory_space<vmem>>, vector<10x128xf32>
      %c100 = arith.constant 100 : index
      %c0_38 = arith.constant 0 : index
      %44 = tpu.strided_load %arg11[%c100, %c0_38] {strides = array<i32: 2, 1>} : memref<800x128xf32, #tpu.memory_space<vmem>>, vector<10x128xf32>
      %c101 = arith.constant 101 : index
      %c0_39 = arith.constant 0 : index
      %45 = tpu.strided_load %arg11[%c101, %c0_39] {strides = array<i32: 2, 1>} : memref<800x128xf32, #tpu.memory_space<vmem>>, vector<10x128xf32>
      %46 = arith.maximumf %42, %43 : vector<10x128xf32>
      %47 = arith.maximumf %44, %45 : vector<10x128xf32>
      %48 = arith.maximumf %46, %47 : vector<10x128xf32>
      %49 = vector.broadcast %20 : vector<1x128xf32> to vector<10x128xf32>
      %50 = arith.addf %48, %49 : vector<10x128xf32>
      %c20_40 = arith.constant 20 : index
      %c0_41 = arith.constant 0 : index
      %51 = vector.load %arg12[%c20_40, %c0_41] : memref<200x128xf32, #tpu.memory_space<vmem>>, vector<10x128xf32>
      tpu.vector_store %arg12[%c20_40, %c0_41], %50 {strides = array<i32>} : memref<200x128xf32, #tpu.memory_space<vmem>>, vector<10x128xf32>,
      %c120 = arith.constant 120 : index
      %c0_42 = arith.constant 0 : index
      %52 = tpu.strided_load %arg11[%c120, %c0_42] {strides = array<i32: 2, 1>} : memref<800x128xf32, #tpu.memory_space<vmem>>, vector<10x128xf32>
      %c121 = arith.constant 121 : index
      %c0_43 = arith.constant 0 : index
      %53 = tpu.strided_load %arg11[%c121, %c0_43] {strides = array<i32: 2, 1>} : memref<800x128xf32, #tpu.memory_space<vmem>>, vector<10x128xf32>
      %c140 = arith.constant 140 : index
      %c0_44 = arith.constant 0 : index
      %54 = tpu.strided_load %arg11[%c140, %c0_44] {strides = array<i32: 2, 1>} : memref<800x128xf32, #tpu.memory_space<vmem>>, vector<10x128xf32>
      %c141 = arith.constant 141 : index
      %c0_45 = arith.constant 0 : index
      %55 = tpu.strided_load %arg11[%c141, %c0_45] {strides = array<i32: 2, 1>} : memref<800x128xf32, #tpu.memory_space<vmem>>, vector<10x128xf32>
      %56 = arith.maximumf %52, %53 : vector<10x128xf32>
      %57 = arith.maximumf %54, %55 : vector<10x128xf32>
      %58 = arith.maximumf %56, %57 : vector<10x128xf32>
      %59 = vector.broadcast %20 : vector<1x128xf32> to vector<10x128xf32>
      %60 = arith.addf %58, %59 : vector<10x128xf32>
      %c30 = arith.constant 30 : index
      %c0_46 = arith.constant 0 : index
      %61 = vector.load %arg12[%c30, %c0_46] : memref<200x128xf32, #tpu.memory_space<vmem>>, vector<10x128xf32>
      tpu.vector_store %arg12[%c30, %c0_46], %60 {strides = array<i32>} : memref<200x128xf32, #tpu.memory_space<vmem>>, vector<10x128xf32>,
      %c160 = arith.constant 160 : index
      %c0_47 = arith.constant 0 : index
      %62 = tpu.strided_load %arg11[%c160, %c0_47] {strides = array<i32: 2, 1>} : memref<800x128xf32, #tpu.memory_space<vmem>>, vector<10x128xf32>
      %c161 = arith.constant 161 : index
      %c0_48 = arith.constant 0 : index
      %63 = tpu.strided_load %arg11[%c161, %c0_48] {strides = array<i32: 2, 1>} : memref<800x128xf32, #tpu.memory_space<vmem>>, vector<10x128xf32>
      %c180 = arith.constant 180 : index
      %c0_49 = arith.constant 0 : index
      %64 = tpu.strided_load %arg11[%c180, %c0_49] {strides = array<i32: 2, 1>} : memref<800x128xf32, #tpu.memory_space<vmem>>, vector<10x128xf32>
      %c181 = arith.constant 181 : index
      %c0_50 = arith.constant 0 : index
      %65 = tpu.strided_load %arg11[%c181, %c0_50] {strides = array<i32: 2, 1>} : memref<800x128xf32, #tpu.memory_space<vmem>>, vector<10x128xf32>
      %66 = arith.maximumf %62, %63 : vector<10x128xf32>
      %67 = arith.maximumf %64, %65 : vector<10x128xf32>
      %68 = arith.maximumf %66, %67 : vector<10x128xf32>
      %69 = vector.broadcast %20 : vector<1x128xf32> to vector<10x128xf32>
      %70 = arith.addf %68, %69 : vector<10x128xf32>
      %c40_51 = arith.constant 40 : index
      %c0_52 = arith.constant 0 : index
      %71 = vector.load %arg12[%c40_51, %c0_52] : memref<200x128xf32, #tpu.memory_space<vmem>>, vector<10x128xf32>
      tpu.vector_store %arg12[%c40_51, %c0_52], %70 {strides = array<i32>} : memref<200x128xf32, #tpu.memory_space<vmem>>, vector<10x128xf32>,
      %c200 = arith.constant 200 : index
      %c0_53 = arith.constant 0 : index
      %72 = tpu.strided_load %arg11[%c200, %c0_53] {strides = array<i32: 2, 1>} : memref<800x128xf32, #tpu.memory_space<vmem>>, vector<10x128xf32>
      %c201 = arith.constant 201 : index
      %c0_54 = arith.constant 0 : index
      %73 = tpu.strided_load %arg11[%c201, %c0_54] {strides = array<i32: 2, 1>} : memref<800x128xf32, #tpu.memory_space<vmem>>, vector<10x128xf32>
      %c220 = arith.constant 220 : index
      %c0_55 = arith.constant 0 : index
      %74 = tpu.strided_load %arg11[%c220, %c0_55] {strides = array<i32: 2, 1>} : memref<800x128xf32, #tpu.memory_space<vmem>>, vector<10x128xf32>
      %c221 = arith.constant 221 : index
      %c0_56 = arith.constant 0 : index
      %75 = tpu.strided_load %arg11[%c221, %c0_56] {strides = array<i32: 2, 1>} : memref<800x128xf32, #tpu.memory_space<vmem>>, vector<10x128xf32>
      %76 = arith.maximumf %72, %73 : vector<10x128xf32>
      %77 = arith.maximumf %74, %75 : vector<10x128xf32>
      %78 = arith.maximumf %76, %77 : vector<10x128xf32>
      %79 = vector.broadcast %20 : vector<1x128xf32> to vector<10x128xf32>
      %80 = arith.addf %78, %79 : vector<10x128xf32>
      %c50 = arith.constant 50 : index
      %c0_57 = arith.constant 0 : index
      %81 = vector.load %arg12[%c50, %c0_57] : memref<200x128xf32, #tpu.memory_space<vmem>>, vector<10x128xf32>
      tpu.vector_store %arg12[%c50, %c0_57], %80 {strides = array<i32>} : memref<200x128xf32, #tpu.memory_space<vmem>>, vector<10x128xf32>,
      %c240 = arith.constant 240 : index
      %c0_58 = arith.constant 0 : index
      %82 = tpu.strided_load %arg11[%c240, %c0_58] {strides = array<i32: 2, 1>} : memref<800x128xf32, #tpu.memory_space<vmem>>, vector<10x128xf32>
      %c241 = arith.constant 241 : index
      %c0_59 = arith.constant 0 : index
      %83 = tpu.strided_load %arg11[%c241, %c0_59] {strides = array<i32: 2, 1>} : memref<800x128xf32, #tpu.memory_space<vmem>>, vector<10x128xf32>
      %c260 = arith.constant 260 : index
      %c0_60 = arith.constant 0 : index
      %84 = tpu.strided_load %arg11[%c260, %c0_60] {strides = array<i32: 2, 1>} : memref<800x128xf32, #tpu.memory_space<vmem>>, vector<10x128xf32>
      %c261 = arith.constant 261 : index
      %c0_61 = arith.constant 0 : index
      %85 = tpu.strided_load %arg11[%c261, %c0_61] {strides = array<i32: 2, 1>} : memref<800x128xf32, #tpu.memory_space<vmem>>, vector<10x128xf32>
      %86 = arith.maximumf %82, %83 : vector<10x128xf32>
      %87 = arith.maximumf %84, %85 : vector<10x128xf32>
      %88 = arith.maximumf %86, %87 : vector<10x128xf32>
      %89 = vector.broadcast %20 : vector<1x128xf32> to vector<10x128xf32>
      %90 = arith.addf %88, %89 : vector<10x128xf32>
      %c60_62 = arith.constant 60 : index
      %c0_63 = arith.constant 0 : index
      %91 = vector.load %arg12[%c60_62, %c0_63] : memref<200x128xf32, #tpu.memory_space<vmem>>, vector<10x128xf32>
      tpu.vector_store %arg12[%c60_62, %c0_63], %90 {strides = array<i32>} : memref<200x128xf32, #tpu.memory_space<vmem>>, vector<10x128xf32>,
      %c280 = arith.constant 280 : index
      %c0_64 = arith.constant 0 : index
      %92 = tpu.strided_load %arg11[%c280, %c0_64] {strides = array<i32: 2, 1>} : memref<800x128xf32, #tpu.memory_space<vmem>>, vector<10x128xf32>
      %c281 = arith.constant 281 : index
      %c0_65 = arith.constant 0 : index
      %93 = tpu.strided_load %arg11[%c281, %c0_65] {strides = array<i32: 2, 1>} : memref<800x128xf32, #tpu.memory_space<vmem>>, vector<10x128xf32>
      %c300 = arith.constant 300 : index
      %c0_66 = arith.constant 0 : index
      %94 = tpu.strided_load %arg11[%c300, %c0_66] {strides = array<i32: 2, 1>} : memref<800x128xf32, #tpu.memory_space<vmem>>, vector<10x128xf32>
      %c301 = arith.constant 301 : index
      %c0_67 = arith.constant 0 : index
      %95 = tpu.strided_load %arg11[%c301, %c0_67] {strides = array<i32: 2, 1>} : memref<800x128xf32, #tpu.memory_space<vmem>>, vector<10x128xf32>
      %96 = arith.maximumf %92, %93 : vector<10x128xf32>
      %97 = arith.maximumf %94, %95 : vector<10x128xf32>
      %98 = arith.maximumf %96, %97 : vector<10x128xf32>
      %99 = vector.broadcast %20 : vector<1x128xf32> to vector<10x128xf32>
      %100 = arith.addf %98, %99 : vector<10x128xf32>
      %c70 = arith.constant 70 : index
      %c0_68 = arith.constant 0 : index
      %101 = vector.load %arg12[%c70, %c0_68] : memref<200x128xf32, #tpu.memory_space<vmem>>, vector<10x128xf32>
      tpu.vector_store %arg12[%c70, %c0_68], %100 {strides = array<i32>} : memref<200x128xf32, #tpu.memory_space<vmem>>, vector<10x128xf32>,
      %c320 = arith.constant 320 : index
      %c0_69 = arith.constant 0 : index
      %102 = tpu.strided_load %arg11[%c320, %c0_69] {strides = array<i32: 2, 1>} : memref<800x128xf32, #tpu.memory_space<vmem>>, vector<10x128xf32>
      %c321 = arith.constant 321 : index
      %c0_70 = arith.constant 0 : index
      %103 = tpu.strided_load %arg11[%c321, %c0_70] {strides = array<i32: 2, 1>} : memref<800x128xf32, #tpu.memory_space<vmem>>, vector<10x128xf32>
      %c340 = arith.constant 340 : index
      %c0_71 = arith.constant 0 : index
      %104 = tpu.strided_load %arg11[%c340, %c0_71] {strides = array<i32: 2, 1>} : memref<800x128xf32, #tpu.memory_space<vmem>>, vector<10x128xf32>
      %c341 = arith.constant 341 : index
      %c0_72 = arith.constant 0 : index
      %105 = tpu.strided_load %arg11[%c341, %c0_72] {strides = array<i32: 2, 1>} : memref<800x128xf32, #tpu.memory_space<vmem>>, vector<10x128xf32>
      %106 = arith.maximumf %102, %103 : vector<10x128xf32>
      %107 = arith.maximumf %104, %105 : vector<10x128xf32>
      %108 = arith.maximumf %106, %107 : vector<10x128xf32>
      %109 = vector.broadcast %20 : vector<1x128xf32> to vector<10x128xf32>
      %110 = arith.addf %108, %109 : vector<10x128xf32>
      %c80_73 = arith.constant 80 : index
      %c0_74 = arith.constant 0 : index
      %111 = vector.load %arg12[%c80_73, %c0_74] : memref<200x128xf32, #tpu.memory_space<vmem>>, vector<10x128xf32>
      tpu.vector_store %arg12[%c80_73, %c0_74], %110 {strides = array<i32>} : memref<200x128xf32, #tpu.memory_space<vmem>>, vector<10x128xf32>,
      %c360 = arith.constant 360 : index
      %c0_75 = arith.constant 0 : index
      %112 = tpu.strided_load %arg11[%c360, %c0_75] {strides = array<i32: 2, 1>} : memref<800x128xf32, #tpu.memory_space<vmem>>, vector<10x128xf32>
      %c361 = arith.constant 361 : index
      %c0_76 = arith.constant 0 : index
      %113 = tpu.strided_load %arg11[%c361, %c0_76] {strides = array<i32: 2, 1>} : memref<800x128xf32, #tpu.memory_space<vmem>>, vector<10x128xf32>
      %c380 = arith.constant 380 : index
      %c0_77 = arith.constant 0 : index
      %114 = tpu.strided_load %arg11[%c380, %c0_77] {strides = array<i32: 2, 1>} : memref<800x128xf32, #tpu.memory_space<vmem>>, vector<10x128xf32>
      %c381 = arith.constant 381 : index
      %c0_78 = arith.constant 0 : index
      %115 = tpu.strided_load %arg11[%c381, %c0_78] {strides = array<i32: 2, 1>} : memref<800x128xf32, #tpu.memory_space<vmem>>, vector<10x128xf32>
      %116 = arith.maximumf %112, %113 : vector<10x128xf32>
      %117 = arith.maximumf %114, %115 : vector<10x128xf32>
      %118 = arith.maximumf %116, %117 : vector<10x128xf32>
      %119 = vector.broadcast %20 : vector<1x128xf32> to vector<10x128xf32>
      %120 = arith.addf %118, %119 : vector<10x128xf32>
      %c90 = arith.constant 90 : index
      %c0_79 = arith.constant 0 : index
      %121 = vector.load %arg12[%c90, %c0_79] : memref<200x128xf32, #tpu.memory_space<vmem>>, vector<10x128xf32>
      tpu.vector_store %arg12[%c90, %c0_79], %120 {strides = array<i32>} : memref<200x128xf32, #tpu.memory_space<vmem>>, vector<10x128xf32>,
      %cst_80 = arith.constant 0.000000e+00 : f32
      %122 = vector.broadcast %cst_80 : f32 to vector<56x128xf32>
      %c0_81 = arith.constant 0 : index
      %c0_82 = arith.constant 0 : index
      %123 = vector.load %arg12[%c0_81, %c0_82] : memref<200x128xf32, #tpu.memory_space<vmem>>, vector<56x128xf32>
      %124 = arith.truncf %123 : vector<56x128xf32> to vector<56x128xbf16>
      %c0_83 = arith.constant 0 : index
      %c0_84 = arith.constant 0 : index
      %c0_85 = arith.constant 0 : index
      %125 = vector.load %arg4[%c0_83, %c0_84, %c0_85] : memref<25x128x128xbf16, #tpu.memory_space<vmem>>, vector<1x128x128xbf16>
      %126 = vector.shape_cast %125 : vector<1x128x128xbf16> to vector<128x128xbf16>
      %cst_86 = arith.constant dense<0.000000e+00> : vector<56x128xf32>
      %127 = tpu.matmul %124, %126, %cst_86 {dimension_numbers = #tpu.dot_dimension_numbers<[1], [0], [0], [1], [0, 0, 1, 1], [], []>} : vector<56x128xbf16>, vector<128x128xbf16>, vector<56x128xf32> -> vector<56x128xf32>
      %128 = arith.addf %122, %127 : vector<56x128xf32>
      %c1_87 = arith.constant 1 : index
      %c0_88 = arith.constant 0 : index
      %129 = vector.load %arg12[%c1_87, %c0_88] : memref<200x128xf32, #tpu.memory_space<vmem>>, vector<56x128xf32>
      %130 = arith.truncf %129 : vector<56x128xf32> to vector<56x128xbf16>
      %c1_89 = arith.constant 1 : index
      %c0_90 = arith.constant 0 : index
      %c0_91 = arith.constant 0 : index
      %131 = vector.load %arg4[%c1_89, %c0_90, %c0_91] : memref<25x128x128xbf16, #tpu.memory_space<vmem>>, vector<1x128x128xbf16>
      %132 = vector.shape_cast %131 : vector<1x128x128xbf16> to vector<128x128xbf16>
      %cst_92 = arith.constant dense<0.000000e+00> : vector<56x128xf32>
      %133 = tpu.matmul %130, %132, %cst_92 {dimension_numbers = #tpu.dot_dimension_numbers<[1], [0], [0], [1], [0, 0, 1, 1], [], []>} : vector<56x128xbf16>, vector<128x128xbf16>, vector<56x128xf32> -> vector<56x128xf32>
      %134 = arith.addf %128, %133 : vector<56x128xf32>
      %c2 = arith.constant 2 : index
      %c0_93 = arith.constant 0 : index
      %135 = vector.load %arg12[%c2, %c0_93] : memref<200x128xf32, #tpu.memory_space<vmem>>, vector<56x128xf32>
      %136 = arith.truncf %135 : vector<56x128xf32> to vector<56x128xbf16>
      %c2_94 = arith.constant 2 : index
      %c0_95 = arith.constant 0 : index
      %c0_96 = arith.constant 0 : index
      %137 = vector.load %arg4[%c2_94, %c0_95, %c0_96] : memref<25x128x128xbf16, #tpu.memory_space<vmem>>, vector<1x128x128xbf16>
      %138 = vector.shape_cast %137 : vector<1x128x128xbf16> to vector<128x128xbf16>
      %cst_97 = arith.constant dense<0.000000e+00> : vector<56x128xf32>
      %139 = tpu.matmul %136, %138, %cst_97 {dimension_numbers = #tpu.dot_dimension_numbers<[1], [0], [0], [1], [0, 0, 1, 1], [], []>} : vector<56x128xbf16>, vector<128x128xbf16>, vector<56x128xf32> -> vector<56x128xf32>
      %140 = arith.addf %134, %139 : vector<56x128xf32>
      %c3 = arith.constant 3 : index
      %c0_98 = arith.constant 0 : index
      %141 = vector.load %arg12[%c3, %c0_98] : memref<200x128xf32, #tpu.memory_space<vmem>>, vector<56x128xf32>
      %142 = arith.truncf %141 : vector<56x128xf32> to vector<56x128xbf16>
      %c3_99 = arith.constant 3 : index
      %c0_100 = arith.constant 0 : index
      %c0_101 = arith.constant 0 : index
      %143 = vector.load %arg4[%c3_99, %c0_100, %c0_101] : memref<25x128x128xbf16, #tpu.memory_space<vmem>>, vector<1x128x128xbf16>
      %144 = vector.shape_cast %143 : vector<1x128x128xbf16> to vector<128x128xbf16>
      %cst_102 = arith.constant dense<0.000000e+00> : vector<56x128xf32>
      %145 = tpu.matmul %142, %144, %cst_102 {dimension_numbers = #tpu.dot_dimension_numbers<[1], [0], [0], [1], [0, 0, 1, 1], [], []>} : vector<56x128xbf16>, vector<128x128xbf16>, vector<56x128xf32> -> vector<56x128xf32>
      %146 = arith.addf %140, %145 : vector<56x128xf32>
      %c4 = arith.constant 4 : index
      %c0_103 = arith.constant 0 : index
      %147 = vector.load %arg12[%c4, %c0_103] : memref<200x128xf32, #tpu.memory_space<vmem>>, vector<56x128xf32>
      %148 = arith.truncf %147 : vector<56x128xf32> to vector<56x128xbf16>
      %c4_104 = arith.constant 4 : index
      %c0_105 = arith.constant 0 : index
      %c0_106 = arith.constant 0 : index
      %149 = vector.load %arg4[%c4_104, %c0_105, %c0_106] : memref<25x128x128xbf16, #tpu.memory_space<vmem>>, vector<1x128x128xbf16>
      %150 = vector.shape_cast %149 : vector<1x128x128xbf16> to vector<128x128xbf16>
      %cst_107 = arith.constant dense<0.000000e+00> : vector<56x128xf32>
      %151 = tpu.matmul %148, %150, %cst_107 {dimension_numbers = #tpu.dot_dimension_numbers<[1], [0], [0], [1], [0, 0, 1, 1], [], []>} : vector<56x128xbf16>, vector<128x128xbf16>, vector<56x128xf32> -> vector<56x128xf32>
      %152 = arith.addf %146, %151 : vector<56x128xf32>
      %c10_108 = arith.constant 10 : index
      %c0_109 = arith.constant 0 : index
      %153 = vector.load %arg12[%c10_108, %c0_109] : memref<200x128xf32, #tpu.memory_space<vmem>>, vector<56x128xf32>
      %154 = arith.truncf %153 : vector<56x128xf32> to vector<56x128xbf16>
      %c5 = arith.constant 5 : index
      %c0_110 = arith.constant 0 : index
      %c0_111 = arith.constant 0 : index
      %155 = vector.load %arg4[%c5, %c0_110, %c0_111] : memref<25x128x128xbf16, #tpu.memory_space<vmem>>, vector<1x128x128xbf16>
      %156 = vector.shape_cast %155 : vector<1x128x128xbf16> to vector<128x128xbf16>
      %cst_112 = arith.constant dense<0.000000e+00> : vector<56x128xf32>
      %157 = tpu.matmul %154, %156, %cst_112 {dimension_numbers = #tpu.dot_dimension_numbers<[1], [0], [0], [1], [0, 0, 1, 1], [], []>} : vector<56x128xbf16>, vector<128x128xbf16>, vector<56x128xf32> -> vector<56x128xf32>
      %158 = arith.addf %152, %157 : vector<56x128xf32>
      %c11 = arith.constant 11 : index
      %c0_113 = arith.constant 0 : index
      %159 = vector.load %arg12[%c11, %c0_113] : memref<200x128xf32, #tpu.memory_space<vmem>>, vector<56x128xf32>
      %160 = arith.truncf %159 : vector<56x128xf32> to vector<56x128xbf16>
      %c6 = arith.constant 6 : index
      %c0_114 = arith.constant 0 : index
      %c0_115 = arith.constant 0 : index
      %161 = vector.load %arg4[%c6, %c0_114, %c0_115] : memref<25x128x128xbf16, #tpu.memory_space<vmem>>, vector<1x128x128xbf16>
      %162 = vector.shape_cast %161 : vector<1x128x128xbf16> to vector<128x128xbf16>
      %cst_116 = arith.constant dense<0.000000e+00> : vector<56x128xf32>
      %163 = tpu.matmul %160, %162, %cst_116 {dimension_numbers = #tpu.dot_dimension_numbers<[1], [0], [0], [1], [0, 0, 1, 1], [], []>} : vector<56x128xbf16>, vector<128x128xbf16>, vector<56x128xf32> -> vector<56x128xf32>
      %164 = arith.addf %158, %163 : vector<56x128xf32>
      %c12 = arith.constant 12 : index
      %c0_117 = arith.constant 0 : index
      %165 = vector.load %arg12[%c12, %c0_117] : memref<200x128xf32, #tpu.memory_space<vmem>>, vector<56x128xf32>
      %166 = arith.truncf %165 : vector<56x128xf32> to vector<56x128xbf16>
      %c7 = arith.constant 7 : index
      %c0_118 = arith.constant 0 : index
      %c0_119 = arith.constant 0 : index
      %167 = vector.load %arg4[%c7, %c0_118, %c0_119] : memref<25x128x128xbf16, #tpu.memory_space<vmem>>, vector<1x128x128xbf16>
      %168 = vector.shape_cast %167 : vector<1x128x128xbf16> to vector<128x128xbf16>
      %cst_120 = arith.constant dense<0.000000e+00> : vector<56x128xf32>
      %169 = tpu.matmul %166, %168, %cst_120 {dimension_numbers = #tpu.dot_dimension_numbers<[1], [0], [0], [1], [0, 0, 1, 1], [], []>} : vector<56x128xbf16>, vector<128x128xbf16>, vector<56x128xf32> -> vector<56x128xf32>
      %170 = arith.addf %164, %169 : vector<56x128xf32>
      %c13 = arith.constant 13 : index
      %c0_121 = arith.constant 0 : index
      %171 = vector.load %arg12[%c13, %c0_121] : memref<200x128xf32, #tpu.memory_space<vmem>>, vector<56x128xf32>
      %172 = arith.truncf %171 : vector<56x128xf32> to vector<56x128xbf16>
      %c8 = arith.constant 8 : index
      %c0_122 = arith.constant 0 : index
      %c0_123 = arith.constant 0 : index
      %173 = vector.load %arg4[%c8, %c0_122, %c0_123] : memref<25x128x128xbf16, #tpu.memory_space<vmem>>, vector<1x128x128xbf16>
      %174 = vector.shape_cast %173 : vector<1x128x128xbf16> to vector<128x128xbf16>
      %cst_124 = arith.constant dense<0.000000e+00> : vector<56x128xf32>
      %175 = tpu.matmul %172, %174, %cst_124 {dimension_numbers = #tpu.dot_dimension_numbers<[1], [0], [0], [1], [0, 0, 1, 1], [], []>} : vector<56x128xbf16>, vector<128x128xbf16>, vector<56x128xf32> -> vector<56x128xf32>
      %176 = arith.addf %170, %175 : vector<56x128xf32>
      %c14 = arith.constant 14 : index
      %c0_125 = arith.constant 0 : index
      %177 = vector.load %arg12[%c14, %c0_125] : memref<200x128xf32, #tpu.memory_space<vmem>>, vector<56x128xf32>
      %178 = arith.truncf %177 : vector<56x128xf32> to vector<56x128xbf16>
      %c9 = arith.constant 9 : index
      %c0_126 = arith.constant 0 : index
      %c0_127 = arith.constant 0 : index
      %179 = vector.load %arg4[%c9, %c0_126, %c0_127] : memref<25x128x128xbf16, #tpu.memory_space<vmem>>, vector<1x128x128xbf16>
      %180 = vector.shape_cast %179 : vector<1x128x128xbf16> to vector<128x128xbf16>
      %cst_128 = arith.constant dense<0.000000e+00> : vector<56x128xf32>
      %181 = tpu.matmul %178, %180, %cst_128 {dimension_numbers = #tpu.dot_dimension_numbers<[1], [0], [0], [1], [0, 0, 1, 1], [], []>} : vector<56x128xbf16>, vector<128x128xbf16>, vector<56x128xf32> -> vector<56x128xf32>
      %182 = arith.addf %176, %181 : vector<56x128xf32>
      %c20_129 = arith.constant 20 : index
      %c0_130 = arith.constant 0 : index
      %183 = vector.load %arg12[%c20_129, %c0_130] : memref<200x128xf32, #tpu.memory_space<vmem>>, vector<56x128xf32>
      %184 = arith.truncf %183 : vector<56x128xf32> to vector<56x128xbf16>
      %c10_131 = arith.constant 10 : index
      %c0_132 = arith.constant 0 : index
      %c0_133 = arith.constant 0 : index
      %185 = vector.load %arg4[%c10_131, %c0_132, %c0_133] : memref<25x128x128xbf16, #tpu.memory_space<vmem>>, vector<1x128x128xbf16>
      %186 = vector.shape_cast %185 : vector<1x128x128xbf16> to vector<128x128xbf16>
      %cst_134 = arith.constant dense<0.000000e+00> : vector<56x128xf32>
      %187 = tpu.matmul %184, %186, %cst_134 {dimension_numbers = #tpu.dot_dimension_numbers<[1], [0], [0], [1], [0, 0, 1, 1], [], []>} : vector<56x128xbf16>, vector<128x128xbf16>, vector<56x128xf32> -> vector<56x128xf32>
      %188 = arith.addf %182, %187 : vector<56x128xf32>
      %c21_135 = arith.constant 21 : index
      %c0_136 = arith.constant 0 : index
      %189 = vector.load %arg12[%c21_135, %c0_136] : memref<200x128xf32, #tpu.memory_space<vmem>>, vector<56x128xf32>
      %190 = arith.truncf %189 : vector<56x128xf32> to vector<56x128xbf16>
      %c11_137 = arith.constant 11 : index
      %c0_138 = arith.constant 0 : index
      %c0_139 = arith.constant 0 : index
      %191 = vector.load %arg4[%c11_137, %c0_138, %c0_139] : memref<25x128x128xbf16, #tpu.memory_space<vmem>>, vector<1x128x128xbf16>
      %192 = vector.shape_cast %191 : vector<1x128x128xbf16> to vector<128x128xbf16>
      %cst_140 = arith.constant dense<0.000000e+00> : vector<56x128xf32>
      %193 = tpu.matmul %190, %192, %cst_140 {dimension_numbers = #tpu.dot_dimension_numbers<[1], [0], [0], [1], [0, 0, 1, 1], [], []>} : vector<56x128xbf16>, vector<128x128xbf16>, vector<56x128xf32> -> vector<56x128xf32>
      %194 = arith.addf %188, %193 : vector<56x128xf32>
      %c22 = arith.constant 22 : index
      %c0_141 = arith.constant 0 : index
      %195 = vector.load %arg12[%c22, %c0_141] : memref<200x128xf32, #tpu.memory_space<vmem>>, vector<56x128xf32>
      %196 = arith.truncf %195 : vector<56x128xf32> to vector<56x128xbf16>
      %c12_142 = arith.constant 12 : index
      %c0_143 = arith.constant 0 : index
      %c0_144 = arith.constant 0 : index
      %197 = vector.load %arg4[%c12_142, %c0_143, %c0_144] : memref<25x128x128xbf16, #tpu.memory_space<vmem>>, vector<1x128x128xbf16>
      %198 = vector.shape_cast %197 : vector<1x128x128xbf16> to vector<128x128xbf16>
      %cst_145 = arith.constant dense<0.000000e+00> : vector<56x128xf32>
      %199 = tpu.matmul %196, %198, %cst_145 {dimension_numbers = #tpu.dot_dimension_numbers<[1], [0], [0], [1], [0, 0, 1, 1], [], []>} : vector<56x128xbf16>, vector<128x128xbf16>, vector<56x128xf32> -> vector<56x128xf32>
      %200 = arith.addf %194, %199 : vector<56x128xf32>
      %c23 = arith.constant 23 : index
      %c0_146 = arith.constant 0 : index
      %201 = vector.load %arg12[%c23, %c0_146] : memref<200x128xf32, #tpu.memory_space<vmem>>, vector<56x128xf32>
      %202 = arith.truncf %201 : vector<56x128xf32> to vector<56x128xbf16>
      %c13_147 = arith.constant 13 : index
      %c0_148 = arith.constant 0 : index
      %c0_149 = arith.constant 0 : index
      %203 = vector.load %arg4[%c13_147, %c0_148, %c0_149] : memref<25x128x128xbf16, #tpu.memory_space<vmem>>, vector<1x128x128xbf16>
      %204 = vector.shape_cast %203 : vector<1x128x128xbf16> to vector<128x128xbf16>
      %cst_150 = arith.constant dense<0.000000e+00> : vector<56x128xf32>
      %205 = tpu.matmul %202, %204, %cst_150 {dimension_numbers = #tpu.dot_dimension_numbers<[1], [0], [0], [1], [0, 0, 1, 1], [], []>} : vector<56x128xbf16>, vector<128x128xbf16>, vector<56x128xf32> -> vector<56x128xf32>
      %206 = arith.addf %200, %205 : vector<56x128xf32>
      %c24 = arith.constant 24 : index
      %c0_151 = arith.constant 0 : index
      %207 = vector.load %arg12[%c24, %c0_151] : memref<200x128xf32, #tpu.memory_space<vmem>>, vector<56x128xf32>
      %208 = arith.truncf %207 : vector<56x128xf32> to vector<56x128xbf16>
      %c14_152 = arith.constant 14 : index
      %c0_153 = arith.constant 0 : index
      %c0_154 = arith.constant 0 : index
      %209 = vector.load %arg4[%c14_152, %c0_153, %c0_154] : memref<25x128x128xbf16, #tpu.memory_space<vmem>>, vector<1x128x128xbf16>
      %210 = vector.shape_cast %209 : vector<1x128x128xbf16> to vector<128x128xbf16>
      %cst_155 = arith.constant dense<0.000000e+00> : vector<56x128xf32>
      %211 = tpu.matmul %208, %210, %cst_155 {dimension_numbers = #tpu.dot_dimension_numbers<[1], [0], [0], [1], [0, 0, 1, 1], [], []>} : vector<56x128xbf16>, vector<128x128xbf16>, vector<56x128xf32> -> vector<56x128xf32>
      %212 = arith.addf %206, %211 : vector<56x128xf32>
      %c30_156 = arith.constant 30 : index
      %c0_157 = arith.constant 0 : index
      %213 = vector.load %arg12[%c30_156, %c0_157] : memref<200x128xf32, #tpu.memory_space<vmem>>, vector<56x128xf32>
      %214 = arith.truncf %213 : vector<56x128xf32> to vector<56x128xbf16>
      %c15 = arith.constant 15 : index
      %c0_158 = arith.constant 0 : index
      %c0_159 = arith.constant 0 : index
      %215 = vector.load %arg4[%c15, %c0_158, %c0_159] : memref<25x128x128xbf16, #tpu.memory_space<vmem>>, vector<1x128x128xbf16>
      %216 = vector.shape_cast %215 : vector<1x128x128xbf16> to vector<128x128xbf16>
      %cst_160 = arith.constant dense<0.000000e+00> : vector<56x128xf32>
      %217 = tpu.matmul %214, %216, %cst_160 {dimension_numbers = #tpu.dot_dimension_numbers<[1], [0], [0], [1], [0, 0, 1, 1], [], []>} : vector<56x128xbf16>, vector<128x128xbf16>, vector<56x128xf32> -> vector<56x128xf32>
      %218 = arith.addf %212, %217 : vector<56x128xf32>
      %c31 = arith.constant 31 : index
      %c0_161 = arith.constant 0 : index
      %219 = vector.load %arg12[%c31, %c0_161] : memref<200x128xf32, #tpu.memory_space<vmem>>, vector<56x128xf32>
      %220 = arith.truncf %219 : vector<56x128xf32> to vector<56x128xbf16>
      %c16 = arith.constant 16 : index
      %c0_162 = arith.constant 0 : index
      %c0_163 = arith.constant 0 : index
      %221 = vector.load %arg4[%c16, %c0_162, %c0_163] : memref<25x128x128xbf16, #tpu.memory_space<vmem>>, vector<1x128x128xbf16>
      %222 = vector.shape_cast %221 : vector<1x128x128xbf16> to vector<128x128xbf16>
      %cst_164 = arith.constant dense<0.000000e+00> : vector<56x128xf32>
      %223 = tpu.matmul %220, %222, %cst_164 {dimension_numbers = #tpu.dot_dimension_numbers<[1], [0], [0], [1], [0, 0, 1, 1], [], []>} : vector<56x128xbf16>, vector<128x128xbf16>, vector<56x128xf32> -> vector<56x128xf32>
      %224 = arith.addf %218, %223 : vector<56x128xf32>
      %c32 = arith.constant 32 : index
      %c0_165 = arith.constant 0 : index
      %225 = vector.load %arg12[%c32, %c0_165] : memref<200x128xf32, #tpu.memory_space<vmem>>, vector<56x128xf32>
      %226 = arith.truncf %225 : vector<56x128xf32> to vector<56x128xbf16>
      %c17 = arith.constant 17 : index
      %c0_166 = arith.constant 0 : index
      %c0_167 = arith.constant 0 : index
      %227 = vector.load %arg4[%c17, %c0_166, %c0_167] : memref<25x128x128xbf16, #tpu.memory_space<vmem>>, vector<1x128x128xbf16>
      %228 = vector.shape_cast %227 : vector<1x128x128xbf16> to vector<128x128xbf16>
      %cst_168 = arith.constant dense<0.000000e+00> : vector<56x128xf32>
      %229 = tpu.matmul %226, %228, %cst_168 {dimension_numbers = #tpu.dot_dimension_numbers<[1], [0], [0], [1], [0, 0, 1, 1], [], []>} : vector<56x128xbf16>, vector<128x128xbf16>, vector<56x128xf32> -> vector<56x128xf32>
      %230 = arith.addf %224, %229 : vector<56x128xf32>
      %c33 = arith.constant 33 : index
      %c0_169 = arith.constant 0 : index
      %231 = vector.load %arg12[%c33, %c0_169] : memref<200x128xf32, #tpu.memory_space<vmem>>, vector<56x128xf32>
      %232 = arith.truncf %231 : vector<56x128xf32> to vector<56x128xbf16>
      %c18 = arith.constant 18 : index
      %c0_170 = arith.constant 0 : index
      %c0_171 = arith.constant 0 : index
      %233 = vector.load %arg4[%c18, %c0_170, %c0_171] : memref<25x128x128xbf16, #tpu.memory_space<vmem>>, vector<1x128x128xbf16>
      %234 = vector.shape_cast %233 : vector<1x128x128xbf16> to vector<128x128xbf16>
      %cst_172 = arith.constant dense<0.000000e+00> : vector<56x128xf32>
      %235 = tpu.matmul %232, %234, %cst_172 {dimension_numbers = #tpu.dot_dimension_numbers<[1], [0], [0], [1], [0, 0, 1, 1], [], []>} : vector<56x128xbf16>, vector<128x128xbf16>, vector<56x128xf32> -> vector<56x128xf32>
      %236 = arith.addf %230, %235 : vector<56x128xf32>
      %c34 = arith.constant 34 : index
      %c0_173 = arith.constant 0 : index
      %237 = vector.load %arg12[%c34, %c0_173] : memref<200x128xf32, #tpu.memory_space<vmem>>, vector<56x128xf32>
      %238 = arith.truncf %237 : vector<56x128xf32> to vector<56x128xbf16>
      %c19 = arith.constant 19 : index
      %c0_174 = arith.constant 0 : index
      %c0_175 = arith.constant 0 : index
      %239 = vector.load %arg4[%c19, %c0_174, %c0_175] : memref<25x128x128xbf16, #tpu.memory_space<vmem>>, vector<1x128x128xbf16>
      %240 = vector.shape_cast %239 : vector<1x128x128xbf16> to vector<128x128xbf16>
      %cst_176 = arith.constant dense<0.000000e+00> : vector<56x128xf32>
      %241 = tpu.matmul %238, %240, %cst_176 {dimension_numbers = #tpu.dot_dimension_numbers<[1], [0], [0], [1], [0, 0, 1, 1], [], []>} : vector<56x128xbf16>, vector<128x128xbf16>, vector<56x128xf32> -> vector<56x128xf32>
      %242 = arith.addf %236, %241 : vector<56x128xf32>
      %c40_177 = arith.constant 40 : index
      %c0_178 = arith.constant 0 : index
      %243 = vector.load %arg12[%c40_177, %c0_178] : memref<200x128xf32, #tpu.memory_space<vmem>>, vector<56x128xf32>
      %244 = arith.truncf %243 : vector<56x128xf32> to vector<56x128xbf16>
      %c20_179 = arith.constant 20 : index
      %c0_180 = arith.constant 0 : index
      %c0_181 = arith.constant 0 : index
      %245 = vector.load %arg4[%c20_179, %c0_180, %c0_181] : memref<25x128x128xbf16, #tpu.memory_space<vmem>>, vector<1x128x128xbf16>
      %246 = vector.shape_cast %245 : vector<1x128x128xbf16> to vector<128x128xbf16>
      %cst_182 = arith.constant dense<0.000000e+00> : vector<56x128xf32>
      %247 = tpu.matmul %244, %246, %cst_182 {dimension_numbers = #tpu.dot_dimension_numbers<[1], [0], [0], [1], [0, 0, 1, 1], [], []>} : vector<56x128xbf16>, vector<128x128xbf16>, vector<56x128xf32> -> vector<56x128xf32>
      %248 = arith.addf %242, %247 : vector<56x128xf32>
      %c41_183 = arith.constant 41 : index
      %c0_184 = arith.constant 0 : index
      %249 = vector.load %arg12[%c41_183, %c0_184] : memref<200x128xf32, #tpu.memory_space<vmem>>, vector<56x128xf32>
      %250 = arith.truncf %249 : vector<56x128xf32> to vector<56x128xbf16>
      %c21_185 = arith.constant 21 : index
      %c0_186 = arith.constant 0 : index
      %c0_187 = arith.constant 0 : index
      %251 = vector.load %arg4[%c21_185, %c0_186, %c0_187] : memref<25x128x128xbf16, #tpu.memory_space<vmem>>, vector<1x128x128xbf16>
      %252 = vector.shape_cast %251 : vector<1x128x128xbf16> to vector<128x128xbf16>
      %cst_188 = arith.constant dense<0.000000e+00> : vector<56x128xf32>
      %253 = tpu.matmul %250, %252, %cst_188 {dimension_numbers = #tpu.dot_dimension_numbers<[1], [0], [0], [1], [0, 0, 1, 1], [], []>} : vector<56x128xbf16>, vector<128x128xbf16>, vector<56x128xf32> -> vector<56x128xf32>
      %254 = arith.addf %248, %253 : vector<56x128xf32>
      %c42 = arith.constant 42 : index
      %c0_189 = arith.constant 0 : index
      %255 = vector.load %arg12[%c42, %c0_189] : memref<200x128xf32, #tpu.memory_space<vmem>>, vector<56x128xf32>
      %256 = arith.truncf %255 : vector<56x128xf32> to vector<56x128xbf16>
      %c22_190 = arith.constant 22 : index
      %c0_191 = arith.constant 0 : index
      %c0_192 = arith.constant 0 : index
      %257 = vector.load %arg4[%c22_190, %c0_191, %c0_192] : memref<25x128x128xbf16, #tpu.memory_space<vmem>>, vector<1x128x128xbf16>
      %258 = vector.shape_cast %257 : vector<1x128x128xbf16> to vector<128x128xbf16>
      %cst_193 = arith.constant dense<0.000000e+00> : vector<56x128xf32>
      %259 = tpu.matmul %256, %258, %cst_193 {dimension_numbers = #tpu.dot_dimension_numbers<[1], [0], [0], [1], [0, 0, 1, 1], [], []>} : vector<56x128xbf16>, vector<128x128xbf16>, vector<56x128xf32> -> vector<56x128xf32>
      %260 = arith.addf %254, %259 : vector<56x128xf32>
      %c43 = arith.constant 43 : index
      %c0_194 = arith.constant 0 : index
      %261 = vector.load %arg12[%c43, %c0_194] : memref<200x128xf32, #tpu.memory_space<vmem>>, vector<56x128xf32>
      %262 = arith.truncf %261 : vector<56x128xf32> to vector<56x128xbf16>
      %c23_195 = arith.constant 23 : index
      %c0_196 = arith.constant 0 : index
      %c0_197 = arith.constant 0 : index
      %263 = vector.load %arg4[%c23_195, %c0_196, %c0_197] : memref<25x128x128xbf16, #tpu.memory_space<vmem>>, vector<1x128x128xbf16>
      %264 = vector.shape_cast %263 : vector<1x128x128xbf16> to vector<128x128xbf16>
      %cst_198 = arith.constant dense<0.000000e+00> : vector<56x128xf32>
      %265 = tpu.matmul %262, %264, %cst_198 {dimension_numbers = #tpu.dot_dimension_numbers<[1], [0], [0], [1], [0, 0, 1, 1], [], []>} : vector<56x128xbf16>, vector<128x128xbf16>, vector<56x128xf32> -> vector<56x128xf32>
      %266 = arith.addf %260, %265 : vector<56x128xf32>
      %c44 = arith.constant 44 : index
      %c0_199 = arith.constant 0 : index
      %267 = vector.load %arg12[%c44, %c0_199] : memref<200x128xf32, #tpu.memory_space<vmem>>, vector<56x128xf32>
      %268 = arith.truncf %267 : vector<56x128xf32> to vector<56x128xbf16>
      %c24_200 = arith.constant 24 : index
      %c0_201 = arith.constant 0 : index
      %c0_202 = arith.constant 0 : index
      %269 = vector.load %arg4[%c24_200, %c0_201, %c0_202] : memref<25x128x128xbf16, #tpu.memory_space<vmem>>, vector<1x128x128xbf16>
      %270 = vector.shape_cast %269 : vector<1x128x128xbf16> to vector<128x128xbf16>
      %cst_203 = arith.constant dense<0.000000e+00> : vector<56x128xf32>
      %271 = tpu.matmul %268, %270, %cst_203 {dimension_numbers = #tpu.dot_dimension_numbers<[1], [0], [0], [1], [0, 0, 1, 1], [], []>} : vector<56x128xbf16>, vector<128x128xbf16>, vector<56x128xf32> -> vector<56x128xf32>
      %272 = arith.addf %266, %271 : vector<56x128xf32>
      %c0_204 = arith.constant 0 : index
      %c0_205 = arith.constant 0 : index
      %273 = vector.load %arg13[%c0_204, %c0_205] : memref<56x128xf32, #tpu.memory_space<vmem>>, vector<56x128xf32>
      tpu.vector_store %arg13[%c0_204, %c0_205], %272 {strides = array<i32>} : memref<56x128xf32, #tpu.memory_space<vmem>>, vector<56x128xf32>,
      %c0_206 = arith.constant 0 : index
      %c0_207 = arith.constant 0 : index
      %274 = tpu.strided_load %arg13[%c0_206, %c0_207] {strides = array<i32: 2, 1>} : memref<56x128xf32, #tpu.memory_space<vmem>>, vector<3x128xf32>
      %c1_208 = arith.constant 1 : index
      %c0_209 = arith.constant 0 : index
      %275 = tpu.strided_load %arg13[%c1_208, %c0_209] {strides = array<i32: 2, 1>} : memref<56x128xf32, #tpu.memory_space<vmem>>, vector<3x128xf32>
      %c10_210 = arith.constant 10 : index
      %c0_211 = arith.constant 0 : index
      %276 = tpu.strided_load %arg13[%c10_210, %c0_211] {strides = array<i32: 2, 1>} : memref<56x128xf32, #tpu.memory_space<vmem>>, vector<3x128xf32>
      %c11_212 = arith.constant 11 : index
      %c0_213 = arith.constant 0 : index
      %277 = tpu.strided_load %arg13[%c11_212, %c0_213] {strides = array<i32: 2, 1>} : memref<56x128xf32, #tpu.memory_space<vmem>>, vector<3x128xf32>
      %278 = arith.maximumf %274, %275 : vector<3x128xf32>
      %279 = arith.maximumf %276, %277 : vector<3x128xf32>
      %280 = arith.maximumf %278, %279 : vector<3x128xf32>
      %281 = vector.broadcast %21 : vector<1x128xf32> to vector<3x128xf32>
      %282 = arith.addf %280, %281 : vector<3x128xf32>
      %283 = vector.extract_strided_slice %282 {offsets = [0, 0], sizes = [1, 128], strides = [1, 1]} : vector<3x128xf32> to vector<1x128xf32>
      %c0_214 = arith.constant 0 : index
      %c0_215 = arith.constant 0 : index
      %284 = vector.load %arg14[%c0_214, %c0_215] : memref<2x1152xf32, #tpu.memory_space<vmem>>, vector<1x128xf32>
      tpu.vector_store %arg14[%c0_214, %c0_215], %283 {strides = array<i32>} : memref<2x1152xf32, #tpu.memory_space<vmem>>, vector<1x128xf32>,
      %285 = vector.extract_strided_slice %282 {offsets = [1, 0], sizes = [1, 128], strides = [1, 1]} : vector<3x128xf32> to vector<1x128xf32>
      %c0_216 = arith.constant 0 : index
      %c128 = arith.constant 128 : index
      %286 = vector.load %arg14[%c0_216, %c128] : memref<2x1152xf32, #tpu.memory_space<vmem>>, vector<1x128xf32>
      tpu.vector_store %arg14[%c0_216, %c128], %285 {strides = array<i32>} : memref<2x1152xf32, #tpu.memory_space<vmem>>, vector<1x128xf32>,
      %287 = vector.extract_strided_slice %282 {offsets = [2, 0], sizes = [1, 128], strides = [1, 1]} : vector<3x128xf32> to vector<1x128xf32>
      %c0_217 = arith.constant 0 : index
      %c256 = arith.constant 256 : index
      %288 = vector.load %arg14[%c0_217, %c256] : memref<2x1152xf32, #tpu.memory_space<vmem>>, vector<1x128xf32>
      tpu.vector_store %arg14[%c0_217, %c256], %287 {strides = array<i32>} : memref<2x1152xf32, #tpu.memory_space<vmem>>, vector<1x128xf32>,
      %c20_218 = arith.constant 20 : index
      %c0_219 = arith.constant 0 : index
      %289 = tpu.strided_load %arg13[%c20_218, %c0_219] {strides = array<i32: 2, 1>} : memref<56x128xf32, #tpu.memory_space<vmem>>, vector<3x128xf32>
      %c21_220 = arith.constant 21 : index
      %c0_221 = arith.constant 0 : index
      %290 = tpu.strided_load %arg13[%c21_220, %c0_221] {strides = array<i32: 2, 1>} : memref<56x128xf32, #tpu.memory_space<vmem>>, vector<3x128xf32>
      %c30_222 = arith.constant 30 : index
      %c0_223 = arith.constant 0 : index
      %291 = tpu.strided_load %arg13[%c30_222, %c0_223] {strides = array<i32: 2, 1>} : memref<56x128xf32, #tpu.memory_space<vmem>>, vector<3x128xf32>
      %c31_224 = arith.constant 31 : index
      %c0_225 = arith.constant 0 : index
      %292 = tpu.strided_load %arg13[%c31_224, %c0_225] {strides = array<i32: 2, 1>} : memref<56x128xf32, #tpu.memory_space<vmem>>, vector<3x128xf32>
      %293 = arith.maximumf %289, %290 : vector<3x128xf32>
      %294 = arith.maximumf %291, %292 : vector<3x128xf32>
      %295 = arith.maximumf %293, %294 : vector<3x128xf32>
      %296 = vector.broadcast %21 : vector<1x128xf32> to vector<3x128xf32>
      %297 = arith.addf %295, %296 : vector<3x128xf32>
      %298 = vector.extract_strided_slice %297 {offsets = [0, 0], sizes = [1, 128], strides = [1, 1]} : vector<3x128xf32> to vector<1x128xf32>
      %c0_226 = arith.constant 0 : index
      %c384 = arith.constant 384 : index
      %299 = vector.load %arg14[%c0_226, %c384] : memref<2x1152xf32, #tpu.memory_space<vmem>>, vector<1x128xf32>
      tpu.vector_store %arg14[%c0_226, %c384], %298 {strides = array<i32>} : memref<2x1152xf32, #tpu.memory_space<vmem>>, vector<1x128xf32>,
      %300 = vector.extract_strided_slice %297 {offsets = [1, 0], sizes = [1, 128], strides = [1, 1]} : vector<3x128xf32> to vector<1x128xf32>
      %c0_227 = arith.constant 0 : index
      %c512 = arith.constant 512 : index
      %301 = vector.load %arg14[%c0_227, %c512] : memref<2x1152xf32, #tpu.memory_space<vmem>>, vector<1x128xf32>
      tpu.vector_store %arg14[%c0_227, %c512], %300 {strides = array<i32>} : memref<2x1152xf32, #tpu.memory_space<vmem>>, vector<1x128xf32>,
      %302 = vector.extract_strided_slice %297 {offsets = [2, 0], sizes = [1, 128], strides = [1, 1]} : vector<3x128xf32> to vector<1x128xf32>
      %c0_228 = arith.constant 0 : index
      %c640 = arith.constant 640 : index
      %303 = vector.load %arg14[%c0_228, %c640] : memref<2x1152xf32, #tpu.memory_space<vmem>>, vector<1x128xf32>
      tpu.vector_store %arg14[%c0_228, %c640], %302 {strides = array<i32>} : memref<2x1152xf32, #tpu.memory_space<vmem>>, vector<1x128xf32>,
      %c40_229 = arith.constant 40 : index
      %c0_230 = arith.constant 0 : index
      %304 = tpu.strided_load %arg13[%c40_229, %c0_230] {strides = array<i32: 2, 1>} : memref<56x128xf32, #tpu.memory_space<vmem>>, vector<3x128xf32>
      %c41_231 = arith.constant 41 : index
      %c0_232 = arith.constant 0 : index
      %305 = tpu.strided_load %arg13[%c41_231, %c0_232] {strides = array<i32: 2, 1>} : memref<56x128xf32, #tpu.memory_space<vmem>>, vector<3x128xf32>
      %c50_233 = arith.constant 50 : index
      %c0_234 = arith.constant 0 : index
      %306 = tpu.strided_load %arg13[%c50_233, %c0_234] {strides = array<i32: 2, 1>} : memref<56x128xf32, #tpu.memory_space<vmem>>, vector<3x128xf32>
      %c51 = arith.constant 51 : index
      %c0_235 = arith.constant 0 : index
      %307 = tpu.strided_load %arg13[%c51, %c0_235] {strides = array<i32: 2, 1>} : memref<56x128xf32, #tpu.memory_space<vmem>>, vector<3x128xf32>
      %308 = arith.maximumf %304, %305 : vector<3x128xf32>
      %309 = arith.maximumf %306, %307 : vector<3x128xf32>
      %310 = arith.maximumf %308, %309 : vector<3x128xf32>
      %311 = vector.broadcast %21 : vector<1x128xf32> to vector<3x128xf32>
      %312 = arith.addf %310, %311 : vector<3x128xf32>
      %313 = vector.extract_strided_slice %312 {offsets = [0, 0], sizes = [1, 128], strides = [1, 1]} : vector<3x128xf32> to vector<1x128xf32>
      %c0_236 = arith.constant 0 : index
      %c768 = arith.constant 768 : index
      %314 = vector.load %arg14[%c0_236, %c768] : memref<2x1152xf32, #tpu.memory_space<vmem>>, vector<1x128xf32>
      tpu.vector_store %arg14[%c0_236, %c768], %313 {strides = array<i32>} : memref<2x1152xf32, #tpu.memory_space<vmem>>, vector<1x128xf32>,
      %315 = vector.extract_strided_slice %312 {offsets = [1, 0], sizes = [1, 128], strides = [1, 1]} : vector<3x128xf32> to vector<1x128xf32>
      %c0_237 = arith.constant 0 : index
      %c896 = arith.constant 896 : index
      %316 = vector.load %arg14[%c0_237, %c896] : memref<2x1152xf32, #tpu.memory_space<vmem>>, vector<1x128xf32>
      tpu.vector_store %arg14[%c0_237, %c896], %315 {strides = array<i32>} : memref<2x1152xf32, #tpu.memory_space<vmem>>, vector<1x128xf32>,
      %317 = vector.extract_strided_slice %312 {offsets = [2, 0], sizes = [1, 128], strides = [1, 1]} : vector<3x128xf32> to vector<1x128xf32>
      %c0_238 = arith.constant 0 : index
      %c1024 = arith.constant 1024 : index
      %318 = vector.load %arg14[%c0_238, %c1024] : memref<2x1152xf32, #tpu.memory_space<vmem>>, vector<1x128xf32>
      tpu.vector_store %arg14[%c0_238, %c1024], %317 {strides = array<i32>} : memref<2x1152xf32, #tpu.memory_space<vmem>>, vector<1x128xf32>,
      %c400 = arith.constant 400 : index
      %c0_239 = arith.constant 0 : index
      %319 = tpu.strided_load %arg11[%c400, %c0_239] {strides = array<i32: 2, 1>} : memref<800x128xf32, #tpu.memory_space<vmem>>, vector<10x128xf32>
      %c401 = arith.constant 401 : index
      %c0_240 = arith.constant 0 : index
      %320 = tpu.strided_load %arg11[%c401, %c0_240] {strides = array<i32: 2, 1>} : memref<800x128xf32, #tpu.memory_space<vmem>>, vector<10x128xf32>
      %c420 = arith.constant 420 : index
      %c0_241 = arith.constant 0 : index
      %321 = tpu.strided_load %arg11[%c420, %c0_241] {strides = array<i32: 2, 1>} : memref<800x128xf32, #tpu.memory_space<vmem>>, vector<10x128xf32>
      %c421 = arith.constant 421 : index
      %c0_242 = arith.constant 0 : index
      %322 = tpu.strided_load %arg11[%c421, %c0_242] {strides = array<i32: 2, 1>} : memref<800x128xf32, #tpu.memory_space<vmem>>, vector<10x128xf32>
      %323 = arith.maximumf %319, %320 : vector<10x128xf32>
      %324 = arith.maximumf %321, %322 : vector<10x128xf32>
      %325 = arith.maximumf %323, %324 : vector<10x128xf32>
      %326 = vector.broadcast %20 : vector<1x128xf32> to vector<10x128xf32>
      %327 = arith.addf %325, %326 : vector<10x128xf32>
      %c100_243 = arith.constant 100 : index
      %c0_244 = arith.constant 0 : index
      %328 = vector.load %arg12[%c100_243, %c0_244] : memref<200x128xf32, #tpu.memory_space<vmem>>, vector<10x128xf32>
      tpu.vector_store %arg12[%c100_243, %c0_244], %327 {strides = array<i32>} : memref<200x128xf32, #tpu.memory_space<vmem>>, vector<10x128xf32>,
      %c440 = arith.constant 440 : index
      %c0_245 = arith.constant 0 : index
      %329 = tpu.strided_load %arg11[%c440, %c0_245] {strides = array<i32: 2, 1>} : memref<800x128xf32, #tpu.memory_space<vmem>>, vector<10x128xf32>
      %c441 = arith.constant 441 : index
      %c0_246 = arith.constant 0 : index
      %330 = tpu.strided_load %arg11[%c441, %c0_246] {strides = array<i32: 2, 1>} : memref<800x128xf32, #tpu.memory_space<vmem>>, vector<10x128xf32>
      %c460 = arith.constant 460 : index
      %c0_247 = arith.constant 0 : index
      %331 = tpu.strided_load %arg11[%c460, %c0_247] {strides = array<i32: 2, 1>} : memref<800x128xf32, #tpu.memory_space<vmem>>, vector<10x128xf32>
      %c461 = arith.constant 461 : index
      %c0_248 = arith.constant 0 : index
      %332 = tpu.strided_load %arg11[%c461, %c0_248] {strides = array<i32: 2, 1>} : memref<800x128xf32, #tpu.memory_space<vmem>>, vector<10x128xf32>
      %333 = arith.maximumf %329, %330 : vector<10x128xf32>
      %334 = arith.maximumf %331, %332 : vector<10x128xf32>
      %335 = arith.maximumf %333, %334 : vector<10x128xf32>
      %336 = vector.broadcast %20 : vector<1x128xf32> to vector<10x128xf32>
      %337 = arith.addf %335, %336 : vector<10x128xf32>
      %c110 = arith.constant 110 : index
      %c0_249 = arith.constant 0 : index
      %338 = vector.load %arg12[%c110, %c0_249] : memref<200x128xf32, #tpu.memory_space<vmem>>, vector<10x128xf32>
      tpu.vector_store %arg12[%c110, %c0_249], %337 {strides = array<i32>} : memref<200x128xf32, #tpu.memory_space<vmem>>, vector<10x128xf32>,
      %c480 = arith.constant 480 : index
      %c0_250 = arith.constant 0 : index
      %339 = tpu.strided_load %arg11[%c480, %c0_250] {strides = array<i32: 2, 1>} : memref<800x128xf32, #tpu.memory_space<vmem>>, vector<10x128xf32>
      %c481 = arith.constant 481 : index
      %c0_251 = arith.constant 0 : index
      %340 = tpu.strided_load %arg11[%c481, %c0_251] {strides = array<i32: 2, 1>} : memref<800x128xf32, #tpu.memory_space<vmem>>, vector<10x128xf32>
      %c500 = arith.constant 500 : index
      %c0_252 = arith.constant 0 : index
      %341 = tpu.strided_load %arg11[%c500, %c0_252] {strides = array<i32: 2, 1>} : memref<800x128xf32, #tpu.memory_space<vmem>>, vector<10x128xf32>
      %c501 = arith.constant 501 : index
      %c0_253 = arith.constant 0 : index
      %342 = tpu.strided_load %arg11[%c501, %c0_253] {strides = array<i32: 2, 1>} : memref<800x128xf32, #tpu.memory_space<vmem>>, vector<10x128xf32>
      %343 = arith.maximumf %339, %340 : vector<10x128xf32>
      %344 = arith.maximumf %341, %342 : vector<10x128xf32>
      %345 = arith.maximumf %343, %344 : vector<10x128xf32>
      %346 = vector.broadcast %20 : vector<1x128xf32> to vector<10x128xf32>
      %347 = arith.addf %345, %346 : vector<10x128xf32>
      %c120_254 = arith.constant 120 : index
      %c0_255 = arith.constant 0 : index
      %348 = vector.load %arg12[%c120_254, %c0_255] : memref<200x128xf32, #tpu.memory_space<vmem>>, vector<10x128xf32>
      tpu.vector_store %arg12[%c120_254, %c0_255], %347 {strides = array<i32>} : memref<200x128xf32, #tpu.memory_space<vmem>>, vector<10x128xf32>,
      %c520 = arith.constant 520 : index
      %c0_256 = arith.constant 0 : index
      %349 = tpu.strided_load %arg11[%c520, %c0_256] {strides = array<i32: 2, 1>} : memref<800x128xf32, #tpu.memory_space<vmem>>, vector<10x128xf32>
      %c521 = arith.constant 521 : index
      %c0_257 = arith.constant 0 : index
      %350 = tpu.strided_load %arg11[%c521, %c0_257] {strides = array<i32: 2, 1>} : memref<800x128xf32, #tpu.memory_space<vmem>>, vector<10x128xf32>
      %c540 = arith.constant 540 : index
      %c0_258 = arith.constant 0 : index
      %351 = tpu.strided_load %arg11[%c540, %c0_258] {strides = array<i32: 2, 1>} : memref<800x128xf32, #tpu.memory_space<vmem>>, vector<10x128xf32>
      %c541 = arith.constant 541 : index
      %c0_259 = arith.constant 0 : index
      %352 = tpu.strided_load %arg11[%c541, %c0_259] {strides = array<i32: 2, 1>} : memref<800x128xf32, #tpu.memory_space<vmem>>, vector<10x128xf32>
      %353 = arith.maximumf %349, %350 : vector<10x128xf32>
      %354 = arith.maximumf %351, %352 : vector<10x128xf32>
      %355 = arith.maximumf %353, %354 : vector<10x128xf32>
      %356 = vector.broadcast %20 : vector<1x128xf32> to vector<10x128xf32>
      %357 = arith.addf %355, %356 : vector<10x128xf32>
      %c130 = arith.constant 130 : index
      %c0_260 = arith.constant 0 : index
      %358 = vector.load %arg12[%c130, %c0_260] : memref<200x128xf32, #tpu.memory_space<vmem>>, vector<10x128xf32>
      tpu.vector_store %arg12[%c130, %c0_260], %357 {strides = array<i32>} : memref<200x128xf32, #tpu.memory_space<vmem>>, vector<10x128xf32>,
      %c560 = arith.constant 560 : index
      %c0_261 = arith.constant 0 : index
      %359 = tpu.strided_load %arg11[%c560, %c0_261] {strides = array<i32: 2, 1>} : memref<800x128xf32, #tpu.memory_space<vmem>>, vector<10x128xf32>
      %c561 = arith.constant 561 : index
      %c0_262 = arith.constant 0 : index
      %360 = tpu.strided_load %arg11[%c561, %c0_262] {strides = array<i32: 2, 1>} : memref<800x128xf32, #tpu.memory_space<vmem>>, vector<10x128xf32>
      %c580 = arith.constant 580 : index
      %c0_263 = arith.constant 0 : index
      %361 = tpu.strided_load %arg11[%c580, %c0_263] {strides = array<i32: 2, 1>} : memref<800x128xf32, #tpu.memory_space<vmem>>, vector<10x128xf32>
      %c581 = arith.constant 581 : index
      %c0_264 = arith.constant 0 : index
      %362 = tpu.strided_load %arg11[%c581, %c0_264] {strides = array<i32: 2, 1>} : memref<800x128xf32, #tpu.memory_space<vmem>>, vector<10x128xf32>
      %363 = arith.maximumf %359, %360 : vector<10x128xf32>
      %364 = arith.maximumf %361, %362 : vector<10x128xf32>
      %365 = arith.maximumf %363, %364 : vector<10x128xf32>
      %366 = vector.broadcast %20 : vector<1x128xf32> to vector<10x128xf32>
      %367 = arith.addf %365, %366 : vector<10x128xf32>
      %c140_265 = arith.constant 140 : index
      %c0_266 = arith.constant 0 : index
      %368 = vector.load %arg12[%c140_265, %c0_266] : memref<200x128xf32, #tpu.memory_space<vmem>>, vector<10x128xf32>
      tpu.vector_store %arg12[%c140_265, %c0_266], %367 {strides = array<i32>} : memref<200x128xf32, #tpu.memory_space<vmem>>, vector<10x128xf32>,
      %c600 = arith.constant 600 : index
      %c0_267 = arith.constant 0 : index
      %369 = tpu.strided_load %arg11[%c600, %c0_267] {strides = array<i32: 2, 1>} : memref<800x128xf32, #tpu.memory_space<vmem>>, vector<10x128xf32>
      %c601 = arith.constant 601 : index
      %c0_268 = arith.constant 0 : index
      %370 = tpu.strided_load %arg11[%c601, %c0_268] {strides = array<i32: 2, 1>} : memref<800x128xf32, #tpu.memory_space<vmem>>, vector<10x128xf32>
      %c620 = arith.constant 620 : index
      %c0_269 = arith.constant 0 : index
      %371 = tpu.strided_load %arg11[%c620, %c0_269] {strides = array<i32: 2, 1>} : memref<800x128xf32, #tpu.memory_space<vmem>>, vector<10x128xf32>
      %c621 = arith.constant 621 : index
      %c0_270 = arith.constant 0 : index
      %372 = tpu.strided_load %arg11[%c621, %c0_270] {strides = array<i32: 2, 1>} : memref<800x128xf32, #tpu.memory_space<vmem>>, vector<10x128xf32>
      %373 = arith.maximumf %369, %370 : vector<10x128xf32>
      %374 = arith.maximumf %371, %372 : vector<10x128xf32>
      %375 = arith.maximumf %373, %374 : vector<10x128xf32>
      %376 = vector.broadcast %20 : vector<1x128xf32> to vector<10x128xf32>
      %377 = arith.addf %375, %376 : vector<10x128xf32>
      %c150 = arith.constant 150 : index
      %c0_271 = arith.constant 0 : index
      %378 = vector.load %arg12[%c150, %c0_271] : memref<200x128xf32, #tpu.memory_space<vmem>>, vector<10x128xf32>
      tpu.vector_store %arg12[%c150, %c0_271], %377 {strides = array<i32>} : memref<200x128xf32, #tpu.memory_space<vmem>>, vector<10x128xf32>,
      %c640_272 = arith.constant 640 : index
      %c0_273 = arith.constant 0 : index
      %379 = tpu.strided_load %arg11[%c640_272, %c0_273] {strides = array<i32: 2, 1>} : memref<800x128xf32, #tpu.memory_space<vmem>>, vector<10x128xf32>
      %c641 = arith.constant 641 : index
      %c0_274 = arith.constant 0 : index
      %380 = tpu.strided_load %arg11[%c641, %c0_274] {strides = array<i32: 2, 1>} : memref<800x128xf32, #tpu.memory_space<vmem>>, vector<10x128xf32>
      %c660 = arith.constant 660 : index
      %c0_275 = arith.constant 0 : index
      %381 = tpu.strided_load %arg11[%c660, %c0_275] {strides = array<i32: 2, 1>} : memref<800x128xf32, #tpu.memory_space<vmem>>, vector<10x128xf32>
      %c661 = arith.constant 661 : index
      %c0_276 = arith.constant 0 : index
      %382 = tpu.strided_load %arg11[%c661, %c0_276] {strides = array<i32: 2, 1>} : memref<800x128xf32, #tpu.memory_space<vmem>>, vector<10x128xf32>
      %383 = arith.maximumf %379, %380 : vector<10x128xf32>
      %384 = arith.maximumf %381, %382 : vector<10x128xf32>
      %385 = arith.maximumf %383, %384 : vector<10x128xf32>
      %386 = vector.broadcast %20 : vector<1x128xf32> to vector<10x128xf32>
      %387 = arith.addf %385, %386 : vector<10x128xf32>
      %c160_277 = arith.constant 160 : index
      %c0_278 = arith.constant 0 : index
      %388 = vector.load %arg12[%c160_277, %c0_278] : memref<200x128xf32, #tpu.memory_space<vmem>>, vector<10x128xf32>
      tpu.vector_store %arg12[%c160_277, %c0_278], %387 {strides = array<i32>} : memref<200x128xf32, #tpu.memory_space<vmem>>, vector<10x128xf32>,
      %c680 = arith.constant 680 : index
      %c0_279 = arith.constant 0 : index
      %389 = tpu.strided_load %arg11[%c680, %c0_279] {strides = array<i32: 2, 1>} : memref<800x128xf32, #tpu.memory_space<vmem>>, vector<10x128xf32>
      %c681 = arith.constant 681 : index
      %c0_280 = arith.constant 0 : index
      %390 = tpu.strided_load %arg11[%c681, %c0_280] {strides = array<i32: 2, 1>} : memref<800x128xf32, #tpu.memory_space<vmem>>, vector<10x128xf32>
      %c700 = arith.constant 700 : index
      %c0_281 = arith.constant 0 : index
      %391 = tpu.strided_load %arg11[%c700, %c0_281] {strides = array<i32: 2, 1>} : memref<800x128xf32, #tpu.memory_space<vmem>>, vector<10x128xf32>
      %c701 = arith.constant 701 : index
      %c0_282 = arith.constant 0 : index
      %392 = tpu.strided_load %arg11[%c701, %c0_282] {strides = array<i32: 2, 1>} : memref<800x128xf32, #tpu.memory_space<vmem>>, vector<10x128xf32>
      %393 = arith.maximumf %389, %390 : vector<10x128xf32>
      %394 = arith.maximumf %391, %392 : vector<10x128xf32>
      %395 = arith.maximumf %393, %394 : vector<10x128xf32>
      %396 = vector.broadcast %20 : vector<1x128xf32> to vector<10x128xf32>
      %397 = arith.addf %395, %396 : vector<10x128xf32>
      %c170 = arith.constant 170 : index
      %c0_283 = arith.constant 0 : index
      %398 = vector.load %arg12[%c170, %c0_283] : memref<200x128xf32, #tpu.memory_space<vmem>>, vector<10x128xf32>
      tpu.vector_store %arg12[%c170, %c0_283], %397 {strides = array<i32>} : memref<200x128xf32, #tpu.memory_space<vmem>>, vector<10x128xf32>,
      %c720 = arith.constant 720 : index
      %c0_284 = arith.constant 0 : index
      %399 = tpu.strided_load %arg11[%c720, %c0_284] {strides = array<i32: 2, 1>} : memref<800x128xf32, #tpu.memory_space<vmem>>, vector<10x128xf32>
      %c721 = arith.constant 721 : index
      %c0_285 = arith.constant 0 : index
      %400 = tpu.strided_load %arg11[%c721, %c0_285] {strides = array<i32: 2, 1>} : memref<800x128xf32, #tpu.memory_space<vmem>>, vector<10x128xf32>
      %c740 = arith.constant 740 : index
      %c0_286 = arith.constant 0 : index
      %401 = tpu.strided_load %arg11[%c740, %c0_286] {strides = array<i32: 2, 1>} : memref<800x128xf32, #tpu.memory_space<vmem>>, vector<10x128xf32>
      %c741 = arith.constant 741 : index
      %c0_287 = arith.constant 0 : index
      %402 = tpu.strided_load %arg11[%c741, %c0_287] {strides = array<i32: 2, 1>} : memref<800x128xf32, #tpu.memory_space<vmem>>, vector<10x128xf32>
      %403 = arith.maximumf %399, %400 : vector<10x128xf32>
      %404 = arith.maximumf %401, %402 : vector<10x128xf32>
      %405 = arith.maximumf %403, %404 : vector<10x128xf32>
      %406 = vector.broadcast %20 : vector<1x128xf32> to vector<10x128xf32>
      %407 = arith.addf %405, %406 : vector<10x128xf32>
      %c180_288 = arith.constant 180 : index
      %c0_289 = arith.constant 0 : index
      %408 = vector.load %arg12[%c180_288, %c0_289] : memref<200x128xf32, #tpu.memory_space<vmem>>, vector<10x128xf32>
      tpu.vector_store %arg12[%c180_288, %c0_289], %407 {strides = array<i32>} : memref<200x128xf32, #tpu.memory_space<vmem>>, vector<10x128xf32>,
      %c760 = arith.constant 760 : index
      %c0_290 = arith.constant 0 : index
      %409 = tpu.strided_load %arg11[%c760, %c0_290] {strides = array<i32: 2, 1>} : memref<800x128xf32, #tpu.memory_space<vmem>>, vector<10x128xf32>
      %c761 = arith.constant 761 : index
      %c0_291 = arith.constant 0 : index
      %410 = tpu.strided_load %arg11[%c761, %c0_291] {strides = array<i32: 2, 1>} : memref<800x128xf32, #tpu.memory_space<vmem>>, vector<10x128xf32>
      %c780 = arith.constant 780 : index
      %c0_292 = arith.constant 0 : index
      %411 = tpu.strided_load %arg11[%c780, %c0_292] {strides = array<i32: 2, 1>} : memref<800x128xf32, #tpu.memory_space<vmem>>, vector<10x128xf32>
      %c781 = arith.constant 781 : index
      %c0_293 = arith.constant 0 : index
      %412 = tpu.strided_load %arg11[%c781, %c0_293] {strides = array<i32: 2, 1>} : memref<800x128xf32, #tpu.memory_space<vmem>>, vector<10x128xf32>
      %413 = arith.maximumf %409, %410 : vector<10x128xf32>
      %414 = arith.maximumf %411, %412 : vector<10x128xf32>
      %415 = arith.maximumf %413, %414 : vector<10x128xf32>
      %416 = vector.broadcast %20 : vector<1x128xf32> to vector<10x128xf32>
      %417 = arith.addf %415, %416 : vector<10x128xf32>
      %c190 = arith.constant 190 : index
      %c0_294 = arith.constant 0 : index
      %418 = vector.load %arg12[%c190, %c0_294] : memref<200x128xf32, #tpu.memory_space<vmem>>, vector<10x128xf32>
      tpu.vector_store %arg12[%c190, %c0_294], %417 {strides = array<i32>} : memref<200x128xf32, #tpu.memory_space<vmem>>, vector<10x128xf32>,
      %cst_295 = arith.constant 0.000000e+00 : f32
      %419 = vector.broadcast %cst_295 : f32 to vector<56x128xf32>
      %c100_296 = arith.constant 100 : index
      %c0_297 = arith.constant 0 : index
      %420 = vector.load %arg12[%c100_296, %c0_297] : memref<200x128xf32, #tpu.memory_space<vmem>>, vector<56x128xf32>
      %421 = arith.truncf %420 : vector<56x128xf32> to vector<56x128xbf16>
      %c0_298 = arith.constant 0 : index
      %c0_299 = arith.constant 0 : index
      %c0_300 = arith.constant 0 : index
      %422 = vector.load %arg4[%c0_298, %c0_299, %c0_300] : memref<25x128x128xbf16, #tpu.memory_space<vmem>>, vector<1x128x128xbf16>
      %423 = vector.shape_cast %422 : vector<1x128x128xbf16> to vector<128x128xbf16>
      %cst_301 = arith.constant dense<0.000000e+00> : vector<56x128xf32>
      %424 = tpu.matmul %421, %423, %cst_301 {dimension_numbers = #tpu.dot_dimension_numbers<[1], [0], [0], [1], [0, 0, 1, 1], [], []>} : vector<56x128xbf16>, vector<128x128xbf16>, vector<56x128xf32> -> vector<56x128xf32>
      %425 = arith.addf %419, %424 : vector<56x128xf32>
      %c101_302 = arith.constant 101 : index
      %c0_303 = arith.constant 0 : index
      %426 = vector.load %arg12[%c101_302, %c0_303] : memref<200x128xf32, #tpu.memory_space<vmem>>, vector<56x128xf32>
      %427 = arith.truncf %426 : vector<56x128xf32> to vector<56x128xbf16>
      %c1_304 = arith.constant 1 : index
      %c0_305 = arith.constant 0 : index
      %c0_306 = arith.constant 0 : index
      %428 = vector.load %arg4[%c1_304, %c0_305, %c0_306] : memref<25x128x128xbf16, #tpu.memory_space<vmem>>, vector<1x128x128xbf16>
      %429 = vector.shape_cast %428 : vector<1x128x128xbf16> to vector<128x128xbf16>
      %cst_307 = arith.constant dense<0.000000e+00> : vector<56x128xf32>
      %430 = tpu.matmul %427, %429, %cst_307 {dimension_numbers = #tpu.dot_dimension_numbers<[1], [0], [0], [1], [0, 0, 1, 1], [], []>} : vector<56x128xbf16>, vector<128x128xbf16>, vector<56x128xf32> -> vector<56x128xf32>
      %431 = arith.addf %425, %430 : vector<56x128xf32>
      %c102 = arith.constant 102 : index
      %c0_308 = arith.constant 0 : index
      %432 = vector.load %arg12[%c102, %c0_308] : memref<200x128xf32, #tpu.memory_space<vmem>>, vector<56x128xf32>
      %433 = arith.truncf %432 : vector<56x128xf32> to vector<56x128xbf16>
      %c2_309 = arith.constant 2 : index
      %c0_310 = arith.constant 0 : index
      %c0_311 = arith.constant 0 : index
      %434 = vector.load %arg4[%c2_309, %c0_310, %c0_311] : memref<25x128x128xbf16, #tpu.memory_space<vmem>>, vector<1x128x128xbf16>
      %435 = vector.shape_cast %434 : vector<1x128x128xbf16> to vector<128x128xbf16>
      %cst_312 = arith.constant dense<0.000000e+00> : vector<56x128xf32>
      %436 = tpu.matmul %433, %435, %cst_312 {dimension_numbers = #tpu.dot_dimension_numbers<[1], [0], [0], [1], [0, 0, 1, 1], [], []>} : vector<56x128xbf16>, vector<128x128xbf16>, vector<56x128xf32> -> vector<56x128xf32>
      %437 = arith.addf %431, %436 : vector<56x128xf32>
      %c103 = arith.constant 103 : index
      %c0_313 = arith.constant 0 : index
      %438 = vector.load %arg12[%c103, %c0_313] : memref<200x128xf32, #tpu.memory_space<vmem>>, vector<56x128xf32>
      %439 = arith.truncf %438 : vector<56x128xf32> to vector<56x128xbf16>
      %c3_314 = arith.constant 3 : index
      %c0_315 = arith.constant 0 : index
      %c0_316 = arith.constant 0 : index
      %440 = vector.load %arg4[%c3_314, %c0_315, %c0_316] : memref<25x128x128xbf16, #tpu.memory_space<vmem>>, vector<1x128x128xbf16>
      %441 = vector.shape_cast %440 : vector<1x128x128xbf16> to vector<128x128xbf16>
      %cst_317 = arith.constant dense<0.000000e+00> : vector<56x128xf32>
      %442 = tpu.matmul %439, %441, %cst_317 {dimension_numbers = #tpu.dot_dimension_numbers<[1], [0], [0], [1], [0, 0, 1, 1], [], []>} : vector<56x128xbf16>, vector<128x128xbf16>, vector<56x128xf32> -> vector<56x128xf32>
      %443 = arith.addf %437, %442 : vector<56x128xf32>
      %c104 = arith.constant 104 : index
      %c0_318 = arith.constant 0 : index
      %444 = vector.load %arg12[%c104, %c0_318] : memref<200x128xf32, #tpu.memory_space<vmem>>, vector<56x128xf32>
      %445 = arith.truncf %444 : vector<56x128xf32> to vector<56x128xbf16>
      %c4_319 = arith.constant 4 : index
      %c0_320 = arith.constant 0 : index
      %c0_321 = arith.constant 0 : index
      %446 = vector.load %arg4[%c4_319, %c0_320, %c0_321] : memref<25x128x128xbf16, #tpu.memory_space<vmem>>, vector<1x128x128xbf16>
      %447 = vector.shape_cast %446 : vector<1x128x128xbf16> to vector<128x128xbf16>
      %cst_322 = arith.constant dense<0.000000e+00> : vector<56x128xf32>
      %448 = tpu.matmul %445, %447, %cst_322 {dimension_numbers = #tpu.dot_dimension_numbers<[1], [0], [0], [1], [0, 0, 1, 1], [], []>} : vector<56x128xbf16>, vector<128x128xbf16>, vector<56x128xf32> -> vector<56x128xf32>
      %449 = arith.addf %443, %448 : vector<56x128xf32>
      %c110_323 = arith.constant 110 : index
      %c0_324 = arith.constant 0 : index
      %450 = vector.load %arg12[%c110_323, %c0_324] : memref<200x128xf32, #tpu.memory_space<vmem>>, vector<56x128xf32>
      %451 = arith.truncf %450 : vector<56x128xf32> to vector<56x128xbf16>
      %c5_325 = arith.constant 5 : index
      %c0_326 = arith.constant 0 : index
      %c0_327 = arith.constant 0 : index
      %452 = vector.load %arg4[%c5_325, %c0_326, %c0_327] : memref<25x128x128xbf16, #tpu.memory_space<vmem>>, vector<1x128x128xbf16>
      %453 = vector.shape_cast %452 : vector<1x128x128xbf16> to vector<128x128xbf16>
      %cst_328 = arith.constant dense<0.000000e+00> : vector<56x128xf32>
      %454 = tpu.matmul %451, %453, %cst_328 {dimension_numbers = #tpu.dot_dimension_numbers<[1], [0], [0], [1], [0, 0, 1, 1], [], []>} : vector<56x128xbf16>, vector<128x128xbf16>, vector<56x128xf32> -> vector<56x128xf32>
      %455 = arith.addf %449, %454 : vector<56x128xf32>
      %c111 = arith.constant 111 : index
      %c0_329 = arith.constant 0 : index
      %456 = vector.load %arg12[%c111, %c0_329] : memref<200x128xf32, #tpu.memory_space<vmem>>, vector<56x128xf32>
      %457 = arith.truncf %456 : vector<56x128xf32> to vector<56x128xbf16>
      %c6_330 = arith.constant 6 : index
      %c0_331 = arith.constant 0 : index
      %c0_332 = arith.constant 0 : index
      %458 = vector.load %arg4[%c6_330, %c0_331, %c0_332] : memref<25x128x128xbf16, #tpu.memory_space<vmem>>, vector<1x128x128xbf16>
      %459 = vector.shape_cast %458 : vector<1x128x128xbf16> to vector<128x128xbf16>
      %cst_333 = arith.constant dense<0.000000e+00> : vector<56x128xf32>
      %460 = tpu.matmul %457, %459, %cst_333 {dimension_numbers = #tpu.dot_dimension_numbers<[1], [0], [0], [1], [0, 0, 1, 1], [], []>} : vector<56x128xbf16>, vector<128x128xbf16>, vector<56x128xf32> -> vector<56x128xf32>
      %461 = arith.addf %455, %460 : vector<56x128xf32>
      %c112 = arith.constant 112 : index
      %c0_334 = arith.constant 0 : index
      %462 = vector.load %arg12[%c112, %c0_334] : memref<200x128xf32, #tpu.memory_space<vmem>>, vector<56x128xf32>
      %463 = arith.truncf %462 : vector<56x128xf32> to vector<56x128xbf16>
      %c7_335 = arith.constant 7 : index
      %c0_336 = arith.constant 0 : index
      %c0_337 = arith.constant 0 : index
      %464 = vector.load %arg4[%c7_335, %c0_336, %c0_337] : memref<25x128x128xbf16, #tpu.memory_space<vmem>>, vector<1x128x128xbf16>
      %465 = vector.shape_cast %464 : vector<1x128x128xbf16> to vector<128x128xbf16>
      %cst_338 = arith.constant dense<0.000000e+00> : vector<56x128xf32>
      %466 = tpu.matmul %463, %465, %cst_338 {dimension_numbers = #tpu.dot_dimension_numbers<[1], [0], [0], [1], [0, 0, 1, 1], [], []>} : vector<56x128xbf16>, vector<128x128xbf16>, vector<56x128xf32> -> vector<56x128xf32>
      %467 = arith.addf %461, %466 : vector<56x128xf32>
      %c113 = arith.constant 113 : index
      %c0_339 = arith.constant 0 : index
      %468 = vector.load %arg12[%c113, %c0_339] : memref<200x128xf32, #tpu.memory_space<vmem>>, vector<56x128xf32>
      %469 = arith.truncf %468 : vector<56x128xf32> to vector<56x128xbf16>
      %c8_340 = arith.constant 8 : index
      %c0_341 = arith.constant 0 : index
      %c0_342 = arith.constant 0 : index
      %470 = vector.load %arg4[%c8_340, %c0_341, %c0_342] : memref<25x128x128xbf16, #tpu.memory_space<vmem>>, vector<1x128x128xbf16>
      %471 = vector.shape_cast %470 : vector<1x128x128xbf16> to vector<128x128xbf16>
      %cst_343 = arith.constant dense<0.000000e+00> : vector<56x128xf32>
      %472 = tpu.matmul %469, %471, %cst_343 {dimension_numbers = #tpu.dot_dimension_numbers<[1], [0], [0], [1], [0, 0, 1, 1], [], []>} : vector<56x128xbf16>, vector<128x128xbf16>, vector<56x128xf32> -> vector<56x128xf32>
      %473 = arith.addf %467, %472 : vector<56x128xf32>
      %c114 = arith.constant 114 : index
      %c0_344 = arith.constant 0 : index
      %474 = vector.load %arg12[%c114, %c0_344] : memref<200x128xf32, #tpu.memory_space<vmem>>, vector<56x128xf32>
      %475 = arith.truncf %474 : vector<56x128xf32> to vector<56x128xbf16>
      %c9_345 = arith.constant 9 : index
      %c0_346 = arith.constant 0 : index
      %c0_347 = arith.constant 0 : index
      %476 = vector.load %arg4[%c9_345, %c0_346, %c0_347] : memref<25x128x128xbf16, #tpu.memory_space<vmem>>, vector<1x128x128xbf16>
      %477 = vector.shape_cast %476 : vector<1x128x128xbf16> to vector<128x128xbf16>
      %cst_348 = arith.constant dense<0.000000e+00> : vector<56x128xf32>
      %478 = tpu.matmul %475, %477, %cst_348 {dimension_numbers = #tpu.dot_dimension_numbers<[1], [0], [0], [1], [0, 0, 1, 1], [], []>} : vector<56x128xbf16>, vector<128x128xbf16>, vector<56x128xf32> -> vector<56x128xf32>
      %479 = arith.addf %473, %478 : vector<56x128xf32>
      %c120_349 = arith.constant 120 : index
      %c0_350 = arith.constant 0 : index
      %480 = vector.load %arg12[%c120_349, %c0_350] : memref<200x128xf32, #tpu.memory_space<vmem>>, vector<56x128xf32>
      %481 = arith.truncf %480 : vector<56x128xf32> to vector<56x128xbf16>
      %c10_351 = arith.constant 10 : index
      %c0_352 = arith.constant 0 : index
      %c0_353 = arith.constant 0 : index
      %482 = vector.load %arg4[%c10_351, %c0_352, %c0_353] : memref<25x128x128xbf16, #tpu.memory_space<vmem>>, vector<1x128x128xbf16>
      %483 = vector.shape_cast %482 : vector<1x128x128xbf16> to vector<128x128xbf16>
      %cst_354 = arith.constant dense<0.000000e+00> : vector<56x128xf32>
      %484 = tpu.matmul %481, %483, %cst_354 {dimension_numbers = #tpu.dot_dimension_numbers<[1], [0], [0], [1], [0, 0, 1, 1], [], []>} : vector<56x128xbf16>, vector<128x128xbf16>, vector<56x128xf32> -> vector<56x128xf32>
      %485 = arith.addf %479, %484 : vector<56x128xf32>
      %c121_355 = arith.constant 121 : index
      %c0_356 = arith.constant 0 : index
      %486 = vector.load %arg12[%c121_355, %c0_356] : memref<200x128xf32, #tpu.memory_space<vmem>>, vector<56x128xf32>
      %487 = arith.truncf %486 : vector<56x128xf32> to vector<56x128xbf16>
      %c11_357 = arith.constant 11 : index
      %c0_358 = arith.constant 0 : index
      %c0_359 = arith.constant 0 : index
      %488 = vector.load %arg4[%c11_357, %c0_358, %c0_359] : memref<25x128x128xbf16, #tpu.memory_space<vmem>>, vector<1x128x128xbf16>
      %489 = vector.shape_cast %488 : vector<1x128x128xbf16> to vector<128x128xbf16>
      %cst_360 = arith.constant dense<0.000000e+00> : vector<56x128xf32>
      %490 = tpu.matmul %487, %489, %cst_360 {dimension_numbers = #tpu.dot_dimension_numbers<[1], [0], [0], [1], [0, 0, 1, 1], [], []>} : vector<56x128xbf16>, vector<128x128xbf16>, vector<56x128xf32> -> vector<56x128xf32>
      %491 = arith.addf %485, %490 : vector<56x128xf32>
      %c122 = arith.constant 122 : index
      %c0_361 = arith.constant 0 : index
      %492 = vector.load %arg12[%c122, %c0_361] : memref<200x128xf32, #tpu.memory_space<vmem>>, vector<56x128xf32>
      %493 = arith.truncf %492 : vector<56x128xf32> to vector<56x128xbf16>
      %c12_362 = arith.constant 12 : index
      %c0_363 = arith.constant 0 : index
      %c0_364 = arith.constant 0 : index
      %494 = vector.load %arg4[%c12_362, %c0_363, %c0_364] : memref<25x128x128xbf16, #tpu.memory_space<vmem>>, vector<1x128x128xbf16>
      %495 = vector.shape_cast %494 : vector<1x128x128xbf16> to vector<128x128xbf16>
      %cst_365 = arith.constant dense<0.000000e+00> : vector<56x128xf32>
      %496 = tpu.matmul %493, %495, %cst_365 {dimension_numbers = #tpu.dot_dimension_numbers<[1], [0], [0], [1], [0, 0, 1, 1], [], []>} : vector<56x128xbf16>, vector<128x128xbf16>, vector<56x128xf32> -> vector<56x128xf32>
      %497 = arith.addf %491, %496 : vector<56x128xf32>
      %c123 = arith.constant 123 : index
      %c0_366 = arith.constant 0 : index
      %498 = vector.load %arg12[%c123, %c0_366] : memref<200x128xf32, #tpu.memory_space<vmem>>, vector<56x128xf32>
      %499 = arith.truncf %498 : vector<56x128xf32> to vector<56x128xbf16>
      %c13_367 = arith.constant 13 : index
      %c0_368 = arith.constant 0 : index
      %c0_369 = arith.constant 0 : index
      %500 = vector.load %arg4[%c13_367, %c0_368, %c0_369] : memref<25x128x128xbf16, #tpu.memory_space<vmem>>, vector<1x128x128xbf16>
      %501 = vector.shape_cast %500 : vector<1x128x128xbf16> to vector<128x128xbf16>
      %cst_370 = arith.constant dense<0.000000e+00> : vector<56x128xf32>
      %502 = tpu.matmul %499, %501, %cst_370 {dimension_numbers = #tpu.dot_dimension_numbers<[1], [0], [0], [1], [0, 0, 1, 1], [], []>} : vector<56x128xbf16>, vector<128x128xbf16>, vector<56x128xf32> -> vector<56x128xf32>
      %503 = arith.addf %497, %502 : vector<56x128xf32>
      %c124 = arith.constant 124 : index
      %c0_371 = arith.constant 0 : index
      %504 = vector.load %arg12[%c124, %c0_371] : memref<200x128xf32, #tpu.memory_space<vmem>>, vector<56x128xf32>
      %505 = arith.truncf %504 : vector<56x128xf32> to vector<56x128xbf16>
      %c14_372 = arith.constant 14 : index
      %c0_373 = arith.constant 0 : index
      %c0_374 = arith.constant 0 : index
      %506 = vector.load %arg4[%c14_372, %c0_373, %c0_374] : memref<25x128x128xbf16, #tpu.memory_space<vmem>>, vector<1x128x128xbf16>
      %507 = vector.shape_cast %506 : vector<1x128x128xbf16> to vector<128x128xbf16>
      %cst_375 = arith.constant dense<0.000000e+00> : vector<56x128xf32>
      %508 = tpu.matmul %505, %507, %cst_375 {dimension_numbers = #tpu.dot_dimension_numbers<[1], [0], [0], [1], [0, 0, 1, 1], [], []>} : vector<56x128xbf16>, vector<128x128xbf16>, vector<56x128xf32> -> vector<56x128xf32>
      %509 = arith.addf %503, %508 : vector<56x128xf32>
      %c130_376 = arith.constant 130 : index
      %c0_377 = arith.constant 0 : index
      %510 = vector.load %arg12[%c130_376, %c0_377] : memref<200x128xf32, #tpu.memory_space<vmem>>, vector<56x128xf32>
      %511 = arith.truncf %510 : vector<56x128xf32> to vector<56x128xbf16>
      %c15_378 = arith.constant 15 : index
      %c0_379 = arith.constant 0 : index
      %c0_380 = arith.constant 0 : index
      %512 = vector.load %arg4[%c15_378, %c0_379, %c0_380] : memref<25x128x128xbf16, #tpu.memory_space<vmem>>, vector<1x128x128xbf16>
      %513 = vector.shape_cast %512 : vector<1x128x128xbf16> to vector<128x128xbf16>
      %cst_381 = arith.constant dense<0.000000e+00> : vector<56x128xf32>
      %514 = tpu.matmul %511, %513, %cst_381 {dimension_numbers = #tpu.dot_dimension_numbers<[1], [0], [0], [1], [0, 0, 1, 1], [], []>} : vector<56x128xbf16>, vector<128x128xbf16>, vector<56x128xf32> -> vector<56x128xf32>
      %515 = arith.addf %509, %514 : vector<56x128xf32>
      %c131 = arith.constant 131 : index
      %c0_382 = arith.constant 0 : index
      %516 = vector.load %arg12[%c131, %c0_382] : memref<200x128xf32, #tpu.memory_space<vmem>>, vector<56x128xf32>
      %517 = arith.truncf %516 : vector<56x128xf32> to vector<56x128xbf16>
      %c16_383 = arith.constant 16 : index
      %c0_384 = arith.constant 0 : index
      %c0_385 = arith.constant 0 : index
      %518 = vector.load %arg4[%c16_383, %c0_384, %c0_385] : memref<25x128x128xbf16, #tpu.memory_space<vmem>>, vector<1x128x128xbf16>
      %519 = vector.shape_cast %518 : vector<1x128x128xbf16> to vector<128x128xbf16>
      %cst_386 = arith.constant dense<0.000000e+00> : vector<56x128xf32>
      %520 = tpu.matmul %517, %519, %cst_386 {dimension_numbers = #tpu.dot_dimension_numbers<[1], [0], [0], [1], [0, 0, 1, 1], [], []>} : vector<56x128xbf16>, vector<128x128xbf16>, vector<56x128xf32> -> vector<56x128xf32>
      %521 = arith.addf %515, %520 : vector<56x128xf32>
      %c132 = arith.constant 132 : index
      %c0_387 = arith.constant 0 : index
      %522 = vector.load %arg12[%c132, %c0_387] : memref<200x128xf32, #tpu.memory_space<vmem>>, vector<56x128xf32>
      %523 = arith.truncf %522 : vector<56x128xf32> to vector<56x128xbf16>
      %c17_388 = arith.constant 17 : index
      %c0_389 = arith.constant 0 : index
      %c0_390 = arith.constant 0 : index
      %524 = vector.load %arg4[%c17_388, %c0_389, %c0_390] : memref<25x128x128xbf16, #tpu.memory_space<vmem>>, vector<1x128x128xbf16>
      %525 = vector.shape_cast %524 : vector<1x128x128xbf16> to vector<128x128xbf16>
      %cst_391 = arith.constant dense<0.000000e+00> : vector<56x128xf32>
      %526 = tpu.matmul %523, %525, %cst_391 {dimension_numbers = #tpu.dot_dimension_numbers<[1], [0], [0], [1], [0, 0, 1, 1], [], []>} : vector<56x128xbf16>, vector<128x128xbf16>, vector<56x128xf32> -> vector<56x128xf32>
      %527 = arith.addf %521, %526 : vector<56x128xf32>
      %c133 = arith.constant 133 : index
      %c0_392 = arith.constant 0 : index
      %528 = vector.load %arg12[%c133, %c0_392] : memref<200x128xf32, #tpu.memory_space<vmem>>, vector<56x128xf32>
      %529 = arith.truncf %528 : vector<56x128xf32> to vector<56x128xbf16>
      %c18_393 = arith.constant 18 : index
      %c0_394 = arith.constant 0 : index
      %c0_395 = arith.constant 0 : index
      %530 = vector.load %arg4[%c18_393, %c0_394, %c0_395] : memref<25x128x128xbf16, #tpu.memory_space<vmem>>, vector<1x128x128xbf16>
      %531 = vector.shape_cast %530 : vector<1x128x128xbf16> to vector<128x128xbf16>
      %cst_396 = arith.constant dense<0.000000e+00> : vector<56x128xf32>
      %532 = tpu.matmul %529, %531, %cst_396 {dimension_numbers = #tpu.dot_dimension_numbers<[1], [0], [0], [1], [0, 0, 1, 1], [], []>} : vector<56x128xbf16>, vector<128x128xbf16>, vector<56x128xf32> -> vector<56x128xf32>
      %533 = arith.addf %527, %532 : vector<56x128xf32>
      %c134 = arith.constant 134 : index
      %c0_397 = arith.constant 0 : index
      %534 = vector.load %arg12[%c134, %c0_397] : memref<200x128xf32, #tpu.memory_space<vmem>>, vector<56x128xf32>
      %535 = arith.truncf %534 : vector<56x128xf32> to vector<56x128xbf16>
      %c19_398 = arith.constant 19 : index
      %c0_399 = arith.constant 0 : index
      %c0_400 = arith.constant 0 : index
      %536 = vector.load %arg4[%c19_398, %c0_399, %c0_400] : memref<25x128x128xbf16, #tpu.memory_space<vmem>>, vector<1x128x128xbf16>
      %537 = vector.shape_cast %536 : vector<1x128x128xbf16> to vector<128x128xbf16>
      %cst_401 = arith.constant dense<0.000000e+00> : vector<56x128xf32>
      %538 = tpu.matmul %535, %537, %cst_401 {dimension_numbers = #tpu.dot_dimension_numbers<[1], [0], [0], [1], [0, 0, 1, 1], [], []>} : vector<56x128xbf16>, vector<128x128xbf16>, vector<56x128xf32> -> vector<56x128xf32>
      %539 = arith.addf %533, %538 : vector<56x128xf32>
      %c140_402 = arith.constant 140 : index
      %c0_403 = arith.constant 0 : index
      %540 = vector.load %arg12[%c140_402, %c0_403] : memref<200x128xf32, #tpu.memory_space<vmem>>, vector<56x128xf32>
      %541 = arith.truncf %540 : vector<56x128xf32> to vector<56x128xbf16>
      %c20_404 = arith.constant 20 : index
      %c0_405 = arith.constant 0 : index
      %c0_406 = arith.constant 0 : index
      %542 = vector.load %arg4[%c20_404, %c0_405, %c0_406] : memref<25x128x128xbf16, #tpu.memory_space<vmem>>, vector<1x128x128xbf16>
      %543 = vector.shape_cast %542 : vector<1x128x128xbf16> to vector<128x128xbf16>
      %cst_407 = arith.constant dense<0.000000e+00> : vector<56x128xf32>
      %544 = tpu.matmul %541, %543, %cst_407 {dimension_numbers = #tpu.dot_dimension_numbers<[1], [0], [0], [1], [0, 0, 1, 1], [], []>} : vector<56x128xbf16>, vector<128x128xbf16>, vector<56x128xf32> -> vector<56x128xf32>
      %545 = arith.addf %539, %544 : vector<56x128xf32>
      %c141_408 = arith.constant 141 : index
      %c0_409 = arith.constant 0 : index
      %546 = vector.load %arg12[%c141_408, %c0_409] : memref<200x128xf32, #tpu.memory_space<vmem>>, vector<56x128xf32>
      %547 = arith.truncf %546 : vector<56x128xf32> to vector<56x128xbf16>
      %c21_410 = arith.constant 21 : index
      %c0_411 = arith.constant 0 : index
      %c0_412 = arith.constant 0 : index
      %548 = vector.load %arg4[%c21_410, %c0_411, %c0_412] : memref<25x128x128xbf16, #tpu.memory_space<vmem>>, vector<1x128x128xbf16>
      %549 = vector.shape_cast %548 : vector<1x128x128xbf16> to vector<128x128xbf16>
      %cst_413 = arith.constant dense<0.000000e+00> : vector<56x128xf32>
      %550 = tpu.matmul %547, %549, %cst_413 {dimension_numbers = #tpu.dot_dimension_numbers<[1], [0], [0], [1], [0, 0, 1, 1], [], []>} : vector<56x128xbf16>, vector<128x128xbf16>, vector<56x128xf32> -> vector<56x128xf32>
      %551 = arith.addf %545, %550 : vector<56x128xf32>
      %c142 = arith.constant 142 : index
      %c0_414 = arith.constant 0 : index
      %552 = vector.load %arg12[%c142, %c0_414] : memref<200x128xf32, #tpu.memory_space<vmem>>, vector<56x128xf32>
      %553 = arith.truncf %552 : vector<56x128xf32> to vector<56x128xbf16>
      %c22_415 = arith.constant 22 : index
      %c0_416 = arith.constant 0 : index
      %c0_417 = arith.constant 0 : index
      %554 = vector.load %arg4[%c22_415, %c0_416, %c0_417] : memref<25x128x128xbf16, #tpu.memory_space<vmem>>, vector<1x128x128xbf16>
      %555 = vector.shape_cast %554 : vector<1x128x128xbf16> to vector<128x128xbf16>
      %cst_418 = arith.constant dense<0.000000e+00> : vector<56x128xf32>
      %556 = tpu.matmul %553, %555, %cst_418 {dimension_numbers = #tpu.dot_dimension_numbers<[1], [0], [0], [1], [0, 0, 1, 1], [], []>} : vector<56x128xbf16>, vector<128x128xbf16>, vector<56x128xf32> -> vector<56x128xf32>
      %557 = arith.addf %551, %556 : vector<56x128xf32>
      %c143 = arith.constant 143 : index
      %c0_419 = arith.constant 0 : index
      %558 = vector.load %arg12[%c143, %c0_419] : memref<200x128xf32, #tpu.memory_space<vmem>>, vector<56x128xf32>
      %559 = arith.truncf %558 : vector<56x128xf32> to vector<56x128xbf16>
      %c23_420 = arith.constant 23 : index
      %c0_421 = arith.constant 0 : index
      %c0_422 = arith.constant 0 : index
      %560 = vector.load %arg4[%c23_420, %c0_421, %c0_422] : memref<25x128x128xbf16, #tpu.memory_space<vmem>>, vector<1x128x128xbf16>
      %561 = vector.shape_cast %560 : vector<1x128x128xbf16> to vector<128x128xbf16>
      %cst_423 = arith.constant dense<0.000000e+00> : vector<56x128xf32>
      %562 = tpu.matmul %559, %561, %cst_423 {dimension_numbers = #tpu.dot_dimension_numbers<[1], [0], [0], [1], [0, 0, 1, 1], [], []>} : vector<56x128xbf16>, vector<128x128xbf16>, vector<56x128xf32> -> vector<56x128xf32>
      %563 = arith.addf %557, %562 : vector<56x128xf32>
      %c144 = arith.constant 144 : index
      %c0_424 = arith.constant 0 : index
      %564 = vector.load %arg12[%c144, %c0_424] : memref<200x128xf32, #tpu.memory_space<vmem>>, vector<56x128xf32>
      %565 = arith.truncf %564 : vector<56x128xf32> to vector<56x128xbf16>
      %c24_425 = arith.constant 24 : index
      %c0_426 = arith.constant 0 : index
      %c0_427 = arith.constant 0 : index
      %566 = vector.load %arg4[%c24_425, %c0_426, %c0_427] : memref<25x128x128xbf16, #tpu.memory_space<vmem>>, vector<1x128x128xbf16>
      %567 = vector.shape_cast %566 : vector<1x128x128xbf16> to vector<128x128xbf16>
      %cst_428 = arith.constant dense<0.000000e+00> : vector<56x128xf32>
      %568 = tpu.matmul %565, %567, %cst_428 {dimension_numbers = #tpu.dot_dimension_numbers<[1], [0], [0], [1], [0, 0, 1, 1], [], []>} : vector<56x128xbf16>, vector<128x128xbf16>, vector<56x128xf32> -> vector<56x128xf32>
      %569 = arith.addf %563, %568 : vector<56x128xf32>
      %c0_429 = arith.constant 0 : index
      %c0_430 = arith.constant 0 : index
      %570 = vector.load %arg13[%c0_429, %c0_430] : memref<56x128xf32, #tpu.memory_space<vmem>>, vector<56x128xf32>
      tpu.vector_store %arg13[%c0_429, %c0_430], %569 {strides = array<i32>} : memref<56x128xf32, #tpu.memory_space<vmem>>, vector<56x128xf32>,
      %c0_431 = arith.constant 0 : index
      %c0_432 = arith.constant 0 : index
      %571 = tpu.strided_load %arg13[%c0_431, %c0_432] {strides = array<i32: 2, 1>} : memref<56x128xf32, #tpu.memory_space<vmem>>, vector<3x128xf32>
      %c1_433 = arith.constant 1 : index
      %c0_434 = arith.constant 0 : index
      %572 = tpu.strided_load %arg13[%c1_433, %c0_434] {strides = array<i32: 2, 1>} : memref<56x128xf32, #tpu.memory_space<vmem>>, vector<3x128xf32>
      %c10_435 = arith.constant 10 : index
      %c0_436 = arith.constant 0 : index
      %573 = tpu.strided_load %arg13[%c10_435, %c0_436] {strides = array<i32: 2, 1>} : memref<56x128xf32, #tpu.memory_space<vmem>>, vector<3x128xf32>
      %c11_437 = arith.constant 11 : index
      %c0_438 = arith.constant 0 : index
      %574 = tpu.strided_load %arg13[%c11_437, %c0_438] {strides = array<i32: 2, 1>} : memref<56x128xf32, #tpu.memory_space<vmem>>, vector<3x128xf32>
      %575 = arith.maximumf %571, %572 : vector<3x128xf32>
      %576 = arith.maximumf %573, %574 : vector<3x128xf32>
      %577 = arith.maximumf %575, %576 : vector<3x128xf32>
      %578 = vector.broadcast %21 : vector<1x128xf32> to vector<3x128xf32>
      %579 = arith.addf %577, %578 : vector<3x128xf32>
      %580 = vector.extract_strided_slice %579 {offsets = [0, 0], sizes = [1, 128], strides = [1, 1]} : vector<3x128xf32> to vector<1x128xf32>
      %c1_439 = arith.constant 1 : index
      %c0_440 = arith.constant 0 : index
      %581 = vector.load %arg14[%c1_439, %c0_440] : memref<2x1152xf32, #tpu.memory_space<vmem>>, vector<1x128xf32>
      tpu.vector_store %arg14[%c1_439, %c0_440], %580 {strides = array<i32>} : memref<2x1152xf32, #tpu.memory_space<vmem>>, vector<1x128xf32>,
      %582 = vector.extract_strided_slice %579 {offsets = [1, 0], sizes = [1, 128], strides = [1, 1]} : vector<3x128xf32> to vector<1x128xf32>
      %c1_441 = arith.constant 1 : index
      %c128_442 = arith.constant 128 : index
      %583 = vector.load %arg14[%c1_441, %c128_442] : memref<2x1152xf32, #tpu.memory_space<vmem>>, vector<1x128xf32>
      tpu.vector_store %arg14[%c1_441, %c128_442], %582 {strides = array<i32>} : memref<2x1152xf32, #tpu.memory_space<vmem>>, vector<1x128xf32>,
      %584 = vector.extract_strided_slice %579 {offsets = [2, 0], sizes = [1, 128], strides = [1, 1]} : vector<3x128xf32> to vector<1x128xf32>
      %c1_443 = arith.constant 1 : index
      %c256_444 = arith.constant 256 : index
      %585 = vector.load %arg14[%c1_443, %c256_444] : memref<2x1152xf32, #tpu.memory_space<vmem>>, vector<1x128xf32>
      tpu.vector_store %arg14[%c1_443, %c256_444], %584 {strides = array<i32>} : memref<2x1152xf32, #tpu.memory_space<vmem>>, vector<1x128xf32>,
      %c20_445 = arith.constant 20 : index
      %c0_446 = arith.constant 0 : index
      %586 = tpu.strided_load %arg13[%c20_445, %c0_446] {strides = array<i32: 2, 1>} : memref<56x128xf32, #tpu.memory_space<vmem>>, vector<3x128xf32>
      %c21_447 = arith.constant 21 : index
      %c0_448 = arith.constant 0 : index
      %587 = tpu.strided_load %arg13[%c21_447, %c0_448] {strides = array<i32: 2, 1>} : memref<56x128xf32, #tpu.memory_space<vmem>>, vector<3x128xf32>
      %c30_449 = arith.constant 30 : index
      %c0_450 = arith.constant 0 : index
      %588 = tpu.strided_load %arg13[%c30_449, %c0_450] {strides = array<i32: 2, 1>} : memref<56x128xf32, #tpu.memory_space<vmem>>, vector<3x128xf32>
      %c31_451 = arith.constant 31 : index
      %c0_452 = arith.constant 0 : index
      %589 = tpu.strided_load %arg13[%c31_451, %c0_452] {strides = array<i32: 2, 1>} : memref<56x128xf32, #tpu.memory_space<vmem>>, vector<3x128xf32>
      %590 = arith.maximumf %586, %587 : vector<3x128xf32>
      %591 = arith.maximumf %588, %589 : vector<3x128xf32>
      %592 = arith.maximumf %590, %591 : vector<3x128xf32>
      %593 = vector.broadcast %21 : vector<1x128xf32> to vector<3x128xf32>
      %594 = arith.addf %592, %593 : vector<3x128xf32>
      %595 = vector.extract_strided_slice %594 {offsets = [0, 0], sizes = [1, 128], strides = [1, 1]} : vector<3x128xf32> to vector<1x128xf32>
      %c1_453 = arith.constant 1 : index
      %c384_454 = arith.constant 384 : index
      %596 = vector.load %arg14[%c1_453, %c384_454] : memref<2x1152xf32, #tpu.memory_space<vmem>>, vector<1x128xf32>
      tpu.vector_store %arg14[%c1_453, %c384_454], %595 {strides = array<i32>} : memref<2x1152xf32, #tpu.memory_space<vmem>>, vector<1x128xf32>,
      %597 = vector.extract_strided_slice %594 {offsets = [1, 0], sizes = [1, 128], strides = [1, 1]} : vector<3x128xf32> to vector<1x128xf32>
      %c1_455 = arith.constant 1 : index
      %c512_456 = arith.constant 512 : index
      %598 = vector.load %arg14[%c1_455, %c512_456] : memref<2x1152xf32, #tpu.memory_space<vmem>>, vector<1x128xf32>
      tpu.vector_store %arg14[%c1_455, %c512_456], %597 {strides = array<i32>} : memref<2x1152xf32, #tpu.memory_space<vmem>>, vector<1x128xf32>,
      %599 = vector.extract_strided_slice %594 {offsets = [2, 0], sizes = [1, 128], strides = [1, 1]} : vector<3x128xf32> to vector<1x128xf32>
      %c1_457 = arith.constant 1 : index
      %c640_458 = arith.constant 640 : index
      %600 = vector.load %arg14[%c1_457, %c640_458] : memref<2x1152xf32, #tpu.memory_space<vmem>>, vector<1x128xf32>
      tpu.vector_store %arg14[%c1_457, %c640_458], %599 {strides = array<i32>} : memref<2x1152xf32, #tpu.memory_space<vmem>>, vector<1x128xf32>,
      %c40_459 = arith.constant 40 : index
      %c0_460 = arith.constant 0 : index
      %601 = tpu.strided_load %arg13[%c40_459, %c0_460] {strides = array<i32: 2, 1>} : memref<56x128xf32, #tpu.memory_space<vmem>>, vector<3x128xf32>
      %c41_461 = arith.constant 41 : index
      %c0_462 = arith.constant 0 : index
      %602 = tpu.strided_load %arg13[%c41_461, %c0_462] {strides = array<i32: 2, 1>} : memref<56x128xf32, #tpu.memory_space<vmem>>, vector<3x128xf32>
      %c50_463 = arith.constant 50 : index
      %c0_464 = arith.constant 0 : index
      %603 = tpu.strided_load %arg13[%c50_463, %c0_464] {strides = array<i32: 2, 1>} : memref<56x128xf32, #tpu.memory_space<vmem>>, vector<3x128xf32>
      %c51_465 = arith.constant 51 : index
      %c0_466 = arith.constant 0 : index
      %604 = tpu.strided_load %arg13[%c51_465, %c0_466] {strides = array<i32: 2, 1>} : memref<56x128xf32, #tpu.memory_space<vmem>>, vector<3x128xf32>
      %605 = arith.maximumf %601, %602 : vector<3x128xf32>
      %606 = arith.maximumf %603, %604 : vector<3x128xf32>
      %607 = arith.maximumf %605, %606 : vector<3x128xf32>
      %608 = vector.broadcast %21 : vector<1x128xf32> to vector<3x128xf32>
      %609 = arith.addf %607, %608 : vector<3x128xf32>
      %610 = vector.extract_strided_slice %609 {offsets = [0, 0], sizes = [1, 128], strides = [1, 1]} : vector<3x128xf32> to vector<1x128xf32>
      %c1_467 = arith.constant 1 : index
      %c768_468 = arith.constant 768 : index
      %611 = vector.load %arg14[%c1_467, %c768_468] : memref<2x1152xf32, #tpu.memory_space<vmem>>, vector<1x128xf32>
      tpu.vector_store %arg14[%c1_467, %c768_468], %610 {strides = array<i32>} : memref<2x1152xf32, #tpu.memory_space<vmem>>, vector<1x128xf32>,
      %612 = vector.extract_strided_slice %609 {offsets = [1, 0], sizes = [1, 128], strides = [1, 1]} : vector<3x128xf32> to vector<1x128xf32>
      %c1_469 = arith.constant 1 : index
      %c896_470 = arith.constant 896 : index
      %613 = vector.load %arg14[%c1_469, %c896_470] : memref<2x1152xf32, #tpu.memory_space<vmem>>, vector<1x128xf32>
      tpu.vector_store %arg14[%c1_469, %c896_470], %612 {strides = array<i32>} : memref<2x1152xf32, #tpu.memory_space<vmem>>, vector<1x128xf32>,
      %614 = vector.extract_strided_slice %609 {offsets = [2, 0], sizes = [1, 128], strides = [1, 1]} : vector<3x128xf32> to vector<1x128xf32>
      %c1_471 = arith.constant 1 : index
      %c1024_472 = arith.constant 1024 : index
      %615 = vector.load %arg14[%c1_471, %c1024_472] : memref<2x1152xf32, #tpu.memory_space<vmem>>, vector<1x128xf32>
      tpu.vector_store %arg14[%c1_471, %c1024_472], %614 {strides = array<i32>} : memref<2x1152xf32, #tpu.memory_space<vmem>>, vector<1x128xf32>,
      %c0_473 = arith.constant 0 : index
      %c0_474 = arith.constant 0 : index
      %616 = vector.load %arg9[%c0_473, %c0_474] : memref<1x128xf32, #tpu.memory_space<vmem>>, vector<1x128xf32>
      %617 = vector.shape_cast %616 : vector<1x128xf32> to vector<1x128xf32>
      %618 = vector.broadcast %617 : vector<1x128xf32> to vector<2x128xf32>
      %c0_475 = arith.constant 0 : index
      %c0_476 = arith.constant 0 : index
      %619 = vector.load %arg10[%c0_475, %c0_476] : memref<2x128xf32, #tpu.memory_space<vmem>>, vector<2x128xf32>
      tpu.vector_store %arg10[%c0_475, %c0_476], %618 {strides = array<i32>} : memref<2x128xf32, #tpu.memory_space<vmem>>, vector<2x128xf32>,
    } else {
    }
    %c0 = arith.constant 0 : index
    %c0_1 = arith.constant 0 : index
    %3 = vector.load %arg14[%c0, %c0_1] : memref<2x1152xf32, #tpu.memory_space<vmem>>, vector<2x1152xf32>
    %4 = arith.truncf %3 : vector<2x1152xf32> to vector<2x1152xbf16>
    %c0_2 = arith.constant 0 : index
    %c0_3 = arith.constant 0 : index
    %5 = vector.load %arg6[%c0_2, %c0_3] : memref<1152x512xbf16, #tpu.memory_space<vmem>>, vector<1152x512xbf16>
    %cst = arith.constant dense<0.000000e+00> : vector<2x512xf32>
    %6 = tpu.matmul %4, %5, %cst {dimension_numbers = #tpu.dot_dimension_numbers<[1], [0], [0], [1], [0, 0, 1, 1], [], []>} : vector<2x1152xbf16>, vector<1152x512xbf16>, vector<2x512xf32> -> vector<2x512xf32>
    %c0_4 = arith.constant 0 : index
    %c0_5 = arith.constant 0 : index
    %7 = vector.load %arg7[%c0_4, %c0_5] : memref<1x512xf32, #tpu.memory_space<vmem>>, vector<1x512xf32>
    %8 = vector.broadcast %7 : vector<1x512xf32> to vector<2x512xf32>
    %9 = arith.addf %6, %8 : vector<2x512xf32>
    %c0_6 = arith.constant 0 : index
    %c0_7 = arith.constant 0 : index
    %10 = vector.load %arg10[%c0_6, %c0_7] : memref<2x128xf32, #tpu.memory_space<vmem>>, vector<2x128xf32>
    %11 = arith.truncf %9 : vector<2x512xf32> to vector<2x512xbf16>
    %c0_8 = arith.constant 0 : index
    %c0_9 = arith.constant 0 : index
    %12 = vector.load %arg8[%c0_8, %c0_9] : memref<512x128xbf16, #tpu.memory_space<vmem>>, vector<512x128xbf16>
    %cst_10 = arith.constant dense<0.000000e+00> : vector<2x128xf32>
    %13 = tpu.matmul %11, %12, %cst_10 {dimension_numbers = #tpu.dot_dimension_numbers<[1], [0], [0], [1], [0, 0, 1, 1], [], []>} : vector<2x512xbf16>, vector<512x128xbf16>, vector<2x128xf32> -> vector<2x128xf32>
    %14 = arith.addf %10, %13 : vector<2x128xf32>
    %c0_11 = arith.constant 0 : index
    %c0_12 = arith.constant 0 : index
    %15 = vector.load %arg10[%c0_11, %c0_12] : memref<2x128xf32, #tpu.memory_space<vmem>>, vector<2x128xf32>
    tpu.vector_store %arg10[%c0_11, %c0_12], %14 {strides = array<i32>} : memref<2x128xf32, #tpu.memory_space<vmem>>, vector<2x128xf32>,
    return
  }
  func.func @transform_0(%arg0: i32) -> (i32, i32) {
    %c0_i32 = arith.constant 0 : i32
    %c0_i32_0 = arith.constant 0 : i32
    %c0_i32_1 = arith.constant 0 : i32
    return %c0_i32, %c0_i32_0 : i32, i32
  }
  func.func @transform_1(%arg0: i32) -> (i32, i32) {
    %c0_i32 = arith.constant 0 : i32
    %c0_i32_0 = arith.constant 0 : i32
    %c0_i32_1 = arith.constant 0 : i32
    return %c0_i32, %c0_i32_0 : i32, i32
  }
  func.func @transform_2(%arg0: i32) -> (i32, i32) {
    %c0_i32 = arith.constant 0 : i32
    %c0_i32_0 = arith.constant 0 : i32
    %c0_i32_1 = arith.constant 0 : i32
    return %c0_i32, %c0_i32_0 : i32, i32
  }
  func.func @transform_3(%arg0: i32) -> (i32, i32, i32) {
    %c0_i32 = arith.constant 0 : i32
    %c0_i32_0 = arith.constant 0 : i32
    %c0_i32_1 = arith.constant 0 : i32
    %c0_i32_2 = arith.constant 0 : i32
    return %c0_i32, %c0_i32_0, %c0_i32_1 : i32, i32, i32
  }
  func.func @transform_4(%arg0: i32) -> (i32, i32) {
    %c0_i32 = arith.constant 0 : i32
    %c0_i32_0 = arith.constant 0 : i32
    %c0_i32_1 = arith.constant 0 : i32
    return %c0_i32, %c0_i32_0 : i32, i32
  }
  func.func @transform_5(%arg0: i32) -> (i32, i32) {
    %c0_i32 = arith.constant 0 : i32
    %c0_i32_0 = arith.constant 0 : i32
    return %c0_i32, %arg0 : i32, i32
  }
  func.func @transform_6(%arg0: i32) -> (i32, i32) {
    %c0_i32 = arith.constant 0 : i32
    %c0_i32_0 = arith.constant 0 : i32
    return %c0_i32, %arg0 : i32, i32
  }
  func.func @transform_7(%arg0: i32) -> (i32, i32) {
    %c0_i32 = arith.constant 0 : i32
    %c0_i32_0 = arith.constant 0 : i32
    return %arg0, %c0_i32 : i32, i32
  }
  func.func @transform_8(%arg0: i32) -> (i32, i32) {
    %c0_i32 = arith.constant 0 : i32
    %c0_i32_0 = arith.constant 0 : i32
    %c0_i32_1 = arith.constant 0 : i32
    return %c0_i32, %c0_i32_0 : i32, i32
  }
  func.func @transform_9(%arg0: i32) -> (i32, i32) {
    %c0_i32 = arith.constant 0 : i32
    %c0_i32_0 = arith.constant 0 : i32
    %c0_i32_1 = arith.constant 0 : i32
    return %c0_i32, %c0_i32_0 : i32, i32
  }
}

</mosaic_0001>

<bundles_post_ra>
// kernel: imu_signal_image_forward.1
= control target key start
LH: loop header
LB: loop body
LE: loop exit
PB: predicated region body
PF: predicated region fallthrough
CT: control target
= control target key end

     0   :  { %14 = vsyncpa [#allocation8], 0  ;;  %s20936_s0 = inlined_call_operand.vmem [shape: bf16[800,128], index: 0, kind: input, shape index: {}]   ;;  %s20937_s1 = inlined_call_operand.vmem [shape: bf16[128,128], index: 1, kind: input, shape index: {}]   ;;  %s20938_s2 = inlined_call_operand.vmem [shape: f32[1,128], index: 2, kind: input, shape index: {}]   ;;  %s20939_s3 = inlined_call_operand.vmem [shape: bf16[25,128,128], index: 3, kind: input, shape index: {}]   ;;  %s20940_s4 = inlined_call_operand.vmem [shape: f32[1,128], index: 4, kind: input, shape index: {}]   ;;  %s20941_s5 = inlined_call_operand.vmem [shape: bf16[1152,2048], index: 5, kind: input, shape index: {}]   ;;  %s20942_s6 = inlined_call_operand.vmem [shape: f32[1,2048], index: 6, kind: input, shape index: {}]   ;;  %s20943_s7 = inlined_call_operand.hbm [shape: bf16[2048,128], index: 7, kind: input, shape index: {}]   ;;  %s20944_s8 = inlined_call_operand.vmem [shape: f32[1,128], index: 8, kind: input, shape index: {}]   ;;  %s20945_s9 = inlined_call_operand.hbm [shape: f32[2,128], index: 9, kind: output, shape index: {}]  }
   0x1   :  { %16 = vsyncpa [#allocation8 + $0x1], 0 }
   0x2   :  { %17 = vsyncpa [#allocation9], 0  ;;  %s17866_s30 = smov 0   ;;  %s17868_s10 = smov 0  }
   0x3   :  { %s17870_s11 = smov 0   ;;  %s17872_s12 = smov 0  }
   0x4 LB: > { %s17885_s13 = sadd.s32 4294967295, %s17807_s12   ;;  %s17888_s14 = sadd.s32 1, %s17807_s12   ;;  %s17807_s12 = sphi %s17872_s12, %s21113_s12   ;;  %s17803_s11 = sphi %s17870_s11, %s21112_s11   ;;  %s17799_s10 = sphi %s17868_s10, %s21111_s10   ;;  %s17795_s30 = sphi %s17866_s30, %s21110_s30  }
   0x5   : > { %s132_s15 = ssub.s32 %s17807_s12, %s17888_s14  ;;  %s135_s16 = sadd.s32 1, %s17803_s11 }
   0x6   : > { %p133_p0 = scmp.eq.s32.totalorder %s132_s15, 0  ;;  %p142_p1 = scmp.ne.s32.totalorder %s17803_s11, %s17799_s10 }
   0x7   : > { %p143_p2 = scmp.eq.s32.totalorder %s17807_s12, 0  ;;  %p200_p3 = scmp.ne.s32.totalorder %s17799_s10, %s17795_s30 }
   0x8   : > { %s17898_s17 = scalar_select %p133_p0, %s17803_s11, %s135_s16  }
   0x9   : > { %p17900_p4 = por %p143_p2, %p142_p1  ;;  %p201_p5 = scmp.eq.s32.totalorder %s17885_s13, 0 }
   0xa   : > { %p12636_p7 = scmp.ge.s32.totalorder %s17807_s12, 4 }
   0xb   : > { %p17905_p6 = por %p201_p5, %p200_p3 }
   0xc   : > { %280 = sbr.rel (%p12636_p7) target bundleno = 193 (0xc1), region = 40 }
  0x13   : > { %283 = sbr.rel (!%p17900_p4) target bundleno = 167 (0xa7), region = 44  ;;  %s285_s20 = sand.u32 (%p17900_p4), 1, %s17803_s11  }
  0x14   : > { %s14206_s21 = sshll.u32 (%p17900_p4), %s17807_s12, 4  ;;  %s16662_s22 = smul.u32 (%p17900_p4), 2304, %s285_s20 }
  0x15   : > { %s17917_s25 = scalar_lea.vmem (%p17900_p4), %s20941_s5, %s14206_s21 }
  0x16   : > { %v303_v0 = vld [vmem:[%s17917_s25] sm:$0xff] (%p17900_p4)  ;;  %v305_v1 = vld [vmem:[%s17917_s25 + $0x8] sm:$0xff] (%p17900_p4)  ;;  %s17925_s26 = scalar_lea.vmem (%p17900_p4), [#allocation6], %s16662_s22 }
  0x17   : > { %v307_v2 = vld [vmem:[%s17917_s25 + $0x40] sm:$0xff] (%p17900_p4)  ;;  %v309_v3 = vld [vmem:[%s17917_s25 + $0x48] sm:$0xff] (%p17900_p4)  ;;  %304 = vst [vmem:[%s17925_s26] sm:$0xff] (%p17900_p4), %v303_v0  ;;  %306 = vst [vmem:[%s17925_s26 + $0x8] sm:$0xff] (%p17900_p4), %v305_v1 }
  0x18   : > { %v311_v4 = vld [vmem:[%s17917_s25 + $0x80] sm:$0xff] (%p17900_p4)  ;;  %v313_v5 = vld [vmem:[%s17917_s25 + $0x88] sm:$0xff] (%p17900_p4)  ;;  %308 = vst [vmem:[%s17925_s26 + $0x10] sm:$0xff] (%p17900_p4), %v307_v2  ;;  %310 = vst [vmem:[%s17925_s26 + $0x18] sm:$0xff] (%p17900_p4), %v309_v3 }
  0x19   : > { %312 = vst [vmem:[%s17925_s26 + $0x20] sm:$0xff] (%p17900_p4), %v311_v4  ;;  %314 = vst [vmem:[%s17925_s26 + $0x28] sm:$0xff] (%p17900_p4), %v313_v5  ;;  %v315_v6 = vld [vmem:[%s17917_s25 + $0xc0] sm:$0xff] (%p17900_p4)  ;;  %v317_v7 = vld [vmem:[%s17917_s25 + $0xc8] sm:$0xff] (%p17900_p4) }
  0x1a   : > { %v319_v8 = vld [vmem:[%s17917_s25 + $0x100] sm:$0xff]  ;;  %316 = vst [vmem:[%s17925_s26 + $0x30] sm:$0xff] %v315_v6  ;;  %318 = vst [vmem:[%s17925_s26 + $0x38] sm:$0xff] %v317_v7  ;;  %v321_v9 = vld [vmem:[%s17917_s25 + $0x108] sm:$0xff] }
  0x1b   : > { %320 = vst [vmem:[%s17925_s26 + $0x40] sm:$0xff] %v319_v8  ;;  %v323_v10 = vld [vmem:[%s17917_s25 + $0x140] sm:$0xff]  ;;  %v325_v11 = vld [vmem:[%s17917_s25 + $0x148] sm:$0xff]  ;;  %322 = vst [vmem:[%s17925_s26 + $0x48] sm:$0xff] %v321_v9 }
  0x1c   : > { %324 = vst [vmem:[%s17925_s26 + $0x50] sm:$0xff] %v323_v10  ;;  %326 = vst [vmem:[%s17925_s26 + $0x58] sm:$0xff] %v325_v11  ;;  %v327_v12 = vld [vmem:[%s17917_s25 + $0x180] sm:$0xff]  ;;  %v329_v13 = vld [vmem:[%s17917_s25 + $0x188] sm:$0xff] }
  0x1d   : > { %v331_v14 = vld [vmem:[%s17917_s25 + $0x1c0] sm:$0xff]  ;;  %328 = vst [vmem:[%s17925_s26 + $0x60] sm:$0xff] %v327_v12  ;;  %330 = vst [vmem:[%s17925_s26 + $0x68] sm:$0xff] %v329_v13  ;;  %v333_v15 = vld [vmem:[%s17917_s25 + $0x1c8] sm:$0xff] }
  0x1e   : > { %332 = vst [vmem:[%s17925_s26 + $0x70] sm:$0xff] %v331_v14  ;;  %v335_v16 = vld [vmem:[%s17917_s25 + $0x200] sm:$0xff]  ;;  %v337_v17 = vld [vmem:[%s17917_s25 + $0x208] sm:$0xff]  ;;  %334 = vst [vmem:[%s17925_s26 + $0x78] sm:$0xff] %v333_v15 }
  0x1f   : > { %336 = vst [vmem:[%s17925_s26 + $0x80] sm:$0xff] %v335_v16  ;;  %338 = vst [vmem:[%s17925_s26 + $0x88] sm:$0xff] %v337_v17  ;;  %v339_v18 = vld [vmem:[%s17917_s25 + $0x240] sm:$0xff]  ;;  %v341_v19 = vld [vmem:[%s17917_s25 + $0x248] sm:$0xff] }
  0x20   : > { %v343_v20 = vld [vmem:[%s17917_s25 + $0x280] sm:$0xff]  ;;  %340 = vst [vmem:[%s17925_s26 + $0x90] sm:$0xff] %v339_v18  ;;  %342 = vst [vmem:[%s17925_s26 + $0x98] sm:$0xff] %v341_v19  ;;  %v345_v21 = vld [vmem:[%s17917_s25 + $0x288] sm:$0xff] }
  0x21   : > { %344 = vst [vmem:[%s17925_s26 + $0xa0] sm:$0xff] %v343_v20  ;;  %v347_v22 = vld [vmem:[%s17917_s25 + $0x2c0] sm:$0xff]  ;;  %v349_v23 = vld [vmem:[%s17917_s25 + $0x2c8] sm:$0xff]  ;;  %346 = vst [vmem:[%s17925_s26 + $0xa8] sm:$0xff] %v345_v21 }
  0x22   : > { %348 = vst [vmem:[%s17925_s26 + $0xb0] sm:$0xff] %v347_v22  ;;  %350 = vst [vmem:[%s17925_s26 + $0xb8] sm:$0xff] %v349_v23  ;;  %v351_v24 = vld [vmem:[%s17917_s25 + $0x300] sm:$0xff]  ;;  %v353_v25 = vld [vmem:[%s17917_s25 + $0x308] sm:$0xff] }
  0x23   : > { %v355_v26 = vld [vmem:[%s17917_s25 + $0x340] sm:$0xff]  ;;  %352 = vst [vmem:[%s17925_s26 + $0xc0] sm:$0xff] %v351_v24  ;;  %354 = vst [vmem:[%s17925_s26 + $0xc8] sm:$0xff] %v353_v25  ;;  %v357_v27 = vld [vmem:[%s17917_s25 + $0x348] sm:$0xff] }
  0x24   : > { %356 = vst [vmem:[%s17925_s26 + $0xd0] sm:$0xff] %v355_v26  ;;  %v359_v28 = vld [vmem:[%s17917_s25 + $0x380] sm:$0xff]  ;;  %v361_v29 = vld [vmem:[%s17917_s25 + $0x388] sm:$0xff]  ;;  %358 = vst [vmem:[%s17925_s26 + $0xd8] sm:$0xff] %v357_v27 }
  0x25   : > { %360 = vst [vmem:[%s17925_s26 + $0xe0] sm:$0xff] %v359_v28  ;;  %362 = vst [vmem:[%s17925_s26 + $0xe8] sm:$0xff] %v361_v29  ;;  %v363_v30 = vld [vmem:[%s17917_s25 + $0x3c0] sm:$0xff]  ;;  %v365_v31 = vld [vmem:[%s17917_s25 + $0x3c8] sm:$0xff] }
  0x26   : > { %v367_v32 = vld [vmem:[%s17917_s25 + $0x400] sm:$0xff]  ;;  %364 = vst [vmem:[%s17925_s26 + $0xf0] sm:$0xff] %v363_v30  ;;  %366 = vst [vmem:[%s17925_s26 + $0xf8] sm:$0xff] %v365_v31  ;;  %v369_v33 = vld [vmem:[%s17917_s25 + $0x408] sm:$0xff] }
  0x27   : > { %368 = vst [vmem:[%s17925_s26 + $0x100] sm:$0xff] %v367_v32  ;;  %v371_v34 = vld [vmem:[%s17917_s25 + $0x440] sm:$0xff]  ;;  %v373_v35 = vld [vmem:[%s17917_s25 + $0x448] sm:$0xff]  ;;  %370 = vst [vmem:[%s17925_s26 + $0x108] sm:$0xff] %v369_v33 }
  0x28   : > { %372 = vst [vmem:[%s17925_s26 + $0x110] sm:$0xff] %v371_v34  ;;  %374 = vst [vmem:[%s17925_s26 + $0x118] sm:$0xff] %v373_v35  ;;  %v375_v36 = vld [vmem:[%s17917_s25 + $0x480] sm:$0xff]  ;;  %v377_v37 = vld [vmem:[%s17917_s25 + $0x488] sm:$0xff] }
  0x29   : > { %v379_v38 = vld [vmem:[%s17917_s25 + $0x4c0] sm:$0xff]  ;;  %376 = vst [vmem:[%s17925_s26 + $0x120] sm:$0xff] %v375_v36  ;;  %378 = vst [vmem:[%s17925_s26 + $0x128] sm:$0xff] %v377_v37  ;;  %v381_v39 = vld [vmem:[%s17917_s25 + $0x4c8] sm:$0xff] }
  0x2a   : > { %380 = vst [vmem:[%s17925_s26 + $0x130] sm:$0xff] %v379_v38  ;;  %v383_v40 = vld [vmem:[%s17917_s25 + $0x500] sm:$0xff]  ;;  %v385_v41 = vld [vmem:[%s17917_s25 + $0x508] sm:$0xff]  ;;  %382 = vst [vmem:[%s17925_s26 + $0x138] sm:$0xff] %v381_v39 }
  0x2b   : > { %384 = vst [vmem:[%s17925_s26 + $0x140] sm:$0xff] %v383_v40  ;;  %386 = vst [vmem:[%s17925_s26 + $0x148] sm:$0xff] %v385_v41  ;;  %v387_v42 = vld [vmem:[%s17917_s25 + $0x540] sm:$0xff]  ;;  %v389_v43 = vld [vmem:[%s17917_s25 + $0x548] sm:$0xff] }
  0x2c   : > { %v391_v44 = vld [vmem:[%s17917_s25 + $0x580] sm:$0xff]  ;;  %388 = vst [vmem:[%s17925_s26 + $0x150] sm:$0xff] %v387_v42  ;;  %390 = vst [vmem:[%s17925_s26 + $0x158] sm:$0xff] %v389_v43  ;;  %v393_v45 = vld [vmem:[%s17917_s25 + $0x588] sm:$0xff] }
  0x2d   : > { %392 = vst [vmem:[%s17925_s26 + $0x160] sm:$0xff] %v391_v44  ;;  %v395_v46 = vld [vmem:[%s17917_s25 + $0x5c0] sm:$0xff]  ;;  %v397_v47 = vld [vmem:[%s17917_s25 + $0x5c8] sm:$0xff]  ;;  %394 = vst [vmem:[%s17925_s26 + $0x168] sm:$0xff] %v393_v45 }
  0x2e   : > { %396 = vst [vmem:[%s17925_s26 + $0x170] sm:$0xff] %v395_v46  ;;  %398 = vst [vmem:[%s17925_s26 + $0x178] sm:$0xff] %v397_v47  ;;  %v399_v48 = vld [vmem:[%s17917_s25 + $0x600] sm:$0xff]  ;;  %v401_v49 = vld [vmem:[%s17917_s25 + $0x608] sm:$0xff] }
  0x2f   : > { %v403_v50 = vld [vmem:[%s17917_s25 + $0x640] sm:$0xff]  ;;  %400 = vst [vmem:[%s17925_s26 + $0x180] sm:$0xff] %v399_v48  ;;  %402 = vst [vmem:[%s17925_s26 + $0x188] sm:$0xff] %v401_v49  ;;  %v405_v51 = vld [vmem:[%s17917_s25 + $0x648] sm:$0xff] }
  0x30   : > { %404 = vst [vmem:[%s17925_s26 + $0x190] sm:$0xff] %v403_v50  ;;  %v407_v52 = vld [vmem:[%s17917_s25 + $0x680] sm:$0xff]  ;;  %v409_v53 = vld [vmem:[%s17917_s25 + $0x688] sm:$0xff]  ;;  %406 = vst [vmem:[%s17925_s26 + $0x198] sm:$0xff] %v405_v51 }
  0x31   : > { %408 = vst [vmem:[%s17925_s26 + $0x1a0] sm:$0xff] %v407_v52  ;;  %410 = vst [vmem:[%s17925_s26 + $0x1a8] sm:$0xff] %v409_v53  ;;  %v411_v54 = vld [vmem:[%s17917_s25 + $0x6c0] sm:$0xff]  ;;  %v413_v55 = vld [vmem:[%s17917_s25 + $0x6c8] sm:$0xff] }
  0x32   : > { %v415_v56 = vld [vmem:[%s17917_s25 + $0x700] sm:$0xff]  ;;  %412 = vst [vmem:[%s17925_s26 + $0x1b0] sm:$0xff] %v411_v54  ;;  %414 = vst [vmem:[%s17925_s26 + $0x1b8] sm:$0xff] %v413_v55  ;;  %v417_v57 = vld [vmem:[%s17917_s25 + $0x708] sm:$0xff] }
  0x33   : > { %416 = vst [vmem:[%s17925_s26 + $0x1c0] sm:$0xff] %v415_v56  ;;  %v419_v58 = vld [vmem:[%s17917_s25 + $0x740] sm:$0xff]  ;;  %v421_v59 = vld [vmem:[%s17917_s25 + $0x748] sm:$0xff]  ;;  %418 = vst [vmem:[%s17925_s26 + $0x1c8] sm:$0xff] %v417_v57 }
  0x34   : > { %420 = vst [vmem:[%s17925_s26 + $0x1d0] sm:$0xff] %v419_v58  ;;  %422 = vst [vmem:[%s17925_s26 + $0x1d8] sm:$0xff] %v421_v59  ;;  %v423_v60 = vld [vmem:[%s17917_s25 + $0x780] sm:$0xff]  ;;  %v425_v61 = vld [vmem:[%s17917_s25 + $0x788] sm:$0xff] }
  0x35   : > { %v427_v62 = vld [vmem:[%s17917_s25 + $0x7c0] sm:$0xff]  ;;  %424 = vst [vmem:[%s17925_s26 + $0x1e0] sm:$0xff] %v423_v60  ;;  %426 = vst [vmem:[%s17925_s26 + $0x1e8] sm:$0xff] %v425_v61  ;;  %v429_v63 = vld [vmem:[%s17917_s25 + $0x7c8] sm:$0xff] }
  0x36   : > { %428 = vst [vmem:[%s17925_s26 + $0x1f0] sm:$0xff] %v427_v62  ;;  %v431_v0 = vld [vmem:[%s17917_s25 + $0x800] sm:$0xff]  ;;  %v433_v1 = vld [vmem:[%s17917_s25 + $0x808] sm:$0xff]  ;;  %430 = vst [vmem:[%s17925_s26 + $0x1f8] sm:$0xff] %v429_v63 }
  0x37   : > { %432 = vst [vmem:[%s17925_s26 + $0x200] sm:$0xff] %v431_v0  ;;  %434 = vst [vmem:[%s17925_s26 + $0x208] sm:$0xff] %v433_v1  ;;  %v435_v2 = vld [vmem:[%s17917_s25 + $0x840] sm:$0xff]  ;;  %v437_v3 = vld [vmem:[%s17917_s25 + $0x848] sm:$0xff] }
  0x38   : > { %v439_v4 = vld [vmem:[%s17917_s25 + $0x880] sm:$0xff]  ;;  %436 = vst [vmem:[%s17925_s26 + $0x210] sm:$0xff] %v435_v2  ;;  %438 = vst [vmem:[%s17925_s26 + $0x218] sm:$0xff] %v437_v3  ;;  %v441_v5 = vld [vmem:[%s17917_s25 + $0x888] sm:$0xff] }
  0x39   : > { %440 = vst [vmem:[%s17925_s26 + $0x220] sm:$0xff] %v439_v4  ;;  %v443_v6 = vld [vmem:[%s17917_s25 + $0x8c0] sm:$0xff]  ;;  %v445_v7 = vld [vmem:[%s17917_s25 + $0x8c8] sm:$0xff]  ;;  %442 = vst [vmem:[%s17925_s26 + $0x228] sm:$0xff] %v441_v5 }
  0x3a   : > { %444 = vst [vmem:[%s17925_s26 + $0x230] sm:$0xff] %v443_v6  ;;  %446 = vst [vmem:[%s17925_s26 + $0x238] sm:$0xff] %v445_v7  ;;  %v447_v8 = vld [vmem:[%s17917_s25 + $0x900] sm:$0xff]  ;;  %v449_v9 = vld [vmem:[%s17917_s25 + $0x908] sm:$0xff] }
  0x3b   : > { %v451_v10 = vld [vmem:[%s17917_s25 + $0x940] sm:$0xff]  ;;  %448 = vst [vmem:[%s17925_s26 + $0x240] sm:$0xff] %v447_v8  ;;  %450 = vst [vmem:[%s17925_s26 + $0x248] sm:$0xff] %v449_v9  ;;  %v453_v11 = vld [vmem:[%s17917_s25 + $0x948] sm:$0xff] }
  0x3c   : > { %452 = vst [vmem:[%s17925_s26 + $0x250] sm:$0xff] %v451_v10  ;;  %v455_v12 = vld [vmem:[%s17917_s25 + $0x980] sm:$0xff]  ;;  %v457_v13 = vld [vmem:[%s17917_s25 + $0x988] sm:$0xff]  ;;  %454 = vst [vmem:[%s17925_s26 + $0x258] sm:$0xff] %v453_v11 }
  0x3d   : > { %456 = vst [vmem:[%s17925_s26 + $0x260] sm:$0xff] %v455_v12  ;;  %458 = vst [vmem:[%s17925_s26 + $0x268] sm:$0xff] %v457_v13  ;;  %v459_v14 = vld [vmem:[%s17917_s25 + $0x9c0] sm:$0xff]  ;;  %v461_v15 = vld [vmem:[%s17917_s25 + $0x9c8] sm:$0xff] }
  0x3e   : > { %v463_v16 = vld [vmem:[%s17917_s25 + $0xa00] sm:$0xff]  ;;  %460 = vst [vmem:[%s17925_s26 + $0x270] sm:$0xff] %v459_v14  ;;  %462 = vst [vmem:[%s17925_s26 + $0x278] sm:$0xff] %v461_v15  ;;  %v465_v17 = vld [vmem:[%s17917_s25 + $0xa08] sm:$0xff] }
  0x3f   : > { %464 = vst [vmem:[%s17925_s26 + $0x280] sm:$0xff] %v463_v16  ;;  %v467_v18 = vld [vmem:[%s17917_s25 + $0xa40] sm:$0xff]  ;;  %v469_v19 = vld [vmem:[%s17917_s25 + $0xa48] sm:$0xff]  ;;  %466 = vst [vmem:[%s17925_s26 + $0x288] sm:$0xff] %v465_v17 }
  0x40   : > { %468 = vst [vmem:[%s17925_s26 + $0x290] sm:$0xff] %v467_v18  ;;  %470 = vst [vmem:[%s17925_s26 + $0x298] sm:$0xff] %v469_v19  ;;  %v471_v20 = vld [vmem:[%s17917_s25 + $0xa80] sm:$0xff]  ;;  %v473_v21 = vld [vmem:[%s17917_s25 + $0xa88] sm:$0xff] }
  0x41   : > { %v475_v22 = vld [vmem:[%s17917_s25 + $0xac0] sm:$0xff]  ;;  %472 = vst [vmem:[%s17925_s26 + $0x2a0] sm:$0xff] %v471_v20  ;;  %474 = vst [vmem:[%s17925_s26 + $0x2a8] sm:$0xff] %v473_v21  ;;  %v477_v23 = vld [vmem:[%s17917_s25 + $0xac8] sm:$0xff] }
  0x42   : > { %476 = vst [vmem:[%s17925_s26 + $0x2b0] sm:$0xff] %v475_v22  ;;  %v479_v24 = vld [vmem:[%s17917_s25 + $0xb00] sm:$0xff]  ;;  %v481_v25 = vld [vmem:[%s17917_s25 + $0xb08] sm:$0xff]  ;;  %478 = vst [vmem:[%s17925_s26 + $0x2b8] sm:$0xff] %v477_v23 }
  0x43   : > { %480 = vst [vmem:[%s17925_s26 + $0x2c0] sm:$0xff] %v479_v24  ;;  %482 = vst [vmem:[%s17925_s26 + $0x2c8] sm:$0xff] %v481_v25  ;;  %v483_v26 = vld [vmem:[%s17917_s25 + $0xb40] sm:$0xff]  ;;  %v485_v27 = vld [vmem:[%s17917_s25 + $0xb48] sm:$0xff] }
  0x44   : > { %v487_v28 = vld [vmem:[%s17917_s25 + $0xb80] sm:$0xff]  ;;  %484 = vst [vmem:[%s17925_s26 + $0x2d0] sm:$0xff] %v483_v26  ;;  %486 = vst [vmem:[%s17925_s26 + $0x2d8] sm:$0xff] %v485_v27  ;;  %v489_v29 = vld [vmem:[%s17917_s25 + $0xb88] sm:$0xff] }
  0x45   : > { %488 = vst [vmem:[%s17925_s26 + $0x2e0] sm:$0xff] %v487_v28  ;;  %v491_v30 = vld [vmem:[%s17917_s25 + $0xbc0] sm:$0xff]  ;;  %v493_v31 = vld [vmem:[%s17917_s25 + $0xbc8] sm:$0xff]  ;;  %490 = vst [vmem:[%s17925_s26 + $0x2e8] sm:$0xff] %v489_v29 }
  0x46   : > { %492 = vst [vmem:[%s17925_s26 + $0x2f0] sm:$0xff] %v491_v30  ;;  %494 = vst [vmem:[%s17925_s26 + $0x2f8] sm:$0xff] %v493_v31  ;;  %v495_v32 = vld [vmem:[%s17917_s25 + $0xc00] sm:$0xff]  ;;  %v497_v33 = vld [vmem:[%s17917_s25 + $0xc08] sm:$0xff] }
  0x47   : > { %v499_v34 = vld [vmem:[%s17917_s25 + $0xc40] sm:$0xff]  ;;  %496 = vst [vmem:[%s17925_s26 + $0x300] sm:$0xff] %v495_v32  ;;  %498 = vst [vmem:[%s17925_s26 + $0x308] sm:$0xff] %v497_v33  ;;  %v501_v35 = vld [vmem:[%s17917_s25 + $0xc48] sm:$0xff] }
  0x48   : > { %500 = vst [vmem:[%s17925_s26 + $0x310] sm:$0xff] %v499_v34  ;;  %v503_v36 = vld [vmem:[%s17917_s25 + $0xc80] sm:$0xff]  ;;  %v505_v37 = vld [vmem:[%s17917_s25 + $0xc88] sm:$0xff]  ;;  %502 = vst [vmem:[%s17925_s26 + $0x318] sm:$0xff] %v501_v35 }
  0x49   : > { %504 = vst [vmem:[%s17925_s26 + $0x320] sm:$0xff] %v503_v36  ;;  %506 = vst [vmem:[%s17925_s26 + $0x328] sm:$0xff] %v505_v37  ;;  %v507_v38 = vld [vmem:[%s17917_s25 + $0xcc0] sm:$0xff]  ;;  %v509_v39 = vld [vmem:[%s17917_s25 + $0xcc8] sm:$0xff] }
  0x4a   : > { %v511_v40 = vld [vmem:[%s17917_s25 + $0xd00] sm:$0xff]  ;;  %508 = vst [vmem:[%s17925_s26 + $0x330] sm:$0xff] %v507_v38  ;;  %510 = vst [vmem:[%s17925_s26 + $0x338] sm:$0xff] %v509_v39  ;;  %v513_v41 = vld [vmem:[%s17917_s25 + $0xd08] sm:$0xff] }
  0x4b   : > { %512 = vst [vmem:[%s17925_s26 + $0x340] sm:$0xff] %v511_v40  ;;  %v515_v42 = vld [vmem:[%s17917_s25 + $0xd40] sm:$0xff]  ;;  %v517_v43 = vld [vmem:[%s17917_s25 + $0xd48] sm:$0xff]  ;;  %514 = vst [vmem:[%s17925_s26 + $0x348] sm:$0xff] %v513_v41 }
  0x4c   : > { %516 = vst [vmem:[%s17925_s26 + $0x350] sm:$0xff] %v515_v42  ;;  %518 = vst [vmem:[%s17925_s26 + $0x358] sm:$0xff] %v517_v43  ;;  %v519_v44 = vld [vmem:[%s17917_s25 + $0xd80] sm:$0xff]  ;;  %v521_v45 = vld [vmem:[%s17917_s25 + $0xd88] sm:$0xff] }
  0x4d   : > { %v523_v46 = vld [vmem:[%s17917_s25 + $0xdc0] sm:$0xff]  ;;  %520 = vst [vmem:[%s17925_s26 + $0x360] sm:$0xff] %v519_v44  ;;  %522 = vst [vmem:[%s17925_s26 + $0x368] sm:$0xff] %v521_v45  ;;  %v525_v47 = vld [vmem:[%s17917_s25 + $0xdc8] sm:$0xff] }
  0x4e   : > { %524 = vst [vmem:[%s17925_s26 + $0x370] sm:$0xff] %v523_v46  ;;  %v527_v48 = vld [vmem:[%s17917_s25 + $0xe00] sm:$0xff]  ;;  %v529_v49 = vld [vmem:[%s17917_s25 + $0xe08] sm:$0xff]  ;;  %526 = vst [vmem:[%s17925_s26 + $0x378] sm:$0xff] %v525_v47 }
  0x4f   : > { %528 = vst [vmem:[%s17925_s26 + $0x380] sm:$0xff] %v527_v48  ;;  %530 = vst [vmem:[%s17925_s26 + $0x388] sm:$0xff] %v529_v49  ;;  %v531_v50 = vld [vmem:[%s17917_s25 + $0xe40] sm:$0xff]  ;;  %v533_v51 = vld [vmem:[%s17917_s25 + $0xe48] sm:$0xff] }
  0x50   : > { %v535_v52 = vld [vmem:[%s17917_s25 + $0xe80] sm:$0xff]  ;;  %532 = vst [vmem:[%s17925_s26 + $0x390] sm:$0xff] %v531_v50  ;;  %534 = vst [vmem:[%s17925_s26 + $0x398] sm:$0xff] %v533_v51  ;;  %v537_v53 = vld [vmem:[%s17917_s25 + $0xe88] sm:$0xff] }
  0x51   : > { %536 = vst [vmem:[%s17925_s26 + $0x3a0] sm:$0xff] %v535_v52  ;;  %v539_v54 = vld [vmem:[%s17917_s25 + $0xec0] sm:$0xff]  ;;  %v541_v55 = vld [vmem:[%s17917_s25 + $0xec8] sm:$0xff]  ;;  %538 = vst [vmem:[%s17925_s26 + $0x3a8] sm:$0xff] %v537_v53 }
  0x52   : > { %540 = vst [vmem:[%s17925_s26 + $0x3b0] sm:$0xff] %v539_v54  ;;  %542 = vst [vmem:[%s17925_s26 + $0x3b8] sm:$0xff] %v541_v55  ;;  %v543_v56 = vld [vmem:[%s17917_s25 + $0xf00] sm:$0xff]  ;;  %v545_v57 = vld [vmem:[%s17917_s25 + $0xf08] sm:$0xff] }
  0x53   : > { %v547_v58 = vld [vmem:[%s17917_s25 + $0xf40] sm:$0xff]  ;;  %544 = vst [vmem:[%s17925_s26 + $0x3c0] sm:$0xff] %v543_v56  ;;  %546 = vst [vmem:[%s17925_s26 + $0x3c8] sm:$0xff] %v545_v57  ;;  %v549_v59 = vld [vmem:[%s17917_s25 + $0xf48] sm:$0xff] }
  0x54   : > { %548 = vst [vmem:[%s17925_s26 + $0x3d0] sm:$0xff] %v547_v58  ;;  %v551_v60 = vld [vmem:[%s17917_s25 + $0xf80] sm:$0xff]  ;;  %v553_v61 = vld [vmem:[%s17917_s25 + $0xf88] sm:$0xff]  ;;  %550 = vst [vmem:[%s17925_s26 + $0x3d8] sm:$0xff] %v549_v59 }
  0x55   : > { %552 = vst [vmem:[%s17925_s26 + $0x3e0] sm:$0xff] %v551_v60  ;;  %554 = vst [vmem:[%s17925_s26 + $0x3e8] sm:$0xff] %v553_v61  ;;  %v555_v62 = vld [vmem:[%s17917_s25 + $0xfc0] sm:$0xff]  ;;  %v557_v63 = vld [vmem:[%s17917_s25 + $0xfc8] sm:$0xff] }
  0x56   : > { %v559_v0 = vld [vmem:[%s17917_s25 + $0x1000] sm:$0xff]  ;;  %556 = vst [vmem:[%s17925_s26 + $0x3f0] sm:$0xff] %v555_v62  ;;  %558 = vst [vmem:[%s17925_s26 + $0x3f8] sm:$0xff] %v557_v63  ;;  %v561_v1 = vld [vmem:[%s17917_s25 + $0x1008] sm:$0xff] }
  0x57   : > { %560 = vst [vmem:[%s17925_s26 + $0x400] sm:$0xff] %v559_v0  ;;  %v563_v2 = vld [vmem:[%s17917_s25 + $0x1040] sm:$0xff]  ;;  %v565_v3 = vld [vmem:[%s17917_s25 + $0x1048] sm:$0xff]  ;;  %562 = vst [vmem:[%s17925_s26 + $0x408] sm:$0xff] %v561_v1 }
  0x58   : > { %564 = vst [vmem:[%s17925_s26 + $0x410] sm:$0xff] %v563_v2  ;;  %566 = vst [vmem:[%s17925_s26 + $0x418] sm:$0xff] %v565_v3  ;;  %v567_v4 = vld [vmem:[%s17917_s25 + $0x1080] sm:$0xff]  ;;  %v569_v5 = vld [vmem:[%s17917_s25 + $0x1088] sm:$0xff] }
  0x59   : > { %v571_v6 = vld [vmem:[%s17917_s25 + $0x10c0] sm:$0xff]  ;;  %568 = vst [vmem:[%s17925_s26 + $0x420] sm:$0xff] %v567_v4  ;;  %570 = vst [vmem:[%s17925_s26 + $0x428] sm:$0xff] %v569_v5  ;;  %v573_v7 = vld [vmem:[%s17917_s25 + $0x10c8] sm:$0xff] }
  0x5a   : > { %572 = vst [vmem:[%s17925_s26 + $0x430] sm:$0xff] %v571_v6  ;;  %v575_v8 = vld [vmem:[%s17917_s25 + $0x1100] sm:$0xff]  ;;  %v577_v9 = vld [vmem:[%s17917_s25 + $0x1108] sm:$0xff]  ;;  %574 = vst [vmem:[%s17925_s26 + $0x438] sm:$0xff] %v573_v7 }
  0x5b   : > { %576 = vst [vmem:[%s17925_s26 + $0x440] sm:$0xff] %v575_v8  ;;  %578 = vst [vmem:[%s17925_s26 + $0x448] sm:$0xff] %v577_v9  ;;  %v579_v10 = vld [vmem:[%s17917_s25 + $0x1140] sm:$0xff]  ;;  %v581_v11 = vld [vmem:[%s17917_s25 + $0x1148] sm:$0xff] }
  0x5c   : > { %v583_v12 = vld [vmem:[%s17917_s25 + $0x1180] sm:$0xff]  ;;  %580 = vst [vmem:[%s17925_s26 + $0x450] sm:$0xff] %v579_v10  ;;  %582 = vst [vmem:[%s17925_s26 + $0x458] sm:$0xff] %v581_v11  ;;  %v585_v13 = vld [vmem:[%s17917_s25 + $0x1188] sm:$0xff] }
  0x5d   : > { %584 = vst [vmem:[%s17925_s26 + $0x460] sm:$0xff] %v583_v12  ;;  %v587_v14 = vld [vmem:[%s17917_s25 + $0x11c0] sm:$0xff]  ;;  %v589_v15 = vld [vmem:[%s17917_s25 + $0x11c8] sm:$0xff]  ;;  %586 = vst [vmem:[%s17925_s26 + $0x468] sm:$0xff] %v585_v13 }
  0x5e   : > { %588 = vst [vmem:[%s17925_s26 + $0x470] sm:$0xff] %v587_v14  ;;  %590 = vst [vmem:[%s17925_s26 + $0x478] sm:$0xff] %v589_v15  ;;  %v591_v16 = vld [vmem:[%s17917_s25 + $0x1200] sm:$0xff]  ;;  %v593_v17 = vld [vmem:[%s17917_s25 + $0x1208] sm:$0xff] }
  0x5f   : > { %v595_v18 = vld [vmem:[%s17917_s25 + $0x1240] sm:$0xff]  ;;  %592 = vst [vmem:[%s17925_s26 + $0x480] sm:$0xff] %v591_v16  ;;  %594 = vst [vmem:[%s17925_s26 + $0x488] sm:$0xff] %v593_v17  ;;  %v597_v19 = vld [vmem:[%s17917_s25 + $0x1248] sm:$0xff] }
  0x60   : > { %596 = vst [vmem:[%s17925_s26 + $0x490] sm:$0xff] %v595_v18  ;;  %v599_v20 = vld [vmem:[%s17917_s25 + $0x1280] sm:$0xff]  ;;  %v601_v21 = vld [vmem:[%s17917_s25 + $0x1288] sm:$0xff]  ;;  %598 = vst [vmem:[%s17925_s26 + $0x498] sm:$0xff] %v597_v19 }
  0x61   : > { %600 = vst [vmem:[%s17925_s26 + $0x4a0] sm:$0xff] %v599_v20  ;;  %602 = vst [vmem:[%s17925_s26 + $0x4a8] sm:$0xff] %v601_v21  ;;  %v603_v22 = vld [vmem:[%s17917_s25 + $0x12c0] sm:$0xff]  ;;  %v605_v23 = vld [vmem:[%s17917_s25 + $0x12c8] sm:$0xff] }
  0x62   : > { %v607_v24 = vld [vmem:[%s17917_s25 + $0x1300] sm:$0xff]  ;;  %604 = vst [vmem:[%s17925_s26 + $0x4b0] sm:$0xff] %v603_v22  ;;  %606 = vst [vmem:[%s17925_s26 + $0x4b8] sm:$0xff] %v605_v23  ;;  %v609_v25 = vld [vmem:[%s17917_s25 + $0x1308] sm:$0xff] }
  0x63   : > { %608 = vst [vmem:[%s17925_s26 + $0x4c0] sm:$0xff] %v607_v24  ;;  %v611_v26 = vld [vmem:[%s17917_s25 + $0x1340] sm:$0xff]  ;;  %v613_v27 = vld [vmem:[%s17917_s25 + $0x1348] sm:$0xff]  ;;  %610 = vst [vmem:[%s17925_s26 + $0x4c8] sm:$0xff] %v609_v25 }
  0x64   : > { %612 = vst [vmem:[%s17925_s26 + $0x4d0] sm:$0xff] %v611_v26  ;;  %614 = vst [vmem:[%s17925_s26 + $0x4d8] sm:$0xff] %v613_v27  ;;  %v615_v28 = vld [vmem:[%s17917_s25 + $0x1380] sm:$0xff]  ;;  %v617_v29 = vld [vmem:[%s17917_s25 + $0x1388] sm:$0xff] }
  0x65   : > { %v619_v30 = vld [vmem:[%s17917_s25 + $0x13c0] sm:$0xff]  ;;  %616 = vst [vmem:[%s17925_s26 + $0x4e0] sm:$0xff] %v615_v28  ;;  %618 = vst [vmem:[%s17925_s26 + $0x4e8] sm:$0xff] %v617_v29  ;;  %v621_v31 = vld [vmem:[%s17917_s25 + $0x13c8] sm:$0xff] }
  0x66   : > { %620 = vst [vmem:[%s17925_s26 + $0x4f0] sm:$0xff] %v619_v30  ;;  %v623_v32 = vld [vmem:[%s17917_s25 + $0x1400] sm:$0xff]  ;;  %v625_v33 = vld [vmem:[%s17917_s25 + $0x1408] sm:$0xff]  ;;  %622 = vst [vmem:[%s17925_s26 + $0x4f8] sm:$0xff] %v621_v31 }
  0x67   : > { %624 = vst [vmem:[%s17925_s26 + $0x500] sm:$0xff] %v623_v32  ;;  %626 = vst [vmem:[%s17925_s26 + $0x508] sm:$0xff] %v625_v33  ;;  %v627_v34 = vld [vmem:[%s17917_s25 + $0x1440] sm:$0xff]  ;;  %v629_v35 = vld [vmem:[%s17917_s25 + $0x1448] sm:$0xff] }
  0x68   : > { %v631_v36 = vld [vmem:[%s17917_s25 + $0x1480] sm:$0xff]  ;;  %628 = vst [vmem:[%s17925_s26 + $0x510] sm:$0xff] %v627_v34  ;;  %630 = vst [vmem:[%s17925_s26 + $0x518] sm:$0xff] %v629_v35  ;;  %v633_v37 = vld [vmem:[%s17917_s25 + $0x1488] sm:$0xff] }
  0x69   : > { %632 = vst [vmem:[%s17925_s26 + $0x520] sm:$0xff] %v631_v36  ;;  %v635_v38 = vld [vmem:[%s17917_s25 + $0x14c0] sm:$0xff]  ;;  %v637_v39 = vld [vmem:[%s17917_s25 + $0x14c8] sm:$0xff]  ;;  %634 = vst [vmem:[%s17925_s26 + $0x528] sm:$0xff] %v633_v37 }
  0x6a   : > { %636 = vst [vmem:[%s17925_s26 + $0x530] sm:$0xff] %v635_v38  ;;  %638 = vst [vmem:[%s17925_s26 + $0x538] sm:$0xff] %v637_v39  ;;  %v639_v40 = vld [vmem:[%s17917_s25 + $0x1500] sm:$0xff]  ;;  %v641_v41 = vld [vmem:[%s17917_s25 + $0x1508] sm:$0xff] }
  0x6b   : > { %v643_v42 = vld [vmem:[%s17917_s25 + $0x1540] sm:$0xff]  ;;  %640 = vst [vmem:[%s17925_s26 + $0x540] sm:$0xff] %v639_v40  ;;  %642 = vst [vmem:[%s17925_s26 + $0x548] sm:$0xff] %v641_v41  ;;  %v645_v43 = vld [vmem:[%s17917_s25 + $0x1548] sm:$0xff] }
  0x6c   : > { %644 = vst [vmem:[%s17925_s26 + $0x550] sm:$0xff] %v643_v42  ;;  %v647_v44 = vld [vmem:[%s17917_s25 + $0x1580] sm:$0xff]  ;;  %v649_v45 = vld [vmem:[%s17917_s25 + $0x1588] sm:$0xff]  ;;  %646 = vst [vmem:[%s17925_s26 + $0x558] sm:$0xff] %v645_v43 }
  0x6d   : > { %648 = vst [vmem:[%s17925_s26 + $0x560] sm:$0xff] %v647_v44  ;;  %650 = vst [vmem:[%s17925_s26 + $0x568] sm:$0xff] %v649_v45  ;;  %v651_v46 = vld [vmem:[%s17917_s25 + $0x15c0] sm:$0xff]  ;;  %v653_v47 = vld [vmem:[%s17917_s25 + $0x15c8] sm:$0xff] }
  0x6e   : > { %v655_v48 = vld [vmem:[%s17917_s25 + $0x1600] sm:$0xff]  ;;  %652 = vst [vmem:[%s17925_s26 + $0x570] sm:$0xff] %v651_v46  ;;  %654 = vst [vmem:[%s17925_s26 + $0x578] sm:$0xff] %v653_v47  ;;  %v657_v49 = vld [vmem:[%s17917_s25 + $0x1608] sm:$0xff] }
  0x6f   : > { %656 = vst [vmem:[%s17925_s26 + $0x580] sm:$0xff] %v655_v48  ;;  %v659_v50 = vld [vmem:[%s17917_s25 + $0x1640] sm:$0xff]  ;;  %v661_v51 = vld [vmem:[%s17917_s25 + $0x1648] sm:$0xff]  ;;  %658 = vst [vmem:[%s17925_s26 + $0x588] sm:$0xff] %v657_v49 }
  0x70   : > { %660 = vst [vmem:[%s17925_s26 + $0x590] sm:$0xff] %v659_v50  ;;  %662 = vst [vmem:[%s17925_s26 + $0x598] sm:$0xff] %v661_v51  ;;  %v663_v52 = vld [vmem:[%s17917_s25 + $0x1680] sm:$0xff]  ;;  %v665_v53 = vld [vmem:[%s17917_s25 + $0x1688] sm:$0xff] }
  0x71   : > { %v667_v54 = vld [vmem:[%s17917_s25 + $0x16c0] sm:$0xff]  ;;  %664 = vst [vmem:[%s17925_s26 + $0x5a0] sm:$0xff] %v663_v52  ;;  %666 = vst [vmem:[%s17925_s26 + $0x5a8] sm:$0xff] %v665_v53  ;;  %v669_v55 = vld [vmem:[%s17917_s25 + $0x16c8] sm:$0xff] }
  0x72   : > { %668 = vst [vmem:[%s17925_s26 + $0x5b0] sm:$0xff] %v667_v54  ;;  %v671_v56 = vld [vmem:[%s17917_s25 + $0x1700] sm:$0xff]  ;;  %v673_v57 = vld [vmem:[%s17917_s25 + $0x1708] sm:$0xff]  ;;  %670 = vst [vmem:[%s17925_s26 + $0x5b8] sm:$0xff] %v669_v55 }
  0x73   : > { %672 = vst [vmem:[%s17925_s26 + $0x5c0] sm:$0xff] %v671_v56  ;;  %674 = vst [vmem:[%s17925_s26 + $0x5c8] sm:$0xff] %v673_v57  ;;  %v675_v58 = vld [vmem:[%s17917_s25 + $0x1740] sm:$0xff]  ;;  %v677_v59 = vld [vmem:[%s17917_s25 + $0x1748] sm:$0xff] }
  0x74   : > { %v679_v60 = vld [vmem:[%s17917_s25 + $0x1780] sm:$0xff]  ;;  %676 = vst [vmem:[%s17925_s26 + $0x5d0] sm:$0xff] %v675_v58  ;;  %678 = vst [vmem:[%s17925_s26 + $0x5d8] sm:$0xff] %v677_v59  ;;  %v681_v61 = vld [vmem:[%s17917_s25 + $0x1788] sm:$0xff] }
  0x75   : > { %680 = vst [vmem:[%s17925_s26 + $0x5e0] sm:$0xff] %v679_v60  ;;  %v683_v62 = vld [vmem:[%s17917_s25 + $0x17c0] sm:$0xff]  ;;  %v685_v63 = vld [vmem:[%s17917_s25 + $0x17c8] sm:$0xff]  ;;  %682 = vst [vmem:[%s17925_s26 + $0x5e8] sm:$0xff] %v681_v61 }
  0x76   : > { %684 = vst [vmem:[%s17925_s26 + $0x5f0] sm:$0xff] %v683_v62  ;;  %686 = vst [vmem:[%s17925_s26 + $0x5f8] sm:$0xff] %v685_v63  ;;  %v687_v0 = vld [vmem:[%s17917_s25 + $0x1800] sm:$0xff]  ;;  %v689_v1 = vld [vmem:[%s17917_s25 + $0x1808] sm:$0xff] }
  0x77   : > { %v691_v2 = vld [vmem:[%s17917_s25 + $0x1840] sm:$0xff]  ;;  %688 = vst [vmem:[%s17925_s26 + $0x600] sm:$0xff] %v687_v0  ;;  %690 = vst [vmem:[%s17925_s26 + $0x608] sm:$0xff] %v689_v1  ;;  %v693_v3 = vld [vmem:[%s17917_s25 + $0x1848] sm:$0xff] }
  0x78   : > { %692 = vst [vmem:[%s17925_s26 + $0x610] sm:$0xff] %v691_v2  ;;  %v695_v4 = vld [vmem:[%s17917_s25 + $0x1880] sm:$0xff]  ;;  %v697_v5 = vld [vmem:[%s17917_s25 + $0x1888] sm:$0xff]  ;;  %694 = vst [vmem:[%s17925_s26 + $0x618] sm:$0xff] %v693_v3 }
  0x79   : > { %696 = vst [vmem:[%s17925_s26 + $0x620] sm:$0xff] %v695_v4  ;;  %698 = vst [vmem:[%s17925_s26 + $0x628] sm:$0xff] %v697_v5  ;;  %v699_v6 = vld [vmem:[%s17917_s25 + $0x18c0] sm:$0xff]  ;;  %v701_v7 = vld [vmem:[%s17917_s25 + $0x18c8] sm:$0xff] }
  0x7a   : > { %v703_v8 = vld [vmem:[%s17917_s25 + $0x1900] sm:$0xff]  ;;  %700 = vst [vmem:[%s17925_s26 + $0x630] sm:$0xff] %v699_v6  ;;  %702 = vst [vmem:[%s17925_s26 + $0x638] sm:$0xff] %v701_v7  ;;  %v705_v9 = vld [vmem:[%s17917_s25 + $0x1908] sm:$0xff] }
  0x7b   : > { %704 = vst [vmem:[%s17925_s26 + $0x640] sm:$0xff] %v703_v8  ;;  %v707_v10 = vld [vmem:[%s17917_s25 + $0x1940] sm:$0xff]  ;;  %v709_v11 = vld [vmem:[%s17917_s25 + $0x1948] sm:$0xff]  ;;  %706 = vst [vmem:[%s17925_s26 + $0x648] sm:$0xff] %v705_v9 }
  0x7c   : > { %708 = vst [vmem:[%s17925_s26 + $0x650] sm:$0xff] %v707_v10  ;;  %710 = vst [vmem:[%s17925_s26 + $0x658] sm:$0xff] %v709_v11  ;;  %v711_v12 = vld [vmem:[%s17917_s25 + $0x1980] sm:$0xff]  ;;  %v713_v13 = vld [vmem:[%s17917_s25 + $0x1988] sm:$0xff] }
  0x7d   : > { %v715_v14 = vld [vmem:[%s17917_s25 + $0x19c0] sm:$0xff]  ;;  %712 = vst [vmem:[%s17925_s26 + $0x660] sm:$0xff] %v711_v12  ;;  %714 = vst [vmem:[%s17925_s26 + $0x668] sm:$0xff] %v713_v13  ;;  %v717_v15 = vld [vmem:[%s17917_s25 + $0x19c8] sm:$0xff] }
  0x7e   : > { %716 = vst [vmem:[%s17925_s26 + $0x670] sm:$0xff] %v715_v14  ;;  %v719_v16 = vld [vmem:[%s17917_s25 + $0x1a00] sm:$0xff]  ;;  %v721_v17 = vld [vmem:[%s17917_s25 + $0x1a08] sm:$0xff]  ;;  %718 = vst [vmem:[%s17925_s26 + $0x678] sm:$0xff] %v717_v15 }
  0x7f   : > { %720 = vst [vmem:[%s17925_s26 + $0x680] sm:$0xff] %v719_v16  ;;  %722 = vst [vmem:[%s17925_s26 + $0x688] sm:$0xff] %v721_v17  ;;  %v723_v18 = vld [vmem:[%s17917_s25 + $0x1a40] sm:$0xff]  ;;  %v725_v19 = vld [vmem:[%s17917_s25 + $0x1a48] sm:$0xff] }
  0x80   : > { %v727_v20 = vld [vmem:[%s17917_s25 + $0x1a80] sm:$0xff]  ;;  %724 = vst [vmem:[%s17925_s26 + $0x690] sm:$0xff] %v723_v18  ;;  %726 = vst [vmem:[%s17925_s26 + $0x698] sm:$0xff] %v725_v19  ;;  %v729_v21 = vld [vmem:[%s17917_s25 + $0x1a88] sm:$0xff] }
  0x81   : > { %728 = vst [vmem:[%s17925_s26 + $0x6a0] sm:$0xff] %v727_v20  ;;  %v731_v22 = vld [vmem:[%s17917_s25 + $0x1ac0] sm:$0xff]  ;;  %v733_v23 = vld [vmem:[%s17917_s25 + $0x1ac8] sm:$0xff]  ;;  %730 = vst [vmem:[%s17925_s26 + $0x6a8] sm:$0xff] %v729_v21 }
  0x82   : > { %732 = vst [vmem:[%s17925_s26 + $0x6b0] sm:$0xff] %v731_v22  ;;  %734 = vst [vmem:[%s17925_s26 + $0x6b8] sm:$0xff] %v733_v23  ;;  %v735_v24 = vld [vmem:[%s17917_s25 + $0x1b00] sm:$0xff]  ;;  %v737_v25 = vld [vmem:[%s17917_s25 + $0x1b08] sm:$0xff] }
  0x83   : > { %v739_v26 = vld [vmem:[%s17917_s25 + $0x1b40] sm:$0xff]  ;;  %736 = vst [vmem:[%s17925_s26 + $0x6c0] sm:$0xff] %v735_v24  ;;  %738 = vst [vmem:[%s17925_s26 + $0x6c8] sm:$0xff] %v737_v25  ;;  %v741_v27 = vld [vmem:[%s17917_s25 + $0x1b48] sm:$0xff] }
  0x84   : > { %740 = vst [vmem:[%s17925_s26 + $0x6d0] sm:$0xff] %v739_v26  ;;  %v743_v28 = vld [vmem:[%s17917_s25 + $0x1b80] sm:$0xff]  ;;  %v745_v29 = vld [vmem:[%s17917_s25 + $0x1b88] sm:$0xff]  ;;  %742 = vst [vmem:[%s17925_s26 + $0x6d8] sm:$0xff] %v741_v27 }
  0x85   : > { %744 = vst [vmem:[%s17925_s26 + $0x6e0] sm:$0xff] %v743_v28  ;;  %746 = vst [vmem:[%s17925_s26 + $0x6e8] sm:$0xff] %v745_v29  ;;  %v747_v30 = vld [vmem:[%s17917_s25 + $0x1bc0] sm:$0xff]  ;;  %v749_v31 = vld [vmem:[%s17917_s25 + $0x1bc8] sm:$0xff] }
  0x86   : > { %v751_v32 = vld [vmem:[%s17917_s25 + $0x1c00] sm:$0xff]  ;;  %748 = vst [vmem:[%s17925_s26 + $0x6f0] sm:$0xff] %v747_v30  ;;  %750 = vst [vmem:[%s17925_s26 + $0x6f8] sm:$0xff] %v749_v31  ;;  %v753_v33 = vld [vmem:[%s17917_s25 + $0x1c08] sm:$0xff] }
  0x87   : > { %752 = vst [vmem:[%s17925_s26 + $0x700] sm:$0xff] %v751_v32  ;;  %v755_v34 = vld [vmem:[%s17917_s25 + $0x1c40] sm:$0xff]  ;;  %v757_v35 = vld [vmem:[%s17917_s25 + $0x1c48] sm:$0xff]  ;;  %754 = vst [vmem:[%s17925_s26 + $0x708] sm:$0xff] %v753_v33 }
  0x88   : > { %756 = vst [vmem:[%s17925_s26 + $0x710] sm:$0xff] %v755_v34  ;;  %758 = vst [vmem:[%s17925_s26 + $0x718] sm:$0xff] %v757_v35  ;;  %v759_v36 = vld [vmem:[%s17917_s25 + $0x1c80] sm:$0xff]  ;;  %v761_v37 = vld [vmem:[%s17917_s25 + $0x1c88] sm:$0xff] }
  0x89   : > { %v763_v38 = vld [vmem:[%s17917_s25 + $0x1cc0] sm:$0xff]  ;;  %760 = vst [vmem:[%s17925_s26 + $0x720] sm:$0xff] %v759_v36  ;;  %762 = vst [vmem:[%s17925_s26 + $0x728] sm:$0xff] %v761_v37  ;;  %v765_v39 = vld [vmem:[%s17917_s25 + $0x1cc8] sm:$0xff] }
  0x8a   : > { %764 = vst [vmem:[%s17925_s26 + $0x730] sm:$0xff] %v763_v38  ;;  %v767_v40 = vld [vmem:[%s17917_s25 + $0x1d00] sm:$0xff]  ;;  %v769_v41 = vld [vmem:[%s17917_s25 + $0x1d08] sm:$0xff]  ;;  %766 = vst [vmem:[%s17925_s26 + $0x738] sm:$0xff] %v765_v39 }
  0x8b   : > { %768 = vst [vmem:[%s17925_s26 + $0x740] sm:$0xff] %v767_v40  ;;  %770 = vst [vmem:[%s17925_s26 + $0x748] sm:$0xff] %v769_v41  ;;  %v771_v42 = vld [vmem:[%s17917_s25 + $0x1d40] sm:$0xff]  ;;  %v773_v43 = vld [vmem:[%s17917_s25 + $0x1d48] sm:$0xff] }
  0x8c   : > { %v775_v44 = vld [vmem:[%s17917_s25 + $0x1d80] sm:$0xff]  ;;  %772 = vst [vmem:[%s17925_s26 + $0x750] sm:$0xff] %v771_v42  ;;  %774 = vst [vmem:[%s17925_s26 + $0x758] sm:$0xff] %v773_v43  ;;  %v777_v45 = vld [vmem:[%s17917_s25 + $0x1d88] sm:$0xff] }
  0x8d   : > { %776 = vst [vmem:[%s17925_s26 + $0x760] sm:$0xff] %v775_v44  ;;  %v779_v46 = vld [vmem:[%s17917_s25 + $0x1dc0] sm:$0xff]  ;;  %v781_v47 = vld [vmem:[%s17917_s25 + $0x1dc8] sm:$0xff]  ;;  %778 = vst [vmem:[%s17925_s26 + $0x768] sm:$0xff] %v777_v45 }
  0x8e   : > { %780 = vst [vmem:[%s17925_s26 + $0x770] sm:$0xff] %v779_v46  ;;  %782 = vst [vmem:[%s17925_s26 + $0x778] sm:$0xff] %v781_v47  ;;  %v783_v48 = vld [vmem:[%s17917_s25 + $0x1e00] sm:$0xff]  ;;  %v785_v49 = vld [vmem:[%s17917_s25 + $0x1e08] sm:$0xff] }
  0x8f   : > { %v787_v50 = vld [vmem:[%s17917_s25 + $0x1e40] sm:$0xff]  ;;  %784 = vst [vmem:[%s17925_s26 + $0x780] sm:$0xff] %v783_v48  ;;  %786 = vst [vmem:[%s17925_s26 + $0x788] sm:$0xff] %v785_v49  ;;  %v789_v51 = vld [vmem:[%s17917_s25 + $0x1e48] sm:$0xff] }
  0x90   : > { %788 = vst [vmem:[%s17925_s26 + $0x790] sm:$0xff] %v787_v50  ;;  %v791_v52 = vld [vmem:[%s17917_s25 + $0x1e80] sm:$0xff]  ;;  %v793_v53 = vld [vmem:[%s17917_s25 + $0x1e88] sm:$0xff]  ;;  %790 = vst [vmem:[%s17925_s26 + $0x798] sm:$0xff] %v789_v51 }
  0x91   : > { %792 = vst [vmem:[%s17925_s26 + $0x7a0] sm:$0xff] %v791_v52  ;;  %794 = vst [vmem:[%s17925_s26 + $0x7a8] sm:$0xff] %v793_v53  ;;  %v795_v54 = vld [vmem:[%s17917_s25 + $0x1ec0] sm:$0xff]  ;;  %v797_v55 = vld [vmem:[%s17917_s25 + $0x1ec8] sm:$0xff] }
  0x92   : > { %v799_v56 = vld [vmem:[%s17917_s25 + $0x1f00] sm:$0xff]  ;;  %796 = vst [vmem:[%s17925_s26 + $0x7b0] sm:$0xff] %v795_v54  ;;  %798 = vst [vmem:[%s17925_s26 + $0x7b8] sm:$0xff] %v797_v55  ;;  %v801_v57 = vld [vmem:[%s17917_s25 + $0x1f08] sm:$0xff] }
  0x93   : > { %800 = vst [vmem:[%s17925_s26 + $0x7c0] sm:$0xff] %v799_v56  ;;  %v803_v58 = vld [vmem:[%s17917_s25 + $0x1f40] sm:$0xff]  ;;  %v805_v59 = vld [vmem:[%s17917_s25 + $0x1f48] sm:$0xff]  ;;  %802 = vst [vmem:[%s17925_s26 + $0x7c8] sm:$0xff] %v801_v57 }
  0x94   : > { %804 = vst [vmem:[%s17925_s26 + $0x7d0] sm:$0xff] %v803_v58  ;;  %806 = vst [vmem:[%s17925_s26 + $0x7d8] sm:$0xff] %v805_v59  ;;  %v807_v60 = vld [vmem:[%s17917_s25 + $0x1f80] sm:$0xff]  ;;  %v809_v61 = vld [vmem:[%s17917_s25 + $0x1f88] sm:$0xff] }
  0x95   : > { %v811_v62 = vld [vmem:[%s17917_s25 + $0x1fc0] sm:$0xff]  ;;  %808 = vst [vmem:[%s17925_s26 + $0x7e0] sm:$0xff] %v807_v60  ;;  %810 = vst [vmem:[%s17925_s26 + $0x7e8] sm:$0xff] %v809_v61  ;;  %v813_v63 = vld [vmem:[%s17917_s25 + $0x1fc8] sm:$0xff] }
  0x96   : > { %812 = vst [vmem:[%s17925_s26 + $0x7f0] sm:$0xff] %v811_v62  ;;  %v815_v0 = vld [vmem:[%s17917_s25 + $0x2000] sm:$0xff]  ;;  %v817_v1 = vld [vmem:[%s17917_s25 + $0x2008] sm:$0xff]  ;;  %814 = vst [vmem:[%s17925_s26 + $0x7f8] sm:$0xff] %v813_v63 }
  0x97   : > { %816 = vst [vmem:[%s17925_s26 + $0x800] sm:$0xff] %v815_v0  ;;  %818 = vst [vmem:[%s17925_s26 + $0x808] sm:$0xff] %v817_v1  ;;  %v819_v2 = vld [vmem:[%s17917_s25 + $0x2040] sm:$0xff]  ;;  %v821_v3 = vld [vmem:[%s17917_s25 + $0x2048] sm:$0xff] }
  0x98   : > { %v823_v4 = vld [vmem:[%s17917_s25 + $0x2080] sm:$0xff]  ;;  %820 = vst [vmem:[%s17925_s26 + $0x810] sm:$0xff] %v819_v2  ;;  %822 = vst [vmem:[%s17925_s26 + $0x818] sm:$0xff] %v821_v3  ;;  %v825_v5 = vld [vmem:[%s17917_s25 + $0x2088] sm:$0xff] }
  0x99   : > { %824 = vst [vmem:[%s17925_s26 + $0x820] sm:$0xff] %v823_v4  ;;  %v827_v6 = vld [vmem:[%s17917_s25 + $0x20c0] sm:$0xff]  ;;  %v829_v7 = vld [vmem:[%s17917_s25 + $0x20c8] sm:$0xff]  ;;  %826 = vst [vmem:[%s17925_s26 + $0x828] sm:$0xff] %v825_v5 }
  0x9a   : > { %828 = vst [vmem:[%s17925_s26 + $0x830] sm:$0xff] %v827_v6  ;;  %830 = vst [vmem:[%s17925_s26 + $0x838] sm:$0xff] %v829_v7  ;;  %v831_v8 = vld [vmem:[%s17917_s25 + $0x2100] sm:$0xff]  ;;  %v833_v9 = vld [vmem:[%s17917_s25 + $0x2108] sm:$0xff] }
  0x9b   : > { %v835_v10 = vld [vmem:[%s17917_s25 + $0x2140] sm:$0xff]  ;;  %832 = vst [vmem:[%s17925_s26 + $0x840] sm:$0xff] %v831_v8  ;;  %834 = vst [vmem:[%s17925_s26 + $0x848] sm:$0xff] %v833_v9  ;;  %v837_v11 = vld [vmem:[%s17917_s25 + $0x2148] sm:$0xff] }
  0x9c   : > { %836 = vst [vmem:[%s17925_s26 + $0x850] sm:$0xff] %v835_v10  ;;  %v839_v12 = vld [vmem:[%s17917_s25 + $0x2180] sm:$0xff]  ;;  %v841_v13 = vld [vmem:[%s17917_s25 + $0x2188] sm:$0xff]  ;;  %838 = vst [vmem:[%s17925_s26 + $0x858] sm:$0xff] %v837_v11 }
  0x9d   : > { %840 = vst [vmem:[%s17925_s26 + $0x860] sm:$0xff] %v839_v12  ;;  %842 = vst [vmem:[%s17925_s26 + $0x868] sm:$0xff] %v841_v13  ;;  %v843_v14 = vld [vmem:[%s17917_s25 + $0x21c0] sm:$0xff]  ;;  %v845_v15 = vld [vmem:[%s17917_s25 + $0x21c8] sm:$0xff] }
  0x9e   : > { %v847_v16 = vld [vmem:[%s17917_s25 + $0x2200] sm:$0xff]  ;;  %844 = vst [vmem:[%s17925_s26 + $0x870] sm:$0xff] %v843_v14  ;;  %846 = vst [vmem:[%s17925_s26 + $0x878] sm:$0xff] %v845_v15  ;;  %v849_v17 = vld [vmem:[%s17917_s25 + $0x2208] sm:$0xff] }
  0x9f   : > { %848 = vst [vmem:[%s17925_s26 + $0x880] sm:$0xff] %v847_v16  ;;  %v851_v18 = vld [vmem:[%s17917_s25 + $0x2240] sm:$0xff]  ;;  %v853_v19 = vld [vmem:[%s17917_s25 + $0x2248] sm:$0xff]  ;;  %850 = vst [vmem:[%s17925_s26 + $0x888] sm:$0xff] %v849_v17 }
  0xa0   : > { %852 = vst [vmem:[%s17925_s26 + $0x890] sm:$0xff] %v851_v18  ;;  %854 = vst [vmem:[%s17925_s26 + $0x898] sm:$0xff] %v853_v19  ;;  %v855_v20 = vld [vmem:[%s17917_s25 + $0x2280] sm:$0xff]  ;;  %v857_v21 = vld [vmem:[%s17917_s25 + $0x2288] sm:$0xff] }
  0xa1   : > { %v859_v22 = vld [vmem:[%s17917_s25 + $0x22c0] sm:$0xff]  ;;  %856 = vst [vmem:[%s17925_s26 + $0x8a0] sm:$0xff] %v855_v20  ;;  %858 = vst [vmem:[%s17925_s26 + $0x8a8] sm:$0xff] %v857_v21  ;;  %v861_v23 = vld [vmem:[%s17917_s25 + $0x22c8] sm:$0xff] }
  0xa2   : > { %860 = vst [vmem:[%s17925_s26 + $0x8b0] sm:$0xff] %v859_v22  ;;  %v863_v24 = vld [vmem:[%s17917_s25 + $0x2300] sm:$0xff]  ;;  %v865_v25 = vld [vmem:[%s17917_s25 + $0x2308] sm:$0xff]  ;;  %862 = vst [vmem:[%s17925_s26 + $0x8b8] sm:$0xff] %v861_v23 }
  0xa3   : > { %864 = vst [vmem:[%s17925_s26 + $0x8c0] sm:$0xff] %v863_v24  ;;  %866 = vst [vmem:[%s17925_s26 + $0x8c8] sm:$0xff] %v865_v25  ;;  %v867_v26 = vld [vmem:[%s17917_s25 + $0x2340] sm:$0xff]  ;;  %v869_v27 = vld [vmem:[%s17917_s25 + $0x2348] sm:$0xff] }
  0xa4   : > { %v871_v28 = vld [vmem:[%s17917_s25 + $0x2380] sm:$0xff]  ;;  %868 = vst [vmem:[%s17925_s26 + $0x8d0] sm:$0xff] %v867_v26  ;;  %870 = vst [vmem:[%s17925_s26 + $0x8d8] sm:$0xff] %v869_v27  ;;  %v873_v29 = vld [vmem:[%s17917_s25 + $0x2388] sm:$0xff] }
  0xa5   : > { %872 = vst [vmem:[%s17925_s26 + $0x8e0] sm:$0xff] %v871_v28  ;;  %v875_v30 = vld [vmem:[%s17917_s25 + $0x23c0] sm:$0xff]  ;;  %v877_v31 = vld [vmem:[%s17917_s25 + $0x23c8] sm:$0xff]  ;;  %874 = vst [vmem:[%s17925_s26 + $0x8e8] sm:$0xff] %v873_v29 }
  0xa6   : > { %876 = vst [vmem:[%s17925_s26 + $0x8f0] sm:$0xff] %v875_v30  ;;  %878 = vst [vmem:[%s17925_s26 + $0x8f8] sm:$0xff] %v877_v31 }
  0xa7 PF: > { %s893_s27 = sand.u32 1, %s17803_s11   ;;  %s14207_s28 = sshll.u32 %s17807_s12, 12 }
  0xa8   : > { %s12639_s29 = sshll.u32 %s893_s27, 8  ;;  %s18502_s16 = scalar_lea.hbm %s20943_s7, %s14207_s28 }
  0xa9   : > { %s897_s20 = scalar_lea.vmem [#allocation7], %s12639_s29  ;;  %s18506_s22 = scalar_lea.sflag [#allocation8], %s893_s27 }
  0xaa   : > { %s904_s21 = sshll.u32 %s897_s20, 4  ;;  %s17715_s23 = scalar_lea.hbm %s18502_s16, 4096  ;;  %s18504_s21 = int_to_ptr.vmem [resolvable:$true] %s904_s21 }
  0xab   : > { %p17716_p8 = scmp.ne.s32.totalorder %s18502_s16, %s17715_s23  ;;  %s17719_s26 = scalar_lea.hbm %s20943_s7, 16384 }
  0xac   : > { %p17720_p11 = scmp.lt.u32.totalorder %s18502_s16, %s20943_s7  ;;  %p17721_p12 = scmp.lt.u32.totalorder %s17719_s26, %s17715_s23 }
  0xad   : > { %p17717_p9 = pnand %p17716_p8, %p17900_p4  ;;  %p17723_p0 = scmp.lt.u32.totalorder %s17715_s23, %s18502_s16 }
  0xae   : > { %p17722_p13 = por %p17721_p12, %p17720_p11 }
  0xaf   : > { %p17718_p10 = pneg %p17717_p9 }
  0xb0   : > { %p17724_p1 = por %p17723_p0, %p17722_p13 }
  0xb2   : > { %p17725_p2 = pnand %p17724_p1, %p17718_p10 }
  0xb4   : > { %17728 = shalt.err (!%p17725_p2)
}
  0xb5   : > { %s17729_s27 = scalar_lea.vmem %s18504_s21, 4096  ;;  %s17809_s29 = smov [#allocation7]  }
  0xb6   : > { %p17730_p3 = scmp.ne.s32.totalorder %s18504_s21, %s17729_s27  ;;  %s17733_s15 = sshll.u32 %s17809_s29, 4  ;;  %s17734_s15 = int_to_ptr.vmem [resolvable:$false] %s17733_s15 }
  0xb7   : > { %s17735_s20 = scalar_lea.vmem %s17734_s15, 8192  ;;  %p17736_p8 = scmp.lt.s32.totalorder %s18504_s21, %s17734_s15 }
  0xb8   : > { %p17731_p5 = pnand %p17730_p3, %p17900_p4  ;;  %p17737_p9 = scmp.lt.s32.totalorder %s17735_s20, %s17729_s27 }
  0xba   : > { %p17732_p7 = pneg %p17731_p5  ;;  %p17738_p11 = por %p17737_p9, %p17736_p8 }
  0xbc   : > { %p17739_p12 = pnand %p17738_p11, %p17732_p7 }
  0xbe   : > { %17742 = shalt.err (!%p17739_p12)
}
  0xbf   : > { %s17810_s23 = smov 64   ;;  %s17811_s24 = smov 4  }
  0xc0   : > { %16664 = dma.hbm_to_vmem [thread:$0]  (%p17900_p4), %s18502_s16, 4096, %s18504_s21, %s18506_s22, %s17810_s23, %s17810_s23, %s17811_s24  }
  0xc1 PF: > { %p12642_p10 = scmp.ge.s32.totalorder %s17807_s12, 1  ;;  %p912_p13 = scmp.lt.s32.totalorder %s17807_s12, 5 }
  0xc3   : > { %p913_p0 = pnand %p12642_p10, %p912_p13 }
  0xc4   : > { %s919_s25 = sand.u32 (!%p913_p0), 1, %s17799_s10  }
  0xc5   : > { %916 = sbr.rel (%p913_p0) target bundleno = 2343 (0x927), region = 75  ;;  %s12643_s28 = sshll.u32 (!%p913_p0), %s919_s25, 8 }
  0xc6   : > { %s16663_s26 = smul.u32 (!%p913_p0), 2304, %s919_s25  ;;  %s926_s27 = scalar_lea.sflag (!%p913_p0), [#allocation8], %s919_s25 }
  0xc7   : > { %s18535_s29 = scalar_lea.vmem (!%p913_p0), [#allocation7], %s12643_s28 }
  0xc8   : > { %s18533_s30 = scalar_lea.vmem (!%p913_p0), [#allocation6], %s16663_s26 }
  0xcc   : > { %17786 = dma.done.wait (%p17905_p6), %s926_s27, 4096  }
  0xcd   : > { %17788 = vsyncadd (%p17905_p6), %s926_s27, 4294963200  ;;  %s12644_s18 = sshll.u32 %s17885_s13, 2  ;;  %p12645_p1 = scmp.ne.s32.totalorder %s17885_s13, 0 }
  0xce   : > { %p969_p4 = scmp.lt.s32.totalorder %s12644_s18, 15 }
  0xcf   : > { %978 = sbr.rel (%p12645_p1) target bundleno = 1602 (0x642), region = 87 }
  0xd0   : > { %s21115_s18 = smov (!%p969_p4, %s12644_s18), 15 }
  0xd1   : > { %s971_s21 = scalar_lea.vmem %s20942_s6, %s21115_s18 }
  0xd6   : > { %v16710_v32 = vld [vmem:[%s20937_s1] sm:$0xff]   ;;  %v16711_v33 = vld [vmem:[%s20937_s1 + $0x8] sm:$0xff]   ;;  %v16712_v34 = vld [vmem:[%s20937_s1 + $0x10] sm:$0xff]  }
  0xd7   : > { %14910 = vmatprep.subr.bf16.mxu0 %v16710_v32  ;;  %16226 = vmatprep.subr.bf16.mxu1 %v16710_v32  ;;  %v16713_v35 = vld [vmem:[%s20937_s1 + $0x18] sm:$0xff]   ;;  %v16718_v36 = vld [vmem:[%s20936_s0] sm:$0xff]   ;;  %v16715_v38 = vld [vmem:[%s20937_s1 + $0x28] sm:$0xff]  }
  0xd8   : > { %14911 = vmatpush3.bf16.msra.mxu0 %v16710_v32  ;;  %16234 = vmatpush3.bf16.msra.mxu1 %v16710_v32  ;;  %v16714_v37 = vld [vmem:[%s20937_s1 + $0x20] sm:$0xff]   ;;  %v16726_v39 = vld [vmem:[%s20936_s0 + $0xd0] sm:$0xff]   ;;  %v16717_v41 = vld [vmem:[%s20937_s1 + $0x38] sm:$0xff]  }
  0xd9   : > { %14912 = vmatprep.subr.bf16.mxu0 %v16711_v33  ;;  %16227 = vmatprep.subr.bf16.mxu1 %v16711_v33  ;;  %v16716_v40 = vld [vmem:[%s20937_s1 + $0x30] sm:$0xff]   ;;  %v16719_v42 = vld [vmem:[%s20936_s0 + $0x8] sm:$0xff]   ;;  %v16727_v44 = vld [vmem:[%s20936_s0 + $0xd8] sm:$0xff]  }
  0xda   : > { %14926 = vmatprep.mubr.bf16.mxu0 %v16718_v36  ;;  %14978 = vmatprep.mubr.bf16.mxu1 %v16726_v39  ;;  %v16720_v43 = vld [vmem:[%s20936_s0 + $0x10] sm:$0xff]   ;;  %v16730_v45 = vld [vmem:[%s20936_s0 + $0xe0] sm:$0xff]   ;;  %v16721_v46 = vld [vmem:[%s20936_s0 + $0x18] sm:$0xff]  }
  0xdb   : > { %v16722_v47 = vld [vmem:[%s20936_s0 + $0x20] sm:$0xff]   ;;  %v16731_v48 = vld [vmem:[%s20936_s0 + $0xe8] sm:$0xff]   ;;  %v16734_v49 = vld [vmem:[%s20936_s0 + $0xf0] sm:$0xff]  }
  0xdc   : > { %14913 = vmatpush3.bf16.msra.mxu0 %v16711_v33  ;;  %16235 = vmatpush3.bf16.msra.mxu1 %v16711_v33  ;;  %v16723_v50 = vld [vmem:[%s20936_s0 + $0x28] sm:$0xff]   ;;  %v16724_v51 = vld [vmem:[%s20936_s0 + $0x30] sm:$0xff]   ;;  %v16735_v52 = vld [vmem:[%s20936_s0 + $0xf8] sm:$0xff]  }
  0xdd   : > { %14914 = vmatprep.subr.bf16.mxu0 %v16712_v34  ;;  %16228 = vmatprep.subr.bf16.mxu1 %v16712_v34  ;;  %v16738_v53 = vld [vmem:[%s20936_s0 + $0x100] sm:$0xff]   ;;  %v16725_v54 = vld [vmem:[%s20936_s0 + $0x38] sm:$0xff]   ;;  %v16739_v55 = vld [vmem:[%s20936_s0 + $0x108] sm:$0xff]  }
  0xde   : > { %v16728_v56 = vld [vmem:[%s20936_s0 + $0x40] sm:$0xff]   ;;  %v16742_v57 = vld [vmem:[%s20936_s0 + $0x110] sm:$0xff]   ;;  %v16729_v58 = vld [vmem:[%s20936_s0 + $0x48] sm:$0xff]  }
  0xdf   : > { %v16743_v59 = vld [vmem:[%s20936_s0 + $0x118] sm:$0xff]   ;;  %v16732_v60 = vld [vmem:[%s20936_s0 + $0x50] sm:$0xff]   ;;  %v16746_v61 = vld [vmem:[%s20936_s0 + $0x120] sm:$0xff]  }
  0xe0   : > { %14915 = vmatpush3.bf16.msra.mxu0 %v16712_v34  ;;  %16236 = vmatpush3.bf16.msra.mxu1 %v16712_v34  ;;  %v16733_v62 = vld [vmem:[%s20936_s0 + $0x58] sm:$0xff]   ;;  %v16748_v63 = vld [vmem:[%s20936_s0 + $0x128] sm:$0xff]   ;;  %v16736_v0 = vld [vmem:[%s20936_s0 + $0x60] sm:$0xff]  }
  0xe1   : > { %14916 = vmatprep.subr.bf16.mxu0 %v16713_v35  ;;  %16229 = vmatprep.subr.bf16.mxu1 %v16713_v35  ;;  %v16750_v1 = vld [vmem:[%s20936_s0 + $0x130] sm:$0xff]   ;;  %v16737_v2 = vld [vmem:[%s20936_s0 + $0x68] sm:$0xff]   ;;  %v16752_v3 = vld [vmem:[%s20936_s0 + $0x138] sm:$0xff]  }
  0xe2   : > { %v16740_v4 = vld [vmem:[%s20936_s0 + $0x70] sm:$0xff]   ;;  %v16754_v5 = vld [vmem:[%s20936_s0 + $0x140] sm:$0xff]   ;;  %v16741_v6 = vld [vmem:[%s20936_s0 + $0x78] sm:$0xff]  }
  0xe3   : > { %v16756_v7 = vld [vmem:[%s20936_s0 + $0x148] sm:$0xff]   ;;  %v16744_v8 = vld [vmem:[%s20936_s0 + $0x80] sm:$0xff]   ;;  %v16758_v9 = vld [vmem:[%s20936_s0 + $0x150] sm:$0xff]  }
  0xe4   : > { %14917 = vmatpush3.bf16.msra.mxu0 %v16713_v35  ;;  %16237 = vmatpush3.bf16.msra.mxu1 %v16713_v35  ;;  %v16745_v10 = vld [vmem:[%s20936_s0 + $0x88] sm:$0xff]   ;;  %v16760_v11 = vld [vmem:[%s20936_s0 + $0x158] sm:$0xff]   ;;  %v16747_v12 = vld [vmem:[%s20936_s0 + $0x90] sm:$0xff]  }
  0xe5   : > { %14918 = vmatprep.subr.bf16.mxu0 %v16714_v37  ;;  %16230 = vmatprep.subr.bf16.mxu1 %v16714_v37  ;;  %v16762_v13 = vld [vmem:[%s20936_s0 + $0x160] sm:$0xff]   ;;  %v16749_v14 = vld [vmem:[%s20936_s0 + $0x98] sm:$0xff]   ;;  %v16763_v15 = vld [vmem:[%s20936_s0 + $0x168] sm:$0xff]  }
  0xe6   : > { %v16751_v16 = vld [vmem:[%s20936_s0 + $0xa0] sm:$0xff]   ;;  %v16753_v17 = vld [vmem:[%s20936_s0 + $0xa8] sm:$0xff]   ;;  %v16755_v18 = vld [vmem:[%s20936_s0 + $0xb0] sm:$0xff]  }
  0xe7   : > { %v16757_v19 = vld [vmem:[%s20936_s0 + $0xb8] sm:$0xff]   ;;  %v16759_v20 = vld [vmem:[%s20936_s0 + $0xc0] sm:$0xff]   ;;  %v16761_v21 = vld [vmem:[%s20936_s0 + $0xc8] sm:$0xff]  }
  0xe8   : > { %14919 = vmatpush3.bf16.msra.mxu0 %v16714_v37  ;;  %16238 = vmatpush3.bf16.msra.mxu1 %v16714_v37  ;;  %v16764_v22 = vld [vmem:[%s20939_s3 + $0x40] sm:$0xff]   ;;  %v16766_v23 = vld [vmem:[%s20939_s3 + $0x48] sm:$0xff]   ;;  %v16768_v24 = vld [vmem:[%s20936_s0 + $0x170] sm:$0xff]  }
  0xe9   : > { %14920 = vmatprep.subr.bf16.mxu0 %v16715_v38  ;;  %16231 = vmatprep.subr.bf16.mxu1 %v16715_v38  ;;  %v16765_v25 = vld [vmem:[%s20939_s3 + $0x40] sm:$0xff]   ;;  %v16769_v26 = vld [vmem:[%s20936_s0 + $0x178] sm:$0xff]   ;;  %v16770_v27 = vld [vmem:[%s20939_s3 + $0x50] sm:$0xff]  }
  0xea   : > { %v16771_v28 = vld [vmem:[%s20939_s3 + $0x58] sm:$0xff]   ;;  %v16767_v29 = vld [vmem:[%s20939_s3 + $0x48] sm:$0xff]   ;;  %v16772_v30 = vld [vmem:[%s20936_s0 + $0x180] sm:$0xff]  }
  0xeb   : > { %v16773_v31 = vld [vmem:[%s20936_s0 + $0x188] sm:$0xff]   ;;  %v16774_v32 = vld [vmem:[%s20939_s3 + $0x60] sm:$0xff]   ;;  %v16777_v34 = vld [vmem:[%s20939_s3 + $0x70] sm:$0xff]  }
  0xec   : > { %14921 = vmatpush3.bf16.msra.mxu0 %v16715_v38  ;;  %16239 = vmatpush3.bf16.msra.mxu1 %v16715_v38  ;;  %v16776_v33 = vld [vmem:[%s20939_s3 + $0x68] sm:$0xff]   ;;  %v16775_v35 = vld [vmem:[%s20939_s3 + $0x50] sm:$0xff]   ;;  %v16778_v36 = vld [vmem:[%s20939_s3 + $0x78] sm:$0xff]  }
  0xed   : > { %14922 = vmatprep.subr.bf16.mxu0 %v16716_v40  ;;  %16232 = vmatprep.subr.bf16.mxu1 %v16716_v40  ;;  %v16780_v37 = vld [vmem:[%s20939_s3] sm:$0xff]   ;;  %v16779_v38 = vld [vmem:[%s20939_s3 + $0x58] sm:$0xff]  }
  0xee   : > { %v16784_v39 = vld [vmem:[%s20939_s3 + $0x60] sm:$0xff]  }
  0xf0   : > { %14923 = vmatpush3.bf16.msra.mxu0 %v16716_v40  ;;  %16240 = vmatpush3.bf16.msra.mxu1 %v16716_v40  ;;  %v16788_v40 = vld [vmem:[%s20939_s3 + $0x68] sm:$0xff]  }
  0xf1   : > { %14924 = vmatprep.subr.bf16.mxu0 %v16717_v41  ;;  %16233 = vmatprep.subr.bf16.mxu1 %v16717_v41 }
  0xf4   : > { %14925 = vmatpush3.bf16.msra.mxu0 %v16717_v41  ;;  %16241 = vmatpush3.bf16.msra.mxu1 %v16717_v41  ;;  %v16792_v41 = vld [vmem:[%s20939_s3 + $0x70] sm:$0xff]  }
  0xf5   : > { %15026 = vmatprep.subr.bf16.mxu1 %v16764_v22  ;;  %15626 = vmatprep.subr.bf16.mxu0 %v16765_v25 }
  0xf7   : > { %14927 = vmatmul.mubr.bf16.vlgmr.msra.gmra.mrb[0].mxu0 %v16719_v42  ;;  %14979 = vmatmul.mubr.bf16.vlgmr.msra.gmra.mrb[0].mxu1 %v16727_v44  ;;  %v16796_v42 = vld [vmem:[%s20939_s3 + $0x78] sm:$0xff]  }
  0xf8   : > { %14930 = vmatprep.mubr.bf16.mxu0 %v16720_v43  ;;  %14982 = vmatprep.mubr.bf16.mxu1 %v16730_v45  ;;  %v16801_v45 = vld [vmem:[%s20939_s3] sm:$0xff]  }
  0xf9   : > { %15027 = vmatpush3.bf16.msra.mxu1 %v16764_v22  ;;  %15627 = vmatpush3.bf16.msra.mxu0 %v16765_v25 }
  0xfa   : > { %15028 = vmatprep.subr.bf16.mxu1 %v16766_v23  ;;  %15628 = vmatprep.subr.bf16.mxu0 %v16767_v29 }
  0xfd   : > { %15029 = vmatpush3.bf16.msra.mxu1 %v16766_v23  ;;  %15629 = vmatpush3.bf16.msra.mxu0 %v16767_v29 }
  0xfe   : > { %15030 = vmatprep.subr.bf16.mxu1 %v16770_v27  ;;  %15630 = vmatprep.subr.bf16.mxu0 %v16775_v35 }
  0xff   : > { %14931 = vmatmul.mubr.bf16.gmra.mrb[4].mxu0 %v16721_v46  ;;  %14983 = vmatmul.mubr.bf16.gmra.mrb[4].mxu1 %v16731_v48 }
 0x100   : > { %14934 = vmatprep.mubr.bf16.mxu0 %v16722_v47  ;;  %14986 = vmatprep.mubr.bf16.mxu1 %v16734_v49 }
 0x101   : > { %15031 = vmatpush3.bf16.msra.mxu1 %v16770_v27  ;;  %15631 = vmatpush3.bf16.msra.mxu0 %v16775_v35 }
 0x102   : > { %15032 = vmatprep.subr.bf16.mxu1 %v16771_v28  ;;  %15632 = vmatprep.subr.bf16.mxu0 %v16779_v38 }
 0x105   : > { %15033 = vmatpush3.bf16.msra.mxu1 %v16771_v28  ;;  %15633 = vmatpush3.bf16.msra.mxu0 %v16779_v38 }
 0x106   : > { %15034 = vmatprep.subr.bf16.mxu1 %v16774_v32  ;;  %15634 = vmatprep.subr.bf16.mxu0 %v16784_v39 }
 0x107   : > { %14935 = vmatmul.mubr.bf16.gmra.mrb[8].mxu0 %v16723_v50  ;;  %14987 = vmatmul.mubr.bf16.gmra.mrb[8].mxu1 %v16735_v52 }
 0x108   : > { %14938 = vmatprep.mubr.bf16.mxu0 %v16724_v51  ;;  %14990 = vmatprep.mubr.bf16.mxu1 %v16738_v53 }
 0x109   : > { %15035 = vmatpush3.bf16.msra.mxu1 %v16774_v32  ;;  %15635 = vmatpush3.bf16.msra.mxu0 %v16784_v39 }
 0x10a   : > { %15036 = vmatprep.subr.bf16.mxu1 %v16776_v33  ;;  %15636 = vmatprep.subr.bf16.mxu0 %v16788_v40 }
 0x10d   : > { %15037 = vmatpush3.bf16.msra.mxu1 %v16776_v33  ;;  %15637 = vmatpush3.bf16.msra.mxu0 %v16788_v40 }
 0x10e   : > { %15038 = vmatprep.subr.bf16.mxu1 %v16777_v34  ;;  %15638 = vmatprep.subr.bf16.mxu0 %v16792_v41 }
 0x10f   : > { %14939 = vmatmul.mubr.bf16.gmra.mrb[12].mxu0 %v16725_v54  ;;  %14991 = vmatmul.mubr.bf16.gmra.mrb[12].mxu1 %v16739_v55 }
 0x110   : > { %14942 = vmatprep.mubr.bf16.mxu0 %v16728_v56  ;;  %14994 = vmatprep.mubr.bf16.mxu1 %v16742_v57 }
 0x111   : > { %15039 = vmatpush3.bf16.msra.mxu1 %v16777_v34  ;;  %15639 = vmatpush3.bf16.msra.mxu0 %v16792_v41 }
 0x112   : > { %15040 = vmatprep.subr.bf16.mxu1 %v16778_v36  ;;  %15640 = vmatprep.subr.bf16.mxu0 %v16796_v42 }
 0x115   : > { %15041 = vmatpush3.bf16.msra.mxu1 %v16778_v36  ;;  %15641 = vmatpush3.bf16.msra.mxu0 %v16796_v42 }
 0x116   : > { %15050 = vmatprep.subr.bf16.mxu1 %v16780_v37  ;;  %15650 = vmatprep.subr.bf16.mxu0 %v16801_v45 }
 0x117   : > { %14943 = vmatmul.mubr.bf16.gmra.mrb[16].mxu0 %v16729_v58  ;;  %14995 = vmatmul.mubr.bf16.gmra.mrb[16].mxu1 %v16743_v59 }
 0x118   : > { %14946 = vmatprep.mubr.bf16.mxu0 %v16732_v60  ;;  %14998 = vmatprep.mubr.bf16.mxu1 %v16746_v61 }
 0x11f   : > { %14947 = vmatmul.mubr.bf16.gmra.mrb[20].mxu0 %v16733_v62  ;;  %14999 = vmatmul.mubr.bf16.gmra.mrb[20].mxu1 %v16748_v63 }
 0x120   : > { %14950 = vmatprep.mubr.bf16.mxu0 %v16736_v0  ;;  %15002 = vmatprep.mubr.bf16.mxu1 %v16750_v1 }
 0x127   : > { %14951 = vmatmul.mubr.bf16.gmra.mrb[24].mxu0 %v16737_v2  ;;  %15003 = vmatmul.mubr.bf16.gmra.mrb[24].mxu1 %v16752_v3 }
 0x128   : > { %14954 = vmatprep.mubr.bf16.mxu0 %v16740_v4  ;;  %15006 = vmatprep.mubr.bf16.mxu1 %v16754_v5  ;;  %v18780_v5 = vld [vmem:[%s20938_s2] ss:$0 sm:$0xff] }
 0x12f   : > { %14955 = vmatmul.mubr.bf16.gmra.mrb[28].mxu0 %v16741_v6  ;;  %15007 = vmatmul.mubr.bf16.gmra.mrb[28].mxu1 %v16756_v7 }
 0x130   : > { %14958 = vmatprep.mubr.bf16.mxu0 %v16744_v8  ;;  %15010 = vmatprep.mubr.bf16.mxu1 %v16758_v9 }
 0x137   : > { %14959 = vmatmul.mubr.bf16.gmra.mrb[32].mxu0 %v16745_v10  ;;  %15011 = vmatmul.mubr.bf16.gmra.mrb[32].mxu1 %v16760_v11 }
 0x138   : > { %14962 = vmatprep.mubr.bf16.mxu0 %v16747_v12  ;;  %15014 = vmatprep.mubr.bf16.mxu1 %v16762_v13 }
 0x13f   : > { %14963 = vmatmul.mubr.bf16.gmra.mrb[36].mxu0 %v16749_v14  ;;  %15015 = vmatmul.mubr.bf16.gmra.mrb[36].mxu1 %v16763_v15 }
 0x140   : > { %14966 = vmatprep.mubr.bf16.mxu0 %v16751_v16  ;;  %15018 = vmatprep.mubr.bf16.mxu1 %v16768_v24 }
 0x147   : > { %14967 = vmatmul.mubr.bf16.gmra.mrb[40].mxu0 %v16753_v17  ;;  %15019 = vmatmul.mubr.bf16.gmra.mrb[40].mxu1 %v16769_v26 }
 0x148   : > { %14970 = vmatprep.mubr.bf16.mxu0 %v16755_v18  ;;  %15022 = vmatprep.mubr.bf16.mxu1 %v16772_v30 }
 0x14f   : > { %14971 = vmatmul.mubr.bf16.gmra.mrb[44].mxu0 %v16757_v19  ;;  %15023 = vmatmul.mubr.bf16.gmra.mrb[44].mxu1 %v16773_v31 }
 0x150   : > { %14974 = vmatprep.mubr.bf16.mxu0 %v16759_v20 }
 0x157   : > { %14975 = vmatmul.mubr.bf16.gmra.mrb[48].mxu0 %v16761_v21 }
 0x1ca   : > { %v14928_v43 = vpop.f32.mrb[0].mxu0  ;;  %v14980_v44 = vpop.f32.mrb[0].mxu1 }
 0x1cb   : > { %1878 = vst [vmem:[#allocation2 + $0x10] sm:$0xff] %v14928_v43  ;;  %v1477_v46 = vpop.f32.mrb[1].mxu0  ;;  %1930 = vst [vmem:[#allocation2 + $0x1b0] sm:$0xff] %v14980_v44  ;;  %v1685_v47 = vpop.f32.mrb[1].mxu1 }
 0x1cc   : > { %1876 = vst [vmem:[#allocation2] sm:$0xff] %v1477_v46  ;;  %v14929_v48 = vpop.f32.mrb[2].mxu0  ;;  %1928 = vst [vmem:[#allocation2 + $0x1a0] sm:$0xff] %v1685_v47  ;;  %v14981_v49 = vpop.f32.mrb[2].mxu1 }
 0x1cd   : > { %1879 = vst [vmem:[#allocation2 + $0x18] sm:$0xff] %v14929_v48  ;;  %v1480_v50 = vpop.f32.mrb[3].mxu0  ;;  %1931 = vst [vmem:[#allocation2 + $0x1b8] sm:$0xff] %v14981_v49  ;;  %v1688_v51 = vpop.f32.mrb[3].mxu1 }
 0x1ce   : > { %1877 = vst [vmem:[#allocation2 + $0x8] sm:$0xff] %v1480_v50  ;;  %1929 = vst [vmem:[#allocation2 + $0x1a8] sm:$0xff] %v1688_v51 }
 0x1d2   : > { %v14932_v52 = vpop.f32.mrb[4].mxu0  ;;  %v6010_v53 = vld [vmem:[#allocation2 + $0x1b4] ss:$2 sm:$0x3]  ;;  %v14984_v54 = vpop.f32.mrb[4].mxu1 }
 0x1d3   : > { %1882 = vst [vmem:[#allocation2 + $0x30] sm:$0xff] %v14932_v52  ;;  %v1493_v55 = vpop.f32.mrb[5].mxu0  ;;  %v6014_v56 = vld [vmem:[#allocation2 + $0x1b5] ss:$2 sm:$0x3]  ;;  %1934 = vst [vmem:[#allocation2 + $0x1d0] sm:$0xff] %v14984_v54 }
 0x1d4   : > { %v1701_v57 = vpop.f32.mrb[5].mxu1  ;;  %1880 = vst [vmem:[#allocation2 + $0x20] sm:$0xff] %v1493_v55  ;;  %v14933_v58 = vpop.f32.mrb[6].mxu0  ;;  %v6018_v61 = vmax.f32 %v6010_v53, %v6014_v56  ;;  %v6002_v62 = vld [vmem:[#allocation2 + $0x1a0] ss:$2 sm:$0x3] }
 0x1d5   : > { %1932 = vst [vmem:[#allocation2 + $0x1c0] sm:$0xff] %v1701_v57  ;;  %v14985_v59 = vpop.f32.mrb[6].mxu1  ;;  %1883 = vst [vmem:[#allocation2 + $0x38] sm:$0xff] %v14933_v58  ;;  %v1496_v60 = vpop.f32.mrb[7].mxu0  ;;  %v1978_v4 = vld [vmem:[#allocation2] ss:$2 sm:$0xff] }
 0x1d6   : > { %1935 = vst [vmem:[#allocation2 + $0x1d8] sm:$0xff] %v14985_v59  ;;  %1881 = vst [vmem:[#allocation2 + $0x28] sm:$0xff] %v1496_v60  ;;  %v6006_v63 = vld [vmem:[#allocation2 + $0x1a1] ss:$2 sm:$0x3]  ;;  %v1704_v0 = vpop.f32.mrb[7].mxu1 }
 0x1d7   : > { %v6016_v1 = vmax.f32 %v6002_v62, %v6006_v63  ;;  %1933 = vst [vmem:[#allocation2 + $0x1c8] sm:$0xff] %v1704_v0  ;;  %v1980_v2 = vld [vmem:[#allocation2 + $0x10] ss:$2 sm:$0x3]  ;;  %v1982_v9 = vld [vmem:[#allocation2 + $0x1] ss:$2 sm:$0xff] }
 0x1d8   : > { %v1984_v3 = vld [vmem:[#allocation2 + $0x11] ss:$2 sm:$0x3]  ;;  %v1993_v20 = vmax.f32 %v1978_v4, %v1982_v9 }
 0x1d9   : > { %v6020_v7 = vmax.f32 %v6016_v1, %v6018_v61  ;;  %v1994_v19 = vmax.f32 %v1980_v2, %v1984_v3 }
 0x1da   : > { %v14936_v6 = vpop.f32.mrb[8].mxu0  ;;  %v14988_v8 = vpop.f32.mrb[8].mxu1 }
 0x1db   : > { %1886 = vst [vmem:[#allocation2 + $0x50] sm:$0xff] %v14936_v6  ;;  %v1509_v10 = vpop.f32.mrb[9].mxu0  ;;  %1938 = vst [vmem:[#allocation2 + $0x1f0] sm:$0xff] %v14988_v8  ;;  %v1717_v11 = vpop.f32.mrb[9].mxu1  ;;  %v1986_v12 = vld [vmem:[#allocation2 + $0x14] ss:$2 sm:$0xff]  ;;  %v6022_v15 = vadd.f32 %v18780_v5, %v6020_v7 }
 0x1dc   : > { %v1988_v13 = vld [vmem:[#allocation2 + $0x24] ss:$2 sm:$0x3]  ;;  %1884 = vst [vmem:[#allocation2 + $0x40] sm:$0xff] %v1509_v10  ;;  %v14937_v14 = vpop.f32.mrb[10].mxu0  ;;  %1936 = vst [vmem:[#allocation2 + $0x1e0] sm:$0xff] %v1717_v11 }
 0x1dd   : > { %v1990_v16 = vld [vmem:[#allocation2 + $0x15] ss:$2 sm:$0xff]  ;;  %v1992_v17 = vld [vmem:[#allocation2 + $0x25] ss:$2 sm:$0x3]  ;;  %1887 = vst [vmem:[#allocation2 + $0x58] sm:$0xff] %v14937_v14 }
 0x1de   : > { %v1512_v18 = vpop.f32.mrb[11].mxu0  ;;  %v1995_v21 = vmax.f32 %v1986_v12, %v1990_v16  ;;  %v1996_v22 = vmax.f32 %v1988_v13, %v1992_v17  ;;  %6024 = vst [vmem:[#allocation3 + $0x6c] sm:$0x3] %v6022_v15  ;;  %v6026_v23 = vld [vmem:[#allocation2 + $0x1b8] ss:$2 sm:$0xff]  ;;  %v14989_v28 = vpop.f32.mrb[10].mxu1 }
 0x1df   : > { %1885 = vst [vmem:[#allocation2 + $0x48] sm:$0xff] %v1512_v18  ;;  %v6030_v26 = vld [vmem:[#allocation2 + $0x1b9] ss:$2 sm:$0xff]  ;;  %v6036_v27 = vld [vmem:[#allocation2 + $0x1dc] ss:$2 sm:$0x3] }
 0x1e0   : > { %v1997_v24 = vmax.f32 %v1993_v20, %v1995_v21  ;;  %v1998_v25 = vmax.f32 %v1994_v19, %v1996_v22  ;;  %v2012_v29 = vld [vmem:[#allocation2 + $0x38] ss:$2 sm:$0x3]  ;;  %v6040_v30 = vld [vmem:[#allocation2 + $0x1dd] ss:$2 sm:$0x3]  ;;  %v6041_v35 = vmax.f32 %v6026_v23, %v6030_v26 }
 0x1e1   : > { %v6028_v31 = vld [vmem:[#allocation2 + $0x1c8] ss:$2 sm:$0x3]  ;;  %1939 = vst [vmem:[#allocation2 + $0x1f8] sm:$0xff] %v14989_v28  ;;  %v6044_v36 = vmax.f32 %v6036_v27, %v6040_v30  ;;  %v6034_v38 = vld [vmem:[#allocation2 + $0x1cc] ss:$2 sm:$0xff] }
 0x1e2   : > { %v14940_v32 = vpop.f32.mrb[12].mxu0  ;;  %v18784_v33 = vadd.f32 %v18780_v5, %v1997_v24  ;;  %v2006_v34 = vadd.f32 %v18780_v5, %v1998_v25  ;;  %v6032_v37 = vld [vmem:[#allocation2 + $0x1c9] ss:$2 sm:$0x3]  ;;  %v6038_v41 = vld [vmem:[#allocation2 + $0x1cd] ss:$2 sm:$0xff] }
 0x1e3   : > { %v2016_v39 = vld [vmem:[#allocation2 + $0x39] ss:$2 sm:$0x3]  ;;  %1890 = vst [vmem:[#allocation2 + $0x70] sm:$0xff] %v14940_v32  ;;  %v1525_v40 = vpop.f32.mrb[13].mxu0  ;;  %v6042_v42 = vmax.f32 %v6028_v31, %v6032_v37  ;;  %v6043_v46 = vmax.f32 %v6034_v38, %v6038_v41  ;;  %v1720_v47 = vpop.f32.mrb[11].mxu1 }
 0x1e4   : > { %v2010_v43 = vld [vmem:[#allocation2 + $0x28] ss:$2 sm:$0xff]  ;;  %v2014_v44 = vld [vmem:[#allocation2 + $0x29] ss:$2 sm:$0xff]  ;;  %1888 = vst [vmem:[#allocation2 + $0x60] sm:$0xff] %v1525_v40  ;;  %v14941_v45 = vpop.f32.mrb[14].mxu0  ;;  %v2026_v52 = vmax.f32 %v2012_v29, %v2016_v39 }
 0x1e5   : > { %2007 = vst [vmem:[#allocation3] sm:$0xff] %v18784_v33  ;;  %2008 = vst [vmem:[#allocation3 + $0x8] sm:$0x3] %v2006_v34  ;;  %v1528_v50 = vpop.f32.mrb[15].mxu0  ;;  %v6046_v51 = vmax.f32 %v6042_v42, %v6044_v36  ;;  %v6045_v55 = vmax.f32 %v6041_v35, %v6043_v46  ;;  %v14992_v56 = vpop.f32.mrb[12].mxu1  ;;  %v2025_v57 = vmax.f32 %v2010_v43, %v2014_v44 }
 0x1e6   : > { %v2018_v48 = vld [vmem:[#allocation2 + $0x3c] ss:$2 sm:$0xff]  ;;  %v2020_v49 = vld [vmem:[#allocation2 + $0x4c] ss:$2 sm:$0x3]  ;;  %1891 = vst [vmem:[#allocation2 + $0x78] sm:$0xff] %v14941_v45 }
 0x1e7   : > { %1937 = vst [vmem:[#allocation2 + $0x1e8] sm:$0xff] %v1720_v47  ;;  %v2022_v53 = vld [vmem:[#allocation2 + $0x3d] ss:$2 sm:$0xff]  ;;  %v2024_v54 = vld [vmem:[#allocation2 + $0x4d] ss:$2 sm:$0x3]  ;;  %v6048_v60 = vadd.f32 %v18780_v5, %v6046_v51  ;;  %v6047_v63 = vadd.f32 %v18780_v5, %v6045_v55 }
 0x1e8   : > { %1889 = vst [vmem:[#allocation2 + $0x68] sm:$0xff] %v1528_v50  ;;  %v2027_v58 = vmax.f32 %v2018_v48, %v2022_v53  ;;  %v2028_v59 = vmax.f32 %v2020_v49, %v2024_v54  ;;  %1942 = vst [vmem:[#allocation2 + $0x210] sm:$0xff] %v14992_v56  ;;  %v1733_v61 = vpop.f32.mrb[13].mxu1  ;;  %v2036_v0 = vld [vmem:[#allocation2 + $0x50] ss:$2 sm:$0xff] }
 0x1e9   : > { %1940 = vst [vmem:[#allocation2 + $0x200] sm:$0xff] %v1733_v61  ;;  %v14993_v62 = vpop.f32.mrb[14].mxu1  ;;  %v2040_v1 = vld [vmem:[#allocation2 + $0x51] ss:$2 sm:$0xff]  ;;  %6050 = vst [vmem:[#allocation3 + $0x76] sm:$0x3] %v6048_v60 }
 0x1ea   : > { %v2029_v2 = vmax.f32 %v2025_v57, %v2027_v58  ;;  %v2030_v3 = vmax.f32 %v2026_v52, %v2028_v59  ;;  %1943 = vst [vmem:[#allocation2 + $0x218] sm:$0xff] %v14993_v62  ;;  %v1736_v4 = vpop.f32.mrb[15].mxu1  ;;  %v2046_v6 = vld [vmem:[#allocation2 + $0x74] ss:$2 sm:$0x3]  ;;  %6049 = vst [vmem:[#allocation3 + $0x6e] sm:$0xff] %v6047_v63  ;;  %v2051_v23 = vmax.f32 %v2036_v0, %v2040_v1 }
 0x1eb   : > { %v2050_v7 = vld [vmem:[#allocation2 + $0x75] ss:$2 sm:$0x3]  ;;  %v6054_v8 = vld [vmem:[#allocation2 + $0x1f0] ss:$2 sm:$0x3] }
 0x1ec   : > { %v6058_v9 = vld [vmem:[#allocation2 + $0x1f1] ss:$2 sm:$0x3]  ;;  %1941 = vst [vmem:[#allocation2 + $0x208] sm:$0xff] %v1736_v4  ;;  %v2032_v10 = vadd.f32 %v18780_v5, %v2030_v3  ;;  %v2054_v11 = vmax.f32 %v2046_v6, %v2050_v7  ;;  %v18792_v14 = vadd.f32 %v18780_v5, %v2029_v2  ;;  %v14944_v16 = vpop.f32.mrb[16].mxu0  ;;  %v14996_v22 = vpop.f32.mrb[16].mxu1 }
 0x1ed   : > { %v2038_v12 = vld [vmem:[#allocation2 + $0x60] ss:$2 sm:$0x3]  ;;  %v2042_v13 = vld [vmem:[#allocation2 + $0x61] ss:$2 sm:$0x3]  ;;  %v6068_v29 = vmax.f32 %v6054_v8, %v6058_v9 }
 0x1ee   : > { %v2052_v15 = vmax.f32 %v2038_v12, %v2042_v13  ;;  %v6052_v17 = vld [vmem:[#allocation2 + $0x1e0] ss:$2 sm:$0xff]  ;;  %v6056_v18 = vld [vmem:[#allocation2 + $0x1e1] ss:$2 sm:$0xff]  ;;  %2034 = vst [vmem:[#allocation3 + $0x12] sm:$0x3] %v2032_v10 }
 0x1ef   : > { %v2044_v19 = vld [vmem:[#allocation2 + $0x64] ss:$2 sm:$0xff]  ;;  %v2048_v20 = vld [vmem:[#allocation2 + $0x65] ss:$2 sm:$0xff]  ;;  %1894 = vst [vmem:[#allocation2 + $0x90] sm:$0xff] %v14944_v16  ;;  %v1541_v21 = vpop.f32.mrb[17].mxu0  ;;  %v6067_v30 = vmax.f32 %v6052_v17, %v6056_v18 }
 0x1f0   : > { %2033 = vst [vmem:[#allocation3 + $0xa] sm:$0xff] %v18792_v14  ;;  %v2056_v24 = vmax.f32 %v2052_v15, %v2054_v11  ;;  %v2053_v25 = vmax.f32 %v2044_v19, %v2048_v20  ;;  %1892 = vst [vmem:[#allocation2 + $0x80] sm:$0xff] %v1541_v21  ;;  %v14945_v26 = vpop.f32.mrb[18].mxu0  ;;  %v1749_v27 = vpop.f32.mrb[17].mxu1  ;;  %v6060_v31 = vld [vmem:[#allocation2 + $0x1f4] ss:$2 sm:$0xff] }
 0x1f1   : > { %1946 = vst [vmem:[#allocation2 + $0x230] sm:$0xff] %v14996_v22  ;;  %1895 = vst [vmem:[#allocation2 + $0x98] sm:$0xff] %v14945_v26  ;;  %v1544_v28 = vpop.f32.mrb[19].mxu0  ;;  %v6062_v32 = vld [vmem:[#allocation2 + $0x204] ss:$2 sm:$0x3] }
 0x1f2   : > { %1944 = vst [vmem:[#allocation2 + $0x220] sm:$0xff] %v1749_v27  ;;  %v2058_v34 = vadd.f32 %v18780_v5, %v2056_v24  ;;  %v2055_v35 = vmax.f32 %v2051_v23, %v2053_v25  ;;  %1893 = vst [vmem:[#allocation2 + $0x88] sm:$0xff] %v1544_v28  ;;  %v6064_v36 = vld [vmem:[#allocation2 + $0x1f5] ss:$2 sm:$0xff]  ;;  %v14997_v38 = vpop.f32.mrb[18].mxu1  ;;  %v14948_v42 = vpop.f32.mrb[20].mxu0 }
 0x1f3   : > { %v6066_v37 = vld [vmem:[#allocation2 + $0x205] ss:$2 sm:$0x3]  ;;  %v6069_v39 = vmax.f32 %v6060_v31, %v6064_v36  ;;  %1947 = vst [vmem:[#allocation2 + $0x238] sm:$0xff] %v14997_v38  ;;  %v1752_v43 = vpop.f32.mrb[19].mxu1  ;;  %1898 = vst [vmem:[#allocation2 + $0xb0] sm:$0xff] %v14948_v42 }
 0x1f4   : > { %v6070_v40 = vmax.f32 %v6062_v32, %v6066_v37  ;;  %2060 = vst [vmem:[#allocation3 + $0x1c] sm:$0x3] %v2058_v34  ;;  %v2057_v41 = vadd.f32 %v18780_v5, %v2055_v35  ;;  %v1557_v44 = vpop.f32.mrb[21].mxu0  ;;  %1945 = vst [vmem:[#allocation2 + $0x228] sm:$0xff] %v1752_v43  ;;  %v15000_v47 = vpop.f32.mrb[20].mxu1  ;;  %v2270_v49 = vld [vmem:[#allocation3 + $0x1] sm:$0xff] }
 0x1f5   : > { %v6071_v45 = vmax.f32 %v6067_v30, %v6069_v39  ;;  %1896 = vst [vmem:[#allocation2 + $0xa0] sm:$0xff] %v1557_v44  ;;  %v14949_v48 = vpop.f32.mrb[22].mxu0  ;;  %1950 = vst [vmem:[#allocation2 + $0x250] sm:$0xff] %v15000_v47  ;;  %v1765_v51 = vpop.f32.mrb[21].mxu1  ;;  %v6078_v58 = vld [vmem:[#allocation2 + $0x208] ss:$2 sm:$0xff] }
 0x1f6   : > { %v6072_v46 = vmax.f32 %v6068_v29, %v6070_v40  ;;  %2059 = vst [vmem:[#allocation3 + $0x14] sm:$0xff] %v2057_v41  ;;  %1899 = vst [vmem:[#allocation2 + $0xb8] sm:$0xff] %v14949_v48  ;;  %v1560_v54 = vpop.f32.mrb[23].mxu0  ;;  %v6082_v59 = vld [vmem:[#allocation2 + $0x209] ss:$2 sm:$0xff]  ;;  %v15001_v60 = vpop.f32.mrb[22].mxu1 }
 0x1f7   : > { %v2271_v50 = vld [vmem:[#allocation3 + $0x9] sm:$0xff]  ;;  %v2062_v52 = vld [vmem:[#allocation2 + $0x78] ss:$2 sm:$0xff]  ;;  %v2066_v53 = vld [vmem:[#allocation2 + $0x79] ss:$2 sm:$0xff]  ;;  %v6073_v56 = vadd.f32 %v18780_v5, %v6071_v45  ;;  %1948 = vst [vmem:[#allocation2 + $0x240] sm:$0xff] %v1765_v51  ;;  %v6093_v12 = vmax.f32 %v6078_v58, %v6082_v59 }
 0x1f8   : > { %v2277_v55 = vpack.c.bf16 %v2271_v50, %v2270_v49  ;;  %v6074_v57 = vadd.f32 %v18780_v5, %v6072_v46  ;;  %v2072_v61 = vld [vmem:[#allocation2 + $0x9c] ss:$2 sm:$0x3]  ;;  %v2076_v62 = vld [vmem:[#allocation2 + $0x9d] ss:$2 sm:$0x3]  ;;  %v2077_v6 = vmax.f32 %v2062_v52, %v2066_v53 }
 0x1f9   : > { %1897 = vst [vmem:[#allocation2 + $0xa8] sm:$0xff] %v1560_v54  ;;  %1951 = vst [vmem:[#allocation2 + $0x258] sm:$0xff] %v15001_v60  ;;  %v2080_v63 = vmax.f32 %v2072_v61, %v2076_v62  ;;  %v2064_v0 = vld [vmem:[#allocation2 + $0x88] ss:$2 sm:$0x3]  ;;  %v1768_v8 = vpop.f32.mrb[23].mxu1 }
 0x1fa   : > { %v2068_v1 = vld [vmem:[#allocation2 + $0x89] ss:$2 sm:$0x3]  ;;  %15042 = vmatprep.mubr.bf16.mxu1 %v2277_v55  ;;  %6075 = vst [vmem:[#allocation3 + $0x78] sm:$0xff] %v6073_v56  ;;  %6076 = vst [vmem:[#allocation3 + $0x80] sm:$0x3] %v6074_v57 }
 0x1fb   : > { %v2070_v2 = vld [vmem:[#allocation2 + $0x8c] ss:$2 sm:$0xff]  ;;  %v2074_v3 = vld [vmem:[#allocation2 + $0x8d] ss:$2 sm:$0xff]  ;;  %v2078_v4 = vmax.f32 %v2064_v0, %v2068_v1  ;;  %1949 = vst [vmem:[#allocation2 + $0x248] sm:$0xff] %v1768_v8  ;;  %v14952_v15 = vpop.f32.mrb[24].mxu0 }
 0x1fc   : > { %v2079_v7 = vmax.f32 %v2070_v2, %v2074_v3  ;;  %v6080_v10 = vld [vmem:[#allocation2 + $0x218] ss:$2 sm:$0x3]  ;;  %v6084_v11 = vld [vmem:[#allocation2 + $0x219] ss:$2 sm:$0x3] }
 0x1fd   : > { %v2082_v9 = vmax.f32 %v2078_v4, %v2080_v63  ;;  %v6086_v16 = vld [vmem:[#allocation2 + $0x21c] ss:$2 sm:$0xff]  ;;  %v6090_v17 = vld [vmem:[#allocation2 + $0x21d] ss:$2 sm:$0xff]  ;;  %1902 = vst [vmem:[#allocation2 + $0xd0] sm:$0xff] %v14952_v15  ;;  %v1573_v18 = vpop.f32.mrb[25].mxu0  ;;  %v6094_v25 = vmax.f32 %v6080_v10, %v6084_v11 }
 0x1fe   : > { %v2081_v13 = vmax.f32 %v2077_v6, %v2079_v7  ;;  %v6088_v19 = vld [vmem:[#allocation2 + $0x22c] ss:$2 sm:$0x3]  ;;  %v6095_v20 = vmax.f32 %v6086_v16, %v6090_v17  ;;  %v15004_v22 = vpop.f32.mrb[24].mxu1  ;;  %1900 = vst [vmem:[#allocation2 + $0xc0] sm:$0xff] %v1573_v18  ;;  %v14953_v24 = vpop.f32.mrb[26].mxu0 }
 0x1ff   : > { %v2084_v21 = vadd.f32 %v18780_v5, %v2082_v9  ;;  %v6104_v26 = vld [vmem:[#allocation2 + $0x230] ss:$2 sm:$0xff]  ;;  %v6108_v27 = vld [vmem:[#allocation2 + $0x231] ss:$2 sm:$0xff]  ;;  %1954 = vst [vmem:[#allocation2 + $0x270] sm:$0xff] %v15004_v22  ;;  %v1781_v28 = vpop.f32.mrb[25].mxu1 }
 0x200   : > { %v2083_v23 = vadd.f32 %v18780_v5, %v2081_v13  ;;  %1903 = vst [vmem:[#allocation2 + $0xd8] sm:$0xff] %v14953_v24  ;;  %v1576_v29 = vpop.f32.mrb[27].mxu0  ;;  %v6092_v30 = vld [vmem:[#allocation2 + $0x22d] ss:$2 sm:$0x3]  ;;  %v6097_v31 = vmax.f32 %v6093_v12, %v6095_v20  ;;  %1952 = vst [vmem:[#allocation2 + $0x260] sm:$0xff] %v1781_v28  ;;  %v6119_v38 = vmax.f32 %v6104_v26, %v6108_v27 }
 0x201   : > { %2086 = vst [vmem:[#allocation3 + $0x26] sm:$0x3] %v2084_v21  ;;  %v15005_v32 = vpop.f32.mrb[26].mxu1  ;;  %1901 = vst [vmem:[#allocation2 + $0xc8] sm:$0xff] %v1576_v29  ;;  %v6096_v34 = vmax.f32 %v6088_v19, %v6092_v30  ;;  %v18802_v48 = vld [vmem:[#allocation3 + $0xb] sm:$0xff]  ;;  %v18804_v53 = vld [vmem:[#allocation3 + $0x13] sm:$0xff] }
 0x202   : > { %2085 = vst [vmem:[#allocation3 + $0x1e] sm:$0xff] %v2083_v23  ;;  %v6114_v35 = vld [vmem:[#allocation2 + $0x254] ss:$2 sm:$0x3]  ;;  %1955 = vst [vmem:[#allocation2 + $0x278] sm:$0xff] %v15005_v32  ;;  %v6099_v39 = vadd.f32 %v18780_v5, %v6097_v31  ;;  %v1784_v47 = vpop.f32.mrb[27].mxu1 }
 0x203   : > { %v6118_v36 = vld [vmem:[#allocation2 + $0x255] ss:$2 sm:$0x3]  ;;  %v2090_v37 = vld [vmem:[#allocation2 + $0xb0] ss:$2 sm:$0x3]  ;;  %v6098_v43 = vmax.f32 %v6094_v25, %v6096_v34 }
 0x204   : > { %v6122_v40 = vmax.f32 %v6114_v35, %v6118_v36  ;;  %v6106_v41 = vld [vmem:[#allocation2 + $0x240] ss:$2 sm:$0x3]  ;;  %v6110_v42 = vld [vmem:[#allocation2 + $0x241] ss:$2 sm:$0x3] }
 0x205   : > { %v6120_v44 = vmax.f32 %v6106_v41, %v6110_v42  ;;  %v6112_v45 = vld [vmem:[#allocation2 + $0x244] ss:$2 sm:$0xff]  ;;  %v6116_v46 = vld [vmem:[#allocation2 + $0x245] ss:$2 sm:$0xff]  ;;  %v14956_v50 = vpop.f32.mrb[28].mxu0  ;;  %6101 = vst [vmem:[#allocation3 + $0x82] sm:$0xff] %v6099_v39  ;;  %v6100_v59 = vadd.f32 %v18780_v5, %v6098_v43 }
 0x206   : > { %v2094_v49 = vld [vmem:[#allocation2 + $0xb1] ss:$2 sm:$0x3]  ;;  %v6121_v51 = vmax.f32 %v6112_v45, %v6116_v46  ;;  %1953 = vst [vmem:[#allocation2 + $0x268] sm:$0xff] %v1784_v47  ;;  %v15008_v52 = vpop.f32.mrb[28].mxu1  ;;  %1906 = vst [vmem:[#allocation2 + $0xf0] sm:$0xff] %v14956_v50 }
 0x207   : > { %v2088_v54 = vld [vmem:[#allocation2 + $0xa0] ss:$2 sm:$0xff]  ;;  %v2092_v55 = vld [vmem:[#allocation2 + $0xa1] ss:$2 sm:$0xff]  ;;  %v1589_v56 = vpop.f32.mrb[29].mxu0  ;;  %v6124_v57 = vmax.f32 %v6120_v44, %v6122_v40  ;;  %1958 = vst [vmem:[#allocation2 + $0x290] sm:$0xff] %v15008_v52  ;;  %v2104_v1 = vmax.f32 %v2090_v37, %v2094_v49 }
 0x208   : > { %v1797_v58 = vpop.f32.mrb[29].mxu1  ;;  %v2096_v61 = vld [vmem:[#allocation2 + $0xb4] ss:$2 sm:$0xff]  ;;  %v2098_v62 = vld [vmem:[#allocation2 + $0xc4] ss:$2 sm:$0x3]  ;;  %v6123_v0 = vmax.f32 %v6119_v38, %v6121_v51  ;;  %v2103_v7 = vmax.f32 %v2088_v54, %v2092_v55 }
 0x209   : > { %1904 = vst [vmem:[#allocation2 + $0xe0] sm:$0xff] %v1589_v56  ;;  %v14957_v63 = vpop.f32.mrb[30].mxu0  ;;  %1956 = vst [vmem:[#allocation2 + $0x280] sm:$0xff] %v1797_v58  ;;  %v2100_v2 = vld [vmem:[#allocation2 + $0xb5] ss:$2 sm:$0xff]  ;;  %v6126_v6 = vadd.f32 %v18780_v5, %v6124_v57  ;;  %v15009_v13 = vpop.f32.mrb[30].mxu1 }
 0x20a   : > { %v2102_v3 = vld [vmem:[#allocation2 + $0xc5] ss:$2 sm:$0x3]  ;;  %1907 = vst [vmem:[#allocation2 + $0xf8] sm:$0xff] %v14957_v63  ;;  %v1592_v4 = vpop.f32.mrb[31].mxu0  ;;  %v2105_v8 = vmax.f32 %v2096_v61, %v2100_v2  ;;  %v18811_v10 = vadd.f32 %v18780_v5, %v6123_v0  ;;  %v2272_v11 = vld [vmem:[#allocation3 + $0x11] sm:$0xff] }
 0x20b   : > { %6102 = vst [vmem:[#allocation3 + $0x8a] sm:$0x3] %v6100_v59  ;;  %v2106_v9 = vmax.f32 %v2098_v62, %v2102_v3  ;;  %1905 = vst [vmem:[#allocation2 + $0xe8] sm:$0xff] %v1592_v4  ;;  %v2273_v12 = vld [vmem:[#allocation3 + $0x19] sm:$0xff]  ;;  %v1800_v21 = vpop.f32.mrb[31].mxu1  ;;  %v14960_v26 = vpop.f32.mrb[32].mxu0 }
 0x20c   : > { %6128 = vst [vmem:[#allocation3 + $0x94] sm:$0x3] %v6126_v6  ;;  %v2107_v15 = vmax.f32 %v2103_v7, %v2105_v8  ;;  %v2278_v17 = vpack.c.bf16 %v2273_v12, %v2272_v11  ;;  %v16781_v18 = vld [vmem:[%s20939_s3 + $0x8] sm:$0xff]   ;;  %1959 = vst [vmem:[#allocation2 + $0x298] sm:$0xff] %v15009_v13  ;;  %v17168_v34 = vld [vmem:[%s20939_s3] sm:$0xff]   ;;  %v1605_v35 = vpop.f32.mrb[33].mxu0 }
 0x20d   : > { %v2108_v16 = vmax.f32 %v2104_v1, %v2106_v9  ;;  %v6130_v19 = vld [vmem:[#allocation2 + $0x258] ss:$2 sm:$0xff]  ;;  %v6134_v20 = vld [vmem:[#allocation2 + $0x259] ss:$2 sm:$0xff]  ;;  %6127 = vst [vmem:[#allocation3 + $0x8c] sm:$0xff] %v18811_v10  ;;  %1957 = vst [vmem:[#allocation2 + $0x288] sm:$0xff] %v1800_v21 }
 0x20e   : > { %v6140_v22 = vld [vmem:[#allocation2 + $0x27c] ss:$2 sm:$0x3]  ;;  %v6144_v23 = vld [vmem:[#allocation2 + $0x27d] ss:$2 sm:$0x3]  ;;  %15043 = vmatmul.mubr.bf16.vlgmr.msra.gmra.mrb[48].mxu1 %v2278_v17  ;;  %v18818_v27 = vadd.f32 %v18780_v5, %v2107_v15  ;;  %v6145_v29 = vmax.f32 %v6130_v19, %v6134_v20 }
 0x20f   : > { %v2116_v24 = vld [vmem:[#allocation2 + $0xd8] ss:$2 sm:$0x3]  ;;  %v2120_v25 = vld [vmem:[#allocation2 + $0xd9] ss:$2 sm:$0x3]  ;;  %v2110_v28 = vadd.f32 %v18780_v5, %v2108_v16  ;;  %v6148_v30 = vmax.f32 %v6140_v22, %v6144_v23  ;;  %15051 = vmatpush3.bf16.msra.mxu1 %v17168_v34 }
 0x210   : > { %v6132_v31 = vld [vmem:[#allocation2 + $0x268] ss:$2 sm:$0x3]  ;;  %v6138_v32 = vld [vmem:[#allocation2 + $0x26c] ss:$2 sm:$0xff]  ;;  %1910 = vst [vmem:[#allocation2 + $0x110] sm:$0xff] %v14960_v26  ;;  %15052 = vmatprep.subr.bf16.mxu1 %v16781_v18  ;;  %v2130_v54 = vmax.f32 %v2116_v24, %v2120_v25 }
 0x211   : > { %v6136_v36 = vld [vmem:[#allocation2 + $0x269] ss:$2 sm:$0x3]  ;;  %v6142_v37 = vld [vmem:[#allocation2 + $0x26d] ss:$2 sm:$0xff]  ;;  %1908 = vst [vmem:[#allocation2 + $0x100] sm:$0xff] %v1605_v35 }
 0x212   : > { %v2114_v38 = vld [vmem:[#allocation2 + $0xc8] ss:$2 sm:$0xff]  ;;  %v2118_v39 = vld [vmem:[#allocation2 + $0xc9] ss:$2 sm:$0xff]  ;;  %v14961_v40 = vpop.f32.mrb[34].mxu0  ;;  %v16782_v41 = vld [vmem:[%s20939_s3 + $0x10] sm:$0xff]   ;;  %v6146_v42 = vmax.f32 %v6132_v31, %v6136_v36  ;;  %v6147_v43 = vmax.f32 %v6138_v32, %v6142_v37 }
 0x213   : > { %2111 = vst [vmem:[#allocation3 + $0x28] sm:$0xff] %v18818_v27  ;;  %2112 = vst [vmem:[#allocation3 + $0x30] sm:$0x3] %v2110_v28  ;;  %v2122_v44 = vld [vmem:[#allocation2 + $0xdc] ss:$2 sm:$0xff]  ;;  %v1608_v46 = vpop.f32.mrb[35].mxu0  ;;  %v2129_v55 = vmax.f32 %v2114_v38, %v2118_v39  ;;  %15053 = vmatpush3.bf16.msra.mxu1 %v16781_v18 }
 0x214   : > { %v2124_v45 = vld [vmem:[#allocation2 + $0xec] ss:$2 sm:$0x3]  ;;  %1911 = vst [vmem:[#allocation2 + $0x118] sm:$0xff] %v14961_v40  ;;  %v2126_v47 = vld [vmem:[#allocation2 + $0xdd] ss:$2 sm:$0xff]  ;;  %v6149_v50 = vmax.f32 %v6145_v29, %v6147_v43  ;;  %v6150_v51 = vmax.f32 %v6146_v42, %v6148_v30  ;;  %15054 = vmatprep.subr.bf16.mxu1 %v16782_v41 }
 0x215   : > { %v2128_v49 = vld [vmem:[#allocation2 + $0xed] ss:$2 sm:$0x3]  ;;  %1909 = vst [vmem:[#allocation2 + $0x108] sm:$0xff] %v1608_v46  ;;  %v15012_v52 = vpop.f32.mrb[32].mxu1  ;;  %v2131_v56 = vmax.f32 %v2122_v44, %v2126_v47  ;;  %v18836_v7 = vld [vmem:[%s20939_s3 + $0x20] sm:$0xff]  }
 0x216   : > { %v2132_v57 = vmax.f32 %v2124_v45, %v2128_v49  ;;  %1962 = vst [vmem:[#allocation2 + $0x2b0] sm:$0xff] %v15012_v52  ;;  %v16783_v58 = vld [vmem:[%s20939_s3 + $0x18] sm:$0xff]   ;;  %v1813_v59 = vpop.f32.mrb[33].mxu1  ;;  %v6151_v61 = vadd.f32 %v18780_v5, %v6149_v50  ;;  %v6152_v62 = vadd.f32 %v18780_v5, %v6150_v51  ;;  %v2140_v63 = vld [vmem:[#allocation2 + $0xf0] ss:$2 sm:$0xff]  ;;  %v14964_v21 = vpop.f32.mrb[36].mxu0 }
 0x217   : > { %v2144_v0 = vld [vmem:[#allocation2 + $0xf1] ss:$2 sm:$0xff]  ;;  %v2133_v1 = vmax.f32 %v2129_v55, %v2131_v56  ;;  %1960 = vst [vmem:[#allocation2 + $0x2a0] sm:$0xff] %v1813_v59  ;;  %v15013_v3 = vpop.f32.mrb[34].mxu1  ;;  %15055 = vmatpush3.bf16.msra.mxu1 %v16782_v41  ;;  %v18847_v17 = vld [vmem:[#allocation2 + $0x280] ss:$2 sm:$0xff] }
 0x218   : > { %v2134_v2 = vmax.f32 %v2130_v54, %v2132_v57  ;;  %v2150_v4 = vld [vmem:[#allocation2 + $0x114] ss:$2 sm:$0x3]  ;;  %v2154_v6 = vld [vmem:[#allocation2 + $0x115] ss:$2 sm:$0x3]  ;;  %15056 = vmatprep.subr.bf16.mxu1 %v16783_v58  ;;  %v2155_v34 = vmax.f32 %v2140_v63, %v2144_v0 }
 0x219   : > { %v18838_v8 = vld [vmem:[#allocation2 + $0x290] ss:$2 sm:$0x3]  ;;  %v18840_v9 = vld [vmem:[#allocation2 + $0x291] ss:$2 sm:$0x3]  ;;  %v2158_v12 = vmax.f32 %v2150_v4, %v2154_v6  ;;  %v18845_v16 = vadd.f32 %v18780_v5, %v2133_v1 }
 0x21a   : > { %1963 = vst [vmem:[#allocation2 + $0x2b8] sm:$0xff] %v15013_v3  ;;  %v18842_v11 = vld [vmem:[#allocation3 + $0x1a] sm:$0xff]  ;;  %6153 = vst [vmem:[#allocation3 + $0x96] sm:$0xff] %v6151_v61  ;;  %v2136_v19 = vadd.f32 %v18780_v5, %v2134_v2  ;;  %v2275_v23 = vld [vmem:[#allocation3 + $0x29] sm:$0xff]  ;;  %v1816_v24 = vpop.f32.mrb[35].mxu1  ;;  %v1621_v29 = vpop.f32.mrb[37].mxu0  ;;  %v6172_v41 = vmax.f32 %v18838_v8, %v18840_v9 }
 0x21b   : > { %6154 = vst [vmem:[#allocation3 + $0x9e] sm:$0x3] %v6152_v62  ;;  %v2142_v13 = vld [vmem:[#allocation2 + $0x100] ss:$2 sm:$0x3]  ;;  %1914 = vst [vmem:[#allocation2 + $0x130] sm:$0xff] %v14964_v21  ;;  %15057 = vmatpush3.bf16.msra.mxu1 %v16783_v58 }
 0x21c   : > { %v2146_v15 = vld [vmem:[#allocation2 + $0x101] ss:$2 sm:$0x3]  ;;  %v2148_v26 = vld [vmem:[#allocation2 + $0x104] ss:$2 sm:$0xff]  ;;  %2137 = vst [vmem:[#allocation3 + $0x32] sm:$0xff] %v18845_v16  ;;  %15058 = vmatprep.subr.bf16.mxu1 %v18836_v7 }
 0x21d   : > { %v18849_v18 = vld [vmem:[#allocation2 + $0x281] ss:$2 sm:$0xff]  ;;  %v2156_v20 = vmax.f32 %v2142_v13, %v2146_v15  ;;  %1961 = vst [vmem:[#allocation2 + $0x2a8] sm:$0xff] %v1816_v24  ;;  %v15016_v31 = vpop.f32.mrb[36].mxu1  ;;  %2138 = vst [vmem:[#allocation3 + $0x3a] sm:$0x3] %v2136_v19 }
 0x21e   : > { %v2274_v22 = vld [vmem:[#allocation3 + $0x21] sm:$0xff]  ;;  %1912 = vst [vmem:[#allocation2 + $0x120] sm:$0xff] %v1621_v29  ;;  %v14965_v37 = vpop.f32.mrb[38].mxu0  ;;  %1966 = vst [vmem:[#allocation2 + $0x2d0] sm:$0xff] %v15016_v31  ;;  %v1829_v38 = vpop.f32.mrb[37].mxu1  ;;  %v16786_v40 = vld [vmem:[%s20939_s3 + $0x28] sm:$0xff]   ;;  %v6171_v46 = vmax.f32 %v18847_v17, %v18849_v18 }
 0x21f   : > { %v18852_v25 = vld [vmem:[#allocation3 + $0x22] sm:$0xff]  ;;  %v2279_v30 = vpack.c.bf16 %v2275_v23, %v2274_v22  ;;  %v2160_v35 = vmax.f32 %v2156_v20, %v2158_v12  ;;  %1915 = vst [vmem:[#allocation2 + $0x138] sm:$0xff] %v14965_v37  ;;  %v1624_v39 = vpop.f32.mrb[39].mxu0  ;;  %1964 = vst [vmem:[#allocation2 + $0x2c0] sm:$0xff] %v1829_v38  ;;  %v15017_v42 = vpop.f32.mrb[38].mxu1  ;;  %15059 = vmatpush3.bf16.msra.mxu1 %v18836_v7  ;;  %v6260_v51 = vld [vmem:[#allocation3 + $0x6c] sm:$0xff] }
 0x220   : > { %v2152_v28 = vld [vmem:[#allocation2 + $0x105] ss:$2 sm:$0xff]  ;;  %v18862_v43 = vld [vmem:[#allocation3 + $0x1b] sm:$0xff]  ;;  %1913 = vst [vmem:[#allocation2 + $0x128] sm:$0xff] %v1624_v39  ;;  %1967 = vst [vmem:[#allocation2 + $0x2d8] sm:$0xff] %v15017_v42  ;;  %v1832_v50 = vpop.f32.mrb[39].mxu1  ;;  %15060 = vmatprep.subr.bf16.mxu1 %v16786_v40 }
 0x221   : > { %v2157_v36 = vmax.f32 %v2148_v26, %v2152_v28  ;;  %15046 = vmatprep.mubr.bf16.mxu1 %v2279_v30  ;;  %v18864_v44 = vld [vmem:[#allocation3 + $0x23] sm:$0xff]  ;;  %v6164_v47 = vld [vmem:[#allocation2 + $0x294] ss:$2 sm:$0xff]  ;;  %v2162_v52 = vadd.f32 %v18780_v5, %v2160_v35  ;;  %1965 = vst [vmem:[#allocation2 + $0x2c8] sm:$0xff] %v1832_v50  ;;  %v14968_v56 = vpop.f32.mrb[40].mxu0 }
 0x222   : > { %v6166_v49 = vld [vmem:[#allocation2 + $0x2a4] ss:$2 sm:$0x3]  ;;  %v6168_v54 = vld [vmem:[#allocation2 + $0x295] ss:$2 sm:$0xff]  ;;  %1918 = vst [vmem:[#allocation2 + $0x150] sm:$0xff] %v14968_v56 }
 0x223   : > { %v2159_v45 = vmax.f32 %v2155_v34, %v2157_v36  ;;  %v6170_v55 = vld [vmem:[#allocation2 + $0x2a5] ss:$2 sm:$0x3]  ;;  %v6173_v57 = vmax.f32 %v6164_v47, %v6168_v54  ;;  %2164 = vst [vmem:[#allocation3 + $0x44] sm:$0x3] %v2162_v52  ;;  %v1637_v61 = vpop.f32.mrb[41].mxu0  ;;  %15061 = vmatpush3.bf16.msra.mxu1 %v16786_v40 }
 0x224   : > { %v6174_v58 = vmax.f32 %v6166_v49, %v6170_v55  ;;  %1916 = vst [vmem:[#allocation2 + $0x140] sm:$0xff] %v1637_v61  ;;  %v14969_v62 = vpop.f32.mrb[42].mxu0  ;;  %v16787_v63 = vld [vmem:[%s20939_s3 + $0x30] sm:$0xff]   ;;  %v2276_v0 = vld [vmem:[#allocation3 + $0x31] sm:$0xff]  ;;  %v2244_v1 = vld [vmem:[#allocation3 + $0x8] sm:$0xff] }
 0x225   : > { %v2161_v59 = vadd.f32 %v18780_v5, %v2159_v45  ;;  %v6175_v2 = vmax.f32 %v6171_v46, %v6173_v57  ;;  %v2166_v4 = vld [vmem:[#allocation2 + $0x118] ss:$2 sm:$0xff]  ;;  %v2170_v6 = vld [vmem:[#allocation2 + $0x119] ss:$2 sm:$0xff]  ;;  %1919 = vst [vmem:[#allocation2 + $0x158] sm:$0xff] %v14969_v62  ;;  %v1640_v8 = vpop.f32.mrb[43].mxu0  ;;  %v2280_v9 = vpack.c.bf16 %v2276_v0, %v2276_v0  ;;  %v2250_v22 = vpack.c.bf16 %v2244_v1, %v18784_v33 }
 0x226   : > { %v6176_v3 = vmax.f32 %v6172_v41, %v6174_v58  ;;  %v6182_v7 = vld [vmem:[#allocation2 + $0x2a8] ss:$2 sm:$0xff]  ;;  %v2176_v12 = vld [vmem:[#allocation2 + $0x13c] ss:$2 sm:$0x3]  ;;  %1917 = vst [vmem:[#allocation2 + $0x148] sm:$0xff] %v1640_v8  ;;  %15062 = vmatprep.subr.bf16.mxu1 %v16787_v63  ;;  %v2181_v29 = vmax.f32 %v2166_v4, %v2170_v6 }
 0x227   : > { %2163 = vst [vmem:[#allocation3 + $0x3c] sm:$0xff] %v2161_v59  ;;  %v2180_v13 = vld [vmem:[#allocation2 + $0x13d] ss:$2 sm:$0x3]  ;;  %v16789_v15 = vld [vmem:[%s20939_s3 + $0x38] sm:$0xff]   ;;  %v6177_v17 = vadd.f32 %v18780_v5, %v6175_v2  ;;  %15047 = vmatmul.mubr.bf16.gmra.mrb[52].mxu1 %v2280_v9  ;;  %v14972_v38 = vpop.f32.mrb[44].mxu0 }
 0x228   : > { %v6178_v18 = vadd.f32 %v18780_v5, %v6176_v3  ;;  %v2184_v19 = vmax.f32 %v2176_v12, %v2180_v13  ;;  %v2168_v20 = vld [vmem:[#allocation2 + $0x128] ss:$2 sm:$0x3]  ;;  %v2172_v21 = vld [vmem:[#allocation2 + $0x129] ss:$2 sm:$0x3]  ;;  %15066 = vmatprep.mubr.bf16.mxu1 %v2250_v22  ;;  %15063 = vmatpush3.bf16.msra.mxu1 %v16787_v63 }
 0x229   : > { %v2174_v23 = vld [vmem:[#allocation2 + $0x12c] ss:$2 sm:$0xff]  ;;  %v2178_v24 = vld [vmem:[#allocation2 + $0x12d] ss:$2 sm:$0xff]  ;;  %v2182_v26 = vmax.f32 %v2168_v20, %v2172_v21  ;;  %6179 = vst [vmem:[#allocation3 + $0xa0] sm:$0xff] %v6177_v17  ;;  %15064 = vmatprep.subr.bf16.mxu1 %v16789_v15  ;;  %1922 = vst [vmem:[#allocation2 + $0x170] sm:$0xff] %v14972_v38 }
 0x22a   : > { %v6186_v28 = vld [vmem:[#allocation2 + $0x2a9] ss:$2 sm:$0xff]  ;;  %6180 = vst [vmem:[#allocation3 + $0xa8] sm:$0x3] %v6178_v18  ;;  %v2183_v30 = vmax.f32 %v2174_v23, %v2178_v24  ;;  %v6190_v31 = vld [vmem:[#allocation2 + $0x2bc] ss:$2 sm:$0xff] }
 0x22b   : > { %v2186_v34 = vmax.f32 %v2182_v26, %v2184_v19  ;;  %v6197_v35 = vmax.f32 %v6182_v7, %v6186_v28  ;;  %v18883_v36 = vld [vmem:[#allocation3 + $0x2b] sm:$0xff]  ;;  %v1653_v39 = vpop.f32.mrb[45].mxu0  ;;  %v18888_v42 = vld [vmem:[#allocation3 + $0x33] sm:$0xff]  ;;  %v2247_v59 = vld [vmem:[#allocation3 + $0x20] sm:$0xff] }
 0x22c   : > { %v2185_v37 = vmax.f32 %v2181_v29, %v2183_v30  ;;  %v6194_v33 = vld [vmem:[#allocation2 + $0x2bd] ss:$2 sm:$0xff]  ;;  %v16790_v40 = vld [vmem:[%s20939_s3 + $0x80] sm:$0xff]   ;;  %1920 = vst [vmem:[#allocation2 + $0x160] sm:$0xff] %v1653_v39  ;;  %v14973_v46 = vpop.f32.mrb[46].mxu0  ;;  %15065 = vmatpush3.bf16.msra.mxu1 %v16789_v15  ;;  %v2252_v1 = vpack.c.bf16 %v18818_v27, %v2247_v59 }
 0x22d   : > { %v6199_v41 = vmax.f32 %v6190_v31, %v6194_v33  ;;  %v2188_v45 = vadd.f32 %v18780_v5, %v2186_v34  ;;  %v2246_v47 = vld [vmem:[#allocation3 + $0x18] sm:$0xff]  ;;  %1923 = vst [vmem:[#allocation2 + $0x178] sm:$0xff] %v14973_v46  ;;  %v1656_v52 = vpop.f32.mrb[47].mxu0  ;;  %v2245_v55 = vld [vmem:[#allocation3 + $0x10] sm:$0xff]  ;;  %15074 = vmatprep.subr.bf16.mxu1 %v16790_v40  ;;  %v18907_v3 = vld [vmem:[#allocation3 + $0x24] sm:$0xff] }
 0x22e   : > { %v2187_v50 = vadd.f32 %v18780_v5, %v2185_v37  ;;  %1921 = vst [vmem:[#allocation2 + $0x168] sm:$0xff] %v1656_v52  ;;  %v18894_v56 = vld [vmem:[#allocation3 + $0xc] sm:$0xff]  ;;  %v18896_v57 = vld [vmem:[#allocation3 + $0x14] sm:$0xff]  ;;  %v2251_v58 = vpack.c.bf16 %v2246_v47, %v2245_v55  ;;  %v18905_v2 = vld [vmem:[#allocation3 + $0x1c] sm:$0xff]  ;;  %v14976_v8 = vpop.f32.mrb[48].mxu0 }
 0x22f   : > { %v6201_v54 = vmax.f32 %v6197_v35, %v6199_v41  ;;  %2190 = vst [vmem:[#allocation3 + $0x4e] sm:$0x3] %v2188_v45  ;;  %v16791_v61 = vld [vmem:[%s20939_s3 + $0x88] sm:$0xff]   ;;  %v2194_v0 = vld [vmem:[#allocation2 + $0x150] ss:$2 sm:$0x3] }
 0x230   : > { %2189 = vst [vmem:[#allocation3 + $0x46] sm:$0xff] %v2187_v50  ;;  %v18909_v4 = vld [vmem:[#allocation3 + $0x2c] sm:$0xff]  ;;  %15067 = vmatmul.mubr.bf16.vlgmr.msra.gmra.mrb[48].mxu1 %v2251_v58  ;;  %v16793_v9 = vld [vmem:[%s20939_s3 + $0x90] sm:$0xff]   ;;  %1926 = vst [vmem:[#allocation2 + $0x190] sm:$0xff] %v14976_v8  ;;  %v1669_v15 = vpop.f32.mrb[49].mxu0 }
 0x231   : > { %v6203_v63 = vadd.f32 %v18780_v5, %v6201_v54  ;;  %v2198_v6 = vld [vmem:[#allocation2 + $0x151] ss:$2 sm:$0x3]  ;;  %v18914_v7 = vld [vmem:[#allocation3 + $0x7e] sm:$0xff]  ;;  %v18916_v12 = vld [vmem:[#allocation3 + $0x86] sm:$0xff]  ;;  %15075 = vmatpush3.bf16.msra.mxu1 %v16790_v40  ;;  %15070 = vmatprep.mubr.bf16.mxu1 %v2252_v1  ;;  %1924 = vst [vmem:[#allocation2 + $0x180] sm:$0xff] %v1669_v15 }
 0x232   : > { %v2192_v27 = vld [vmem:[#allocation2 + $0x140] ss:$2 sm:$0xff]  ;;  %v2196_v13 = vld [vmem:[#allocation2 + $0x141] ss:$2 sm:$0xff]  ;;  %v2249_v17 = vld [vmem:[#allocation3 + $0x30] sm:$0xff]  ;;  %15076 = vmatprep.subr.bf16.mxu1 %v16791_v61  ;;  %v14977_v22 = vpop.f32.mrb[50].mxu0  ;;  %v2208_v29 = vmax.f32 %v2194_v0, %v2198_v6 }
 0x233   : > { %6205 = vst [vmem:[#allocation3 + $0xaa] sm:$0xff] %v6203_v63  ;;  %v18920_v18 = vld [vmem:[#allocation3 + $0x34] sm:$0xff]  ;;  %v2202_v21 = vld [vmem:[#allocation2 + $0x164] ss:$2 sm:$0x3]  ;;  %1927 = vst [vmem:[#allocation2 + $0x198] sm:$0xff] %v14977_v22  ;;  %v2207_v30 = vmax.f32 %v2192_v27, %v2196_v13  ;;  %v2253_v38 = vpack.c.bf16 %v2249_v17, %v2249_v17 }
 0x234   : > { %v2200_v20 = vld [vmem:[#allocation2 + $0x154] ss:$2 sm:$0xff]  ;;  %v2204_v24 = vld [vmem:[#allocation2 + $0x155] ss:$2 sm:$0xff]  ;;  %v1672_v28 = vpop.f32.mrb[51].mxu0  ;;  %v16794_v39 = vld [vmem:[%s20939_s3 + $0x98] sm:$0xff]  }
 0x235   : > { %v2206_v26 = vld [vmem:[#allocation2 + $0x165] ss:$2 sm:$0x3]  ;;  %v2209_v31 = vmax.f32 %v2200_v20, %v2204_v24  ;;  %1925 = vst [vmem:[#allocation2 + $0x188] sm:$0xff] %v1672_v28  ;;  %15077 = vmatpush3.bf16.msra.mxu1 %v16791_v61  ;;  %v6008_v41 = vld [vmem:[#allocation2 + $0x1a4] ss:$2 sm:$0xff] }
 0x236   : > { %v2210_v34 = vmax.f32 %v2202_v21, %v2206_v26  ;;  %15078 = vmatprep.subr.bf16.mxu1 %v16793_v9  ;;  %v2522_v33 = vld [vmem:[#allocation3 + $0x2] sm:$0xff]  ;;  %v18933_v46 = vld [vmem:[%s20938_s2] ss:$0 sm:$0xff]  ;;  %v18942_v1 = vld [vmem:[#allocation3 + $0x77] sm:$0xff] }
 0x237   : > { %v2211_v35 = vmax.f32 %v2207_v30, %v2209_v31  ;;  %v2529_v40 = vpack.c.bf16 %v18792_v14, %v2522_v33  ;;  %v6012_v45 = vld [vmem:[#allocation2 + $0x1a5] ss:$2 sm:$0xff]  ;;  %v2218_v52 = vld [vmem:[#allocation2 + $0x168] ss:$2 sm:$0xff]  ;;  %v16797_v20 = vld [vmem:[%s20939_s3 + $0xa8] sm:$0xff]  }
 0x238   : > { %v2212_v37 = vmax.f32 %v2208_v29, %v2210_v34  ;;  %15071 = vmatmul.mubr.bf16.gmra.mrb[52].mxu1 %v2253_v38  ;;  %v16795_v54 = vld [vmem:[%s20939_s3 + $0xa0] sm:$0xff]   ;;  %v6017_v61 = vmax.f32 %v6008_v41, %v6012_v45  ;;  %v18946_v15 = vld [vmem:[#allocation3 + $0x7f] sm:$0xff]  ;;  %v18948_v17 = vld [vmem:[#allocation3 + $0x87] sm:$0xff] }
 0x239   : > { %v2213_v47 = vadd.f32 %v18933_v46, %v2211_v35  ;;  %15079 = vmatpush3.bf16.msra.mxu1 %v16793_v9  ;;  %15090 = vmatprep.mubr.bf16.mxu1 %v2529_v40  ;;  %v18940_v14 = vld [vmem:[#allocation3 + $0x6f] sm:$0xff]  ;;  %v18960_v28 = vld [vmem:[#allocation3 + $0x97] sm:$0xff]  ;;  %v16798_v34 = vld [vmem:[%s20939_s3 + $0xb0] sm:$0xff]  }
 0x23a   : > { %v2214_v50 = vadd.f32 %v18933_v46, %v2212_v37  ;;  %v2222_v55 = vld [vmem:[#allocation2 + $0x169] ss:$2 sm:$0xff]  ;;  %v6000_v58 = vld [vmem:[#allocation2 + $0x190] ss:$2 sm:$0xff]  ;;  %15080 = vmatprep.subr.bf16.mxu1 %v16794_v39  ;;  %v18973_v37 = vld [vmem:[#allocation3 + $0x80] sm:$0xff] }
 0x23b   : > { %v6004_v59 = vld [vmem:[#allocation2 + $0x191] ss:$2 sm:$0xff]  ;;  %2215 = vst [vmem:[#allocation3 + $0x50] sm:$0xff] %v2213_v47  ;;  %v2233_v9 = vmax.f32 %v2218_v52, %v2222_v55  ;;  %v18975_v38 = vld [vmem:[#allocation3 + $0x88] sm:$0xff] }
 0x23c   : > { %2216 = vst [vmem:[#allocation3 + $0x58] sm:$0x3] %v2214_v50  ;;  %v6015_v63 = vmax.f32 %v6000_v58, %v6004_v59  ;;  %v2226_v0 = vld [vmem:[#allocation2 + $0x17c] ss:$2 sm:$0xff]  ;;  %v2230_v6 = vld [vmem:[#allocation2 + $0x17d] ss:$2 sm:$0xff] }
 0x23d   : > { %v2235_v13 = vmax.f32 %v2226_v0, %v2230_v6  ;;  %15081 = vmatpush3.bf16.msra.mxu1 %v16794_v39  ;;  %v18958_v26 = vld [vmem:[#allocation3 + $0x8f] sm:$0xff]  ;;  %v18971_v35 = vld [vmem:[#allocation3 + $0x78] sm:$0xff]  ;;  %v18994_v58 = vld [vmem:[#allocation3 + $0x25] sm:$0xff] }
 0x23e   : > { %v6019_v27 = vmax.f32 %v6015_v63, %v6017_v61  ;;  %15082 = vmatprep.subr.bf16.mxu1 %v16795_v54  ;;  %v18962_v29 = vld [vmem:[#allocation3 + $0x70] sm:$0xff]  ;;  %v18981_v40 = vld [vmem:[#allocation3 + $0x98] sm:$0xff]  ;;  %v16799_v45 = vld [vmem:[%s20939_s3 + $0xb8] sm:$0xff]  }
 0x23f   : > { %v2237_v22 = vmax.f32 %v2233_v9, %v2235_v13  ;;  %v18979_v39 = vld [vmem:[#allocation3 + $0x90] sm:$0xff]  ;;  %v6289_v52 = vld [vmem:[#allocation3 + $0x7d] sm:$0xff]  ;;  %v6290_v13 = vld [vmem:[#allocation3 + $0x85] sm:$0xff] }
 0x240   : > { %v18956_v24 = vadd.f32 %v18933_v46, %v6019_v27  ;;  %v6288_v47 = vld [vmem:[#allocation3 + $0x75] sm:$0xff]  ;;  %v18992_v55 = vld [vmem:[#allocation3 + $0x1d] sm:$0xff]  ;;  %v18996_v59 = vld [vmem:[#allocation3 + $0x2d] sm:$0xff] }
 0x241   : > { %15083 = vmatpush3.bf16.msra.mxu1 %v16795_v54  ;;  %v2239_v31 = vadd.f32 %v18933_v46, %v2237_v22  ;;  %v18990_v54 = vld [vmem:[#allocation3 + $0x15] sm:$0xff]  ;;  %v6287_v6 = vld [vmem:[#allocation3 + $0x6d] sm:$0xff]  ;;  %v19004_v22 = vld [vmem:[#allocation3 + $0x3d] sm:$0xff]  ;;  %v6294_v41 = vpack.c.bf16 %v6289_v52, %v6288_v47 }
 0x242   : > { %6023 = vst [vmem:[#allocation3 + $0x64] sm:$0xff] %v18956_v24  ;;  %15084 = vmatprep.subr.bf16.mxu1 %v16797_v20  ;;  %v18998_v61 = vld [vmem:[#allocation3 + $0x35] sm:$0xff]  ;;  %v19009_v50 = vld [vmem:[#allocation3 + $0x2a] sm:$0xff]  ;;  %v19026_v47 = vld [vmem:[#allocation3 + $0x3e] sm:$0xff] }
 0x243   : > { %2241 = vst [vmem:[#allocation3 + $0x5a] sm:$0xff] %v2239_v31  ;;  %v16800_v31 = vld [vmem:[%s20939_s3 + $0xc0] sm:$0xff]   ;;  %v16803_v63 = vld [vmem:[%s20939_s3 + $0x8] sm:$0xff]   ;;  %v19020_v9 = vld [vmem:[#allocation3 + $0x26] sm:$0xff]  ;;  %v2531_v52 = vpack.c.bf16 %v19009_v50, %v18852_v25 }
 0x244   : > { %v19022_v30 = vld [vmem:[#allocation3 + $0x2e] sm:$0xff]  ;;  %v19024_v21 = vld [vmem:[#allocation3 + $0x36] sm:$0xff]  ;;  %v19051_v23 = vld [vmem:[#allocation3 + $0x81] sm:$0xff] }
 0x245   : > { %15085 = vmatpush3.bf16.msra.mxu1 %v16797_v20  ;;  %v6291_v20 = vld [vmem:[#allocation3 + $0x8d] sm:$0xff]  ;;  %20988 = vst [vmem:[#allocation13_spill] sm:$0xff] %v19024_v21  ;;  %v6292_v8 = vld [vmem:[#allocation3 + $0x95] sm:$0xff]  ;;  %20990 = vst [vmem:[#allocation15_spill] sm:$0xff] %v19051_v23 }
 0x246   : > { %15086 = vmatprep.subr.bf16.mxu1 %v16798_v34  ;;  %v6295_v33 = vpack.c.bf16 %v6291_v20, %v6290_v13  ;;  %v16804_v20 = vld [vmem:[%s20939_s3 + $0xd0] sm:$0xff]   ;;  %v19058_v19 = vld [vmem:[#allocation3 + $0x89] sm:$0xff]  ;;  %v19060_v62 = vld [vmem:[#allocation3 + $0x91] sm:$0xff] }
 0x247   : > { %20991 = vst [vmem:[#allocation16_spill] sm:$0xff] %v19058_v19  ;;  %20992 = vst [vmem:[#allocation17_spill] sm:$0xff] %v19060_v62  ;;  %v2669_v49 = vld [vmem:[#allocation3 + $0x3] sm:$0xff]  ;;  %v19068_v5 = vld [vmem:[#allocation3 + $0x7a] sm:$0xff] }
 0x248   : > { %v19070_v60 = vld [vmem:[#allocation3 + $0x82] sm:$0xff]  ;;  %v2232_v32 = vld [vmem:[#allocation2 + $0x18d] ss:$2 sm:$0x3]  ;;  %v2676_v21 = vpack.c.bf16 %v18802_v48, %v2669_v49  ;;  %v19098_v49 = vld [vmem:[#allocation3 + $0x37] sm:$0xff] }
 0x249   : > { %v6286_v0 = vld [vmem:[#allocation3 + $0x65] sm:$0xff]  ;;  %15087 = vmatpush3.bf16.msra.mxu1 %v16798_v34  ;;  %v19030_v34 = vld [vmem:[#allocation3 + $0x12] sm:$0xff] }
 0x24a   : > { %v6293_v27 = vpack.c.bf16 %v6287_v6, %v6286_v0  ;;  %15088 = vmatprep.subr.bf16.mxu1 %v16799_v45  ;;  %v19016_v0 = vld [vmem:[#allocation3 + $0x16] sm:$0xff]  ;;  %v19018_v6 = vld [vmem:[#allocation3 + $0x1e] sm:$0xff]  ;;  %v2530_v13 = vpack.c.bf16 %v18842_v11, %v19030_v34 }
 0x24b   : > { %v2224_v19 = vld [vmem:[#allocation2 + $0x179] ss:$2 sm:$0x3]  ;;  %v19092_v23 = vld [vmem:[#allocation3 + $0x1f] sm:$0xff] }
 0x24c   : > { %15642 = vmatprep.mubr.bf16.mxu0 %v6293_v27  ;;  %v17170_v27 = vld [vmem:[%s20939_s3] sm:$0xff]   ;;  %20995 = vst [vmem:[#allocation20_spill] sm:$0xff] %v19092_v23  ;;  %v19138_v23 = vld [vmem:[#allocation3 + $0x83] sm:$0xff] }
 0x24d   : > { %15643 = vmatmul.mubr.bf16.vlgmr.msra.gmra.mrb[52].mxu0 %v6294_v41  ;;  %15089 = vmatpush3.bf16.msra.mxu1 %v16799_v45  ;;  %v16802_v45 = vld [vmem:[%s20939_s3 + $0xc8] sm:$0xff]   ;;  %21004 = vst [vmem:[#allocation29_spill] sm:$0xff] %v19138_v23 }
 0x24e   : > { %15651 = vmatpush3.bf16.msra.mxu0 %v17170_v27  ;;  %15098 = vmatprep.subr.bf16.mxu1 %v16800_v31  ;;  %v16805_v27 = vld [vmem:[%s20939_s3 + $0x10] sm:$0xff]  }
 0x24f   : > { %15646 = vmatprep.mubr.bf16.mxu0 %v6295_v33  ;;  %15652 = vmatprep.subr.bf16.mxu0 %v16803_v63  ;;  %v19049_v41 = vld [vmem:[#allocation3 + $0x79] sm:$0xff]  ;;  %v6296_v33 = vpack.c.bf16 %v6292_v8, %v6292_v8  ;;  %v16807_v8 = vld [vmem:[%s20939_s3 + $0x18] sm:$0xff]  }
 0x250   : > { %20989 = vst [vmem:[#allocation14_spill] sm:$0xff] %v19049_v41  ;;  %15091 = vmatmul.mubr.bf16.vlgmr.msra.gmra.mrb[48].mxu1 %v2530_v13  ;;  %v6266_v13 = vpack.c.bf16 %v6260_v51, %v18956_v24  ;;  %v19074_v41 = vld [vmem:[#allocation3 + $0x92] sm:$0xff] }
 0x251   : > { %15094 = vmatprep.mubr.bf16.mxu1 %v2531_v52  ;;  %15099 = vmatpush3.bf16.msra.mxu1 %v16800_v31  ;;  %v2228_v31 = vld [vmem:[#allocation2 + $0x18c] ss:$2 sm:$0x3]  ;;  %20994 = vst [vmem:[#allocation19_spill] sm:$0xff] %v19074_v41  ;;  %v16808_v51 = vld [vmem:[%s20939_s3 + $0xe0] sm:$0xff]   ;;  %v19117_v41 = vld [vmem:[#allocation3 + $0x38] sm:$0xff] }
 0x252   : > { %15100 = vmatprep.subr.bf16.mxu1 %v16802_v45  ;;  %15653 = vmatpush3.bf16.msra.mxu0 %v16803_v63  ;;  %v19072_v63 = vld [vmem:[#allocation3 + $0x8a] sm:$0xff]  ;;  %v2220_v24 = vld [vmem:[#allocation2 + $0x178] ss:$2 sm:$0x3]  ;;  %v2236_v62 = vmax.f32 %v2228_v31, %v2232_v32  ;;  %21001 = vst [vmem:[#allocation26_spill] sm:$0xff] %v19117_v41 }
 0x253   : > { %15654 = vmatprep.subr.bf16.mxu0 %v16805_v27  ;;  %20993 = vst [vmem:[#allocation18_spill] sm:$0xff] %v19072_v63  ;;  %v16806_v52 = vld [vmem:[%s20939_s3 + $0xd8] sm:$0xff]   ;;  %v19115_v63 = vld [vmem:[#allocation3 + $0x30] sm:$0xff] }
 0x254   : > { %v19096_v32 = vld [vmem:[#allocation3 + $0x2f] sm:$0xff]  ;;  %v19107_v31 = vld [vmem:[#allocation3 + $0x47] sm:$0xff]  ;;  %21000 = vst [vmem:[#allocation25_spill] sm:$0xff] %v19115_v63 }
 0x255   : > { %15647 = vmatmul.mubr.bf16.gmra.mrb[56].mxu0 %v6296_v33  ;;  %15101 = vmatpush3.bf16.msra.mxu1 %v16802_v45  ;;  %v2532_v33 = vpack.c.bf16 %v18845_v16, %v18845_v16  ;;  %v16809_v45 = vld [vmem:[%s20939_s3 + $0x20] sm:$0xff]   ;;  %v19094_v16 = vld [vmem:[#allocation3 + $0x27] sm:$0xff]  ;;  %20996 = vst [vmem:[#allocation21_spill] sm:$0xff] %v19096_v32  ;;  %v16810_v32 = vld [vmem:[%s20939_s3 + $0xe8] sm:$0xff]  }
 0x256   : > { %15666 = vmatprep.mubr.bf16.mxu0 %v6266_v13  ;;  %15102 = vmatprep.subr.bf16.mxu1 %v16804_v20  ;;  %v2234_v13 = vmax.f32 %v2220_v24, %v2224_v19  ;;  %v19109_v24 = vld [vmem:[#allocation3 + $0x20] sm:$0xff]  ;;  %v19123_v19 = vld [vmem:[#allocation3 + $0x48] sm:$0xff] }
 0x257   : > { %15655 = vmatpush3.bf16.msra.mxu0 %v16805_v27  ;;  %v19100_v27 = vld [vmem:[#allocation3 + $0x3f] sm:$0xff]  ;;  %20998 = vst [vmem:[#allocation23_spill] sm:$0xff] %v19109_v24  ;;  %21003 = vst [vmem:[#allocation28_spill] sm:$0xff] %v19123_v19  ;;  %v19140_v24 = vld [vmem:[#allocation3 + $0x8b] sm:$0xff] }
 0x258   : > { %15656 = vmatprep.subr.bf16.mxu0 %v16807_v8  ;;  %15095 = vmatmul.mubr.bf16.gmra.mrb[52].mxu1 %v2532_v33  ;;  %20997 = vst [vmem:[#allocation22_spill] sm:$0xff] %v19100_v27  ;;  %v19113_v33 = vld [vmem:[#allocation3 + $0x28] sm:$0xff]  ;;  %21005 = vst [vmem:[#allocation30_spill] sm:$0xff] %v19140_v24  ;;  %v19147_v19 = vld [vmem:[#allocation3 + $0x93] sm:$0xff] }
 0x259   : > { %15103 = vmatpush3.bf16.msra.mxu1 %v16804_v20  ;;  %15114 = vmatprep.mubr.bf16.mxu1 %v2676_v21  ;;  %v2238_v21 = vmax.f32 %v2234_v13, %v2236_v62  ;;  %v16811_v20 = vld [vmem:[%s20939_s3 + $0x28] sm:$0xff]   ;;  %20999 = vst [vmem:[#allocation24_spill] sm:$0xff] %v19113_v33  ;;  %v19121_v13 = vld [vmem:[#allocation3 + $0x40] sm:$0xff]  ;;  %21006 = vst [vmem:[#allocation31_spill] sm:$0xff] %v19147_v19  ;;  %v2825_v33 = vpack.c.bf16 %v18909_v4, %v18907_v3 }
 0x25a   : > { %15104 = vmatprep.subr.bf16.mxu1 %v16806_v52  ;;  %21002 = vst [vmem:[#allocation27_spill] sm:$0xff] %v19121_v13  ;;  %v16812_v62 = vld [vmem:[%s20939_s3 + $0xf0] sm:$0xff]   ;;  %v16839_v41 = vld [vmem:[%s20939_s3 + $0xd8] sm:$0xff]  }
 0x25b   : > { %15657 = vmatpush3.bf16.msra.mxu0 %v16807_v8  ;;  %v2240_v27 = vadd.f32 %v18933_v46, %v2238_v21  ;;  %v19149_v46 = vld [vmem:[#allocation3 + $0x9b] sm:$0xff]  ;;  %v19154_v21 = vld [vmem:[#allocation3 + $0x84] sm:$0xff] }
 0x25c   : > { %15658 = vmatprep.subr.bf16.mxu0 %v16809_v45  ;;  %21007 = vst [vmem:[#allocation32_spill] sm:$0xff] %v19149_v46  ;;  %21008 = vst [vmem:[#allocation33_spill] sm:$0xff] %v19154_v21  ;;  %v19160_v8 = vld [vmem:[#allocation3 + $0x94] sm:$0xff]  ;;  %v6262_v46 = vld [vmem:[#allocation3 + $0x7c] sm:$0xff] }
 0x25d   : > { %15105 = vmatpush3.bf16.msra.mxu1 %v16806_v52  ;;  %v16813_v52 = vld [vmem:[%s20939_s3 + $0x30] sm:$0xff]   ;;  %2242 = vst [vmem:[#allocation3 + $0x62] sm:$0x3] %v2240_v27  ;;  %21010 = vst [vmem:[#allocation35_spill] sm:$0xff] %v19160_v8  ;;  %v16817_v27 = vld [vmem:[%s20939_s3 + $0x80] sm:$0xff]  }
 0x25e   : > { %15106 = vmatprep.subr.bf16.mxu1 %v16808_v51  ;;  %v6263_v24 = vld [vmem:[#allocation3 + $0x84] sm:$0xff]  ;;  %v16819_v8 = vld [vmem:[%s20939_s3 + $0x88] sm:$0xff]  }
 0x25f   : > { %15659 = vmatpush3.bf16.msra.mxu0 %v16809_v45  ;;  %v15020_v45 = vpop.f32.mrb[40].mxu1 }
 0x260   : > { %15660 = vmatprep.subr.bf16.mxu0 %v16811_v20  ;;  %1970 = vst [vmem:[#allocation2 + $0x2f0] sm:$0xff] %v15020_v45  ;;  %v1845_v13 = vpop.f32.mrb[41].mxu1  ;;  %v19162_v45 = vld [vmem:[#allocation3 + $0x9c] sm:$0xff] }
 0x261   : > { %15107 = vmatpush3.bf16.msra.mxu1 %v16808_v51  ;;  %v16815_v51 = vld [vmem:[%s20939_s3 + $0x38] sm:$0xff]   ;;  %1968 = vst [vmem:[#allocation2 + $0x2e0] sm:$0xff] %v1845_v13  ;;  %21011 = vst [vmem:[#allocation36_spill] sm:$0xff] %v19162_v45  ;;  %v15021_v23 = vpop.f32.mrb[42].mxu1  ;;  %v6268_v45 = vpack.c.bf16 %v18811_v10, %v6263_v24  ;;  %v16832_v24 = vld [vmem:[%s20939_s3 + $0x140] sm:$0xff]  }
 0x262   : > { %15108 = vmatprep.subr.bf16.mxu1 %v16810_v32  ;;  %v16814_v13 = vld [vmem:[%s20939_s3 + $0xf8] sm:$0xff]   ;;  %1971 = vst [vmem:[#allocation2 + $0x2f8] sm:$0xff] %v15021_v23  ;;  %v1848_v19 = vpop.f32.mrb[43].mxu1 }
 0x263   : > { %15661 = vmatpush3.bf16.msra.mxu0 %v16811_v20  ;;  %v19158_v20 = vld [vmem:[#allocation3 + $0x8c] sm:$0xff]  ;;  %1969 = vst [vmem:[#allocation2 + $0x2e8] sm:$0xff] %v1848_v19  ;;  %v15024_v23 = vpop.f32.mrb[44].mxu1 }
 0x264   : > { %15662 = vmatprep.subr.bf16.mxu0 %v16813_v52  ;;  %21009 = vst [vmem:[#allocation34_spill] sm:$0xff] %v19158_v20  ;;  %1974 = vst [vmem:[#allocation2 + $0x310] sm:$0xff] %v15024_v23  ;;  %v1861_v21 = vpop.f32.mrb[45].mxu1  ;;  %v19181_v19 = vld [vmem:[#allocation3 + $0x29] sm:$0xff]  ;;  %v17171_v20 = vld [vmem:[#allocation3 + $0x13] sm:$0xff] }
 0x265   : > { %15109 = vmatpush3.bf16.msra.mxu1 %v16810_v32  ;;  %v6261_v32 = vld [vmem:[#allocation3 + $0x74] sm:$0xff]  ;;  %21012 = vst [vmem:[#allocation37_spill] sm:$0xff] %v19181_v19  ;;  %1972 = vst [vmem:[#allocation2 + $0x300] sm:$0xff] %v1861_v21  ;;  %v19270_v19 = vld [vmem:[#allocation3 + $0x4a] sm:$0xff] }
 0x266   : > { %15110 = vmatprep.subr.bf16.mxu1 %v16812_v62  ;;  %v6267_v63 = vpack.c.bf16 %v6262_v46, %v6261_v32  ;;  %v2677_v46 = vpack.c.bf16 %v18862_v43, %v17171_v20  ;;  %v16818_v32 = vld [vmem:[%s20939_s3 + $0x108] sm:$0xff]   ;;  %v16821_v20 = vld [vmem:[%s20939_s3 + $0x90] sm:$0xff]   ;;  %21022 = vst [vmem:[#allocation47_spill] sm:$0xff] %v19270_v19  ;;  %v2826_v19 = vpack.c.bf16 %v18920_v18, %v18920_v18 }
 0x267   : > { %15663 = vmatpush3.bf16.msra.mxu0 %v16813_v52  ;;  %v16816_v52 = vld [vmem:[%s20939_s3 + $0x100] sm:$0xff]  }
 0x268   : > { %15664 = vmatprep.subr.bf16.mxu0 %v16815_v51  ;;  %v6265_v21 = vld [vmem:[#allocation3 + $0x94] sm:$0xff] }
 0x269   : > { %15111 = vmatpush3.bf16.msra.mxu1 %v16812_v62  ;;  %v15025_v62 = vpop.f32.mrb[46].mxu1  ;;  %v6269_v23 = vpack.c.bf16 %v6265_v21, %v6265_v21  ;;  %v16825_v21 = vld [vmem:[%s20939_s3 + $0xa0] sm:$0xff]  }
 0x26a   : > { %15112 = vmatprep.subr.bf16.mxu1 %v16814_v13  ;;  %1975 = vst [vmem:[#allocation2 + $0x318] sm:$0xff] %v15025_v62  ;;  %v1864_v10 = vpop.f32.mrb[47].mxu1  ;;  %v19199_v62 = vld [vmem:[#allocation3 + $0x6e] sm:$0xff] }
 0x26b   : > { %15665 = vmatpush3.bf16.msra.mxu0 %v16815_v51  ;;  %v19183_v51 = vld [vmem:[#allocation3 + $0x31] sm:$0xff]  ;;  %1973 = vst [vmem:[#allocation2 + $0x308] sm:$0xff] %v1864_v10  ;;  %v16823_v10 = vld [vmem:[%s20939_s3 + $0x98] sm:$0xff]  }
 0x26c   : > { %15674 = vmatprep.subr.bf16.mxu0 %v16817_v27  ;;  %21013 = vst [vmem:[#allocation38_spill] sm:$0xff] %v19183_v51  ;;  %v2824_v51 = vpack.c.bf16 %v18905_v2, %v18896_v57 }
 0x26d   : > { %15113 = vmatpush3.bf16.msra.mxu1 %v16814_v13  ;;  %v16820_v13 = vld [vmem:[%s20939_s3 + $0x110] sm:$0xff]  }
 0x26e   : > { %15667 = vmatmul.mubr.bf16.vlgmr.msra.gmra.mrb[52].mxu0 %v6267_v63  ;;  %15122 = vmatprep.subr.bf16.mxu1 %v16816_v52  ;;  %v2678_v63 = vpack.c.bf16 %v18883_v36, %v18864_v44 }
 0x26f   : > { %15670 = vmatprep.mubr.bf16.mxu0 %v6268_v45  ;;  %15675 = vmatpush3.bf16.msra.mxu0 %v16817_v27  ;;  %v6537_v45 = vld [vmem:[#allocation3 + $0x66] sm:$0xff] }
 0x270   : > { %15115 = vmatmul.mubr.bf16.vlgmr.msra.gmra.mrb[48].mxu1 %v2677_v46  ;;  %15676 = vmatprep.subr.bf16.mxu0 %v16819_v8  ;;  %v2816_v27 = vld [vmem:[#allocation3 + $0x4] sm:$0xff]  ;;  %v6544_v46 = vpack.c.bf16 %v19199_v62, %v6537_v45  ;;  %v16827_v45 = vld [vmem:[%s20939_s3 + $0xa8] sm:$0xff]  }
 0x271   : > { %15118 = vmatprep.mubr.bf16.mxu1 %v2678_v63  ;;  %15123 = vmatpush3.bf16.msra.mxu1 %v16816_v52  ;;  %v2679_v52 = vpack.c.bf16 %v18888_v42, %v18888_v42  ;;  %v2823_v63 = vpack.c.bf16 %v18894_v56, %v2816_v27  ;;  %v19224_v27 = vld [vmem:[#allocation3 + $0x49] sm:$0xff] }
 0x272   : > { %15124 = vmatprep.subr.bf16.mxu1 %v16818_v32  ;;  %21016 = vst [vmem:[#allocation41_spill] sm:$0xff] %v19224_v27  ;;  %v19259_v27 = vld [vmem:[#allocation3 + $0x8e] sm:$0xff] }
 0x273   : > { %15677 = vmatpush3.bf16.msra.mxu0 %v16819_v8  ;;  %v16822_v8 = vld [vmem:[%s20939_s3 + $0x118] sm:$0xff]  }
 0x274   : > { %15678 = vmatprep.subr.bf16.mxu0 %v16821_v20 }
 0x275   : > { %15125 = vmatpush3.bf16.msra.mxu1 %v16818_v32  ;;  %v16824_v32 = vld [vmem:[%s20939_s3 + $0x120] sm:$0xff]  }
 0x276   : > { %15671 = vmatmul.mubr.bf16.gmra.mrb[56].mxu0 %v6269_v23  ;;  %15126 = vmatprep.subr.bf16.mxu1 %v16820_v13  ;;  %v19220_v23 = vld [vmem:[#allocation3 + $0x39] sm:$0xff] }
 0x277   : > { %15690 = vmatprep.mubr.bf16.mxu0 %v6544_v46  ;;  %15679 = vmatpush3.bf16.msra.mxu0 %v16821_v20  ;;  %21014 = vst [vmem:[#allocation39_spill] sm:$0xff] %v19220_v23  ;;  %v19222_v20 = vld [vmem:[#allocation3 + $0x41] sm:$0xff]  ;;  %v16826_v46 = vld [vmem:[%s20939_s3 + $0x128] sm:$0xff]  }
 0x278   : > { %15119 = vmatmul.mubr.bf16.gmra.mrb[52].mxu1 %v2679_v52  ;;  %15680 = vmatprep.subr.bf16.mxu0 %v16823_v10  ;;  %21015 = vst [vmem:[#allocation40_spill] sm:$0xff] %v19222_v20  ;;  %v19231_v52 = vld [vmem:[#allocation3 + $0x51] sm:$0xff]  ;;  %v19266_v23 = vld [vmem:[#allocation3 + $0x3a] sm:$0xff]  ;;  %v19268_v20 = vld [vmem:[#allocation3 + $0x42] sm:$0xff] }
 0x279   : > { %15127 = vmatpush3.bf16.msra.mxu1 %v16820_v13  ;;  %15138 = vmatprep.mubr.bf16.mxu1 %v2823_v63  ;;  %21017 = vst [vmem:[#allocation42_spill] sm:$0xff] %v19231_v52  ;;  %v16829_v63 = vld [vmem:[%s20939_s3 + $0xb0] sm:$0xff]   ;;  %v16831_v13 = vld [vmem:[%s20939_s3 + $0xb8] sm:$0xff]   ;;  %21020 = vst [vmem:[#allocation45_spill] sm:$0xff] %v19266_v23 }
 0x27a   : > { %15128 = vmatprep.subr.bf16.mxu1 %v16822_v8  ;;  %21021 = vst [vmem:[#allocation46_spill] sm:$0xff] %v19268_v20  ;;  %v16834_v52 = vld [vmem:[%s20939_s3 + $0x148] sm:$0xff]   ;;  %v16857_v23 = vld [vmem:[%s20939_s3 + $0x120] sm:$0xff]  }
 0x27b   : > { %15681 = vmatpush3.bf16.msra.mxu0 %v16823_v10  ;;  %v19250_v10 = vld [vmem:[#allocation3 + $0x2a] sm:$0xff] }
 0x27c   : > { %15682 = vmatprep.subr.bf16.mxu0 %v16825_v21  ;;  %21018 = vst [vmem:[#allocation43_spill] sm:$0xff] %v19250_v10  ;;  %v6683_v10 = vld [vmem:[#allocation3 + $0x67] sm:$0xff] }
 0x27d   : > { %15129 = vmatpush3.bf16.msra.mxu1 %v16822_v8  ;;  %v16828_v8 = vld [vmem:[%s20939_s3 + $0x130] sm:$0xff]  }
 0x27e   : > { %15130 = vmatprep.subr.bf16.mxu1 %v16824_v32 }
 0x27f   : > { %15683 = vmatpush3.bf16.msra.mxu0 %v16825_v21  ;;  %v16830_v21 = vld [vmem:[%s20939_s3 + $0x138] sm:$0xff]  }
 0x280   : > { %15684 = vmatprep.subr.bf16.mxu0 %v16827_v45 }
 0x281   : > { %15131 = vmatpush3.bf16.msra.mxu1 %v16824_v32  ;;  %v16833_v32 = vld [vmem:[%s20939_s3 + $0xc0] sm:$0xff]  }
 0x282   : > { %15132 = vmatprep.subr.bf16.mxu1 %v16826_v46 }
 0x283   : > { %15685 = vmatpush3.bf16.msra.mxu0 %v16827_v45  ;;  %v19255_v45 = vld [vmem:[#allocation3 + $0x32] sm:$0xff] }
 0x284   : > { %15686 = vmatprep.subr.bf16.mxu0 %v16829_v63  ;;  %21019 = vst [vmem:[#allocation44_spill] sm:$0xff] %v19255_v45  ;;  %v6546_v45 = vpack.c.bf16 %v19259_v27, %v18916_v12 }
 0x285   : > { %15133 = vmatpush3.bf16.msra.mxu1 %v16826_v46  ;;  %v19257_v46 = vld [vmem:[#allocation3 + $0x76] sm:$0xff] }
 0x286   : > { %15134 = vmatprep.subr.bf16.mxu1 %v16828_v8 }
 0x287   : > { %15687 = vmatpush3.bf16.msra.mxu0 %v16829_v63  ;;  %v16835_v63 = vld [vmem:[%s20939_s3 + $0xc8] sm:$0xff]  }
 0x288   : > { %15688 = vmatprep.subr.bf16.mxu0 %v16831_v13 }
 0x289   : > { %15135 = vmatpush3.bf16.msra.mxu1 %v16828_v8  ;;  %v6545_v8 = vpack.c.bf16 %v18914_v7, %v19257_v46 }
 0x28a   : > { %15136 = vmatprep.subr.bf16.mxu1 %v16830_v21 }
 0x28b   : > { %15689 = vmatpush3.bf16.msra.mxu0 %v16831_v13  ;;  %v19281_v13 = vld [vmem:[#allocation3 + $0x52] sm:$0xff] }
 0x28c   : > { %15698 = vmatprep.subr.bf16.mxu0 %v16833_v32  ;;  %21023 = vst [vmem:[#allocation48_spill] sm:$0xff] %v19281_v13 }
 0x28d   : > { %15137 = vmatpush3.bf16.msra.mxu1 %v16830_v21  ;;  %v16837_v21 = vld [vmem:[%s20939_s3 + $0xd0] sm:$0xff]  }
 0x28e   : > { %15146 = vmatprep.subr.bf16.mxu1 %v16832_v24  ;;  %15691 = vmatmul.mubr.bf16.vlgmr.msra.gmra.mrb[52].mxu0 %v6545_v8  ;;  %v16836_v8 = vld [vmem:[%s20939_s3 + $0x150] sm:$0xff]  }
 0x28f   : > { %15694 = vmatprep.mubr.bf16.mxu0 %v6546_v45  ;;  %15699 = vmatpush3.bf16.msra.mxu0 %v16833_v32  ;;  %v17173_v32 = vld [vmem:[#allocation3 + $0x96] sm:$0xff]  ;;  %v2963_v45 = vld [vmem:[#allocation3 + $0xa] sm:$0xff] }
 0x290   : > { %15139 = vmatmul.mubr.bf16.vlgmr.msra.gmra.mrb[48].mxu1 %v2824_v51  ;;  %15700 = vmatprep.subr.bf16.mxu0 %v16835_v63  ;;  %v6547_v51 = vpack.c.bf16 %v17173_v32, %v17173_v32  ;;  %v2970_v13 = vpack.c.bf16 %v19030_v34, %v2963_v45  ;;  %v19313_v32 = vld [vmem:[#allocation3 + $0x95] sm:$0xff] }
 0x291   : > { %15142 = vmatprep.mubr.bf16.mxu1 %v2825_v33  ;;  %15147 = vmatpush3.bf16.msra.mxu1 %v16832_v24  ;;  %v16838_v33 = vld [vmem:[%s20939_s3 + $0x158] sm:$0xff]   ;;  %v6690_v24 = vpack.c.bf16 %v18940_v14, %v6683_v10  ;;  %21025 = vst [vmem:[#allocation50_spill] sm:$0xff] %v19313_v32  ;;  %v16843_v34 = vld [vmem:[%s20939_s3 + $0xe8] sm:$0xff]   ;;  %v16849_v45 = vld [vmem:[%s20939_s3 + $0x100] sm:$0xff]  }
 0x292   : > { %15148 = vmatprep.subr.bf16.mxu1 %v16834_v52  ;;  %v19311_v10 = vld [vmem:[#allocation3 + $0x8d] sm:$0xff] }
 0x293   : > { %15701 = vmatpush3.bf16.msra.mxu0 %v16835_v63  ;;  %v16841_v63 = vld [vmem:[%s20939_s3 + $0xe0] sm:$0xff]   ;;  %21024 = vst [vmem:[#allocation49_spill] sm:$0xff] %v19311_v10  ;;  %v21028_v10 = vpack.c.bf16 %v18852_v25, %v18842_v11  ;;  %v6693_v11 = vpack.c.bf16 %v18960_v28, %v18960_v28  ;;  %v16854_v25 = vld [vmem:[%s20939_s3 + $0x198] sm:$0xff]  }
 0x294   : > { %15702 = vmatprep.subr.bf16.mxu0 %v16837_v21  ;;  %v6192_v32 = vld [vmem:[#allocation2 + $0x2cc] ss:$2 sm:$0x3] }
 0x295   : > { %15149 = vmatpush3.bf16.msra.mxu1 %v16834_v52  ;;  %v16840_v52 = vld [vmem:[%s20939_s3 + $0x160] sm:$0xff]  }
 0x296   : > { %15150 = vmatprep.subr.bf16.mxu1 %v16836_v8  ;;  %15695 = vmatmul.mubr.bf16.gmra.mrb[56].mxu0 %v6547_v51  ;;  %v16846_v51 = vld [vmem:[%s20939_s3 + $0x178] sm:$0xff]  }
 0x297   : > { %15703 = vmatpush3.bf16.msra.mxu0 %v16837_v21  ;;  %15714 = vmatprep.mubr.bf16.mxu0 %v6690_v24  ;;  %v16844_v21 = vld [vmem:[%s20939_s3 + $0x170] sm:$0xff]   ;;  %v2968_v24 = vld [vmem:[#allocation3 + $0x32] sm:$0xff] }
 0x298   : > { %15143 = vmatmul.mubr.bf16.gmra.mrb[52].mxu1 %v2826_v19  ;;  %15704 = vmatprep.subr.bf16.mxu0 %v16839_v41  ;;  %v2972_v19 = vpack.c.bf16 %v2968_v24, %v19009_v50  ;;  %v6829_v50 = vld [vmem:[#allocation3 + $0x68] sm:$0xff]  ;;  %v6184_v24 = vld [vmem:[#allocation2 + $0x2b8] ss:$2 sm:$0x3] }
 0x299   : > { %15151 = vmatpush3.bf16.msra.mxu1 %v16836_v8  ;;  %15162 = vmatprep.mubr.bf16.mxu1 %v2970_v13  ;;  %v16842_v13 = vld [vmem:[%s20939_s3 + $0x168] sm:$0xff]   ;;  %v16847_v8 = vld [vmem:[%s20939_s3 + $0xf8] sm:$0xff]  }
 0x29a   : > { %15152 = vmatprep.subr.bf16.mxu1 %v16838_v33 }
 0x29b   : > { %15705 = vmatpush3.bf16.msra.mxu0 %v16839_v41  ;;  %v16845_v41 = vld [vmem:[%s20939_s3 + $0xf0] sm:$0xff]  }
 0x29c   : > { %15706 = vmatprep.subr.bf16.mxu0 %v16841_v63 }
 0x29d   : > { %15153 = vmatpush3.bf16.msra.mxu1 %v16838_v33  ;;  %v16848_v33 = vld [vmem:[%s20939_s3 + $0x180] sm:$0xff]  }
 0x29e   : > { %15154 = vmatprep.subr.bf16.mxu1 %v16840_v52 }
 0x29f   : > { %15707 = vmatpush3.bf16.msra.mxu0 %v16841_v63  ;;  %v19341_v63 = vld [vmem:[#allocation3 + $0x8e] sm:$0xff] }
 0x2a0   : > { %15708 = vmatprep.subr.bf16.mxu0 %v16843_v34  ;;  %21026 = vst [vmem:[#allocation51_spill] sm:$0xff] %v19341_v63  ;;  %v6208_v63 = vld [vmem:[#allocation2 + $0x2d0] ss:$2 sm:$0xff] }
 0x2a1   : > { %15155 = vmatpush3.bf16.msra.mxu1 %v16840_v52  ;;  %v19343_v52 = vld [vmem:[#allocation3 + $0x96] sm:$0xff] }
 0x2a2   : > { %15156 = vmatprep.subr.bf16.mxu1 %v16842_v13  ;;  %21027 = vst [vmem:[#allocation52_spill] sm:$0xff] %v19343_v52  ;;  %v6212_v52 = vld [vmem:[#allocation2 + $0x2d1] ss:$2 sm:$0xff] }
 0x2a3   : > { %15709 = vmatpush3.bf16.msra.mxu0 %v16843_v34  ;;  %v6691_v34 = vpack.c.bf16 %v18946_v15, %v18942_v1 }
 0x2a4   : > { %15710 = vmatprep.subr.bf16.mxu0 %v16845_v41 }
 0x2a5   : > { %15157 = vmatpush3.bf16.msra.mxu1 %v16842_v13  ;;  %v16851_v13 = vld [vmem:[%s20939_s3 + $0x108] sm:$0xff]  }
 0x2a6   : > { %15158 = vmatprep.subr.bf16.mxu1 %v16844_v21 }
 0x2a7   : > { %15711 = vmatpush3.bf16.msra.mxu0 %v16845_v41  ;;  %v16852_v41 = vld [vmem:[%s20939_s3 + $0x190] sm:$0xff]  }
 0x2a8   : > { %15712 = vmatprep.subr.bf16.mxu0 %v16847_v8 }
 0x2a9   : > { %15159 = vmatpush3.bf16.msra.mxu1 %v16844_v21  ;;  %v6692_v21 = vpack.c.bf16 %v18958_v26, %v18948_v17 }
 0x2aa   : > { %15160 = vmatprep.subr.bf16.mxu1 %v16846_v51 }
 0x2ab   : > { %15713 = vmatpush3.bf16.msra.mxu0 %v16847_v8  ;;  %v16850_v8 = vld [vmem:[%s20939_s3 + $0x188] sm:$0xff]  }
 0x2ac   : > { %15722 = vmatprep.subr.bf16.mxu0 %v16849_v45 }
 0x2ad   : > { %15161 = vmatpush3.bf16.msra.mxu1 %v16846_v51  ;;  %v16853_v51 = vld [vmem:[%s20939_s3 + $0x110] sm:$0xff]  }
 0x2ae   : > { %15170 = vmatprep.subr.bf16.mxu1 %v16848_v33  ;;  %15715 = vmatmul.mubr.bf16.vlgmr.msra.gmra.mrb[52].mxu0 %v6691_v34  ;;  %v2969_v34 = vld [vmem:[#allocation3 + $0x3a] sm:$0xff] }
 0x2af   : > { %15718 = vmatprep.mubr.bf16.mxu0 %v6692_v21  ;;  %15723 = vmatpush3.bf16.msra.mxu0 %v16849_v45  ;;  %v16855_v45 = vld [vmem:[%s20939_s3 + $0x118] sm:$0xff]   ;;  %v6188_v21 = vld [vmem:[#allocation2 + $0x2b9] ss:$2 sm:$0x3] }
 0x2b0   : > { %15163 = vmatmul.mubr.bf16.vlgmr.msra.gmra.mrb[48].mxu1 %v21028_v10  ;;  %15724 = vmatprep.subr.bf16.mxu0 %v16851_v13  ;;  %v17174_v10 = vld [vmem:[#allocation3 + $0x70] sm:$0xff] }
 0x2b1   : > { %15166 = vmatprep.mubr.bf16.mxu1 %v2972_v19  ;;  %15171 = vmatpush3.bf16.msra.mxu1 %v16848_v33  ;;  %v6836_v19 = vpack.c.bf16 %v17174_v10, %v6829_v50  ;;  %v2973_v33 = vpack.c.bf16 %v2969_v34, %v2969_v34  ;;  %v21029_v34 = vpack.c.bf16 %v18804_v53, %v18802_v48  ;;  %v6220_v50 = vld [vmem:[#allocation2 + $0x2e5] ss:$2 sm:$0xff]  ;;  %v16858_v48 = vld [vmem:[%s20939_s3 + $0x1a8] sm:$0xff]  }
 0x2b2   : > { %15172 = vmatprep.subr.bf16.mxu1 %v16850_v8  ;;  %v6198_v10 = vmax.f32 %v6184_v24, %v6188_v21  ;;  %v16861_v53 = vld [vmem:[%s20939_s3 + $0x130] sm:$0xff]   ;;  %v16865_v24 = vld [vmem:[%s20939_s3 + $0x140] sm:$0xff]   ;;  %v16867_v21 = vld [vmem:[%s20939_s3 + $0x148] sm:$0xff]  }
 0x2b3   : > { %15725 = vmatpush3.bf16.msra.mxu0 %v16851_v13  ;;  %v6196_v13 = vld [vmem:[#allocation2 + $0x2cd] ss:$2 sm:$0x3] }
 0x2b4   : > { %15726 = vmatprep.subr.bf16.mxu0 %v16853_v51 }
 0x2b5   : > { %15173 = vmatpush3.bf16.msra.mxu1 %v16850_v8  ;;  %v6216_v8 = vld [vmem:[#allocation2 + $0x2e4] ss:$2 sm:$0xff] }
 0x2b6   : > { %15174 = vmatprep.subr.bf16.mxu1 %v16852_v41  ;;  %15719 = vmatmul.mubr.bf16.gmra.mrb[56].mxu0 %v6693_v11  ;;  %v16856_v11 = vld [vmem:[%s20939_s3 + $0x1a0] sm:$0xff]  }
 0x2b7   : > { %15727 = vmatpush3.bf16.msra.mxu0 %v16853_v51  ;;  %15738 = vmatprep.mubr.bf16.mxu0 %v6836_v19  ;;  %v16859_v51 = vld [vmem:[%s20939_s3 + $0x128] sm:$0xff]   ;;  %v6223_v19 = vmax.f32 %v6208_v63, %v6212_v52  ;;  %v16863_v63 = vld [vmem:[%s20939_s3 + $0x138] sm:$0xff]  }
 0x2b8   : > { %15167 = vmatmul.mubr.bf16.gmra.mrb[52].mxu1 %v2973_v33  ;;  %15728 = vmatprep.subr.bf16.mxu0 %v16855_v45  ;;  %v6200_v33 = vmax.f32 %v6192_v32, %v6196_v13  ;;  %v16860_v32 = vld [vmem:[%s20939_s3 + $0x1b0] sm:$0xff]   ;;  %v17176_v13 = vld [vmem:[#allocation3 + $0x78] sm:$0xff] }
 0x2b9   : > { %15175 = vmatpush3.bf16.msra.mxu1 %v16852_v41  ;;  %15186 = vmatprep.mubr.bf16.mxu1 %v21029_v34  ;;  %v6225_v41 = vmax.f32 %v6216_v8, %v6220_v50  ;;  %v17177_v8 = vld [vmem:[#allocation3 + $0x80] sm:$0xff] }
 0x2ba   : > { %15176 = vmatprep.subr.bf16.mxu1 %v16854_v25  ;;  %v6202_v34 = vmax.f32 %v6198_v10, %v6200_v33  ;;  %v6837_v50 = vpack.c.bf16 %v17177_v8, %v17176_v13  ;;  %v21030_v33 = vpack.c.bf16 %v18864_v44, %v18862_v43  ;;  %v16871_v43 = vld [vmem:[%s20939_s3 + $0x158] sm:$0xff]   ;;  %v17180_v44 = vld [vmem:[#allocation3 + $0x98] sm:$0xff]  ;;  %v6214_v13 = vld [vmem:[#allocation2 + $0x2e1] ss:$2 sm:$0x3] }
 0x2bb   : > { %15729 = vmatpush3.bf16.msra.mxu0 %v16855_v45  ;;  %v6227_v20 = vmax.f32 %v6223_v19, %v6225_v41  ;;  %v16866_v19 = vld [vmem:[%s20939_s3 + $0x1c8] sm:$0xff]   ;;  %v16869_v41 = vld [vmem:[%s20939_s3 + $0x150] sm:$0xff]   ;;  %v16879_v8 = vld [vmem:[%s20939_s3 + $0x178] sm:$0xff]  }
 0x2bc   : > { %15730 = vmatprep.subr.bf16.mxu0 %v16857_v23 }
 0x2bd   : > { %15177 = vmatpush3.bf16.msra.mxu1 %v16854_v25  ;;  %v16862_v25 = vld [vmem:[%s20939_s3 + $0x1b8] sm:$0xff]  }
 0x2be   : > { %15178 = vmatprep.subr.bf16.mxu1 %v16856_v11 }
 0x2bf   : > { %15731 = vmatpush3.bf16.msra.mxu0 %v16857_v23  ;;  %v19402_v23 = vld [vmem:[%s20938_s2] ss:$0 sm:$0xff] }
 0x2c0   : > { %15732 = vmatprep.subr.bf16.mxu0 %v16859_v51  ;;  %v6204_v52 = vadd.f32 %v19402_v23, %v6202_v34  ;;  %v6229_v45 = vadd.f32 %v19402_v23, %v6227_v20  ;;  %v16864_v20 = vld [vmem:[%s20939_s3 + $0x1c0] sm:$0xff]   ;;  %v16868_v34 = vld [vmem:[%s20939_s3 + $0x1d0] sm:$0xff]  }
 0x2c1   : > { %15179 = vmatpush3.bf16.msra.mxu1 %v16856_v11  ;;  %v17178_v11 = vld [vmem:[#allocation3 + $0x88] sm:$0xff] }
 0x2c2   : > { %15180 = vmatprep.subr.bf16.mxu1 %v16858_v48  ;;  %6206 = vst [vmem:[#allocation3 + $0xb2] sm:$0x3] %v6204_v52  ;;  %6231 = vst [vmem:[#allocation3 + $0xb4] sm:$0xff] %v6229_v45  ;;  %v16873_v52 = vld [vmem:[%s20939_s3 + $0x160] sm:$0xff]   ;;  %v21032_v45 = vpack.c.bf16 %v18896_v57, %v18894_v56  ;;  %v16877_v56 = vld [vmem:[%s20939_s3 + $0x170] sm:$0xff]  }
 0x2c3   : > { %15733 = vmatpush3.bf16.msra.mxu0 %v16859_v51  ;;  %v17179_v51 = vld [vmem:[#allocation3 + $0x90] sm:$0xff]  ;;  %v16876_v57 = vld [vmem:[%s20939_s3 + $0x1f0] sm:$0xff]  }
 0x2c4   : > { %15734 = vmatprep.subr.bf16.mxu0 %v16861_v53  ;;  %v6838_v10 = vpack.c.bf16 %v17179_v51, %v17178_v11  ;;  %v6238_v11 = vld [vmem:[#allocation2 + $0x2f9] ss:$2 sm:$0xff]  ;;  %v6242_v51 = vld [vmem:[#allocation2 + $0x30c] ss:$2 sm:$0xff] }
 0x2c5   : > { %15181 = vmatpush3.bf16.msra.mxu1 %v16858_v48  ;;  %v21031_v48 = vpack.c.bf16 %v18888_v42, %v18883_v36  ;;  %v6982_v36 = vpack.c.bf16 %v19257_v46, %v19199_v62  ;;  %v16870_v42 = vld [vmem:[%s20939_s3 + $0x1d8] sm:$0xff]   ;;  %v16872_v62 = vld [vmem:[%s20939_s3 + $0x1e0] sm:$0xff]   ;;  %v16875_v46 = vld [vmem:[%s20939_s3 + $0x168] sm:$0xff]  }
 0x2c6   : > { %15182 = vmatprep.subr.bf16.mxu1 %v16860_v32 }
 0x2c7   : > { %15735 = vmatpush3.bf16.msra.mxu0 %v16861_v53  ;;  %v3116_v53 = vld [vmem:[#allocation3 + $0x3b] sm:$0xff] }
 0x2c8   : > { %15736 = vmatprep.subr.bf16.mxu0 %v16863_v63 }
 0x2c9   : > { %15183 = vmatpush3.bf16.msra.mxu1 %v16860_v32  ;;  %v6839_v32 = vpack.c.bf16 %v17180_v44, %v17180_v44  ;;  %v16880_v44 = vld [vmem:[%s20939_s3 + $0x200] sm:$0xff]  }
 0x2ca   : > { %15184 = vmatprep.subr.bf16.mxu1 %v16862_v25 }
 0x2cb   : > { %15737 = vmatpush3.bf16.msra.mxu0 %v16863_v63  ;;  %v3120_v63 = vpack.c.bf16 %v3116_v53, %v3116_v53 }
 0x2cc   : > { %15746 = vmatprep.subr.bf16.mxu0 %v16865_v24 }
 0x2cd   : > { %15185 = vmatpush3.bf16.msra.mxu1 %v16862_v25  ;;  %v16874_v25 = vld [vmem:[%s20939_s3 + $0x1e8] sm:$0xff]  }
 0x2ce   : > { %15194 = vmatprep.subr.bf16.mxu1 %v16864_v20  ;;  %15739 = vmatmul.mubr.bf16.vlgmr.msra.gmra.mrb[52].mxu0 %v6837_v50  ;;  %v6234_v50 = vld [vmem:[#allocation2 + $0x2f8] ss:$2 sm:$0xff] }
 0x2cf   : > { %15742 = vmatprep.mubr.bf16.mxu0 %v6838_v10  ;;  %15747 = vmatpush3.bf16.msra.mxu0 %v16865_v24  ;;  %v6218_v24 = vld [vmem:[#allocation2 + $0x2f4] ss:$2 sm:$0x3]  ;;  %v6246_v10 = vld [vmem:[#allocation2 + $0x30d] ss:$2 sm:$0xff] }
 0x2d0   : > { %15187 = vmatmul.mubr.bf16.vlgmr.msra.gmra.mrb[48].mxu1 %v21030_v33  ;;  %15748 = vmatprep.subr.bf16.mxu0 %v16867_v21  ;;  %v6251_v53 = vmax.f32 %v6242_v51, %v6246_v10  ;;  %v16892_v51 = vld [vmem:[%s20939_s3 + $0x230] sm:$0xff]   ;;  %v16895_v10 = vld [vmem:[%s20939_s3 + $0x1b8] sm:$0xff]  }
 0x2d1   : > { %15190 = vmatprep.mubr.bf16.mxu1 %v21031_v48  ;;  %15195 = vmatpush3.bf16.msra.mxu1 %v16864_v20  ;;  %v6222_v20 = vld [vmem:[#allocation2 + $0x2f5] ss:$2 sm:$0x3]  ;;  %v6249_v48 = vmax.f32 %v6234_v50, %v6238_v11  ;;  %v16893_v11 = vld [vmem:[%s20939_s3 + $0x1b0] sm:$0xff]  }
 0x2d2   : > { %15196 = vmatprep.subr.bf16.mxu1 %v16866_v19  ;;  %v6226_v33 = vmax.f32 %v6218_v24, %v6222_v20  ;;  %v16886_v24 = vld [vmem:[%s20939_s3 + $0x218] sm:$0xff]   ;;  %v17182_v20 = vld [vmem:[#allocation3 + $0x15] sm:$0xff] }
 0x2d3   : > { %15749 = vmatpush3.bf16.msra.mxu0 %v16867_v21  ;;  %v6210_v21 = vld [vmem:[#allocation2 + $0x2e0] ss:$2 sm:$0x3]  ;;  %v16888_v50 = vld [vmem:[%s20939_s3 + $0x220] sm:$0xff]  }
 0x2d4   : > { %15750 = vmatprep.subr.bf16.mxu0 %v16869_v41 }
 0x2d5   : > { %15197 = vmatpush3.bf16.msra.mxu1 %v16866_v19  ;;  %v16878_v19 = vld [vmem:[%s20939_s3 + $0x1f8] sm:$0xff]  }
 0x2d6   : > { %15198 = vmatprep.subr.bf16.mxu1 %v16868_v34  ;;  %15743 = vmatmul.mubr.bf16.gmra.mrb[56].mxu0 %v6839_v32 }
 0x2d7   : > { %15751 = vmatpush3.bf16.msra.mxu0 %v16869_v41  ;;  %15762 = vmatprep.mubr.bf16.mxu0 %v6982_v36  ;;  %v6224_v41 = vmax.f32 %v6210_v21, %v6214_v13  ;;  %v6253_v36 = vmax.f32 %v6249_v48, %v6251_v53  ;;  %v21036_v13 = vpack.c.bf16 %v18942_v1, %v18940_v14  ;;  %v16891_v14 = vld [vmem:[%s20939_s3 + $0x1a8] sm:$0xff]  }
 0x2d8   : > { %15191 = vmatmul.mubr.bf16.gmra.mrb[52].mxu1 %v3120_v63  ;;  %15752 = vmatprep.subr.bf16.mxu0 %v16871_v43  ;;  %v16890_v1 = vld [vmem:[%s20939_s3 + $0x228] sm:$0xff]  }
 0x2d9   : > { %15199 = vmatpush3.bf16.msra.mxu1 %v16868_v34  ;;  %15210 = vmatprep.mubr.bf16.mxu1 %v21032_v45  ;;  %v16881_v34 = vld [vmem:[%s20939_s3 + $0x180] sm:$0xff]   ;;  %v6228_v32 = vmax.f32 %v6224_v41, %v6226_v33  ;;  %v16882_v45 = vld [vmem:[%s20939_s3 + $0x208] sm:$0xff]  }
 0x2da   : > { %15200 = vmatprep.subr.bf16.mxu1 %v16870_v42  ;;  %v16897_v33 = vld [vmem:[%s20939_s3 + $0x1c0] sm:$0xff]   ;;  %v16899_v48 = vld [vmem:[%s20939_s3 + $0x1c8] sm:$0xff]  }
 0x2db   : > { %15753 = vmatpush3.bf16.msra.mxu0 %v16871_v43  ;;  %v6980_v43 = vld [vmem:[#allocation3 + $0x96] sm:$0xff] }
 0x2dc   : > { %15754 = vmatprep.subr.bf16.mxu0 %v16873_v52  ;;  %v6984_v63 = vpack.c.bf16 %v6980_v43, %v19259_v27  ;;  %v6981_v27 = vld [vmem:[#allocation3 + $0x9e] sm:$0xff]  ;;  %v16896_v41 = vld [vmem:[%s20939_s3 + $0x240] sm:$0xff]  }
 0x2dd   : > { %15201 = vmatpush3.bf16.msra.mxu1 %v16870_v42  ;;  %v16883_v42 = vld [vmem:[%s20939_s3 + $0x188] sm:$0xff]  }
 0x2de   : > { %15202 = vmatprep.subr.bf16.mxu1 %v16872_v62  ;;  %v17183_v53 = vld [vmem:[#allocation3 + $0x1d] sm:$0xff] }
 0x2df   : > { %15755 = vmatpush3.bf16.msra.mxu0 %v16873_v52  ;;  %v21033_v52 = vpack.c.bf16 %v18916_v12, %v18914_v7  ;;  %v16885_v7 = vld [vmem:[%s20939_s3 + $0x190] sm:$0xff]   ;;  %v21035_v12 = vpack.c.bf16 %v18920_v18, %v18909_v4 }
 0x2e0   : > { %15756 = vmatprep.subr.bf16.mxu0 %v16875_v46  ;;  %v17181_v4 = vld [vmem:[#allocation3 + $0x3c] sm:$0xff] }
 0x2e1   : > { %15203 = vmatpush3.bf16.msra.mxu1 %v16872_v62  ;;  %v6230_v62 = vadd.f32 %v19402_v23, %v6228_v32  ;;  %v3267_v18 = vpack.c.bf16 %v17181_v4, %v17181_v4  ;;  %v16898_v32 = vld [vmem:[%s20939_s3 + $0x248] sm:$0xff]   ;;  %v19578_v4 = vld [vmem:[#allocation3 + $0xad] sm:$0xff] }
 0x2e2   : > { %15204 = vmatprep.subr.bf16.mxu1 %v16874_v25 }
 0x2e3   : > { %15757 = vmatpush3.bf16.msra.mxu0 %v16875_v46  ;;  %v6255_v46 = vadd.f32 %v19402_v23, %v6253_v36  ;;  %6232 = vst [vmem:[#allocation3 + $0xbc] sm:$0x3] %v6230_v62  ;;  %v17185_v36 = vld [vmem:[#allocation3 + $0x2d] sm:$0xff] }
 0x2e4   : > { %15758 = vmatprep.subr.bf16.mxu0 %v16877_v56 }
 0x2e5   : > { %15205 = vmatpush3.bf16.msra.mxu1 %v16874_v25  ;;  %v21034_v25 = vpack.c.bf16 %v18907_v3, %v18905_v2  ;;  %6257 = vst [vmem:[#allocation3 + $0xbe] sm:$0xff] %v6255_v46  ;;  %v6985_v2 = vpack.c.bf16 %v6981_v27, %v6981_v27  ;;  %v3404_v3 = vld [vmem:[#allocation3 + $0xd] sm:$0xff]  ;;  %v17187_v46 = vld [vmem:[#allocation3 + $0x3d] sm:$0xff] }
 0x2e6   : > { %15206 = vmatprep.subr.bf16.mxu1 %v16876_v57  ;;  %v3411_v21 = vpack.c.bf16 %v17182_v20, %v3404_v3  ;;  %v16904_v3 = vld [vmem:[%s20939_s3 + $0x260] sm:$0xff]   ;;  %v16908_v20 = vld [vmem:[%s20939_s3 + $0x270] sm:$0xff]  }
 0x2e7   : > { %15759 = vmatpush3.bf16.msra.mxu0 %v16877_v56  ;;  %v16884_v56 = vld [vmem:[%s20939_s3 + $0x210] sm:$0xff]  }
 0x2e8   : > { %15760 = vmatprep.subr.bf16.mxu0 %v16879_v8 }
 0x2e9   : > { %15207 = vmatpush3.bf16.msra.mxu1 %v16876_v57  ;;  %v16887_v57 = vld [vmem:[%s20939_s3 + $0x198] sm:$0xff]  }
 0x2ea   : > { %15208 = vmatprep.subr.bf16.mxu1 %v16878_v19 }
 0x2eb   : > { %15761 = vmatpush3.bf16.msra.mxu0 %v16879_v8  ;;  %v16889_v8 = vld [vmem:[%s20939_s3 + $0x1a0] sm:$0xff]  }
 0x2ec   : > { %15770 = vmatprep.subr.bf16.mxu0 %v16881_v34 }
 0x2ed   : > { %15209 = vmatpush3.bf16.msra.mxu1 %v16878_v19  ;;  %v16894_v19 = vld [vmem:[%s20939_s3 + $0x238] sm:$0xff]  }
 0x2ee   : > { %15218 = vmatprep.subr.bf16.mxu1 %v16880_v44  ;;  %15763 = vmatmul.mubr.bf16.vlgmr.msra.gmra.mrb[52].mxu0 %v21033_v52  ;;  %v21038_v52 = vpack.c.bf16 %v18960_v28, %v18958_v26  ;;  %v3551_v26 = vld [vmem:[#allocation3 + $0xe] sm:$0xff] }
 0x2ef   : > { %15766 = vmatprep.mubr.bf16.mxu0 %v6984_v63  ;;  %15771 = vmatpush3.bf16.msra.mxu0 %v16881_v34  ;;  %v17184_v34 = vld [vmem:[#allocation3 + $0x25] sm:$0xff] }
 0x2f0   : > { %15211 = vmatmul.mubr.bf16.vlgmr.msra.gmra.mrb[48].mxu1 %v21034_v25  ;;  %15772 = vmatprep.subr.bf16.mxu0 %v16883_v42  ;;  %v3412_v43 = vpack.c.bf16 %v17184_v34, %v17183_v53  ;;  %v16903_v28 = vld [vmem:[%s20939_s3 + $0x1d8] sm:$0xff]   ;;  %v3414_v25 = vpack.c.bf16 %v17187_v46, %v17187_v46  ;;  %v21041_v53 = vpack.c.bf16 %v18981_v40, %v18979_v39  ;;  %v19612_v34 = vld [vmem:[#allocation3 + $0xb6] sm:$0xff] }
 0x2f1   : > { %15214 = vmatprep.mubr.bf16.mxu1 %v21035_v12  ;;  %15219 = vmatpush3.bf16.msra.mxu1 %v16880_v44  ;;  %v21037_v44 = vpack.c.bf16 %v18948_v17, %v18946_v15  ;;  %v7127_v15 = vld [vmem:[#allocation3 + $0x9f] sm:$0xff]  ;;  %v17188_v12 = vld [vmem:[#allocation3 + $0x16] sm:$0xff] }
 0x2f2   : > { %15220 = vmatprep.subr.bf16.mxu1 %v16882_v45  ;;  %v16900_v17 = vld [vmem:[%s20939_s3 + $0x250] sm:$0xff]   ;;  %v7131_v62 = vpack.c.bf16 %v7127_v15, %v7127_v15  ;;  %v3558_v27 = vpack.c.bf16 %v17188_v12, %v3551_v26  ;;  %v7413_v39 = vld [vmem:[#allocation3 + $0x71] sm:$0xff]  ;;  %v6240_v12 = vld [vmem:[#allocation2 + $0x309] ss:$2 sm:$0x3] }
 0x2f3   : > { %15773 = vmatpush3.bf16.msra.mxu0 %v16883_v42  ;;  %v17186_v42 = vld [vmem:[#allocation3 + $0x35] sm:$0xff] }
 0x2f4   : > { %15774 = vmatprep.subr.bf16.mxu0 %v16885_v7  ;;  %v3413_v63 = vpack.c.bf16 %v17186_v42, %v17185_v36  ;;  %v3699_v36 = vld [vmem:[#allocation3 + $0x1c] sm:$0xff]  ;;  %v16919_v42 = vld [vmem:[%s20939_s3 + $0x218] sm:$0xff]   ;;  %v16921_v46 = vld [vmem:[%s20939_s3 + $0x220] sm:$0xff]  }
 0x2f5   : > { %15221 = vmatpush3.bf16.msra.mxu1 %v16882_v45  ;;  %v16901_v45 = vld [vmem:[%s20939_s3 + $0x1d0] sm:$0xff]  }
 0x2f6   : > { %15222 = vmatprep.subr.bf16.mxu1 %v16884_v56  ;;  %15767 = vmatmul.mubr.bf16.gmra.mrb[56].mxu0 %v6985_v2  ;;  %v16905_v2 = vld [vmem:[%s20939_s3 + $0x1e0] sm:$0xff]  }
 0x2f7   : > { %15775 = vmatpush3.bf16.msra.mxu0 %v16885_v7  ;;  %15786 = vmatprep.mubr.bf16.mxu0 %v21036_v13  ;;  %v16902_v7 = vld [vmem:[%s20939_s3 + $0x258] sm:$0xff]  }
 0x2f8   : > { %15215 = vmatmul.mubr.bf16.gmra.mrb[52].mxu1 %v3267_v18  ;;  %15776 = vmatprep.subr.bf16.mxu0 %v16887_v57  ;;  %v16909_v18 = vld [vmem:[%s20939_s3 + $0x1f0] sm:$0xff]   ;;  %v16910_v13 = vld [vmem:[%s20939_s3 + $0x278] sm:$0xff]  }
 0x2f9   : > { %15223 = vmatpush3.bf16.msra.mxu1 %v16884_v56  ;;  %15234 = vmatprep.mubr.bf16.mxu1 %v3411_v21  ;;  %v21039_v56 = vpack.c.bf16 %v18971_v35, %v18962_v29  ;;  %v16907_v29 = vld [vmem:[%s20939_s3 + $0x1e8] sm:$0xff]   ;;  %v16911_v21 = vld [vmem:[%s20939_s3 + $0x1f8] sm:$0xff]  }
 0x2fa   : > { %15224 = vmatprep.subr.bf16.mxu1 %v16886_v24  ;;  %v19573_v35 = vld [vmem:[#allocation3 + $0xb5] sm:$0xff] }
 0x2fb   : > { %15777 = vmatpush3.bf16.msra.mxu0 %v16887_v57  ;;  %v16906_v57 = vld [vmem:[%s20939_s3 + $0x268] sm:$0xff]  }
 0x2fc   : > { %15778 = vmatprep.subr.bf16.mxu0 %v16889_v8 }
 0x2fd   : > { %15225 = vmatpush3.bf16.msra.mxu1 %v16886_v24  ;;  %v9320_v24 = vpack.c.bf16 %v19573_v35, %v19578_v4  ;;  %v5756_v35 = vld [vmem:[#allocation3 + $0x2c] sm:$0xff]  ;;  %v5757_v4 = vld [vmem:[#allocation3 + $0x34] sm:$0xff] }
 0x2fe   : > { %15226 = vmatprep.subr.bf16.mxu1 %v16888_v50 }
 0x2ff   : > { %15779 = vmatpush3.bf16.msra.mxu0 %v16889_v8  ;;  %v16913_v8 = vld [vmem:[%s20939_s3 + $0x200] sm:$0xff]  }
 0x300   : > { %15780 = vmatprep.subr.bf16.mxu0 %v16891_v14 }
 0x301   : > { %15227 = vmatpush3.bf16.msra.mxu1 %v16888_v50  ;;  %v16912_v50 = vld [vmem:[%s20939_s3 + $0x280] sm:$0xff]  }
 0x302   : > { %15228 = vmatprep.subr.bf16.mxu1 %v16890_v1 }
 0x303   : > { %15781 = vmatpush3.bf16.msra.mxu0 %v16891_v14  ;;  %v16915_v14 = vld [vmem:[%s20939_s3 + $0x208] sm:$0xff]  }
 0x304   : > { %15782 = vmatprep.subr.bf16.mxu0 %v16893_v11 }
 0x305   : > { %15229 = vmatpush3.bf16.msra.mxu1 %v16890_v1  ;;  %v17189_v1 = vld [vmem:[#allocation3 + $0x1e] sm:$0xff] }
 0x306   : > { %15230 = vmatprep.subr.bf16.mxu1 %v16892_v51 }
 0x307   : > { %15783 = vmatpush3.bf16.msra.mxu0 %v16893_v11  ;;  %v17190_v11 = vld [vmem:[#allocation3 + $0x26] sm:$0xff] }
 0x308   : > { %15784 = vmatprep.subr.bf16.mxu0 %v16895_v10 }
 0x309   : > { %15231 = vmatpush3.bf16.msra.mxu1 %v16892_v51  ;;  %v3559_v51 = vpack.c.bf16 %v17190_v11, %v17189_v1  ;;  %v19661_v1 = vld [vmem:[#allocation3 + $0x99] sm:$0xff]  ;;  %v17196_v11 = vld [vmem:[#allocation3 + $0x81] sm:$0xff] }
 0x30a   : > { %15232 = vmatprep.subr.bf16.mxu1 %v16894_v19 }
 0x30b   : > { %15785 = vmatpush3.bf16.msra.mxu0 %v16895_v10  ;;  %v21040_v10 = vpack.c.bf16 %v18975_v38, %v18973_v37  ;;  %v16917_v37 = vld [vmem:[%s20939_s3 + $0x210] sm:$0xff]   ;;  %v19617_v38 = vld [vmem:[#allocation3 + $0xae] sm:$0xff] }
 0x30c   : > { %15794 = vmatprep.subr.bf16.mxu0 %v16897_v33  ;;  %v9466_v40 = vpack.c.bf16 %v19612_v34, %v19617_v38  ;;  %v17155_v34 = vld [vmem:[%s20939_s3 + $0x5d8] sm:$0xff]  }
 0x30d   : > { %15233 = vmatpush3.bf16.msra.mxu1 %v16894_v19  ;;  %v16914_v19 = vld [vmem:[%s20939_s3 + $0x288] sm:$0xff]  }
 0x30e   : > { %15242 = vmatprep.subr.bf16.mxu1 %v16896_v41  ;;  %15787 = vmatmul.mubr.bf16.vlgmr.msra.gmra.mrb[52].mxu0 %v21037_v44  ;;  %v17193_v44 = vld [vmem:[#allocation3 + $0xa0] sm:$0xff] }
 0x30f   : > { %15790 = vmatprep.mubr.bf16.mxu0 %v21038_v52  ;;  %15795 = vmatpush3.bf16.msra.mxu0 %v16897_v33  ;;  %v17191_v33 = vld [vmem:[#allocation3 + $0x2e] sm:$0xff] }
 0x310   : > { %15235 = vmatmul.mubr.bf16.vlgmr.msra.gmra.mrb[48].mxu1 %v3412_v43  ;;  %15796 = vmatprep.subr.bf16.mxu0 %v16899_v48  ;;  %v16916_v43 = vld [vmem:[%s20939_s3 + $0x290] sm:$0xff]  }
 0x311   : > { %15238 = vmatprep.mubr.bf16.mxu1 %v3413_v63  ;;  %15243 = vmatpush3.bf16.msra.mxu1 %v16896_v41  ;;  %v17192_v41 = vld [vmem:[#allocation3 + $0x36] sm:$0xff] }
 0x312   : > { %15244 = vmatprep.subr.bf16.mxu1 %v16898_v32  ;;  %v17194_v63 = vld [vmem:[#allocation3 + $0x79] sm:$0xff] }
 0x313   : > { %15797 = vmatpush3.bf16.msra.mxu0 %v16899_v48  ;;  %v3560_v48 = vpack.c.bf16 %v17192_v41, %v17191_v33  ;;  %v7420_v52 = vpack.c.bf16 %v17194_v63, %v7413_v39  ;;  %v16931_v33 = vld [vmem:[%s20939_s3 + $0x248] sm:$0xff]   ;;  %v3700_v41 = vld [vmem:[#allocation3 + $0x24] sm:$0xff] }
 0x314   : > { %15798 = vmatprep.subr.bf16.mxu0 %v16901_v45  ;;  %v16930_v39 = vld [vmem:[%s20939_s3 + $0x2c8] sm:$0xff]   ;;  %v3704_v63 = vld [vmem:[#allocation3 + $0x44] sm:$0xff] }
 0x315   : > { %15245 = vmatpush3.bf16.msra.mxu1 %v16898_v32  ;;  %v7277_v32 = vpack.c.bf16 %v17193_v44, %v17193_v44 }
 0x316   : > { %15246 = vmatprep.subr.bf16.mxu1 %v16900_v17  ;;  %15791 = vmatmul.mubr.bf16.gmra.mrb[56].mxu0 %v7131_v62  ;;  %v16918_v62 = vld [vmem:[%s20939_s3 + $0x298] sm:$0xff]  }
 0x317   : > { %15799 = vmatpush3.bf16.msra.mxu0 %v16901_v45  ;;  %15810 = vmatprep.mubr.bf16.mxu0 %v21039_v56  ;;  %v17195_v45 = vld [vmem:[#allocation3 + $0x3e] sm:$0xff] }
 0x318   : > { %15239 = vmatmul.mubr.bf16.gmra.mrb[52].mxu1 %v3414_v25  ;;  %15800 = vmatprep.subr.bf16.mxu0 %v16903_v28  ;;  %v3561_v15 = vpack.c.bf16 %v17195_v45, %v17195_v45  ;;  %v6248_v25 = vld [vmem:[#allocation2 + $0x31d] ss:$2 sm:$0x3] }
 0x319   : > { %15247 = vmatpush3.bf16.msra.mxu1 %v16900_v17  ;;  %15258 = vmatprep.mubr.bf16.mxu1 %v3558_v27  ;;  %v3698_v17 = vld [vmem:[#allocation3 + $0x14] sm:$0xff] }
 0x31a   : > { %15248 = vmatprep.subr.bf16.mxu1 %v16902_v7  ;;  %v3705_v26 = vpack.c.bf16 %v3699_v36, %v3698_v17  ;;  %v16920_v27 = vld [vmem:[%s20939_s3 + $0x2a0] sm:$0xff]   ;;  %v16923_v56 = vld [vmem:[%s20939_s3 + $0x228] sm:$0xff]   ;;  %v16932_v36 = vld [vmem:[%s20939_s3 + $0x2d0] sm:$0xff]  }
 0x31b   : > { %15801 = vmatpush3.bf16.msra.mxu0 %v16903_v28  ;;  %v6244_v28 = vld [vmem:[#allocation2 + $0x31c] ss:$2 sm:$0x3] }
 0x31c   : > { %15802 = vmatprep.subr.bf16.mxu0 %v16905_v2  ;;  %v17199_v17 = vld [vmem:[#allocation3 + $0x7a] sm:$0xff] }
 0x31d   : > { %15249 = vmatpush3.bf16.msra.mxu1 %v16902_v7  ;;  %v6236_v7 = vld [vmem:[#allocation2 + $0x308] ss:$2 sm:$0x3] }
 0x31e   : > { %15250 = vmatprep.subr.bf16.mxu1 %v16904_v3 }
 0x31f   : > { %15803 = vmatpush3.bf16.msra.mxu0 %v16905_v2  ;;  %v6252_v2 = vmax.f32 %v6244_v28, %v6248_v25  ;;  %v16934_v28 = vld [vmem:[%s20939_s3 + $0x2d8] sm:$0xff]   ;;  %v21042_v25 = vpack.c.bf16 %v18992_v55, %v18990_v54  ;;  %v16941_v54 = vld [vmem:[%s20939_s3 + $0x270] sm:$0xff]  }
 0x320   : > { %15804 = vmatprep.subr.bf16.mxu0 %v16907_v29  ;;  %v16940_v55 = vld [vmem:[%s20939_s3 + $0x2f0] sm:$0xff]  }
 0x321   : > { %15251 = vmatpush3.bf16.msra.mxu1 %v16904_v3  ;;  %v6250_v3 = vmax.f32 %v6236_v7, %v6240_v12  ;;  %v16936_v7 = vld [vmem:[%s20939_s3 + $0x2e0] sm:$0xff]   ;;  %v16939_v12 = vld [vmem:[%s20939_s3 + $0x268] sm:$0xff]  }
 0x322   : > { %15252 = vmatprep.subr.bf16.mxu1 %v16906_v57 }
 0x323   : > { %15805 = vmatpush3.bf16.msra.mxu0 %v16907_v29  ;;  %v16922_v29 = vld [vmem:[%s20939_s3 + $0x2a8] sm:$0xff]  }
 0x324   : > { %15806 = vmatprep.subr.bf16.mxu0 %v16909_v18 }
 0x325   : > { %15253 = vmatpush3.bf16.msra.mxu1 %v16906_v57  ;;  %v16925_v57 = vld [vmem:[%s20939_s3 + $0x230] sm:$0xff]  }
 0x326   : > { %15254 = vmatprep.subr.bf16.mxu1 %v16908_v20 }
 0x327   : > { %15807 = vmatpush3.bf16.msra.mxu0 %v16909_v18  ;;  %v6254_v18 = vmax.f32 %v6250_v3, %v6252_v2  ;;  %v16942_v2 = vld [vmem:[%s20939_s3 + $0x2f8] sm:$0xff]   ;;  %v16945_v3 = vld [vmem:[%s20939_s3 + $0x280] sm:$0xff]  }
 0x328   : > { %15808 = vmatprep.subr.bf16.mxu0 %v16911_v21 }
 0x329   : > { %15255 = vmatpush3.bf16.msra.mxu1 %v16908_v20  ;;  %v16924_v20 = vld [vmem:[%s20939_s3 + $0x2b0] sm:$0xff]  }
 0x32a   : > { %15256 = vmatprep.subr.bf16.mxu1 %v16910_v13 }
 0x32b   : > { %15809 = vmatpush3.bf16.msra.mxu0 %v16911_v21  ;;  %v16927_v21 = vld [vmem:[%s20939_s3 + $0x238] sm:$0xff]  }
 0x32c   : > { %15818 = vmatprep.subr.bf16.mxu0 %v16913_v8 }
 0x32d   : > { %15257 = vmatpush3.bf16.msra.mxu1 %v16910_v13  ;;  %v6256_v13 = vadd.f32 %v19402_v23, %v6254_v18  ;;  %v3701_v23 = vld [vmem:[#allocation3 + $0x2c] sm:$0xff]  ;;  %v17200_v18 = vld [vmem:[#allocation3 + $0x82] sm:$0xff] }
 0x32e   : > { %15266 = vmatprep.subr.bf16.mxu1 %v16912_v50  ;;  %15811 = vmatmul.mubr.bf16.vlgmr.msra.gmra.mrb[52].mxu0 %v21040_v10 }
 0x32f   : > { %15814 = vmatprep.mubr.bf16.mxu0 %v21041_v53  ;;  %15819 = vmatpush3.bf16.msra.mxu0 %v16913_v8  ;;  %v16926_v8 = vld [vmem:[%s20939_s3 + $0x2b8] sm:$0xff]   ;;  %6258 = vst [vmem:[#allocation3 + $0xc6] sm:$0x3] %v6256_v13  ;;  %v16947_v13 = vld [vmem:[%s20939_s3 + $0x288] sm:$0xff]  }
 0x330   : > { %15259 = vmatmul.mubr.bf16.vlgmr.msra.gmra.mrb[48].mxu1 %v3559_v51  ;;  %15820 = vmatprep.subr.bf16.mxu0 %v16915_v14  ;;  %v17197_v51 = vld [vmem:[#allocation3 + $0x89] sm:$0xff] }
 0x331   : > { %15262 = vmatprep.mubr.bf16.mxu1 %v3560_v48  ;;  %15267 = vmatpush3.bf16.msra.mxu1 %v16912_v50  ;;  %v16929_v50 = vld [vmem:[%s20939_s3 + $0x240] sm:$0xff]   ;;  %v7421_v10 = vpack.c.bf16 %v17197_v51, %v17196_v11  ;;  %v16949_v11 = vld [vmem:[%s20939_s3 + $0x290] sm:$0xff]   ;;  %v21044_v51 = vpack.c.bf16 %v19004_v22, %v18998_v61  ;;  %v16951_v61 = vld [vmem:[%s20939_s3 + $0x298] sm:$0xff]  }
 0x332   : > { %15268 = vmatprep.subr.bf16.mxu1 %v16914_v19  ;;  %v17198_v48 = vld [vmem:[#allocation3 + $0x91] sm:$0xff] }
 0x333   : > { %15821 = vmatpush3.bf16.msra.mxu0 %v16915_v14  ;;  %v16928_v14 = vld [vmem:[%s20939_s3 + $0x2c0] sm:$0xff]   ;;  %v7422_v53 = vpack.c.bf16 %v19661_v1, %v17198_v48 }
 0x334   : > { %15822 = vmatprep.subr.bf16.mxu0 %v16917_v37 }
 0x335   : > { %15269 = vmatpush3.bf16.msra.mxu1 %v16914_v19  ;;  %v3703_v19 = vld [vmem:[#allocation3 + $0x3c] sm:$0xff] }
 0x336   : > { %15270 = vmatprep.subr.bf16.mxu1 %v16916_v43  ;;  %15815 = vmatmul.mubr.bf16.gmra.mrb[56].mxu0 %v7277_v32  ;;  %v16933_v32 = vld [vmem:[%s20939_s3 + $0x250] sm:$0xff]  }
 0x337   : > { %15823 = vmatpush3.bf16.msra.mxu0 %v16917_v37  ;;  %15834 = vmatprep.mubr.bf16.mxu0 %v7420_v52  ;;  %v3706_v37 = vpack.c.bf16 %v3701_v23, %v3700_v41  ;;  %v19676_v52 = vld [vmem:[#allocation3 + $0xa1] sm:$0xff]  ;;  %v21043_v23 = vpack.c.bf16 %v18996_v59, %v18994_v58 }
 0x338   : > { %15263 = vmatmul.mubr.bf16.gmra.mrb[52].mxu1 %v3561_v15  ;;  %15824 = vmatprep.subr.bf16.mxu0 %v16919_v42  ;;  %v7423_v45 = vpack.c.bf16 %v19676_v52, %v19676_v52  ;;  %v16935_v15 = vld [vmem:[%s20939_s3 + $0x258] sm:$0xff]  }
 0x339   : > { %15271 = vmatpush3.bf16.msra.mxu1 %v16916_v43  ;;  %15282 = vmatprep.mubr.bf16.mxu1 %v3705_v26  ;;  %v3702_v43 = vld [vmem:[#allocation3 + $0x34] sm:$0xff]  ;;  %v3708_v26 = vpack.c.bf16 %v3704_v63, %v3704_v63  ;;  %v3851_v58 = vld [vmem:[#allocation3 + $0x45] sm:$0xff] }
 0x33a   : > { %15272 = vmatprep.subr.bf16.mxu1 %v16918_v62  ;;  %v3707_v44 = vpack.c.bf16 %v3703_v19, %v3702_v43  ;;  %v7705_v19 = vld [vmem:[#allocation3 + $0x78] sm:$0xff]  ;;  %v19740_v59 = vld [vmem:[#allocation3 + $0xa2] sm:$0xff]  ;;  %v3855_v48 = vpack.c.bf16 %v3851_v58, %v3851_v58  ;;  %v21045_v43 = vpack.c.bf16 %v19018_v6, %v19016_v0  ;;  %v16961_v63 = vld [vmem:[%s20939_s3 + $0x2c0] sm:$0xff]  }
 0x33b   : > { %15825 = vmatpush3.bf16.msra.mxu0 %v16919_v42  ;;  %v7559_v42 = vld [vmem:[#allocation3 + $0x72] sm:$0xff]  ;;  %v7569_v41 = vpack.c.bf16 %v19740_v59, %v19740_v59  ;;  %v16957_v0 = vld [vmem:[%s20939_s3 + $0x2b0] sm:$0xff]   ;;  %v16974_v58 = vld [vmem:[%s20939_s3 + $0x378] sm:$0xff]  }
 0x33c   : > { %15826 = vmatprep.subr.bf16.mxu0 %v16921_v46  ;;  %v16956_v6 = vld [vmem:[%s20939_s3 + $0x330] sm:$0xff]  }
 0x33d   : > { %15273 = vmatpush3.bf16.msra.mxu1 %v16918_v62  ;;  %v7566_v62 = vpack.c.bf16 %v17199_v17, %v7559_v42  ;;  %v16958_v42 = vld [vmem:[%s20939_s3 + $0x338] sm:$0xff]   ;;  %v16960_v17 = vld [vmem:[%s20939_s3 + $0x340] sm:$0xff]  }
 0x33e   : > { %15274 = vmatprep.subr.bf16.mxu1 %v16920_v27 }
 0x33f   : > { %15827 = vmatpush3.bf16.msra.mxu0 %v16921_v46  ;;  %v16937_v46 = vld [vmem:[%s20939_s3 + $0x260] sm:$0xff]  }
 0x340   : > { %15828 = vmatprep.subr.bf16.mxu0 %v16923_v56 }
 0x341   : > { %15275 = vmatpush3.bf16.msra.mxu1 %v16920_v27  ;;  %v16938_v27 = vld [vmem:[%s20939_s3 + $0x2e8] sm:$0xff]  }
 0x342   : > { %15276 = vmatprep.subr.bf16.mxu1 %v16922_v29 }
 0x343   : > { %15829 = vmatpush3.bf16.msra.mxu0 %v16923_v56  ;;  %v16943_v56 = vld [vmem:[%s20939_s3 + $0x278] sm:$0xff]  }
 0x344   : > { %15830 = vmatprep.subr.bf16.mxu0 %v16925_v57 }
 0x345   : > { %15277 = vmatpush3.bf16.msra.mxu1 %v16922_v29  ;;  %v16944_v29 = vld [vmem:[%s20939_s3 + $0x300] sm:$0xff]  }
 0x346   : > { %15278 = vmatprep.subr.bf16.mxu1 %v16924_v20 }
 0x347   : > { %15831 = vmatpush3.bf16.msra.mxu0 %v16925_v57  ;;  %v19719_v57 = vld [vmem:[#allocation3 + $0x9a] sm:$0xff] }
 0x348   : > { %15832 = vmatprep.subr.bf16.mxu0 %v16927_v21 }
 0x349   : > { %15279 = vmatpush3.bf16.msra.mxu1 %v16924_v20  ;;  %v17201_v20 = vld [vmem:[#allocation3 + $0x8a] sm:$0xff] }
 0x34a   : > { %15280 = vmatprep.subr.bf16.mxu1 %v16926_v8 }
 0x34b   : > { %15833 = vmatpush3.bf16.msra.mxu0 %v16927_v21  ;;  %v7567_v21 = vpack.c.bf16 %v17201_v20, %v17200_v18  ;;  %v17204_v20 = vld [vmem:[#allocation3 + $0x1f] sm:$0xff] }
 0x34c   : > { %15842 = vmatprep.subr.bf16.mxu0 %v16929_v50 }
 0x34d   : > { %15281 = vmatpush3.bf16.msra.mxu1 %v16926_v8  ;;  %v17202_v8 = vld [vmem:[#allocation3 + $0x92] sm:$0xff] }
 0x34e   : > { %15290 = vmatprep.subr.bf16.mxu1 %v16928_v14  ;;  %15835 = vmatmul.mubr.bf16.vlgmr.msra.gmra.mrb[52].mxu0 %v7421_v10  ;;  %v16948_v10 = vld [vmem:[%s20939_s3 + $0x310] sm:$0xff]  }
 0x34f   : > { %15838 = vmatprep.mubr.bf16.mxu0 %v7422_v53  ;;  %15843 = vmatpush3.bf16.msra.mxu0 %v16929_v50  ;;  %v7568_v50 = vpack.c.bf16 %v19719_v57, %v17202_v8  ;;  %v16950_v53 = vld [vmem:[%s20939_s3 + $0x318] sm:$0xff]   ;;  %v21050_v8 = vld [vmem:[#allocation14_spill] sm:$0xff] }
 0x350   : > { %15283 = vmatmul.mubr.bf16.vlgmr.msra.gmra.mrb[48].mxu1 %v3706_v37  ;;  %15844 = vmatprep.subr.bf16.mxu0 %v16931_v33  ;;  %v16953_v37 = vld [vmem:[%s20939_s3 + $0x2a0] sm:$0xff]  }
 0x351   : > { %15286 = vmatprep.mubr.bf16.mxu1 %v3707_v44  ;;  %15291 = vmatpush3.bf16.msra.mxu1 %v16928_v14  ;;  %v16946_v14 = vld [vmem:[%s20939_s3 + $0x308] sm:$0xff]  }
 0x352   : > { %15292 = vmatprep.subr.bf16.mxu1 %v16930_v39  ;;  %v16955_v44 = vld [vmem:[%s20939_s3 + $0x2a8] sm:$0xff]  }
 0x353   : > { %15845 = vmatpush3.bf16.msra.mxu0 %v16931_v33  ;;  %v7706_v33 = vld [vmem:[#allocation3 + $0x80] sm:$0xff] }
 0x354   : > { %15846 = vmatprep.subr.bf16.mxu0 %v16933_v32  ;;  %v7712_v22 = vpack.c.bf16 %v7706_v33, %v7705_v19  ;;  %v16972_v19 = vld [vmem:[%s20939_s3 + $0x370] sm:$0xff]   ;;  %v16975_v33 = vld [vmem:[%s20939_s3 + $0x2f8] sm:$0xff]  }
 0x355   : > { %15293 = vmatpush3.bf16.msra.mxu1 %v16930_v39  ;;  %v16952_v39 = vld [vmem:[%s20939_s3 + $0x320] sm:$0xff]  }
 0x356   : > { %15294 = vmatprep.subr.bf16.mxu1 %v16932_v36  ;;  %15839 = vmatmul.mubr.bf16.gmra.mrb[56].mxu0 %v7423_v45  ;;  %v7707_v45 = vld [vmem:[#allocation3 + $0x88] sm:$0xff] }
 0x357   : > { %15847 = vmatpush3.bf16.msra.mxu0 %v16933_v32  ;;  %15858 = vmatprep.mubr.bf16.mxu0 %v7566_v62  ;;  %v16954_v32 = vld [vmem:[%s20939_s3 + $0x328] sm:$0xff]  }
 0x358   : > { %15287 = vmatmul.mubr.bf16.gmra.mrb[52].mxu1 %v3708_v26  ;;  %15848 = vmatprep.subr.bf16.mxu0 %v16935_v15  ;;  %v7709_v62 = vld [vmem:[#allocation3 + $0x98] sm:$0xff]  ;;  %v7710_v26 = vld [vmem:[#allocation3 + $0xa0] sm:$0xff] }
 0x359   : > { %15295 = vmatpush3.bf16.msra.mxu1 %v16932_v36  ;;  %15306 = vmatprep.mubr.bf16.mxu1 %v21042_v25  ;;  %v16959_v36 = vld [vmem:[%s20939_s3 + $0x2b8] sm:$0xff]   ;;  %v7714_v25 = vpack.c.bf16 %v7710_v26, %v7709_v62 }
 0x35a   : > { %15296 = vmatprep.subr.bf16.mxu1 %v16934_v28  ;;  %v17209_v62 = vld [vmem:[#allocation3 + $0x47] sm:$0xff] }
 0x35b   : > { %15849 = vmatpush3.bf16.msra.mxu0 %v16935_v15  ;;  %v7708_v15 = vld [vmem:[#allocation3 + $0x90] sm:$0xff]  ;;  %v4149_v26 = vpack.c.bf16 %v17209_v62, %v17209_v62 }
 0x35c   : > { %15850 = vmatprep.subr.bf16.mxu0 %v16937_v46  ;;  %v17219_v62 = vld [vmem:[#allocation3 + $0x93] sm:$0xff] }
 0x35d   : > { %15297 = vmatpush3.bf16.msra.mxu1 %v16934_v28  ;;  %v7713_v28 = vpack.c.bf16 %v7708_v15, %v7707_v45  ;;  %v4286_v15 = vld [vmem:[#allocation3 + $0x18] sm:$0xff] }
 0x35e   : > { %15298 = vmatprep.subr.bf16.mxu1 %v16936_v7 }
 0x35f   : > { %15851 = vmatpush3.bf16.msra.mxu0 %v16937_v46  ;;  %v16963_v46 = vld [vmem:[%s20939_s3 + $0x2c8] sm:$0xff]  }
 0x360   : > { %15852 = vmatprep.subr.bf16.mxu0 %v16939_v12 }
 0x361   : > { %15299 = vmatpush3.bf16.msra.mxu1 %v16936_v7  ;;  %v16962_v7 = vld [vmem:[%s20939_s3 + $0x348] sm:$0xff]  }
 0x362   : > { %15300 = vmatprep.subr.bf16.mxu1 %v16938_v27 }
 0x363   : > { %15853 = vmatpush3.bf16.msra.mxu0 %v16939_v12  ;;  %v21046_v12 = vpack.c.bf16 %v19022_v30, %v19020_v9  ;;  %v4139_v30 = vld [vmem:[#allocation3 + $0x17] sm:$0xff]  ;;  %v16967_v9 = vld [vmem:[%s20939_s3 + $0x2d8] sm:$0xff]  }
 0x364   : > { %15854 = vmatprep.subr.bf16.mxu0 %v16941_v54 }
 0x365   : > { %15301 = vmatpush3.bf16.msra.mxu1 %v16938_v27  ;;  %v16965_v27 = vld [vmem:[%s20939_s3 + $0x2d0] sm:$0xff]  }
 0x366   : > { %15302 = vmatprep.subr.bf16.mxu1 %v16940_v55 }
 0x367   : > { %15855 = vmatpush3.bf16.msra.mxu0 %v16941_v54  ;;  %v21047_v54 = vld [vmem:[#allocation13_spill] sm:$0xff] }
 0x368   : > { %15856 = vmatprep.subr.bf16.mxu0 %v16943_v56 }
 0x369   : > { %15303 = vmatpush3.bf16.msra.mxu1 %v16940_v55  ;;  %v21048_v55 = vpack.c.bf16 %v19026_v47, %v21047_v54  ;;  %v16966_v47 = vld [vmem:[%s20939_s3 + $0x358] sm:$0xff]   ;;  %v16989_v54 = vld [vmem:[%s20939_s3 + $0x330] sm:$0xff]  }
 0x36a   : > { %15304 = vmatprep.subr.bf16.mxu1 %v16942_v2 }
 0x36b   : > { %15857 = vmatpush3.bf16.msra.mxu0 %v16943_v56  ;;  %v7711_v56 = vld [vmem:[#allocation3 + $0xa8] sm:$0xff] }
 0x36c   : > { %15866 = vmatprep.subr.bf16.mxu0 %v16945_v3 }
 0x36d   : > { %15305 = vmatpush3.bf16.msra.mxu1 %v16942_v2  ;;  %v16964_v2 = vld [vmem:[%s20939_s3 + $0x350] sm:$0xff]  }
 0x36e   : > { %15314 = vmatprep.subr.bf16.mxu1 %v16944_v29  ;;  %15859 = vmatmul.mubr.bf16.vlgmr.msra.gmra.mrb[52].mxu0 %v7567_v21  ;;  %v4146_v21 = vpack.c.bf16 %v17204_v20, %v4139_v30  ;;  %v16992_v30 = vld [vmem:[%s20939_s3 + $0x3c0] sm:$0xff]  }
 0x36f   : > { %15862 = vmatprep.mubr.bf16.mxu0 %v7568_v50  ;;  %15867 = vmatpush3.bf16.msra.mxu0 %v16945_v3  ;;  %v7715_v3 = vpack.c.bf16 %v7711_v56, %v7711_v56  ;;  %v16991_v56 = vld [vmem:[%s20939_s3 + $0x338] sm:$0xff]  }
 0x370   : > { %15307 = vmatmul.mubr.bf16.vlgmr.msra.gmra.mrb[48].mxu1 %v21043_v23  ;;  %15868 = vmatprep.subr.bf16.mxu0 %v16947_v13  ;;  %v16968_v23 = vld [vmem:[%s20939_s3 + $0x360] sm:$0xff]  }
 0x371   : > { %15310 = vmatprep.mubr.bf16.mxu1 %v21044_v51  ;;  %15315 = vmatpush3.bf16.msra.mxu1 %v16944_v29  ;;  %v17203_v29 = vld [vmem:[#allocation3 + $0x46] sm:$0xff]  ;;  %v16970_v51 = vld [vmem:[%s20939_s3 + $0x368] sm:$0xff]  }
 0x372   : > { %15316 = vmatprep.subr.bf16.mxu1 %v16946_v14  ;;  %v4002_v18 = vpack.c.bf16 %v17203_v29, %v17203_v29  ;;  %v8006_v29 = vpack.c.bf16 %v19740_v59, %v19719_v57  ;;  %v16997_v57 = vld [vmem:[%s20939_s3 + $0x350] sm:$0xff]  }
 0x373   : > { %15869 = vmatpush3.bf16.msra.mxu0 %v16947_v13  ;;  %v21049_v13 = vld [vmem:[#allocation15_spill] sm:$0xff] }
 0x374   : > { %15870 = vmatprep.subr.bf16.mxu0 %v16949_v11  ;;  %v21051_v50 = vpack.c.bf16 %v21049_v13, %v21050_v8  ;;  %v21057_v13 = vld [vmem:[#allocation18_spill] sm:$0xff] }
 0x375   : > { %15317 = vmatpush3.bf16.msra.mxu1 %v16946_v14  ;;  %v16969_v14 = vld [vmem:[%s20939_s3 + $0x2e0] sm:$0xff]   ;;  %v16996_v59 = vld [vmem:[%s20939_s3 + $0x3d0] sm:$0xff]  }
 0x376   : > { %15318 = vmatprep.subr.bf16.mxu1 %v16948_v10  ;;  %15863 = vmatmul.mubr.bf16.gmra.mrb[56].mxu0 %v7569_v41  ;;  %v16977_v41 = vld [vmem:[%s20939_s3 + $0x300] sm:$0xff]  }
 0x377   : > { %15871 = vmatpush3.bf16.msra.mxu0 %v16949_v11  ;;  %15882 = vmatprep.mubr.bf16.mxu0 %v7712_v22  ;;  %v16971_v11 = vld [vmem:[%s20939_s3 + $0x2e8] sm:$0xff]  }
 0x378   : > { %15311 = vmatmul.mubr.bf16.gmra.mrb[52].mxu1 %v3855_v48  ;;  %15872 = vmatprep.subr.bf16.mxu0 %v16951_v61  ;;  %v16979_v22 = vld [vmem:[%s20939_s3 + $0x308] sm:$0xff]   ;;  %v7860_v48 = vpack.c.bf16 %v19676_v52, %v19661_v1  ;;  %v16981_v1 = vld [vmem:[%s20939_s3 + $0x310] sm:$0xff]   ;;  %v7857_v52 = vld [vmem:[#allocation3 + $0xa9] sm:$0xff] }
 0x379   : > { %15319 = vmatpush3.bf16.msra.mxu1 %v16948_v10  ;;  %15330 = vmatprep.mubr.bf16.mxu1 %v21045_v43  ;;  %v16973_v10 = vld [vmem:[%s20939_s3 + $0x2f0] sm:$0xff]   ;;  %v7861_v45 = vpack.c.bf16 %v7857_v52, %v7857_v52  ;;  %v17009_v52 = vld [vmem:[%s20939_s3 + $0x380] sm:$0xff]  }
 0x37a   : > { %15320 = vmatprep.subr.bf16.mxu1 %v16950_v53 }
 0x37b   : > { %15873 = vmatpush3.bf16.msra.mxu0 %v16951_v61  ;;  %v16976_v61 = vld [vmem:[%s20939_s3 + $0x380] sm:$0xff]  }
 0x37c   : > { %15874 = vmatprep.subr.bf16.mxu0 %v16953_v37 }
 0x37d   : > { %15321 = vmatpush3.bf16.msra.mxu1 %v16950_v53  ;;  %v17205_v53 = vld [vmem:[#allocation3 + $0x27] sm:$0xff] }
 0x37e   : > { %15322 = vmatprep.subr.bf16.mxu1 %v16952_v39 }
 0x37f   : > { %15875 = vmatpush3.bf16.msra.mxu0 %v16953_v37  ;;  %v17206_v37 = vld [vmem:[#allocation3 + $0x2f] sm:$0xff] }
 0x380   : > { %15876 = vmatprep.subr.bf16.mxu0 %v16955_v44  ;;  %v4147_v43 = vpack.c.bf16 %v17206_v37, %v17205_v53  ;;  %v4433_v53 = vld [vmem:[#allocation3 + $0x1e] sm:$0xff]  ;;  %v16998_v37 = vld [vmem:[%s20939_s3 + $0x3d8] sm:$0xff]  }
 0x381   : > { %15323 = vmatpush3.bf16.msra.mxu1 %v16952_v39  ;;  %v21052_v39 = vld [vmem:[#allocation17_spill] sm:$0xff] }
 0x382   : > { %15324 = vmatprep.subr.bf16.mxu1 %v16954_v32 }
 0x383   : > { %15877 = vmatpush3.bf16.msra.mxu0 %v16955_v44  ;;  %v21053_v44 = vld [vmem:[#allocation16_spill] sm:$0xff] }
 0x384   : > { %15878 = vmatprep.subr.bf16.mxu0 %v16957_v0 }
 0x385   : > { %15325 = vmatpush3.bf16.msra.mxu1 %v16954_v32  ;;  %v21054_v32 = vpack.c.bf16 %v21052_v39, %v21053_v44  ;;  %v17001_v39 = vld [vmem:[%s20939_s3 + $0x360] sm:$0xff]  }
 0x386   : > { %15326 = vmatprep.subr.bf16.mxu1 %v16956_v6  ;;  %v17000_v44 = vld [vmem:[%s20939_s3 + $0x3e0] sm:$0xff]  }
 0x387   : > { %15879 = vmatpush3.bf16.msra.mxu0 %v16957_v0  ;;  %v16978_v0 = vld [vmem:[%s20939_s3 + $0x388] sm:$0xff]  }
 0x388   : > { %15880 = vmatprep.subr.bf16.mxu0 %v16959_v36 }
 0x389   : > { %15327 = vmatpush3.bf16.msra.mxu1 %v16956_v6  ;;  %v17207_v6 = vld [vmem:[#allocation3 + $0x37] sm:$0xff] }
 0x38a   : > { %15328 = vmatprep.subr.bf16.mxu1 %v16958_v42 }
 0x38b   : > { %15881 = vmatpush3.bf16.msra.mxu0 %v16959_v36  ;;  %v17208_v36 = vld [vmem:[#allocation3 + $0x3f] sm:$0xff] }
 0x38c   : > { %15890 = vmatprep.subr.bf16.mxu0 %v16961_v63 }
 0x38d   : > { %15329 = vmatpush3.bf16.msra.mxu1 %v16958_v42  ;;  %v4148_v42 = vpack.c.bf16 %v17208_v36, %v17207_v6  ;;  %v17005_v6 = vld [vmem:[%s20939_s3 + $0x370] sm:$0xff]  }
 0x38e   : > { %15338 = vmatprep.subr.bf16.mxu1 %v16960_v17  ;;  %15883 = vmatmul.mubr.bf16.vlgmr.msra.gmra.mrb[52].mxu0 %v7713_v28  ;;  %v16982_v28 = vld [vmem:[%s20939_s3 + $0x398] sm:$0xff]   ;;  %v17004_v36 = vld [vmem:[%s20939_s3 + $0x3f0] sm:$0xff]  }
 0x38f   : > { %15886 = vmatprep.mubr.bf16.mxu0 %v7714_v25  ;;  %15891 = vmatpush3.bf16.msra.mxu0 %v16961_v63  ;;  %v16980_v63 = vld [vmem:[%s20939_s3 + $0x390] sm:$0xff]  }
 0x390   : > { %15331 = vmatmul.mubr.bf16.vlgmr.msra.gmra.mrb[48].mxu1 %v21046_v12  ;;  %15892 = vmatprep.subr.bf16.mxu0 %v16963_v46  ;;  %v16985_v12 = vld [vmem:[%s20939_s3 + $0x320] sm:$0xff]  }
 0x391   : > { %15334 = vmatprep.mubr.bf16.mxu1 %v21048_v55  ;;  %15339 = vmatpush3.bf16.msra.mxu1 %v16960_v17  ;;  %v16983_v17 = vld [vmem:[%s20939_s3 + $0x318] sm:$0xff]   ;;  %v16988_v55 = vld [vmem:[%s20939_s3 + $0x3b0] sm:$0xff]  }
 0x392   : > { %15340 = vmatprep.subr.bf16.mxu1 %v16962_v7 }
 0x393   : > { %15893 = vmatpush3.bf16.msra.mxu0 %v16963_v46  ;;  %v17210_v46 = vld [vmem:[#allocation3 + $0x20] sm:$0xff] }
 0x394   : > { %15894 = vmatprep.subr.bf16.mxu0 %v16965_v27  ;;  %v4293_v25 = vpack.c.bf16 %v17210_v46, %v4286_v15  ;;  %v4436_v15 = vld [vmem:[#allocation3 + $0x36] sm:$0xff] }
 0x395   : > { %15341 = vmatpush3.bf16.msra.mxu1 %v16962_v7  ;;  %v21055_v7 = vpack.c.bf16 %v19070_v60, %v19068_v5  ;;  %v16987_v60 = vld [vmem:[%s20939_s3 + $0x328] sm:$0xff]  }
 0x396   : > { %15342 = vmatprep.subr.bf16.mxu1 %v16964_v2  ;;  %15887 = vmatmul.mubr.bf16.gmra.mrb[56].mxu0 %v7715_v3  ;;  %v16986_v5 = vld [vmem:[%s20939_s3 + $0x3a8] sm:$0xff]   ;;  %v16993_v3 = vld [vmem:[%s20939_s3 + $0x340] sm:$0xff]  }
 0x397   : > { %15895 = vmatpush3.bf16.msra.mxu0 %v16965_v27  ;;  %15906 = vmatprep.mubr.bf16.mxu0 %v21051_v50  ;;  %v16984_v27 = vld [vmem:[%s20939_s3 + $0x3a0] sm:$0xff]   ;;  %v16994_v50 = vld [vmem:[%s20939_s3 + $0x3c8] sm:$0xff]  }
 0x398   : > { %15335 = vmatmul.mubr.bf16.gmra.mrb[52].mxu1 %v4002_v18  ;;  %15896 = vmatprep.subr.bf16.mxu0 %v16967_v9  ;;  %v17211_v18 = vld [vmem:[#allocation3 + $0x28] sm:$0xff]  ;;  %v17011_v46 = vld [vmem:[%s20939_s3 + $0x388] sm:$0xff]  }
 0x399   : > { %15343 = vmatpush3.bf16.msra.mxu1 %v16964_v2  ;;  %15354 = vmatprep.mubr.bf16.mxu1 %v4146_v21  ;;  %v16990_v2 = vld [vmem:[%s20939_s3 + $0x3b8] sm:$0xff]  }
 0x39a   : > { %15344 = vmatprep.subr.bf16.mxu1 %v16966_v47  ;;  %v21056_v21 = vld [vmem:[#allocation19_spill] sm:$0xff] }
 0x39b   : > { %15897 = vmatpush3.bf16.msra.mxu0 %v16967_v9  ;;  %v16995_v9 = vld [vmem:[%s20939_s3 + $0x348] sm:$0xff]   ;;  %v21058_v8 = vpack.c.bf16 %v21056_v21, %v21057_v13  ;;  %v17014_v21 = vld [vmem:[%s20939_s3 + $0x418] sm:$0xff]   ;;  %v17017_v13 = vld [vmem:[%s20939_s3 + $0x3a0] sm:$0xff]  }
 0x39c   : > { %15898 = vmatprep.subr.bf16.mxu0 %v16969_v14 }
 0x39d   : > { %15345 = vmatpush3.bf16.msra.mxu1 %v16966_v47  ;;  %v17212_v47 = vld [vmem:[#allocation3 + $0x30] sm:$0xff] }
 0x39e   : > { %15346 = vmatprep.subr.bf16.mxu1 %v16968_v23  ;;  %v4294_v20 = vpack.c.bf16 %v17212_v47, %v17211_v18  ;;  %v17221_v18 = vld [vmem:[#allocation3 + $0x84] sm:$0xff] }
 0x39f   : > { %15899 = vmatpush3.bf16.msra.mxu0 %v16969_v14  ;;  %v17213_v14 = vld [vmem:[#allocation3 + $0x38] sm:$0xff] }
 0x3a0   : > { %15900 = vmatprep.subr.bf16.mxu0 %v16971_v11 }
 0x3a1   : > { %15347 = vmatpush3.bf16.msra.mxu1 %v16968_v23  ;;  %v17214_v23 = vld [vmem:[#allocation3 + $0x40] sm:$0xff] }
 0x3a2   : > { %15348 = vmatprep.subr.bf16.mxu1 %v16970_v51 }
 0x3a3   : > { %15901 = vmatpush3.bf16.msra.mxu0 %v16971_v11  ;;  %v4295_v11 = vpack.c.bf16 %v17214_v23, %v17213_v14  ;;  %v17016_v14 = vld [vmem:[%s20939_s3 + $0x420] sm:$0xff]   ;;  %v17019_v23 = vld [vmem:[%s20939_s3 + $0x3a8] sm:$0xff]  }
 0x3a4   : > { %15902 = vmatprep.subr.bf16.mxu0 %v16973_v10 }
 0x3a5   : > { %15349 = vmatpush3.bf16.msra.mxu1 %v16970_v51  ;;  %v8143_v51 = vld [vmem:[#allocation3 + $0x7b] sm:$0xff] }
 0x3a6   : > { %15350 = vmatprep.subr.bf16.mxu1 %v16972_v19 }
 0x3a7   : > { %15903 = vmatpush3.bf16.msra.mxu0 %v16973_v10  ;;  %v17215_v10 = vld [vmem:[#allocation3 + $0xaa] sm:$0xff] }
 0x3a8   : > { %15904 = vmatprep.subr.bf16.mxu0 %v16975_v33 }
 0x3a9   : > { %15351 = vmatpush3.bf16.msra.mxu1 %v16972_v19  ;;  %v8007_v19 = vpack.c.bf16 %v17215_v10, %v17215_v10  ;;  %v17025_v10 = vld [vmem:[%s20939_s3 + $0x3c0] sm:$0xff]  }
 0x3aa   : > { %15352 = vmatprep.subr.bf16.mxu1 %v16974_v58 }
 0x3ab   : > { %15905 = vmatpush3.bf16.msra.mxu0 %v16975_v33  ;;  %v4434_v33 = vld [vmem:[#allocation3 + $0x26] sm:$0xff] }
 0x3ac   : > { %15914 = vmatprep.subr.bf16.mxu0 %v16977_v41 }
 0x3ad   : > { %15353 = vmatpush3.bf16.msra.mxu1 %v16974_v58  ;;  %v16999_v58 = vld [vmem:[%s20939_s3 + $0x358] sm:$0xff]  }
 0x3ae   : > { %15362 = vmatprep.subr.bf16.mxu1 %v16976_v61  ;;  %15907 = vmatmul.mubr.bf16.vlgmr.msra.gmra.mrb[52].mxu0 %v21054_v32  ;;  %v17003_v32 = vld [vmem:[%s20939_s3 + $0x368] sm:$0xff]  }
 0x3af   : > { %15910 = vmatprep.mubr.bf16.mxu0 %v7860_v48  ;;  %15915 = vmatpush3.bf16.msra.mxu0 %v16977_v41  ;;  %v17216_v41 = vld [vmem:[#allocation3 + $0x83] sm:$0xff] }
 0x3b0   : > { %15355 = vmatmul.mubr.bf16.vlgmr.msra.gmra.mrb[48].mxu1 %v4147_v43  ;;  %15916 = vmatprep.subr.bf16.mxu0 %v16979_v22  ;;  %v4440_v43 = vpack.c.bf16 %v4434_v33, %v4433_v53  ;;  %v20007_v33 = vld [vmem:[#allocation3 + $0xa4] sm:$0xff] }
 0x3b1   : > { %15358 = vmatprep.mubr.bf16.mxu1 %v4148_v42  ;;  %15363 = vmatpush3.bf16.msra.mxu1 %v16976_v61  ;;  %v8150_v61 = vpack.c.bf16 %v17216_v41, %v8143_v51  ;;  %v17007_v42 = vld [vmem:[%s20939_s3 + $0x378] sm:$0xff]   ;;  %v17223_v41 = vld [vmem:[#allocation3 + $0x94] sm:$0xff] }
 0x3b2   : > { %15364 = vmatprep.subr.bf16.mxu1 %v16978_v0  ;;  %v17022_v51 = vld [vmem:[%s20939_s3 + $0x438] sm:$0xff]  }
 0x3b3   : > { %15917 = vmatpush3.bf16.msra.mxu0 %v16979_v22  ;;  %v17217_v22 = vld [vmem:[#allocation3 + $0x48] sm:$0xff] }
 0x3b4   : > { %15918 = vmatprep.subr.bf16.mxu0 %v16981_v1  ;;  %v4296_v48 = vpack.c.bf16 %v17217_v22, %v17217_v22  ;;  %v17027_v22 = vld [vmem:[%s20939_s3 + $0x3c8] sm:$0xff]  }
 0x3b5   : > { %15365 = vmatpush3.bf16.msra.mxu1 %v16978_v0  ;;  %v17002_v0 = vld [vmem:[%s20939_s3 + $0x3e8] sm:$0xff]  }
 0x3b6   : > { %15366 = vmatprep.subr.bf16.mxu1 %v16980_v63  ;;  %15911 = vmatmul.mubr.bf16.gmra.mrb[56].mxu0 %v7861_v45  ;;  %v19949_v45 = vld [vmem:[#allocation3 + $0xa3] sm:$0xff] }
 0x3b7   : > { %15919 = vmatpush3.bf16.msra.mxu0 %v16981_v1  ;;  %15930 = vmatprep.mubr.bf16.mxu0 %v21055_v7  ;;  %v17006_v1 = vld [vmem:[%s20939_s3 + $0x3f8] sm:$0xff]   ;;  %v17220_v7 = vld [vmem:[#allocation3 + $0x9b] sm:$0xff] }
 0x3b8   : > { %15359 = vmatmul.mubr.bf16.gmra.mrb[52].mxu1 %v4149_v26  ;;  %15920 = vmatprep.subr.bf16.mxu0 %v16983_v17 }
 0x3b9   : > { %15367 = vmatpush3.bf16.msra.mxu1 %v16980_v63  ;;  %15378 = vmatprep.mubr.bf16.mxu1 %v4293_v25  ;;  %v17008_v63 = vld [vmem:[%s20939_s3 + $0x400] sm:$0xff]  }
 0x3ba   : > { %15368 = vmatprep.subr.bf16.mxu1 %v16982_v28  ;;  %v4435_v25 = vld [vmem:[#allocation3 + $0x2e] sm:$0xff] }
 0x3bb   : > { %15921 = vmatpush3.bf16.msra.mxu0 %v16983_v17  ;;  %v17218_v17 = vld [vmem:[#allocation3 + $0x8b] sm:$0xff] }
 0x3bc   : > { %15922 = vmatprep.subr.bf16.mxu0 %v16985_v12  ;;  %v8151_v26 = vpack.c.bf16 %v17219_v62, %v17218_v17  ;;  %v17030_v17 = vld [vmem:[%s20939_s3 + $0x458] sm:$0xff]   ;;  %v17033_v62 = vld [vmem:[%s20939_s3 + $0x3e0] sm:$0xff]  }
 0x3bd   : > { %15369 = vmatpush3.bf16.msra.mxu1 %v16982_v28  ;;  %v4438_v28 = vld [vmem:[#allocation3 + $0x46] sm:$0xff] }
 0x3be   : > { %15370 = vmatprep.subr.bf16.mxu1 %v16984_v27 }
 0x3bf   : > { %15923 = vmatpush3.bf16.msra.mxu0 %v16985_v12  ;;  %v8152_v12 = vpack.c.bf16 %v19949_v45, %v17220_v7  ;;  %v17035_v7 = vld [vmem:[%s20939_s3 + $0x3e8] sm:$0xff]  }
 0x3c0   : > { %15924 = vmatprep.subr.bf16.mxu0 %v16987_v60 }
 0x3c1   : > { %15371 = vmatpush3.bf16.msra.mxu1 %v16984_v27  ;;  %v4441_v27 = vpack.c.bf16 %v4436_v15, %v4435_v25  ;;  %v17032_v25 = vld [vmem:[%s20939_s3 + $0x460] sm:$0xff]  }
 0x3c2   : > { %15372 = vmatprep.subr.bf16.mxu1 %v16986_v5 }
 0x3c3   : > { %15925 = vmatpush3.bf16.msra.mxu0 %v16987_v60  ;;  %v4437_v60 = vld [vmem:[#allocation3 + $0x3e] sm:$0xff] }
 0x3c4   : > { %15926 = vmatprep.subr.bf16.mxu0 %v16989_v54 }
 0x3c5   : > { %15373 = vmatpush3.bf16.msra.mxu1 %v16986_v5  ;;  %v17010_v5 = vld [vmem:[%s20939_s3 + $0x408] sm:$0xff]  }
 0x3c6   : > { %15374 = vmatprep.subr.bf16.mxu1 %v16988_v55 }
 0x3c7   : > { %15927 = vmatpush3.bf16.msra.mxu0 %v16989_v54  ;;  %v4442_v54 = vpack.c.bf16 %v4438_v28, %v4437_v60  ;;  %v21066_v28 = vld [vmem:[#allocation23_spill] sm:$0xff] }
 0x3c8   : > { %15928 = vmatprep.subr.bf16.mxu0 %v16991_v56  ;;  %v17036_v60 = vld [vmem:[%s20939_s3 + $0x470] sm:$0xff]  }
 0x3c9   : > { %15375 = vmatpush3.bf16.msra.mxu1 %v16988_v55  ;;  %v17013_v55 = vld [vmem:[%s20939_s3 + $0x390] sm:$0xff]  }
 0x3ca   : > { %15376 = vmatprep.subr.bf16.mxu1 %v16990_v2 }
 0x3cb   : > { %15929 = vmatpush3.bf16.msra.mxu0 %v16991_v56  ;;  %v17012_v56 = vld [vmem:[%s20939_s3 + $0x410] sm:$0xff]  }
 0x3cc   : > { %15938 = vmatprep.subr.bf16.mxu0 %v16993_v3 }
 0x3cd   : > { %15377 = vmatpush3.bf16.msra.mxu1 %v16990_v2  ;;  %v8289_v2 = vld [vmem:[#allocation3 + $0x7c] sm:$0xff] }
 0x3ce   : > { %15386 = vmatprep.subr.bf16.mxu1 %v16992_v30  ;;  %15931 = vmatmul.mubr.bf16.vlgmr.msra.gmra.mrb[52].mxu0 %v21058_v8  ;;  %v8296_v47 = vpack.c.bf16 %v17221_v18, %v8289_v2  ;;  %v21059_v8 = vld [vmem:[#allocation20_spill] sm:$0xff]  ;;  %v8438_v2 = vld [vmem:[#allocation3 + $0x9a] sm:$0xff] }
 0x3cf   : > { %15934 = vmatprep.mubr.bf16.mxu0 %v8006_v29  ;;  %15939 = vmatpush3.bf16.msra.mxu0 %v16993_v3  ;;  %v4439_v3 = vld [vmem:[#allocation3 + $0x4e] sm:$0xff] }
 0x3d0   : > { %15379 = vmatmul.mubr.bf16.vlgmr.msra.gmra.mrb[48].mxu1 %v4294_v20  ;;  %15940 = vmatprep.subr.bf16.mxu0 %v16995_v9  ;;  %v17015_v29 = vld [vmem:[%s20939_s3 + $0x398] sm:$0xff]   ;;  %v4443_v20 = vpack.c.bf16 %v4439_v3, %v4439_v3  ;;  %v17040_v3 = vld [vmem:[%s20939_s3 + $0x480] sm:$0xff]  }
 0x3d1   : > { %15382 = vmatprep.mubr.bf16.mxu1 %v4295_v11  ;;  %15387 = vmatpush3.bf16.msra.mxu1 %v16992_v30  ;;  %v19964_v30 = vld [vmem:[#allocation3 + $0xab] sm:$0xff]  ;;  %v17018_v11 = vld [vmem:[%s20939_s3 + $0x428] sm:$0xff]  }
 0x3d2   : > { %15388 = vmatprep.subr.bf16.mxu1 %v16994_v50 }
 0x3d3   : > { %15941 = vmatpush3.bf16.msra.mxu0 %v16995_v9  ;;  %v8153_v9 = vpack.c.bf16 %v19964_v30, %v19964_v30 }
 0x3d4   : > { %15942 = vmatprep.subr.bf16.mxu0 %v16997_v57 }
 0x3d5   : > { %15389 = vmatpush3.bf16.msra.mxu1 %v16994_v50  ;;  %v21060_v50 = vpack.c.bf16 %v19094_v16, %v21059_v8  ;;  %v17021_v16 = vld [vmem:[%s20939_s3 + $0x3b0] sm:$0xff]   ;;  %v21069_v8 = vld [vmem:[#allocation25_spill] sm:$0xff] }
 0x3d6   : > { %15390 = vmatprep.subr.bf16.mxu1 %v16996_v59  ;;  %15935 = vmatmul.mubr.bf16.gmra.mrb[56].mxu0 %v8007_v19  ;;  %v17024_v19 = vld [vmem:[%s20939_s3 + $0x440] sm:$0xff]  }
 0x3d7   : > { %15943 = vmatpush3.bf16.msra.mxu0 %v16997_v57  ;;  %15954 = vmatprep.mubr.bf16.mxu0 %v8150_v61  ;;  %v17020_v57 = vld [vmem:[%s20939_s3 + $0x430] sm:$0xff]  }
 0x3d8   : > { %15383 = vmatmul.mubr.bf16.gmra.mrb[52].mxu1 %v4296_v48  ;;  %15944 = vmatprep.subr.bf16.mxu0 %v16999_v58  ;;  %v17224_v48 = vld [vmem:[#allocation3 + $0x9c] sm:$0xff] }
 0x3d9   : > { %15391 = vmatpush3.bf16.msra.mxu1 %v16996_v59  ;;  %15402 = vmatprep.mubr.bf16.mxu1 %v4440_v43  ;;  %v17023_v59 = vld [vmem:[%s20939_s3 + $0x3b8] sm:$0xff]   ;;  %v8298_v53 = vpack.c.bf16 %v20007_v33, %v17224_v48  ;;  %v21061_v43 = vld [vmem:[#allocation21_spill] sm:$0xff] }
 0x3da   : > { %15392 = vmatprep.subr.bf16.mxu1 %v16998_v37 }
 0x3db   : > { %15945 = vmatpush3.bf16.msra.mxu0 %v16999_v58  ;;  %v17222_v58 = vld [vmem:[#allocation3 + $0x8c] sm:$0xff] }
 0x3dc   : > { %15946 = vmatprep.subr.bf16.mxu0 %v17001_v39  ;;  %v8297_v61 = vpack.c.bf16 %v17223_v41, %v17222_v58  ;;  %v17225_v58 = vld [vmem:[#allocation3 + $0x50] sm:$0xff] }
 0x3dd   : > { %15393 = vmatpush3.bf16.msra.mxu1 %v16998_v37  ;;  %v17026_v37 = vld [vmem:[%s20939_s3 + $0x448] sm:$0xff]   ;;  %v4737_v41 = vpack.c.bf16 %v17225_v58, %v17225_v58 }
 0x3de   : > { %15394 = vmatprep.subr.bf16.mxu1 %v17000_v44  ;;  %v17233_v58 = vld [vmem:[#allocation3 + $0x32] sm:$0xff] }
 0x3df   : > { %15947 = vmatpush3.bf16.msra.mxu0 %v17001_v39  ;;  %v21062_v39 = vpack.c.bf16 %v19098_v49, %v21061_v43  ;;  %v4586_v49 = vld [vmem:[#allocation3 + $0x4f] sm:$0xff] }
 0x3e0   : > { %15948 = vmatprep.subr.bf16.mxu0 %v17003_v32  ;;  %v4590_v15 = vpack.c.bf16 %v4586_v49, %v4586_v49  ;;  %v17054_v49 = vld [vmem:[%s20939_s3 + $0x4b8] sm:$0xff]  }
 0x3e1   : > { %15395 = vmatpush3.bf16.msra.mxu1 %v17000_v44  ;;  %v17029_v44 = vld [vmem:[%s20939_s3 + $0x3d0] sm:$0xff]  }
 0x3e2   : > { %15396 = vmatprep.subr.bf16.mxu1 %v17002_v0 }
 0x3e3   : > { %15949 = vmatpush3.bf16.msra.mxu0 %v17003_v32  ;;  %v21063_v32 = vld [vmem:[#allocation22_spill] sm:$0xff] }
 0x3e4   : > { %15950 = vmatprep.subr.bf16.mxu0 %v17005_v6 }
 0x3e5   : > { %15397 = vmatpush3.bf16.msra.mxu1 %v17002_v0  ;;  %v21064_v0 = vpack.c.bf16 %v19107_v31, %v21063_v32  ;;  %v17031_v31 = vld [vmem:[%s20939_s3 + $0x3d8] sm:$0xff]   ;;  %v17051_v32 = vld [vmem:[%s20939_s3 + $0x428] sm:$0xff]  }
 0x3e6   : > { %15398 = vmatprep.subr.bf16.mxu1 %v17004_v36 }
 0x3e7   : > { %15951 = vmatpush3.bf16.msra.mxu0 %v17005_v6  ;;  %v17028_v6 = vld [vmem:[%s20939_s3 + $0x450] sm:$0xff]  }
 0x3e8   : > { %15952 = vmatprep.subr.bf16.mxu0 %v17007_v42 }
 0x3e9   : > { %15399 = vmatpush3.bf16.msra.mxu1 %v17004_v36  ;;  %v8435_v36 = vld [vmem:[#allocation3 + $0x82] sm:$0xff] }
 0x3ea   : > { %15400 = vmatprep.subr.bf16.mxu1 %v17006_v1 }
 0x3eb   : > { %15953 = vmatpush3.bf16.msra.mxu0 %v17007_v42  ;;  %v8436_v42 = vld [vmem:[#allocation3 + $0x8a] sm:$0xff] }
 0x3ec   : > { %15962 = vmatprep.subr.bf16.mxu0 %v17009_v52 }
 0x3ed   : > { %15401 = vmatpush3.bf16.msra.mxu1 %v17006_v1  ;;  %v20028_v1 = vld [vmem:[#allocation3 + $0xac] sm:$0xff] }
 0x3ee   : > { %15410 = vmatprep.subr.bf16.mxu1 %v17008_v63  ;;  %15955 = vmatmul.mubr.bf16.vlgmr.msra.gmra.mrb[52].mxu0 %v8151_v26  ;;  %v21065_v26 = vld [vmem:[#allocation24_spill] sm:$0xff] }
 0x3ef   : > { %15958 = vmatprep.mubr.bf16.mxu0 %v8152_v12  ;;  %15963 = vmatpush3.bf16.msra.mxu0 %v17009_v52  ;;  %v8299_v52 = vpack.c.bf16 %v20028_v1, %v20028_v1  ;;  %v17034_v12 = vld [vmem:[%s20939_s3 + $0x468] sm:$0xff]  }
 0x3f0   : > { %15403 = vmatmul.mubr.bf16.vlgmr.msra.gmra.mrb[48].mxu1 %v4441_v27  ;;  %15964 = vmatprep.subr.bf16.mxu0 %v17011_v46  ;;  %v17037_v27 = vld [vmem:[%s20939_s3 + $0x3f0] sm:$0xff]  }
 0x3f1   : > { %15406 = vmatprep.mubr.bf16.mxu1 %v4442_v54  ;;  %15411 = vmatpush3.bf16.msra.mxu1 %v17008_v63  ;;  %v8442_v63 = vpack.c.bf16 %v8436_v42, %v8435_v36  ;;  %v17038_v54 = vld [vmem:[%s20939_s3 + $0x478] sm:$0xff]   ;;  %v17052_v36 = vld [vmem:[%s20939_s3 + $0x4b0] sm:$0xff]  }
 0x3f2   : > { %15412 = vmatprep.subr.bf16.mxu1 %v17010_v5  ;;  %v17055_v42 = vld [vmem:[%s20939_s3 + $0x438] sm:$0xff]  }
 0x3f3   : > { %15965 = vmatpush3.bf16.msra.mxu0 %v17011_v46  ;;  %v21067_v46 = vpack.c.bf16 %v21065_v26, %v21066_v28  ;;  %v21077_v28 = vld [vmem:[#allocation32_spill] sm:$0xff] }
 0x3f4   : > { %15966 = vmatprep.subr.bf16.mxu0 %v17013_v55 }
 0x3f5   : > { %15413 = vmatpush3.bf16.msra.mxu1 %v17010_v5  ;;  %v17039_v5 = vld [vmem:[%s20939_s3 + $0x3f8] sm:$0xff]  }
 0x3f6   : > { %15414 = vmatprep.subr.bf16.mxu1 %v17012_v56  ;;  %15959 = vmatmul.mubr.bf16.gmra.mrb[56].mxu0 %v8153_v9  ;;  %v8439_v9 = vld [vmem:[#allocation3 + $0xa2] sm:$0xff] }
 0x3f7   : > { %15967 = vmatpush3.bf16.msra.mxu0 %v17013_v55  ;;  %15978 = vmatprep.mubr.bf16.mxu0 %v8296_v47  ;;  %v17041_v55 = vld [vmem:[%s20939_s3 + $0x400] sm:$0xff]   ;;  %v17043_v47 = vld [vmem:[%s20939_s3 + $0x408] sm:$0xff]  }
 0x3f8   : > { %15407 = vmatmul.mubr.bf16.gmra.mrb[52].mxu1 %v4443_v20  ;;  %15968 = vmatprep.subr.bf16.mxu0 %v17015_v29 }
 0x3f9   : > { %15415 = vmatpush3.bf16.msra.mxu1 %v17012_v56  ;;  %15426 = vmatprep.mubr.bf16.mxu1 %v21060_v50  ;;  %v8437_v56 = vld [vmem:[#allocation3 + $0x92] sm:$0xff] }
 0x3fa   : > { %15416 = vmatprep.subr.bf16.mxu1 %v17014_v21  ;;  %v8443_v18 = vpack.c.bf16 %v8438_v2, %v8437_v56  ;;  %v17063_v56 = vld [vmem:[%s20939_s3 + $0x458] sm:$0xff]   ;;  %v17231_v2 = vld [vmem:[#allocation3 + $0x51] sm:$0xff] }
 0x3fb   : > { %15969 = vmatpush3.bf16.msra.mxu0 %v17015_v29  ;;  %v8440_v29 = vld [vmem:[#allocation3 + $0xaa] sm:$0xff] }
 0x3fc   : > { %15970 = vmatprep.subr.bf16.mxu0 %v17017_v13  ;;  %v8444_v20 = vpack.c.bf16 %v8440_v29, %v8439_v9  ;;  %v17062_v9 = vld [vmem:[%s20939_s3 + $0x4d8] sm:$0xff]  }
 0x3fd   : > { %15417 = vmatpush3.bf16.msra.mxu1 %v17014_v21  ;;  %v17042_v21 = vld [vmem:[%s20939_s3 + $0x488] sm:$0xff]   ;;  %v17232_v29 = vld [vmem:[#allocation3 + $0x2a] sm:$0xff] }
 0x3fe   : > { %15418 = vmatprep.subr.bf16.mxu1 %v17016_v14 }
 0x3ff   : > { %15971 = vmatpush3.bf16.msra.mxu0 %v17017_v13  ;;  %v21068_v13 = vld [vmem:[#allocation26_spill] sm:$0xff] }
 0x400   : > { %15972 = vmatprep.subr.bf16.mxu0 %v17019_v23  ;;  %v21070_v50 = vpack.c.bf16 %v21068_v13, %v21069_v8  ;;  %v17065_v13 = vld [vmem:[%s20939_s3 + $0x460] sm:$0xff]  }
 0x401   : > { %15419 = vmatpush3.bf16.msra.mxu1 %v17016_v14  ;;  %v17045_v14 = vld [vmem:[%s20939_s3 + $0x410] sm:$0xff]   ;;  %v17064_v8 = vld [vmem:[%s20939_s3 + $0x4e0] sm:$0xff]  }
 0x402   : > { %15420 = vmatprep.subr.bf16.mxu1 %v17018_v11 }
 0x403   : > { %15973 = vmatpush3.bf16.msra.mxu0 %v17019_v23  ;;  %v21071_v23 = vld [vmem:[#allocation28_spill] sm:$0xff] }
 0x404   : > { %15974 = vmatprep.subr.bf16.mxu0 %v17021_v16 }
 0x405   : > { %15421 = vmatpush3.bf16.msra.mxu1 %v17018_v11  ;;  %v21072_v11 = vld [vmem:[#allocation27_spill] sm:$0xff] }
 0x406   : > { %15422 = vmatprep.subr.bf16.mxu1 %v17020_v57 }
 0x407   : > { %15975 = vmatpush3.bf16.msra.mxu0 %v17021_v16  ;;  %v21073_v16 = vpack.c.bf16 %v21071_v23, %v21072_v11  ;;  %v17069_v23 = vld [vmem:[%s20939_s3 + $0x470] sm:$0xff]  }
 0x408   : > { %15976 = vmatprep.subr.bf16.mxu0 %v17023_v59  ;;  %v17068_v11 = vld [vmem:[%s20939_s3 + $0x4f0] sm:$0xff]  }
 0x409   : > { %15423 = vmatpush3.bf16.msra.mxu1 %v17020_v57  ;;  %v8441_v57 = vld [vmem:[#allocation3 + $0xb2] sm:$0xff] }
 0x40a   : > { %15424 = vmatprep.subr.bf16.mxu1 %v17022_v51 }
 0x40b   : > { %15977 = vmatpush3.bf16.msra.mxu0 %v17023_v59  ;;  %v17044_v59 = vld [vmem:[%s20939_s3 + $0x490] sm:$0xff]  }
 0x40c   : > { %15986 = vmatprep.subr.bf16.mxu0 %v17025_v10 }
 0x40d   : > { %15425 = vmatpush3.bf16.msra.mxu1 %v17022_v51  ;;  %v8445_v51 = vpack.c.bf16 %v8441_v57, %v8441_v57  ;;  %v17070_v57 = vld [vmem:[%s20939_s3 + $0x4f8] sm:$0xff]  }
 0x40e   : > { %15434 = vmatprep.subr.bf16.mxu1 %v17024_v19  ;;  %15979 = vmatmul.mubr.bf16.vlgmr.msra.gmra.mrb[52].mxu0 %v8297_v61  ;;  %v17046_v61 = vld [vmem:[%s20939_s3 + $0x498] sm:$0xff]  }
 0x40f   : > { %15982 = vmatprep.mubr.bf16.mxu0 %v8298_v53  ;;  %15987 = vmatpush3.bf16.msra.mxu0 %v17025_v10  ;;  %v4874_v10 = vld [vmem:[#allocation3 + $0x21] sm:$0xff] }
 0x410   : > { %15427 = vmatmul.mubr.bf16.vlgmr.msra.gmra.mrb[48].mxu1 %v21062_v39  ;;  %15988 = vmatprep.subr.bf16.mxu0 %v17027_v22  ;;  %v21074_v53 = vld [vmem:[#allocation30_spill] sm:$0xff]  ;;  %v17049_v39 = vld [vmem:[%s20939_s3 + $0x420] sm:$0xff]  }
 0x411   : > { %15430 = vmatprep.mubr.bf16.mxu1 %v21064_v0  ;;  %15435 = vmatpush3.bf16.msra.mxu1 %v17024_v19  ;;  %v17047_v19 = vld [vmem:[%s20939_s3 + $0x418] sm:$0xff]   ;;  %v17050_v0 = vld [vmem:[%s20939_s3 + $0x4a8] sm:$0xff]  }
 0x412   : > { %15436 = vmatprep.subr.bf16.mxu1 %v17026_v37 }
 0x413   : > { %15989 = vmatpush3.bf16.msra.mxu0 %v17027_v22  ;;  %v17226_v22 = vld [vmem:[#allocation3 + $0x29] sm:$0xff] }
 0x414   : > { %15990 = vmatprep.subr.bf16.mxu0 %v17029_v44  ;;  %v4881_v48 = vpack.c.bf16 %v17226_v22, %v4874_v10  ;;  %v17075_v10 = vld [vmem:[%s20939_s3 + $0x488] sm:$0xff]   ;;  %v21083_v22 = vld [vmem:[#allocation36_spill] sm:$0xff] }
 0x415   : > { %15437 = vmatpush3.bf16.msra.mxu1 %v17026_v37  ;;  %v21075_v37 = vld [vmem:[#allocation29_spill] sm:$0xff] }
 0x416   : > { %15438 = vmatprep.subr.bf16.mxu1 %v17028_v6  ;;  %15983 = vmatmul.mubr.bf16.gmra.mrb[56].mxu0 %v8299_v52  ;;  %v21076_v43 = vpack.c.bf16 %v21074_v53, %v21075_v37  ;;  %v17057_v52 = vld [vmem:[%s20939_s3 + $0x440] sm:$0xff]   ;;  %v17074_v37 = vld [vmem:[%s20939_s3 + $0x508] sm:$0xff]  }
 0x417   : > { %15991 = vmatpush3.bf16.msra.mxu0 %v17029_v44  ;;  %16002 = vmatprep.mubr.bf16.mxu0 %v8442_v63  ;;  %v17048_v44 = vld [vmem:[%s20939_s3 + $0x4a0] sm:$0xff]   ;;  %v17059_v63 = vld [vmem:[%s20939_s3 + $0x448] sm:$0xff]  }
 0x418   : > { %15431 = vmatmul.mubr.bf16.gmra.mrb[52].mxu1 %v4590_v15  ;;  %15992 = vmatprep.subr.bf16.mxu0 %v17031_v31  ;;  %v8590_v15 = vpack.c.bf16 %v19964_v30, %v19949_v45  ;;  %v17061_v45 = vld [vmem:[%s20939_s3 + $0x450] sm:$0xff]   ;;  %v8587_v30 = vld [vmem:[#allocation3 + $0xb3] sm:$0xff] }
 0x419   : > { %15439 = vmatpush3.bf16.msra.mxu1 %v17028_v6  ;;  %15450 = vmatprep.mubr.bf16.mxu1 %v21067_v46  ;;  %v17053_v6 = vld [vmem:[%s20939_s3 + $0x430] sm:$0xff]  }
 0x41a   : > { %15440 = vmatprep.subr.bf16.mxu1 %v17030_v17  ;;  %v21078_v46 = vld [vmem:[#allocation31_spill] sm:$0xff] }
 0x41b   : > { %15993 = vmatpush3.bf16.msra.mxu0 %v17031_v31  ;;  %v17056_v31 = vld [vmem:[%s20939_s3 + $0x4c0] sm:$0xff]  }
 0x41c   : > { %15994 = vmatprep.subr.bf16.mxu0 %v17033_v62 }
 0x41d   : > { %15441 = vmatpush3.bf16.msra.mxu1 %v17030_v17  ;;  %v17227_v17 = vld [vmem:[#allocation3 + $0x31] sm:$0xff] }
 0x41e   : > { %15442 = vmatprep.subr.bf16.mxu1 %v17032_v25 }
 0x41f   : > { %15995 = vmatpush3.bf16.msra.mxu0 %v17033_v62  ;;  %v17228_v62 = vld [vmem:[#allocation3 + $0x39] sm:$0xff] }
 0x420   : > { %15996 = vmatprep.subr.bf16.mxu0 %v17035_v7  ;;  %v4882_v26 = vpack.c.bf16 %v17228_v62, %v17227_v17  ;;  %v17078_v17 = vld [vmem:[%s20939_s3 + $0x518] sm:$0xff]  }
 0x421   : > { %15443 = vmatpush3.bf16.msra.mxu1 %v17032_v25  ;;  %v21079_v25 = vpack.c.bf16 %v21077_v28, %v21078_v46  ;;  %v17080_v28 = vld [vmem:[%s20939_s3 + $0x520] sm:$0xff]   ;;  %v17083_v46 = vld [vmem:[%s20939_s3 + $0x4a8] sm:$0xff]  }
 0x422   : > { %15444 = vmatprep.subr.bf16.mxu1 %v17034_v12 }
 0x423   : > { %15997 = vmatpush3.bf16.msra.mxu0 %v17035_v7  ;;  %v17058_v7 = vld [vmem:[%s20939_s3 + $0x4c8] sm:$0xff]  }
 0x424   : > { %15998 = vmatprep.subr.bf16.mxu0 %v17037_v27 }
 0x425   : > { %15445 = vmatpush3.bf16.msra.mxu1 %v17034_v12  ;;  %v17229_v12 = vld [vmem:[#allocation3 + $0x41] sm:$0xff] }
 0x426   : > { %15446 = vmatprep.subr.bf16.mxu1 %v17036_v60 }
 0x427   : > { %15999 = vmatpush3.bf16.msra.mxu0 %v17037_v27  ;;  %v17230_v27 = vld [vmem:[#allocation3 + $0x49] sm:$0xff] }
 0x428   : > { %16000 = vmatprep.subr.bf16.mxu0 %v17039_v5 }
 0x429   : > { %15447 = vmatpush3.bf16.msra.mxu1 %v17036_v60  ;;  %v4883_v60 = vpack.c.bf16 %v17230_v27, %v17229_v12  ;;  %v17084_v12 = vld [vmem:[%s20939_s3 + $0x530] sm:$0xff]   ;;  %v17087_v27 = vld [vmem:[%s20939_s3 + $0x4b8] sm:$0xff]  }
 0x42a   : > { %15448 = vmatprep.subr.bf16.mxu1 %v17038_v54 }
 0x42b   : > { %16001 = vmatpush3.bf16.msra.mxu0 %v17039_v5  ;;  %v17060_v5 = vld [vmem:[%s20939_s3 + $0x4d0] sm:$0xff]  }
 0x42c   : > { %16010 = vmatprep.subr.bf16.mxu0 %v17041_v55 }
 0x42d   : > { %15449 = vmatpush3.bf16.msra.mxu1 %v17038_v54  ;;  %v8591_v54 = vpack.c.bf16 %v8587_v30, %v8587_v30  ;;  %v20234_v30 = vld [vmem:[#allocation3 + $0x9d] sm:$0xff] }
 0x42e   : > { %15458 = vmatprep.subr.bf16.mxu1 %v17040_v3  ;;  %16003 = vmatmul.mubr.bf16.vlgmr.msra.gmra.mrb[52].mxu0 %v8443_v18 }
 0x42f   : > { %16006 = vmatprep.mubr.bf16.mxu0 %v8444_v20  ;;  %16011 = vmatpush3.bf16.msra.mxu0 %v17041_v55  ;;  %v5021_v55 = vld [vmem:[#allocation3 + $0x22] sm:$0xff]  ;;  %v21081_v20 = vld [vmem:[#allocation33_spill] sm:$0xff] }
 0x430   : > { %15451 = vmatmul.mubr.bf16.vlgmr.msra.gmra.mrb[48].mxu1 %v21070_v50  ;;  %16012 = vmatprep.subr.bf16.mxu0 %v17043_v47  ;;  %v5028_v18 = vpack.c.bf16 %v17232_v29, %v5021_v55  ;;  %v17067_v50 = vld [vmem:[%s20939_s3 + $0x468] sm:$0xff]  }
 0x431   : > { %15454 = vmatprep.mubr.bf16.mxu1 %v21073_v16  ;;  %15459 = vmatpush3.bf16.msra.mxu1 %v17040_v3  ;;  %v4884_v3 = vpack.c.bf16 %v17231_v2, %v17231_v2  ;;  %v17071_v16 = vld [vmem:[%s20939_s3 + $0x478] sm:$0xff]   ;;  %v17240_v55 = vld [vmem:[#allocation3 + $0x95] sm:$0xff] }
 0x432   : > { %15460 = vmatprep.subr.bf16.mxu1 %v17042_v21  ;;  %v5173_v2 = vld [vmem:[#allocation3 + $0x50] sm:$0xff]  ;;  %v5170_v29 = vld [vmem:[#allocation3 + $0x38] sm:$0xff] }
 0x433   : > { %16013 = vmatpush3.bf16.msra.mxu0 %v17043_v47  ;;  %v21080_v47 = vld [vmem:[#allocation34_spill] sm:$0xff] }
 0x434   : > { %16014 = vmatprep.subr.bf16.mxu0 %v17045_v14 }
 0x435   : > { %15461 = vmatpush3.bf16.msra.mxu1 %v17042_v21  ;;  %v21082_v21 = vpack.c.bf16 %v21080_v47, %v21081_v20 }
 0x436   : > { %15462 = vmatprep.subr.bf16.mxu1 %v17044_v59  ;;  %16007 = vmatmul.mubr.bf16.gmra.mrb[56].mxu0 %v8445_v51  ;;  %v17072_v51 = vld [vmem:[%s20939_s3 + $0x500] sm:$0xff]  }
 0x437   : > { %16015 = vmatpush3.bf16.msra.mxu0 %v17045_v14  ;;  %16026 = vmatprep.mubr.bf16.mxu0 %v21076_v43  ;;  %v17066_v14 = vld [vmem:[%s20939_s3 + $0x4e8] sm:$0xff]   ;;  %v17235_v43 = vld [vmem:[#allocation3 + $0x42] sm:$0xff] }
 0x438   : > { %15455 = vmatmul.mubr.bf16.gmra.mrb[52].mxu1 %v4737_v41  ;;  %16016 = vmatprep.subr.bf16.mxu0 %v17047_v19  ;;  %v17234_v41 = vld [vmem:[#allocation3 + $0x3a] sm:$0xff] }
 0x439   : > { %15463 = vmatpush3.bf16.msra.mxu1 %v17044_v59  ;;  %15474 = vmatprep.mubr.bf16.mxu1 %v4881_v48  ;;  %v17073_v59 = vld [vmem:[%s20939_s3 + $0x480] sm:$0xff]   ;;  %v21084_v48 = vld [vmem:[#allocation35_spill] sm:$0xff] }
 0x43a   : > { %15464 = vmatprep.subr.bf16.mxu1 %v17046_v61  ;;  %v21085_v53 = vpack.c.bf16 %v21083_v22, %v21084_v48  ;;  %v21087_v22 = vld [vmem:[#allocation37_spill] sm:$0xff] }
 0x43b   : > { %16017 = vmatpush3.bf16.msra.mxu0 %v17047_v19  ;;  %v8736_v19 = vpack.c.bf16 %v20028_v1, %v20007_v33  ;;  %v17077_v33 = vld [vmem:[%s20939_s3 + $0x490] sm:$0xff]  }
 0x43c   : > { %16018 = vmatprep.subr.bf16.mxu0 %v17049_v39  ;;  %v17076_v1 = vld [vmem:[%s20939_s3 + $0x510] sm:$0xff]  }
 0x43d   : > { %15465 = vmatpush3.bf16.msra.mxu1 %v17046_v61  ;;  %v5029_v61 = vpack.c.bf16 %v17234_v41, %v17233_v58  ;;  %v17094_v58 = vld [vmem:[%s20939_s3 + $0x558] sm:$0xff]   ;;  %v17097_v41 = vld [vmem:[%s20939_s3 + $0x4e0] sm:$0xff]  }
 0x43e   : > { %15466 = vmatprep.subr.bf16.mxu1 %v17048_v44 }
 0x43f   : > { %16019 = vmatpush3.bf16.msra.mxu0 %v17049_v39  ;;  %v17236_v39 = vld [vmem:[#allocation3 + $0x4a] sm:$0xff] }
 0x440   : > { %16020 = vmatprep.subr.bf16.mxu0 %v17051_v32 }
 0x441   : > { %15467 = vmatpush3.bf16.msra.mxu1 %v17048_v44  ;;  %v5030_v44 = vpack.c.bf16 %v17236_v39, %v17235_v43  ;;  %v17098_v43 = vld [vmem:[%s20939_s3 + $0x568] sm:$0xff]   ;;  %v17101_v39 = vld [vmem:[%s20939_s3 + $0x4f0] sm:$0xff]  }
 0x442   : > { %15468 = vmatprep.subr.bf16.mxu1 %v17050_v0 }
 0x443   : > { %16021 = vmatpush3.bf16.msra.mxu0 %v17051_v32  ;;  %v8873_v32 = vld [vmem:[#allocation3 + $0x85] sm:$0xff] }
 0x444   : > { %16022 = vmatprep.subr.bf16.mxu0 %v17053_v6 }
 0x445   : > { %15469 = vmatpush3.bf16.msra.mxu1 %v17050_v0  ;;  %v17237_v0 = vld [vmem:[#allocation3 + $0xb4] sm:$0xff] }
 0x446   : > { %15470 = vmatprep.subr.bf16.mxu1 %v17052_v36 }
 0x447   : > { %16023 = vmatpush3.bf16.msra.mxu0 %v17053_v6  ;;  %v8737_v6 = vpack.c.bf16 %v17237_v0, %v17237_v0  ;;  %v20291_v0 = vld [vmem:[#allocation3 + $0x9e] sm:$0xff] }
 0x448   : > { %16024 = vmatprep.subr.bf16.mxu0 %v17055_v42 }
 0x449   : > { %15471 = vmatpush3.bf16.msra.mxu1 %v17052_v36  ;;  %v5169_v36 = vld [vmem:[#allocation3 + $0x30] sm:$0xff] }
 0x44a   : > { %15472 = vmatprep.subr.bf16.mxu1 %v17054_v49 }
 0x44b   : > { %16025 = vmatpush3.bf16.msra.mxu0 %v17055_v42  ;;  %v17079_v42 = vld [vmem:[%s20939_s3 + $0x498] sm:$0xff]  }
 0x44c   : > { %16034 = vmatprep.subr.bf16.mxu0 %v17057_v52 }
 0x44d   : > { %15473 = vmatpush3.bf16.msra.mxu1 %v17054_v49  ;;  %v17238_v49 = vld [vmem:[#allocation3 + $0x8d] sm:$0xff] }
 0x44e   : > { %15482 = vmatprep.subr.bf16.mxu1 %v17056_v31  ;;  %16027 = vmatmul.mubr.bf16.vlgmr.msra.gmra.mrb[52].mxu0 %v21079_v25  ;;  %v17082_v25 = vld [vmem:[%s20939_s3 + $0x528] sm:$0xff]  }
 0x44f   : > { %16030 = vmatprep.mubr.bf16.mxu0 %v8590_v15  ;;  %16035 = vmatpush3.bf16.msra.mxu0 %v17057_v52  ;;  %v8880_v52 = vpack.c.bf16 %v17238_v49, %v8873_v32  ;;  %v5168_v15 = vld [vmem:[#allocation3 + $0x28] sm:$0xff]  ;;  %v17105_v32 = vld [vmem:[%s20939_s3 + $0x500] sm:$0xff]  }
 0x450   : > { %15475 = vmatmul.mubr.bf16.vlgmr.msra.gmra.mrb[48].mxu1 %v4882_v26  ;;  %16036 = vmatprep.subr.bf16.mxu0 %v17059_v63  ;;  %v5175_v62 = vpack.c.bf16 %v5169_v36, %v5168_v15  ;;  %v17081_v26 = vld [vmem:[%s20939_s3 + $0x4a0] sm:$0xff]   ;;  %v20297_v49 = vld [vmem:[#allocation3 + $0xa6] sm:$0xff]  ;;  %v17106_v15 = vld [vmem:[%s20939_s3 + $0x588] sm:$0xff]  }
 0x451   : > { %15478 = vmatprep.mubr.bf16.mxu1 %v4883_v60  ;;  %15483 = vmatpush3.bf16.msra.mxu1 %v17056_v31  ;;  %v17239_v31 = vld [vmem:[#allocation3 + $0x52] sm:$0xff]  ;;  %v17086_v60 = vld [vmem:[%s20939_s3 + $0x538] sm:$0xff]  }
 0x452   : > { %15484 = vmatprep.subr.bf16.mxu1 %v17058_v7  ;;  %v17244_v36 = vld [vmem:[#allocation3 + $0x96] sm:$0xff] }
 0x453   : > { %16037 = vmatpush3.bf16.msra.mxu0 %v17059_v63  ;;  %v5031_v63 = vpack.c.bf16 %v17239_v31, %v17239_v31  ;;  %v17245_v31 = vld [vmem:[#allocation3 + $0xae] sm:$0xff] }
 0x454   : > { %16038 = vmatprep.subr.bf16.mxu0 %v17061_v45 }
 0x455   : > { %15485 = vmatpush3.bf16.msra.mxu1 %v17058_v7  ;;  %v17085_v7 = vld [vmem:[%s20939_s3 + $0x4b0] sm:$0xff]  }
 0x456   : > { %15486 = vmatprep.subr.bf16.mxu1 %v17060_v5  ;;  %16031 = vmatmul.mubr.bf16.gmra.mrb[56].mxu0 %v8591_v54  ;;  %v5171_v54 = vld [vmem:[#allocation3 + $0x40] sm:$0xff] }
 0x457   : > { %16039 = vmatpush3.bf16.msra.mxu0 %v17061_v45  ;;  %16050 = vmatprep.mubr.bf16.mxu0 %v21082_v21  ;;  %v17089_v45 = vld [vmem:[%s20939_s3 + $0x4c0] sm:$0xff]   ;;  %v5176_v20 = vpack.c.bf16 %v5171_v54, %v5170_v29  ;;  %v5172_v21 = vld [vmem:[#allocation3 + $0x48] sm:$0xff] }
 0x458   : > { %15479 = vmatmul.mubr.bf16.gmra.mrb[52].mxu1 %v4884_v3  ;;  %16040 = vmatprep.subr.bf16.mxu0 %v17063_v56  ;;  %v20240_v3 = vld [vmem:[#allocation3 + $0xa5] sm:$0xff]  ;;  %v17113_v29 = vld [vmem:[%s20939_s3 + $0x520] sm:$0xff]  }
 0x459   : > { %15487 = vmatpush3.bf16.msra.mxu1 %v17060_v5  ;;  %15498 = vmatprep.mubr.bf16.mxu1 %v5028_v18  ;;  %v17088_v5 = vld [vmem:[%s20939_s3 + $0x540] sm:$0xff]  }
 0x45a   : > { %15488 = vmatprep.subr.bf16.mxu1 %v17062_v9  ;;  %v17241_v18 = vld [vmem:[#allocation3 + $0xad] sm:$0xff] }
 0x45b   : > { %16041 = vmatpush3.bf16.msra.mxu0 %v17063_v56  ;;  %v8881_v56 = vpack.c.bf16 %v20234_v30, %v17240_v55  ;;  %v8882_v47 = vpack.c.bf16 %v17241_v18, %v20240_v3  ;;  %v17111_v55 = vld [vmem:[%s20939_s3 + $0x518] sm:$0xff]  }
 0x45c   : > { %16042 = vmatprep.subr.bf16.mxu0 %v17065_v13  ;;  %v21095_v18 = vld [vmem:[#allocation44_spill] sm:$0xff] }
 0x45d   : > { %15489 = vmatpush3.bf16.msra.mxu1 %v17062_v9  ;;  %v17091_v9 = vld [vmem:[%s20939_s3 + $0x4c8] sm:$0xff]  }
 0x45e   : > { %15490 = vmatprep.subr.bf16.mxu1 %v17064_v8 }
 0x45f   : > { %16043 = vmatpush3.bf16.msra.mxu0 %v17065_v13  ;;  %v17090_v13 = vld [vmem:[%s20939_s3 + $0x548] sm:$0xff]  }
 0x460   : > { %16044 = vmatprep.subr.bf16.mxu0 %v17067_v50 }
 0x461   : > { %15491 = vmatpush3.bf16.msra.mxu1 %v17064_v8  ;;  %v5177_v8 = vpack.c.bf16 %v5173_v2, %v5172_v21  ;;  %v17112_v21 = vld [vmem:[%s20939_s3 + $0x5a0] sm:$0xff]  }
 0x462   : > { %15492 = vmatprep.subr.bf16.mxu1 %v17066_v14 }
 0x463   : > { %16045 = vmatpush3.bf16.msra.mxu0 %v17067_v50  ;;  %v17093_v50 = vld [vmem:[%s20939_s3 + $0x4d0] sm:$0xff]  }
 0x464   : > { %16046 = vmatprep.subr.bf16.mxu0 %v17069_v23 }
 0x465   : > { %15493 = vmatpush3.bf16.msra.mxu1 %v17066_v14  ;;  %v17092_v14 = vld [vmem:[%s20939_s3 + $0x550] sm:$0xff]  }
 0x466   : > { %15494 = vmatprep.subr.bf16.mxu1 %v17068_v11 }
 0x467   : > { %16047 = vmatpush3.bf16.msra.mxu0 %v17069_v23  ;;  %v9019_v23 = vld [vmem:[#allocation3 + $0x86] sm:$0xff] }
 0x468   : > { %16048 = vmatprep.subr.bf16.mxu0 %v17071_v16 }
 0x469   : > { %15495 = vmatpush3.bf16.msra.mxu1 %v17068_v11  ;;  %v5174_v11 = vld [vmem:[#allocation3 + $0x58] sm:$0xff] }
 0x46a   : > { %15496 = vmatprep.subr.bf16.mxu1 %v17070_v57 }
 0x46b   : > { %16049 = vmatpush3.bf16.msra.mxu0 %v17071_v16  ;;  %v17242_v16 = vld [vmem:[#allocation3 + $0xb5] sm:$0xff] }
 0x46c   : > { %16058 = vmatprep.subr.bf16.mxu0 %v17073_v59 }
 0x46d   : > { %15497 = vmatpush3.bf16.msra.mxu1 %v17070_v57  ;;  %v8883_v57 = vpack.c.bf16 %v17242_v16, %v17242_v16  ;;  %v17121_v16 = vld [vmem:[%s20939_s3 + $0x540] sm:$0xff]  }
 0x46e   : > { %15506 = vmatprep.subr.bf16.mxu1 %v17072_v51  ;;  %16051 = vmatmul.mubr.bf16.vlgmr.msra.gmra.mrb[52].mxu0 %v21085_v53  ;;  %v17096_v53 = vld [vmem:[%s20939_s3 + $0x560] sm:$0xff]  }
 0x46f   : > { %16054 = vmatprep.mubr.bf16.mxu0 %v8736_v19  ;;  %16059 = vmatpush3.bf16.msra.mxu0 %v17073_v59  ;;  %v17095_v59 = vld [vmem:[%s20939_s3 + $0x4d8] sm:$0xff]   ;;  %v5178_v19 = vpack.c.bf16 %v5174_v11, %v5174_v11 }
 0x470   : > { %15499 = vmatmul.mubr.bf16.vlgmr.msra.gmra.mrb[48].mxu1 %v5029_v61  ;;  %16060 = vmatprep.subr.bf16.mxu0 %v17075_v10  ;;  %v21086_v61 = vld [vmem:[#allocation38_spill] sm:$0xff]  ;;  %v17118_v11 = vld [vmem:[%s20939_s3 + $0x5b8] sm:$0xff]  }
 0x471   : > { %15502 = vmatprep.mubr.bf16.mxu1 %v5030_v44  ;;  %15507 = vmatpush3.bf16.msra.mxu1 %v17072_v51  ;;  %v17243_v51 = vld [vmem:[#allocation3 + $0x8e] sm:$0xff]  ;;  %v21088_v48 = vpack.c.bf16 %v21086_v61, %v21087_v22  ;;  %v17100_v44 = vld [vmem:[%s20939_s3 + $0x570] sm:$0xff]   ;;  %v17122_v22 = vld [vmem:[%s20939_s3 + $0x5c8] sm:$0xff]  }
 0x472   : > { %15508 = vmatprep.subr.bf16.mxu1 %v17074_v37 }
 0x473   : > { %16061 = vmatpush3.bf16.msra.mxu0 %v17075_v10  ;;  %v9026_v10 = vpack.c.bf16 %v17243_v51, %v9019_v23  ;;  %v17119_v23 = vld [vmem:[%s20939_s3 + $0x538] sm:$0xff]   ;;  %v17120_v51 = vld [vmem:[%s20939_s3 + $0x5c0] sm:$0xff]  }
 0x474   : > { %16062 = vmatprep.subr.bf16.mxu0 %v17077_v33 }
 0x475   : > { %15509 = vmatpush3.bf16.msra.mxu1 %v17074_v37  ;;  %v17099_v37 = vld [vmem:[%s20939_s3 + $0x4e8] sm:$0xff]  }
 0x476   : > { %15510 = vmatprep.subr.bf16.mxu1 %v17076_v1  ;;  %16055 = vmatmul.mubr.bf16.gmra.mrb[56].mxu0 %v8737_v6  ;;  %v17104_v6 = vld [vmem:[%s20939_s3 + $0x580] sm:$0xff]  }
 0x477   : > { %16063 = vmatpush3.bf16.msra.mxu0 %v17077_v33  ;;  %16074 = vmatprep.mubr.bf16.mxu0 %v8880_v52  ;;  %v17103_v33 = vld [vmem:[%s20939_s3 + $0x4f8] sm:$0xff]   ;;  %v17107_v52 = vld [vmem:[%s20939_s3 + $0x508] sm:$0xff]  }
 0x478   : > { %15503 = vmatmul.mubr.bf16.gmra.mrb[52].mxu1 %v5031_v63  ;;  %16064 = vmatprep.subr.bf16.mxu0 %v17079_v42  ;;  %v9028_v63 = vpack.c.bf16 %v17245_v31, %v20297_v49  ;;  %v17247_v31 = vld [vmem:[#allocation3 + $0x5a] sm:$0xff] }
 0x479   : > { %15511 = vmatpush3.bf16.msra.mxu1 %v17076_v1  ;;  %15522 = vmatprep.mubr.bf16.mxu1 %v5175_v62  ;;  %v17102_v1 = vld [vmem:[%s20939_s3 + $0x578] sm:$0xff]  }
 0x47a   : > { %15512 = vmatprep.subr.bf16.mxu1 %v17078_v17  ;;  %v21090_v62 = vld [vmem:[#allocation39_spill] sm:$0xff] }
 0x47b   : > { %16065 = vmatpush3.bf16.msra.mxu0 %v17079_v42  ;;  %v9027_v42 = vpack.c.bf16 %v20291_v0, %v17244_v36  ;;  %v5609_v36 = vld [vmem:[#allocation3 + $0x2b] sm:$0xff] }
 0x47c   : > { %16066 = vmatprep.subr.bf16.mxu0 %v17081_v26 }
 0x47d   : > { %15513 = vmatpush3.bf16.msra.mxu1 %v17078_v17  ;;  %v21089_v17 = vld [vmem:[#allocation40_spill] sm:$0xff] }
 0x47e   : > { %15514 = vmatprep.subr.bf16.mxu1 %v17080_v28 }
 0x47f   : > { %16067 = vmatpush3.bf16.msra.mxu0 %v17081_v26  ;;  %v21091_v26 = vpack.c.bf16 %v21089_v17, %v21090_v62  ;;  %v21104_v62 = vld [vmem:[#allocation50_spill] sm:$0xff] }
 0x480   : > { %16068 = vmatprep.subr.bf16.mxu0 %v17083_v46 }
 0x481   : > { %15515 = vmatpush3.bf16.msra.mxu1 %v17080_v28  ;;  %v17109_v28 = vld [vmem:[%s20939_s3 + $0x510] sm:$0xff]  }
 0x482   : > { %15516 = vmatprep.subr.bf16.mxu1 %v17082_v25 }
 0x483   : > { %16069 = vmatpush3.bf16.msra.mxu0 %v17083_v46  ;;  %v21092_v46 = vld [vmem:[#allocation42_spill] sm:$0xff] }
 0x484   : > { %16070 = vmatprep.subr.bf16.mxu0 %v17085_v7 }
 0x485   : > { %15517 = vmatpush3.bf16.msra.mxu1 %v17082_v25  ;;  %v21093_v25 = vld [vmem:[#allocation41_spill] sm:$0xff] }
 0x486   : > { %15518 = vmatprep.subr.bf16.mxu1 %v17084_v12 }
 0x487   : > { %16071 = vmatpush3.bf16.msra.mxu0 %v17085_v7  ;;  %v21094_v7 = vpack.c.bf16 %v21092_v46, %v21093_v25  ;;  %v17129_v46 = vld [vmem:[%s20939_s3 + $0x560] sm:$0xff]  }
 0x488   : > { %16072 = vmatprep.subr.bf16.mxu0 %v17087_v27  ;;  %v17128_v25 = vld [vmem:[%s20939_s3 + $0x5e0] sm:$0xff]  }
 0x489   : > { %15519 = vmatpush3.bf16.msra.mxu1 %v17084_v12  ;;  %v17108_v12 = vld [vmem:[%s20939_s3 + $0x590] sm:$0xff]  }
 0x48a   : > { %15520 = vmatprep.subr.bf16.mxu1 %v17086_v60 }
 0x48b   : > { %16073 = vmatpush3.bf16.msra.mxu0 %v17087_v27  ;;  %v9165_v27 = vld [vmem:[#allocation3 + $0x8c] sm:$0xff] }
 0x48c   : > { %16082 = vmatprep.subr.bf16.mxu0 %v17089_v45 }
 0x48d   : > { %15521 = vmatpush3.bf16.msra.mxu1 %v17086_v60  ;;  %v9166_v60 = vld [vmem:[#allocation3 + $0x94] sm:$0xff] }
 0x48e   : > { %15530 = vmatprep.subr.bf16.mxu1 %v17088_v5  ;;  %16075 = vmatmul.mubr.bf16.vlgmr.msra.gmra.mrb[52].mxu0 %v8881_v56  ;;  %v9172_v56 = vpack.c.bf16 %v9166_v60, %v9165_v27  ;;  %v17133_v27 = vld [vmem:[%s20939_s3 + $0x570] sm:$0xff]  }
 0x48f   : > { %16078 = vmatprep.mubr.bf16.mxu0 %v8882_v47  ;;  %16083 = vmatpush3.bf16.msra.mxu0 %v17089_v45  ;;  %v5321_v45 = vld [vmem:[#allocation3 + $0x59] sm:$0xff]  ;;  %v21096_v47 = vld [vmem:[#allocation43_spill] sm:$0xff] }
 0x490   : > { %15523 = vmatmul.mubr.bf16.vlgmr.msra.gmra.mrb[48].mxu1 %v5176_v20  ;;  %16084 = vmatprep.subr.bf16.mxu0 %v17091_v9  ;;  %v5325_v2 = vpack.c.bf16 %v5321_v45, %v5321_v45  ;;  %v21097_v20 = vpack.c.bf16 %v21095_v18, %v21096_v47  ;;  %v17132_v60 = vld [vmem:[%s20939_s3 + $0x5f0] sm:$0xff]   ;;  %v17135_v45 = vld [vmem:[%s20939_s3 + $0x578] sm:$0xff]  }
 0x491   : > { %15526 = vmatprep.mubr.bf16.mxu1 %v5177_v8  ;;  %15531 = vmatpush3.bf16.msra.mxu1 %v17088_v5  ;;  %v17246_v5 = vld [vmem:[#allocation3 + $0xb6] sm:$0xff] }
 0x492   : > { %15532 = vmatprep.subr.bf16.mxu1 %v17090_v13  ;;  %v9029_v54 = vpack.c.bf16 %v17246_v5, %v17246_v5  ;;  %v17114_v8 = vld [vmem:[%s20939_s3 + $0x5a8] sm:$0xff]   ;;  %v17134_v5 = vld [vmem:[%s20939_s3 + $0x5f8] sm:$0xff]  }
 0x493   : > { %16085 = vmatpush3.bf16.msra.mxu0 %v17091_v9  ;;  %v17110_v9 = vld [vmem:[%s20939_s3 + $0x598] sm:$0xff]   ;;  %v5611_v18 = vld [vmem:[#allocation3 + $0x3b] sm:$0xff] }
 0x494   : > { %16086 = vmatprep.subr.bf16.mxu0 %v17093_v50 }
 0x495   : > { %15533 = vmatpush3.bf16.msra.mxu1 %v17090_v13  ;;  %v17115_v13 = vld [vmem:[%s20939_s3 + $0x528] sm:$0xff]  }
 0x496   : > { %15534 = vmatprep.subr.bf16.mxu1 %v17092_v14  ;;  %16079 = vmatmul.mubr.bf16.gmra.mrb[56].mxu0 %v8883_v57  ;;  %v9167_v57 = vld [vmem:[#allocation3 + $0x9c] sm:$0xff] }
 0x497   : > { %16087 = vmatpush3.bf16.msra.mxu0 %v17093_v50  ;;  %16098 = vmatprep.mubr.bf16.mxu0 %v9026_v10  ;;  %v17117_v50 = vld [vmem:[%s20939_s3 + $0x530] sm:$0xff]   ;;  %v9169_v10 = vld [vmem:[#allocation3 + $0xac] sm:$0xff] }
 0x498   : > { %15527 = vmatmul.mubr.bf16.gmra.mrb[52].mxu1 %v5178_v19  ;;  %16088 = vmatprep.subr.bf16.mxu0 %v17095_v59  ;;  %v9170_v19 = vld [vmem:[#allocation3 + $0xb4] sm:$0xff] }
 0x499   : > { %15535 = vmatpush3.bf16.msra.mxu1 %v17092_v14  ;;  %15546 = vmatprep.mubr.bf16.mxu1 %v21088_v48  ;;  %v17116_v14 = vld [vmem:[%s20939_s3 + $0x5b0] sm:$0xff]   ;;  %v9174_v61 = vpack.c.bf16 %v9170_v19, %v9169_v10  ;;  %v17145_v10 = vld [vmem:[%s20939_s3 + $0x5a0] sm:$0xff]  }
 0x49a   : > { %15536 = vmatprep.subr.bf16.mxu1 %v17094_v58  ;;  %v21098_v48 = vld [vmem:[#allocation46_spill] sm:$0xff]  ;;  %v17144_v19 = vld [vmem:[%s20939_s3 + $0x620] sm:$0xff]  }
 0x49b   : > { %16089 = vmatpush3.bf16.msra.mxu0 %v17095_v59  ;;  %v9168_v59 = vld [vmem:[#allocation3 + $0xa4] sm:$0xff] }
 0x49c   : > { %16090 = vmatprep.subr.bf16.mxu0 %v17097_v41 }
 0x49d   : > { %15537 = vmatpush3.bf16.msra.mxu1 %v17094_v58  ;;  %v9173_v58 = vpack.c.bf16 %v9168_v59, %v9167_v57  ;;  %v21107_v57 = vld [vmem:[#allocation52_spill] sm:$0xff]  ;;  %v21108_v59 = vld [vmem:[#allocation51_spill] sm:$0xff] }
 0x49e   : > { %15538 = vmatprep.subr.bf16.mxu1 %v17096_v53 }
 0x49f   : > { %16091 = vmatpush3.bf16.msra.mxu0 %v17097_v41  ;;  %v17123_v41 = vld [vmem:[%s20939_s3 + $0x548] sm:$0xff]  }
 0x4a0   : > { %16092 = vmatprep.subr.bf16.mxu0 %v17099_v37 }
 0x4a1   : > { %15539 = vmatpush3.bf16.msra.mxu1 %v17096_v53  ;;  %v21099_v53 = vld [vmem:[#allocation45_spill] sm:$0xff] }
 0x4a2   : > { %15540 = vmatprep.subr.bf16.mxu1 %v17098_v43 }
 0x4a3   : > { %16093 = vmatpush3.bf16.msra.mxu0 %v17099_v37  ;;  %v21100_v37 = vpack.c.bf16 %v21098_v48, %v21099_v53  ;;  %v17151_v48 = vld [vmem:[%s20939_s3 + $0x5b8] sm:$0xff]  }
 0x4a4   : > { %16094 = vmatprep.subr.bf16.mxu0 %v17101_v39  ;;  %v17150_v53 = vld [vmem:[%s20939_s3 + $0x638] sm:$0xff]  }
 0x4a5   : > { %15541 = vmatpush3.bf16.msra.mxu1 %v17098_v43  ;;  %v17125_v43 = vld [vmem:[%s20939_s3 + $0x550] sm:$0xff]  }
 0x4a6   : > { %15542 = vmatprep.subr.bf16.mxu1 %v17100_v44 }
 0x4a7   : > { %16095 = vmatpush3.bf16.msra.mxu0 %v17101_v39  ;;  %v21101_v39 = vld [vmem:[#allocation48_spill] sm:$0xff] }
 0x4a8   : > { %16096 = vmatprep.subr.bf16.mxu0 %v17103_v33 }
 0x4a9   : > { %15543 = vmatpush3.bf16.msra.mxu1 %v17100_v44  ;;  %v21102_v44 = vld [vmem:[#allocation47_spill] sm:$0xff] }
 0x4aa   : > { %15544 = vmatprep.subr.bf16.mxu1 %v17102_v1 }
 0x4ab   : > { %16097 = vmatpush3.bf16.msra.mxu0 %v17103_v33  ;;  %v21103_v33 = vpack.c.bf16 %v21101_v39, %v21102_v44  ;;  %v9465_v39 = vpack.c.bf16 %v20297_v49, %v20291_v0  ;;  %v5761_v44 = vld [vmem:[#allocation3 + $0x54] sm:$0xff]  ;;  %v17154_v0 = vld [vmem:[%s20939_s3 + $0x5d0] sm:$0xff]  }
 0x4ac   : > { %16106 = vmatprep.subr.bf16.mxu0 %v17105_v32  ;;  %v9603_v49 = vld [vmem:[#allocation3 + $0x8f] sm:$0xff] }
 0x4ad   : > { %15545 = vmatpush3.bf16.msra.mxu1 %v17102_v1  ;;  %v9171_v1 = vld [vmem:[#allocation3 + $0xbc] sm:$0xff] }
 0x4ae   : > { %15554 = vmatprep.subr.bf16.mxu1 %v17104_v6  ;;  %16099 = vmatmul.mubr.bf16.vlgmr.msra.gmra.mrb[52].mxu0 %v9027_v42  ;;  %v5610_v42 = vld [vmem:[#allocation3 + $0x33] sm:$0xff] }
 0x4af   : > { %16102 = vmatprep.mubr.bf16.mxu0 %v9028_v63  ;;  %16107 = vmatpush3.bf16.msra.mxu0 %v17105_v32  ;;  %v17124_v32 = vld [vmem:[%s20939_s3 + $0x5d0] sm:$0xff]   ;;  %v5472_v63 = vpack.c.bf16 %v17247_v31, %v17247_v31  ;;  %v5616_v17 = vpack.c.bf16 %v5610_v42, %v5609_v36  ;;  %v9604_v42 = vld [vmem:[#allocation3 + $0x97] sm:$0xff] }
 0x4b0   : > { %15547 = vmatmul.mubr.bf16.vlgmr.msra.gmra.mrb[48].mxu1 %v21091_v26  ;;  %16108 = vmatprep.subr.bf16.mxu0 %v17107_v52  ;;  %v21105_v26 = vld [vmem:[#allocation49_spill] sm:$0xff]  ;;  %v17248_v31 = vld [vmem:[#allocation3 + $0xbe] sm:$0xff]  ;;  %v9610_v38 = vpack.c.bf16 %v9604_v42, %v9603_v49 }
 0x4b1   : > { %15550 = vmatprep.mubr.bf16.mxu1 %v21094_v7  ;;  %15555 = vmatpush3.bf16.msra.mxu1 %v17104_v6  ;;  %v9175_v6 = vpack.c.bf16 %v9171_v1, %v9171_v1  ;;  %v17131_v7 = vld [vmem:[%s20939_s3 + $0x568] sm:$0xff]  }
 0x4b2   : > { %15556 = vmatprep.subr.bf16.mxu1 %v17106_v15  ;;  %v5758_v1 = vld [vmem:[#allocation3 + $0x3c] sm:$0xff] }
 0x4b3   : > { %16109 = vmatpush3.bf16.msra.mxu0 %v17107_v52  ;;  %v17127_v52 = vld [vmem:[%s20939_s3 + $0x558] sm:$0xff]  }
 0x4b4   : > { %16110 = vmatprep.subr.bf16.mxu0 %v17109_v28 }
 0x4b5   : > { %15557 = vmatpush3.bf16.msra.mxu1 %v17106_v15  ;;  %v17126_v15 = vld [vmem:[%s20939_s3 + $0x5d8] sm:$0xff]  }
 0x4b6   : > { %15558 = vmatprep.subr.bf16.mxu1 %v17108_v12  ;;  %16103 = vmatmul.mubr.bf16.gmra.mrb[56].mxu0 %v9029_v54  ;;  %v17137_v54 = vld [vmem:[%s20939_s3 + $0x580] sm:$0xff]  }
 0x4b7   : > { %16111 = vmatpush3.bf16.msra.mxu0 %v17109_v28  ;;  %16122 = vmatprep.mubr.bf16.mxu0 %v9172_v56  ;;  %v21106_v28 = vpack.c.bf16 %v21104_v62, %v21105_v26  ;;  %v5612_v56 = vld [vmem:[#allocation3 + $0x43] sm:$0xff] }
 0x4b8   : > { %15551 = vmatmul.mubr.bf16.gmra.mrb[52].mxu1 %v5325_v2  ;;  %16112 = vmatprep.subr.bf16.mxu0 %v17111_v55  ;;  %v9319_v2 = vpack.c.bf16 %v20240_v3, %v20234_v30  ;;  %v5617_v47 = vpack.c.bf16 %v5612_v56, %v5611_v18  ;;  %v17141_v30 = vld [vmem:[%s20939_s3 + $0x590] sm:$0xff]   ;;  %v17159_v26 = vld [vmem:[%s20939_s3 + $0x5f8] sm:$0xff]   ;;  %v9750_v56 = vld [vmem:[#allocation3 + $0x98] sm:$0xff] }
 0x4b9   : > { %15559 = vmatpush3.bf16.msra.mxu1 %v17108_v12  ;;  %15570 = vmatprep.mubr.bf16.mxu1 %v21097_v20  ;;  %v17130_v12 = vld [vmem:[%s20939_s3 + $0x5e8] sm:$0xff]   ;;  %v5613_v20 = vld [vmem:[#allocation3 + $0x4b] sm:$0xff]  ;;  %v17158_v62 = vld [vmem:[%s20939_s3 + $0x5f0] sm:$0xff]  }
 0x4ba   : > { %15560 = vmatprep.subr.bf16.mxu1 %v17110_v9  ;;  %v9317_v3 = vld [vmem:[#allocation3 + $0xbd] sm:$0xff]  ;;  %v17164_v18 = vld [vmem:[%s20939_s3 + $0x620] sm:$0xff]  }
 0x4bb   : > { %16113 = vmatpush3.bf16.msra.mxu0 %v17111_v55  ;;  %v17136_v55 = vld [vmem:[%s20939_s3 + $0x600] sm:$0xff]  }
 0x4bc   : > { %16114 = vmatprep.subr.bf16.mxu0 %v17113_v29 }
 0x4bd   : > { %15561 = vmatpush3.bf16.msra.mxu1 %v17110_v9  ;;  %v5614_v9 = vld [vmem:[#allocation3 + $0x53] sm:$0xff] }
 0x4be   : > { %15562 = vmatprep.subr.bf16.mxu1 %v17112_v21 }
 0x4bf   : > { %16115 = vmatpush3.bf16.msra.mxu0 %v17113_v29  ;;  %v17139_v29 = vld [vmem:[%s20939_s3 + $0x588] sm:$0xff]  }
 0x4c0   : > { %16116 = vmatprep.subr.bf16.mxu0 %v17115_v13 }
 0x4c1   : > { %15563 = vmatpush3.bf16.msra.mxu1 %v17112_v21  ;;  %v17138_v21 = vld [vmem:[%s20939_s3 + $0x608] sm:$0xff]  }
 0x4c2   : > { %15564 = vmatprep.subr.bf16.mxu1 %v17114_v8 }
 0x4c3   : > { %16117 = vmatpush3.bf16.msra.mxu0 %v17115_v13  ;;  %v5618_v13 = vpack.c.bf16 %v5614_v9, %v5613_v20  ;;  %v17163_v9 = vld [vmem:[%s20939_s3 + $0x618] sm:$0xff]   ;;  %v17166_v20 = vld [vmem:[%s20939_s3 + $0x630] sm:$0xff]  }
 0x4c4   : > { %16118 = vmatprep.subr.bf16.mxu0 %v17117_v50 }
 0x4c5   : > { %15565 = vmatpush3.bf16.msra.mxu1 %v17114_v8  ;;  %v17140_v8 = vld [vmem:[%s20939_s3 + $0x610] sm:$0xff]  }
 0x4c6   : > { %15566 = vmatprep.subr.bf16.mxu1 %v17116_v14 }
 0x4c7   : > { %16119 = vmatpush3.bf16.msra.mxu0 %v17117_v50  ;;  %v5615_v50 = vld [vmem:[#allocation3 + $0x5b] sm:$0xff] }
 0x4c8   : > { %16120 = vmatprep.subr.bf16.mxu0 %v17119_v23 }
 0x4c9   : > { %15567 = vmatpush3.bf16.msra.mxu1 %v17116_v14  ;;  %v9321_v14 = vpack.c.bf16 %v9317_v3, %v9317_v3  ;;  %v9753_v3 = vld [vmem:[#allocation3 + $0xb0] sm:$0xff] }
 0x4ca   : > { %15568 = vmatprep.subr.bf16.mxu1 %v17118_v11 }
 0x4cb   : > { %16121 = vmatpush3.bf16.msra.mxu0 %v17119_v23  ;;  %v5619_v23 = vpack.c.bf16 %v5615_v50, %v5615_v50 }
 0x4cc   : > { %16130 = vmatprep.subr.bf16.mxu0 %v17121_v16 }
 0x4cd   : > { %15569 = vmatpush3.bf16.msra.mxu1 %v17118_v11  ;;  %v17142_v11 = vld [vmem:[%s20939_s3 + $0x618] sm:$0xff]  }
 0x4ce   : > { %15578 = vmatprep.subr.bf16.mxu1 %v17120_v51  ;;  %16123 = vmatmul.mubr.bf16.vlgmr.msra.gmra.mrb[52].mxu0 %v9173_v58  ;;  %v17147_v58 = vld [vmem:[%s20939_s3 + $0x5a8] sm:$0xff]  }
 0x4cf   : > { %16126 = vmatprep.mubr.bf16.mxu0 %v9174_v61  ;;  %16131 = vmatpush3.bf16.msra.mxu0 %v17121_v16  ;;  %v5763_v16 = vpack.c.bf16 %v5757_v4, %v5756_v35  ;;  %v17149_v61 = vld [vmem:[%s20939_s3 + $0x5b0] sm:$0xff]  }
 0x4d0   : > { %15571 = vmatmul.mubr.bf16.vlgmr.msra.gmra.mrb[48].mxu1 %v21100_v37  ;;  %16132 = vmatprep.subr.bf16.mxu0 %v17123_v41  ;;  %v17152_v37 = vld [vmem:[%s20939_s3 + $0x5c0] sm:$0xff]   ;;  %v9755_v35 = vld [vmem:[#allocation3 + $0xc0] sm:$0xff] }
 0x4d1   : > { %15574 = vmatprep.mubr.bf16.mxu1 %v21103_v33  ;;  %15579 = vmatpush3.bf16.msra.mxu1 %v17120_v51  ;;  %v21109_v51 = vpack.c.bf16 %v21107_v57, %v21108_v59  ;;  %v17153_v33 = vld [vmem:[%s20939_s3 + $0x5c8] sm:$0xff]   ;;  %v9759_v4 = vpack.c.bf16 %v9755_v35, %v9755_v35  ;;  %v5932_v59 = vlaneseq }
 0x4d2   : > { %15580 = vmatprep.subr.bf16.mxu1 %v17122_v22 }
 0x4d3   : > { %16133 = vmatpush3.bf16.msra.mxu0 %v17123_v41  ;;  %v17146_v41 = vld [vmem:[%s20939_s3 + $0x628] sm:$0xff]  }
 0x4d4   : > { %16134 = vmatprep.subr.bf16.mxu0 %v17125_v43 }
 0x4d5   : > { %15581 = vmatpush3.bf16.msra.mxu1 %v17122_v22  ;;  %v17148_v22 = vld [vmem:[%s20939_s3 + $0x630] sm:$0xff]  }
 0x4d6   : > { %15582 = vmatprep.subr.bf16.mxu1 %v17124_v32  ;;  %16127 = vmatmul.mubr.bf16.gmra.mrb[56].mxu0 %v9175_v6  ;;  %v5760_v6 = vld [vmem:[#allocation3 + $0x4c] sm:$0xff] }
 0x4d7   : > { %16135 = vmatpush3.bf16.msra.mxu0 %v17125_v43  ;;  %16146 = vmatprep.mubr.bf16.mxu0 %v21106_v28  ;;  %v5759_v43 = vld [vmem:[#allocation3 + $0x44] sm:$0xff]  ;;  %v5765_v36 = vpack.c.bf16 %v5761_v44, %v5760_v6  ;;  %v17160_v28 = vld [vmem:[%s20939_s3 + $0x600] sm:$0xff]  }
 0x4d8   : > { %15575 = vmatmul.mubr.bf16.gmra.mrb[52].mxu1 %v5472_v63  ;;  %16136 = vmatprep.subr.bf16.mxu0 %v17127_v52  ;;  %v9467_v63 = vpack.c.bf16 %v17248_v31, %v17248_v31 }
 0x4d9   : > { %15583 = vmatpush3.bf16.msra.mxu1 %v17124_v32  ;;  %15594 = vmatprep.mubr.bf16.mxu1 %v5616_v17  ;;  %v5764_v32 = vpack.c.bf16 %v5759_v43, %v5758_v1  ;;  %v17157_v17 = vld [vmem:[%s20939_s3 + $0x5e8] sm:$0xff]  }
 0x4da   : > { %15584 = vmatprep.subr.bf16.mxu1 %v17126_v15 }
 0x4db   : > { %16137 = vmatpush3.bf16.msra.mxu0 %v17127_v52  ;;  %v5762_v52 = vld [vmem:[#allocation3 + $0x5c] sm:$0xff] }
 0x4dc   : > { %16138 = vmatprep.subr.bf16.mxu0 %v17129_v46 }
 0x4dd   : > { %15585 = vmatpush3.bf16.msra.mxu1 %v17126_v15  ;;  %v17156_v15 = vld [vmem:[%s20939_s3 + $0x5e0] sm:$0xff]  }
 0x4de   : > { %15586 = vmatprep.subr.bf16.mxu1 %v17128_v25 }
 0x4df   : > { %16139 = vmatpush3.bf16.msra.mxu0 %v17129_v46  ;;  %v9605_v46 = vld [vmem:[#allocation3 + $0x9f] sm:$0xff] }
 0x4e0   : > { %16140 = vmatprep.subr.bf16.mxu0 %v17131_v7 }
 0x4e1   : > { %15587 = vmatpush3.bf16.msra.mxu1 %v17128_v25  ;;  %v9606_v25 = vld [vmem:[#allocation3 + $0xa7] sm:$0xff] }
 0x4e2   : > { %15588 = vmatprep.subr.bf16.mxu1 %v17130_v12 }
 0x4e3   : > { %16141 = vmatpush3.bf16.msra.mxu0 %v17131_v7  ;;  %v9607_v7 = vld [vmem:[#allocation3 + $0xaf] sm:$0xff] }
 0x4e4   : > { %16142 = vmatprep.subr.bf16.mxu0 %v17133_v27 }
 0x4e5   : > { %15589 = vmatpush3.bf16.msra.mxu1 %v17130_v12  ;;  %v9608_v12 = vld [vmem:[#allocation3 + $0xb7] sm:$0xff] }
 0x4e6   : > { %15590 = vmatprep.subr.bf16.mxu1 %v17132_v60 }
 0x4e7   : > { %16143 = vmatpush3.bf16.msra.mxu0 %v17133_v27  ;;  %v9611_v27 = vpack.c.bf16 %v9606_v25, %v9605_v46 }
 0x4e8   : > { %16144 = vmatprep.subr.bf16.mxu0 %v17135_v45 }
 0x4e9   : > { %15591 = vmatpush3.bf16.msra.mxu1 %v17132_v60  ;;  %v17161_v60 = vld [vmem:[%s20939_s3 + $0x608] sm:$0xff]  }
 0x4ea   : > { %15592 = vmatprep.subr.bf16.mxu1 %v17134_v5 }
 0x4eb   : > { %16145 = vmatpush3.bf16.msra.mxu0 %v17135_v45  ;;  %v9612_v45 = vpack.c.bf16 %v9608_v12, %v9607_v7 }
 0x4ec   : > { %16154 = vmatprep.subr.bf16.mxu0 %v17137_v54 }
 0x4ed   : > { %15593 = vmatpush3.bf16.msra.mxu1 %v17134_v5  ;;  %v17162_v5 = vld [vmem:[%s20939_s3 + $0x610] sm:$0xff]  }
 0x4ee   : > { %15602 = vmatprep.subr.bf16.mxu1 %v17136_v55  ;;  %16147 = vmatmul.mubr.bf16.vlgmr.msra.gmra.mrb[52].mxu0 %v9319_v2 }
 0x4ef   : > { %16150 = vmatprep.mubr.bf16.mxu0 %v9320_v24  ;;  %16155 = vmatpush3.bf16.msra.mxu0 %v17137_v54  ;;  %v17143_v24 = vld [vmem:[%s20939_s3 + $0x598] sm:$0xff]   ;;  %v9609_v54 = vld [vmem:[#allocation3 + $0xbf] sm:$0xff] }
 0x4f0   : > { %15595 = vmatmul.mubr.bf16.vlgmr.msra.gmra.mrb[48].mxu1 %v5617_v47  ;;  %16156 = vmatprep.subr.bf16.mxu0 %v17139_v29  ;;  %v9613_v2 = vpack.c.bf16 %v9609_v54, %v9609_v54  ;;  %v17165_v47 = vld [vmem:[%s20939_s3 + $0x628] sm:$0xff]  }
 0x4f1   : > { %15598 = vmatprep.mubr.bf16.mxu1 %v5618_v13  ;;  %15603 = vmatpush3.bf16.msra.mxu1 %v17136_v55  ;;  %v9749_v55 = vld [vmem:[#allocation3 + $0x90] sm:$0xff]  ;;  %v9751_v13 = vld [vmem:[#allocation3 + $0xa0] sm:$0xff] }
 0x4f2   : > { %15604 = vmatprep.subr.bf16.mxu1 %v17138_v21 }
 0x4f3   : > { %16157 = vmatpush3.bf16.msra.mxu0 %v17139_v29  ;;  %v9756_v29 = vpack.c.bf16 %v9750_v56, %v9749_v55 }
 0x4f4   : > { %16158 = vmatprep.subr.bf16.mxu0 %v17141_v30 }
 0x4f5   : > { %15605 = vmatpush3.bf16.msra.mxu1 %v17138_v21  ;;  %v17167_v21 = vld [vmem:[%s20939_s3 + $0x638] sm:$0xff]  }
 0x4f6   : > { %15606 = vmatprep.subr.bf16.mxu1 %v17140_v8  ;;  %16151 = vmatmul.mubr.bf16.gmra.mrb[56].mxu0 %v9321_v14 }
 0x4f7   : > { %16159 = vmatpush3.bf16.msra.mxu0 %v17141_v30  ;;  %16170 = vmatprep.mubr.bf16.mxu0 %v21109_v51  ;;  %v9752_v30 = vld [vmem:[#allocation3 + $0xa8] sm:$0xff] }
 0x4f8   : > { %15599 = vmatmul.mubr.bf16.gmra.mrb[52].mxu1 %v5619_v23  ;;  %16160 = vmatprep.subr.bf16.mxu0 %v17143_v24  ;;  %v9757_v50 = vpack.c.bf16 %v9752_v30, %v9751_v13 }
 0x4f9   : > { %15607 = vmatpush3.bf16.msra.mxu1 %v17140_v8  ;;  %15618 = vmatprep.mubr.bf16.mxu1 %v5763_v16  ;;  %v9754_v8 = vld [vmem:[#allocation3 + $0xb8] sm:$0xff] }
 0x4fa   : > { %15608 = vmatprep.subr.bf16.mxu1 %v17142_v11  ;;  %v9758_v14 = vpack.c.bf16 %v9754_v8, %v9753_v3 }
 0x4fb   : > { %16161 = vmatpush3.bf16.msra.mxu0 %v17143_v24  ;;  %v13880_v24 = vld [vmem:[%s20944_s8] ss:$0 sm:$0xff] }
 0x4fc   : > { %16162 = vmatprep.subr.bf16.mxu0 %v17145_v10  ;;  %9981 = vst [vmem:[#allocation10] sm:$0x3] %v13880_v24 }
 0x4fd   : > { %15609 = vmatpush3.bf16.msra.mxu1 %v17142_v11 }
 0x4fe   : > { %15610 = vmatprep.subr.bf16.mxu1 %v17144_v19 }
 0x4ff   : > { %16163 = vmatpush3.bf16.msra.mxu0 %v17145_v10  ;;  %v17812_v10 = vmov 1983009808  }
 0x500   : > { %16164 = vmatprep.subr.bf16.mxu0 %v17147_v58 }
 0x501   : > { %15611 = vmatpush3.bf16.msra.mxu1 %v17144_v19  ;;  %v5930_v19 = vunpack.c.l.s4 %v17812_v10 }
 0x502   : > { %15612 = vmatprep.subr.bf16.mxu1 %v17146_v41 }
 0x503   : > { %16165 = vmatpush3.bf16.msra.mxu0 %v17147_v58  ;;  %v5931_v43 = vunpack.c.0.s8 %v5930_v19 }
 0x504   : > { %16166 = vmatprep.subr.bf16.mxu0 %v17149_v61 }
 0x505   : > { %15613 = vmatpush3.bf16.msra.mxu1 %v17146_v41 }
 0x506   : > { %15614 = vmatprep.subr.bf16.mxu1 %v17148_v22 }
 0x507   : > { %16167 = vmatpush3.bf16.msra.mxu0 %v17149_v61 }
 0x508   : > { %16168 = vmatprep.subr.bf16.mxu0 %v17151_v48 }
 0x509   : > { %15615 = vmatpush3.bf16.msra.mxu1 %v17148_v22 }
 0x50a   : > { %15616 = vmatprep.subr.bf16.mxu1 %v17150_v53 }
 0x50b   : > { %16169 = vmatpush3.bf16.msra.mxu0 %v17151_v48  ;;  %v5933_v48 = vshrl.u32 %v5932_v59, 7 }
 0x50c   : > { %16178 = vmatprep.subr.bf16.mxu0 %v17152_v37 }
 0x50d   : > { %15617 = vmatpush3.bf16.msra.mxu1 %v17150_v53 }
 0x50e   : > { %16171 = vmatmul.mubr.bf16.vlgmr.msra.gmra.mrb[52].mxu0 %v9465_v39 }
 0x50f   : > { %16174 = vmatprep.mubr.bf16.mxu0 %v9466_v40  ;;  %16179 = vmatpush3.bf16.msra.mxu0 %v17152_v37  ;;  %v5766_v40 = vpack.c.bf16 %v5762_v52, %v5762_v52 }
 0x510   : > { %15619 = vmatmul.mubr.bf16.vlgmr.msra.gmra.mrb[48].mxu1 %v5764_v32  ;;  %16180 = vmatprep.subr.bf16.mxu0 %v17153_v33 }
 0x511   : > { %15622 = vmatprep.mubr.bf16.mxu1 %v5765_v36 }
 0x513   : > { %16181 = vmatpush3.bf16.msra.mxu0 %v17153_v33  ;;  %v20523_v33 = vld [vmem:[%s20940_s4] ss:$0 sm:$0xff] }
 0x514   : > { %16182 = vmatprep.subr.bf16.mxu0 %v17154_v0 }
 0x516   : > { %16175 = vmatmul.mubr.bf16.gmra.mrb[56].mxu0 %v9467_v63 }
 0x517   : > { %16183 = vmatpush3.bf16.msra.mxu0 %v17154_v0  ;;  %16194 = vmatprep.mubr.bf16.mxu0 %v9610_v38  ;;  %v20525_v0 = vsub.s32 %v5931_v43, %v5933_v48 }
 0x518   : > { %15623 = vmatmul.mubr.bf16.gmra.mrb[52].mxu1 %v5766_v40  ;;  %16184 = vmatprep.subr.bf16.mxu0 %v17155_v34 }
 0x51b   : > { %16185 = vmatpush3.bf16.msra.mxu0 %v17155_v34 }
 0x51c   : > { %16186 = vmatprep.subr.bf16.mxu0 %v17156_v15 }
 0x51f   : > { %16187 = vmatpush3.bf16.msra.mxu0 %v17156_v15 }
 0x520   : > { %16188 = vmatprep.subr.bf16.mxu0 %v17157_v17 }
 0x523   : > { %16189 = vmatpush3.bf16.msra.mxu0 %v17157_v17 }
 0x524   : > { %16190 = vmatprep.subr.bf16.mxu0 %v17158_v62 }
 0x527   : > { %16191 = vmatpush3.bf16.msra.mxu0 %v17158_v62 }
 0x528   : > { %16192 = vmatprep.subr.bf16.mxu0 %v17159_v26 }
 0x52b   : > { %16193 = vmatpush3.bf16.msra.mxu0 %v17159_v26 }
 0x52c   : > { %16202 = vmatprep.subr.bf16.mxu0 %v17160_v28 }
 0x52e   : > { %16195 = vmatmul.mubr.bf16.vlgmr.msra.gmra.mrb[52].mxu0 %v9611_v27 }
 0x52f   : > { %16198 = vmatprep.mubr.bf16.mxu0 %v9612_v45  ;;  %16203 = vmatpush3.bf16.msra.mxu0 %v17160_v28 }
 0x530   : > { %16204 = vmatprep.subr.bf16.mxu0 %v17161_v60 }
 0x533   : > { %16205 = vmatpush3.bf16.msra.mxu0 %v17161_v60 }
 0x534   : > { %16206 = vmatprep.subr.bf16.mxu0 %v17162_v5 }
 0x536   : > { %16199 = vmatmul.mubr.bf16.gmra.mrb[56].mxu0 %v9613_v2 }
 0x537   : > { %16207 = vmatpush3.bf16.msra.mxu0 %v17162_v5  ;;  %16218 = vmatprep.mubr.bf16.mxu0 %v9756_v29 }
 0x538   : > { %16208 = vmatprep.subr.bf16.mxu0 %v17163_v9 }
 0x53b   : > { %16209 = vmatpush3.bf16.msra.mxu0 %v17163_v9 }
 0x53c   : > { %16210 = vmatprep.subr.bf16.mxu0 %v17164_v18 }
 0x53f   : > { %16211 = vmatpush3.bf16.msra.mxu0 %v17164_v18 }
 0x540   : > { %16212 = vmatprep.subr.bf16.mxu0 %v17165_v47 }
 0x543   : > { %16213 = vmatpush3.bf16.msra.mxu0 %v17165_v47 }
 0x544   : > { %16214 = vmatprep.subr.bf16.mxu0 %v17166_v20 }
 0x547   : > { %16215 = vmatpush3.bf16.msra.mxu0 %v17166_v20 }
 0x548   : > { %16216 = vmatprep.subr.bf16.mxu0 %v17167_v21 }
 0x54b   : > { %16217 = vmatpush3.bf16.msra.mxu0 %v17167_v21 }
 0x54e   : > { %16219 = vmatmul.mubr.bf16.vlgmr.msra.gmra.mrb[52].mxu0 %v9757_v50 }
 0x54f   : > { %16222 = vmatprep.mubr.bf16.mxu0 %v9758_v14 }
 0x556   : > { %16223 = vmatmul.mubr.bf16.gmra.mrb[56].mxu0 %v9759_v4 }
 0x5e3   : > { %v15620_v23 = vpop.f32.mrb[48].mxu1 }
 0x5e4   : > { %5905 = vst [vmem:[#allocation4 + $0x10] sm:$0xff] %v15620_v23  ;;  %v5866_v11 = vpop.f32.mrb[49].mxu1 }
 0x5e5   : > { %5903 = vst [vmem:[#allocation4] sm:$0xff] %v5866_v11  ;;  %v15621_v16 = vpop.f32.mrb[50].mxu1 }
 0x5e6   : > { %5906 = vst [vmem:[#allocation4 + $0x18] sm:$0xff] %v15621_v16  ;;  %v5869_v57 = vpop.f32.mrb[51].mxu1 }
 0x5e7   : > { %5904 = vst [vmem:[#allocation4 + $0x8] sm:$0xff] %v5869_v57 }
 0x5eb   : > { %v15624_v51 = vpop.f32.mrb[52].mxu1 }
 0x5ec   : > { %5909 = vst [vmem:[#allocation4 + $0x30] sm:$0xff] %v15624_v51  ;;  %v5882_v58 = vpop.f32.mrb[53].mxu1  ;;  %v5910_v22 = vld [vmem:[#allocation4] ss:$2 sm:$0x7] }
 0x5ed   : > { %5907 = vst [vmem:[#allocation4 + $0x20] sm:$0xff] %v5882_v58  ;;  %v15625_v41 = vpop.f32.mrb[54].mxu1  ;;  %v5912_v53 = vld [vmem:[#allocation4 + $0x1] ss:$2 sm:$0x7] }
 0x5ee   : > { %v5885_v61 = vpop.f32.mrb[55].mxu1  ;;  %v5914_v37 = vld [vmem:[#allocation4 + $0xa] ss:$2 sm:$0x7]  ;;  %v5917_v44 = vmax.f32 %v5910_v22, %v5912_v53 }
 0x5ef   : > { %5908 = vst [vmem:[#allocation4 + $0x28] sm:$0xff] %v5885_v61  ;;  %v5916_v39 = vld [vmem:[#allocation4 + $0xb] ss:$2 sm:$0x7] }
 0x5f0   : > { %v5918_v1 = vmax.f32 %v5914_v37, %v5916_v39  ;;  %v5944_v32 = vld [vmem:[#allocation4 + $0x14] ss:$2 sm:$0x7]  ;;  %v5946_v6 = vld [vmem:[#allocation4 + $0x15] ss:$2 sm:$0x7] }
 0x5f1   : > { %v5951_v63 = vmax.f32 %v5944_v32, %v5946_v6 }
 0x5f2   : > { %v5919_v36 = vmax.f32 %v5917_v44, %v5918_v1 }
 0x5f3   : > { %v5976_v49 = vld [vmem:[#allocation4 + $0x32] ss:$2 sm:$0x7]  ;;  %v5978_v42 = vld [vmem:[#allocation4 + $0x33] ss:$2 sm:$0x7] }
 0x5f4   : > { %v5948_v52 = vld [vmem:[#allocation4 + $0x1e] ss:$2 sm:$0x7]  ;;  %v5950_v31 = vld [vmem:[#allocation4 + $0x1f] ss:$2 sm:$0x7]  ;;  %v5926_v34 = vadd.f32 %v20523_v33, %v5919_v36  ;;  %v5980_v62 = vmax.f32 %v5976_v49, %v5978_v42 }
 0x5f5   : > { %v5952_v38 = vmax.f32 %v5948_v52, %v5950_v31 }
 0x5f6   : > { %v5972_v40 = vld [vmem:[#allocation4 + $0x28] ss:$2 sm:$0x7]  ;;  %v5974_v15 = vld [vmem:[#allocation4 + $0x29] ss:$2 sm:$0x7]  ;;  %v5935_v17 = vrot.slane %v5926_v34, %v20525_v0 }
 0x5f7   : > { %5927 = vst [vmem:[#allocation5] sm:$0x1] %v5926_v34  ;;  %v5953_v26 = vmax.f32 %v5951_v63, %v5952_v38  ;;  %v5979_v28 = vmax.f32 %v5972_v40, %v5974_v15 }
 0x5f8   : > { %v13290_v46 = vrot.slane %v5935_v17, 9  ;;  %v5940_v25 = vcombine.high %v5935_v17, %v5935_v17 }
 0x5f9   : > { %v5954_v7 = vadd.f32 %v20523_v33, %v5953_v26  ;;  %v5981_v12 = vmax.f32 %v5979_v28, %v5980_v62 }
 0x5fa   : > { %5939 = vst [vmem:[#allocation5 + $0x2] sm:$0x1] %v13290_v46  ;;  %5942 = vst [vmem:[#allocation5 + $0x4] sm:$0x1] %v5940_v25 }
 0x5fb   : > { %5955 = vst [vmem:[#allocation5 + $0x6] sm:$0x1] %v5954_v7  ;;  %v5963_v27 = vrot.slane %v5954_v7, %v20525_v0  ;;  %v5982_v60 = vadd.f32 %v20523_v33, %v5981_v12 }
 0x5fd   : > { %v13291_v45 = vrot.slane %v5963_v27, 9  ;;  %v5968_v5 = vcombine.high %v5963_v27, %v5963_v27  ;;  %5983 = vst [vmem:[#allocation5 + $0xc] sm:$0x1] %v5982_v60  ;;  %v5991_v54 = vrot.slane %v5982_v60, %v20525_v0 }
 0x5ff   : > { %5967 = vst [vmem:[#allocation5 + $0x8] sm:$0x1] %v13291_v45  ;;  %5970 = vst [vmem:[#allocation5 + $0xa] sm:$0x1] %v5968_v5  ;;  %v13292_v55 = vrot.slane %v5991_v54, 9  ;;  %v5996_v56 = vcombine.high %v5991_v54, %v5991_v54 }
 0x601   : > { %5995 = vst [vmem:[#allocation5 + $0xe] sm:$0x1] %v13292_v55  ;;  %5998 = vst [vmem:[#allocation5 + $0x10] sm:$0x1] %v5996_v56 }
 0x621   : > { %v16220_v2 = vpop.f32.mrb[52].mxu0 }
 0x622   : > { %9897 = vst [vmem:[#allocation4 + $0x10] sm:$0xff] %v16220_v2  ;;  %v9858_v9 = vpop.f32.mrb[53].mxu0 }
 0x623   : > { %9895 = vst [vmem:[#allocation4] sm:$0xff] %v9858_v9  ;;  %v16221_v29 = vpop.f32.mrb[54].mxu0 }
 0x624   : > { %v9861_v18 = vpop.f32.mrb[55].mxu0  ;;  %9898 = vst [vmem:[#allocation4 + $0x18] sm:$0xff] %v16221_v29 }
 0x625   : > { %9896 = vst [vmem:[#allocation4 + $0x8] sm:$0xff] %v9861_v18 }
 0x629   : > { %v16224_v47 = vpop.f32.mrb[56].mxu0 }
 0x62a   : > { %v9902_v20 = vld [vmem:[#allocation4] ss:$2 sm:$0x7]  ;;  %v9903_v21 = vld [vmem:[#allocation4 + $0x1] ss:$2 sm:$0x7] }
 0x62b   : > { %9901 = vst [vmem:[#allocation4 + $0x30] sm:$0xff] %v16224_v47  ;;  %v9874_v13 = vpop.f32.mrb[57].mxu0  ;;  %v9906_v8 = vmax.f32 %v9902_v20, %v9903_v21  ;;  %v9926_v23 = vld [vmem:[#allocation4 + $0x14] ss:$2 sm:$0x7] }
 0x62c   : > { %v9904_v30 = vld [vmem:[#allocation4 + $0xa] ss:$2 sm:$0x7]  ;;  %v9905_v3 = vld [vmem:[#allocation4 + $0xb] ss:$2 sm:$0x7] }
 0x62d   : > { %9899 = vst [vmem:[#allocation4 + $0x20] sm:$0xff] %v9874_v13  ;;  %v9907_v50 = vmax.f32 %v9904_v30, %v9905_v3  ;;  %v16225_v14 = vpop.f32.mrb[58].mxu0  ;;  %v9927_v11 = vld [vmem:[#allocation4 + $0x15] ss:$2 sm:$0x7] }
 0x62e   : > { %v9877_v35 = vpop.f32.mrb[59].mxu0  ;;  %v9930_v19 = vmax.f32 %v9926_v23, %v9927_v11 }
 0x62f   : > { %v9908_v4 = vmax.f32 %v9906_v8, %v9907_v50  ;;  %9900 = vst [vmem:[#allocation4 + $0x28] sm:$0xff] %v9877_v35 }
 0x631   : > { %v9909_v24 = vadd.f32 %v20523_v33, %v9908_v4 }
 0x632   : > { %v9952_v51 = vld [vmem:[#allocation4 + $0x32] ss:$2 sm:$0x7]  ;;  %v9953_v10 = vld [vmem:[#allocation4 + $0x33] ss:$2 sm:$0x7] }
 0x633   : > { %9910 = vst [vmem:[#allocation5 + $0x1] sm:$0x1] %v9909_v24  ;;  %v9918_v16 = vrot.slane %v9909_v24, %v20525_v0  ;;  %v9955_v37 = vmax.f32 %v9952_v51, %v9953_v10 }
 0x634   : > { %v9928_v57 = vld [vmem:[#allocation4 + $0x1e] ss:$2 sm:$0x7]  ;;  %v9929_v59 = vld [vmem:[#allocation4 + $0x1f] ss:$2 sm:$0x7] }
 0x635   : > { %v9931_v58 = vmax.f32 %v9928_v57, %v9929_v59  ;;  %v13877_v41 = vrot.slane %v9918_v16, 9  ;;  %v9923_v61 = vcombine.high %v9918_v16, %v9918_v16 }
 0x636   : > { %v9950_v48 = vld [vmem:[#allocation4 + $0x28] ss:$2 sm:$0x7]  ;;  %v9951_v53 = vld [vmem:[#allocation4 + $0x29] ss:$2 sm:$0x7] }
 0x637   : > { %v9932_v22 = vmax.f32 %v9930_v19, %v9931_v58  ;;  %9922 = vst [vmem:[#allocation5 + $0x3] sm:$0x1] %v13877_v41  ;;  %9925 = vst [vmem:[#allocation5 + $0x5] sm:$0x1] %v9923_v61  ;;  %v9954_v43 = vmax.f32 %v9950_v48, %v9951_v53 }
 0x639   : > { %v9933_v39 = vadd.f32 %v20523_v33, %v9932_v22  ;;  %v9956_v44 = vmax.f32 %v9954_v43, %v9955_v37 }
 0x63b   : > { %9934 = vst [vmem:[#allocation5 + $0x7] sm:$0x1] %v9933_v39  ;;  %v9942_v1 = vrot.slane %v9933_v39, %v20525_v0  ;;  %v9957_v32 = vadd.f32 %v20523_v33, %v9956_v44 }
 0x63d   : > { %v13878_v6 = vrot.slane %v9942_v1, 9  ;;  %v9947_v36 = vcombine.high %v9942_v1, %v9942_v1  ;;  %9958 = vst [vmem:[#allocation5 + $0xd] sm:$0x1] %v9957_v32  ;;  %v9966_v49 = vrot.slane %v9957_v32, %v20525_v0 }
 0x63f   : > { %9946 = vst [vmem:[#allocation5 + $0x9] sm:$0x1] %v13878_v6  ;;  %9949 = vst [vmem:[#allocation5 + $0xb] sm:$0x1] %v9947_v36  ;;  %v13879_v42 = vrot.slane %v9966_v49, 9  ;;  %v9971_v52 = vcombine.high %v9966_v49, %v9966_v49 }
 0x641   : > { %9970 = vst [vmem:[#allocation5 + $0xf] sm:$0x1] %v13879_v42  ;;  %9973 = vst [vmem:[#allocation5 + $0x11] sm:$0x1] %v9971_v52 }
 0x642 PF: > { %v17249_v33 = vld [vmem:[%s18533_s30 + $0x4] ss:$16 sps:$4 sm:$0xff]   ;;  %v17251_v0 = vld [vmem:[%s18533_s30 + $0xc] ss:$16 sps:$4 sm:$0xff]   ;;  %v17253_v31 = vld [vmem:[%s18533_s30] ss:$16 sps:$4 sm:$0xff]   ;;  %v9992_v24 = vlaneseq }
 0x643   : > { %11797 = vmatprep.subr.bf16.mxu0 %v17249_v33  ;;  %v17254_v63 = vld [vmem:[%s18533_s30 + $0x8] ss:$16 sps:$4 sm:$0xff]   ;;  %12002 = vmatprep.subr.bf16.mxu1 %v17251_v0  ;;  %v17255_v34 = vld [vmem:[%s18533_s30 + $0x24] ss:$16 sps:$4 sm:$0xff]   ;;  %v17257_v38 = vld [vmem:[%s18533_s30 + $0x2c] ss:$16 sps:$4 sm:$0xff]  }
 0x644   : > { %11798 = vmatpush1.bf16.msra.mxu0 %v17253_v31  ;;  %12003 = vmatpush1.bf16.msra.mxu1 %v17254_v63  ;;  %v17259_v40 = vld [vmem:[%s18533_s30 + $0x20] ss:$16 sps:$4 sm:$0xff]   ;;  %v17260_v15 = vld [vmem:[%s18533_s30 + $0x28] ss:$16 sps:$4 sm:$0xff]   ;;  %v17261_v17 = vld [vmem:[%s18533_s30 + $0x44] ss:$16 sps:$4 sm:$0xff]  }
 0x645   : > { %11799 = vmatprep.subr.bf16.mxu0 %v17255_v34  ;;  %12004 = vmatprep.subr.bf16.mxu1 %v17257_v38  ;;  %v17263_v62 = vld [vmem:[%s18533_s30 + $0x4c] ss:$16 sps:$4 sm:$0xff]   ;;  %v17265_v26 = vld [vmem:[%s18533_s30 + $0x40] ss:$16 sps:$4 sm:$0xff]   ;;  %v17266_v28 = vld [vmem:[%s18533_s30 + $0x48] ss:$16 sps:$4 sm:$0xff]  }
 0x646   : > { %v17267_v46 = vld [vmem:[%s18533_s30 + $0x64] ss:$16 sps:$4 sm:$0xff]   ;;  %v17269_v25 = vld [vmem:[%s18533_s30 + $0x6c] ss:$16 sps:$4 sm:$0xff]   ;;  %v17271_v7 = vld [vmem:[%s18533_s30 + $0x60] ss:$16 sps:$4 sm:$0xff]  }
 0x647   : > { %v17272_v12 = vld [vmem:[%s18533_s30 + $0x68] ss:$16 sps:$4 sm:$0xff]   ;;  %v17273_v27 = vld [vmem:[%s18533_s30 + $0x84] ss:$16 sps:$4 sm:$0xff]   ;;  %v17275_v60 = vld [vmem:[%s18533_s30 + $0x8c] ss:$16 sps:$4 sm:$0xff]  }
 0x648   : > { %11800 = vmatpush1.bf16.msra.mxu0 %v17259_v40  ;;  %12005 = vmatpush1.bf16.msra.mxu1 %v17260_v15  ;;  %v17277_v45 = vld [vmem:[%s18533_s30 + $0x80] ss:$16 sps:$4 sm:$0xff]   ;;  %v17278_v5 = vld [vmem:[%s18533_s30 + $0x88] ss:$16 sps:$4 sm:$0xff]   ;;  %v17279_v54 = vld [vmem:[%s18533_s30 + $0xa4] ss:$16 sps:$4 sm:$0xff]  }
 0x649   : > { %11801 = vmatprep.subr.bf16.mxu0 %v17261_v17  ;;  %12006 = vmatprep.subr.bf16.mxu1 %v17263_v62  ;;  %v17281_v55 = vld [vmem:[%s18533_s30 + $0xac] ss:$16 sps:$4 sm:$0xff]   ;;  %v17283_v56 = vld [vmem:[%s18533_s30 + $0xa0] ss:$16 sps:$4 sm:$0xff]   ;;  %v17284_v2 = vld [vmem:[%s18533_s30 + $0xa8] ss:$16 sps:$4 sm:$0xff]  }
 0x64a   : > { %v17285_v9 = vld [vmem:[%s18533_s30 + $0xc4] ss:$16 sps:$4 sm:$0xff]   ;;  %v17287_v29 = vld [vmem:[%s18533_s30 + $0xcc] ss:$16 sps:$4 sm:$0xff]   ;;  %v17289_v18 = vld [vmem:[%s18533_s30 + $0xc0] ss:$16 sps:$4 sm:$0xff]  }
 0x64b   : > { %v17290_v47 = vld [vmem:[%s18533_s30 + $0xc8] ss:$16 sps:$4 sm:$0xff]   ;;  %v17291_v20 = vld [vmem:[%s18533_s30 + $0xe4] ss:$16 sps:$4 sm:$0xff]   ;;  %v17293_v21 = vld [vmem:[%s18533_s30 + $0xec] ss:$16 sps:$4 sm:$0xff]  }
 0x64c   : > { %11802 = vmatpush1.bf16.msra.mxu0 %v17265_v26  ;;  %12007 = vmatpush1.bf16.msra.mxu1 %v17266_v28  ;;  %v17295_v13 = vld [vmem:[%s18533_s30 + $0xe0] ss:$16 sps:$4 sm:$0xff]   ;;  %v17296_v30 = vld [vmem:[%s18533_s30 + $0xe8] ss:$16 sps:$4 sm:$0xff]   ;;  %v17297_v3 = vld [vmem:[%s18533_s30 + $0x104] ss:$16 sps:$4 sm:$0xff]  }
 0x64d   : > { %11803 = vmatprep.subr.bf16.mxu0 %v17267_v46  ;;  %12008 = vmatprep.subr.bf16.mxu1 %v17269_v25  ;;  %v17299_v8 = vld [vmem:[%s18533_s30 + $0x10c] ss:$16 sps:$4 sm:$0xff]   ;;  %v17301_v50 = vld [vmem:[%s18533_s30 + $0x100] ss:$16 sps:$4 sm:$0xff]   ;;  %v17302_v14 = vld [vmem:[%s18533_s30 + $0x108] ss:$16 sps:$4 sm:$0xff]  }
 0x64e   : > { %v17813_v35 = vmov 1983009808   ;;  %v17303_v23 = vld [vmem:[%s18533_s30 + $0x124] ss:$16 sps:$4 sm:$0xff]   ;;  %v17305_v11 = vld [vmem:[%s18533_s30 + $0x12c] ss:$16 sps:$4 sm:$0xff]  }
 0x64f   : > { %v9990_v4 = vunpack.c.l.s4 %v17813_v35  ;;  %v17307_v16 = vld [vmem:[%s18533_s30 + $0x120] ss:$16 sps:$4 sm:$0xff]   ;;  %v20578_v59 = vshrl.u32 %v9992_v24, 7  ;;  %v17308_v51 = vld [vmem:[%s18533_s30 + $0x128] ss:$16 sps:$4 sm:$0xff]   ;;  %p16670_p6 = scmp.eq.s32.totalorder %s17885_s13, 3 }
 0x650   : > { %11804 = vmatpush1.bf16.msra.mxu0 %v17271_v7  ;;  %12009 = vmatpush1.bf16.msra.mxu1 %v17272_v12  ;;  %v17309_v10 = vld [vmem:[%s18533_s30 + $0x144] ss:$16 sps:$4 sm:$0xff]   ;;  %v17311_v19 = vld [vmem:[%s18533_s30 + $0x14c] ss:$16 sps:$4 sm:$0xff]   ;;  %v17313_v58 = vld [vmem:[%s18533_s30 + $0x140] ss:$16 sps:$4 sm:$0xff]  }
 0x651   : > { %11805 = vmatprep.subr.bf16.mxu0 %v17273_v27  ;;  %12010 = vmatprep.subr.bf16.mxu1 %v17275_v60  ;;  %v9991_v57 = vunpack.c.0.s8 %v9990_v4  ;;  %v17314_v41 = vld [vmem:[%s18533_s30 + $0x148] ss:$16 sps:$4 sm:$0xff]   ;;  %v17315_v22 = vld [vmem:[%s18533_s30 + $0x164] ss:$16 sps:$4 sm:$0xff]   ;;  %v17317_v48 = vld [vmem:[%s18533_s30 + $0x16c] ss:$16 sps:$4 sm:$0xff]  }
 0x652   : > { %v9982_v53 = vld [vmem:[#allocation5] sm:$0xff]  ;;  %v17320_v39 = vld [vmem:[%s18533_s30 + $0x168] ss:$16 sps:$4 sm:$0xff]  }
 0x653   : > { %v20586_v61 = vsub.s32 %v9991_v57, %v20578_v59  ;;  %v17319_v37 = vld [vmem:[%s18533_s30 + $0x160] ss:$16 sps:$4 sm:$0xff]   ;;  %v17321_v44 = vld [vmem:[%s18533_s30 + $0x184] ss:$16 sps:$4 sm:$0xff]   ;;  %v17323_v1 = vld [vmem:[%s18533_s30 + $0x18c] ss:$16 sps:$4 sm:$0xff]   ;;  %v9988_v34 = vcombine.high %v9982_v53, %v9982_v53 }
 0x654   : > { %11806 = vmatpush1.bf16.msra.mxu0 %v17277_v45  ;;  %12011 = vmatpush1.bf16.msra.mxu1 %v17278_v5  ;;  %v17325_v6 = vld [vmem:[%s18533_s30 + $0x180] ss:$16 sps:$4 sm:$0xff]   ;;  %v17326_v49 = vld [vmem:[%s18533_s30 + $0x188] ss:$16 sps:$4 sm:$0xff]   ;;  %v17327_v42 = vld [vmem:[%s18533_s30 + $0x1a4] ss:$16 sps:$4 sm:$0xff]  }
 0x655   : > { %11807 = vmatprep.subr.bf16.mxu0 %v17279_v54  ;;  %12012 = vmatprep.subr.bf16.mxu1 %v17281_v55  ;;  %v9995_v43 = vrot.slane %v9982_v53, %v20586_v61  ;;  %v17329_v52 = vld [vmem:[%s18533_s30 + $0x1ac] ss:$16 sps:$4 sm:$0xff]   ;;  %v17331_v33 = vld [vmem:[%s18533_s30 + $0x1a0] ss:$16 sps:$4 sm:$0xff]   ;;  %v17332_v0 = vld [vmem:[%s18533_s30 + $0x1a8] ss:$16 sps:$4 sm:$0xff]   ;;  %v20608_v62 = vrot.slane %v9988_v34, %v20586_v61 }
 0x656   : > { %v17333_v31 = vld [vmem:[%s18533_s30 + $0x1c4] ss:$16 sps:$4 sm:$0xff]   ;;  %v17335_v63 = vld [vmem:[%s18533_s30 + $0x1cc] ss:$16 sps:$4 sm:$0xff]   ;;  %v17337_v38 = vld [vmem:[%s18533_s30 + $0x1c0] ss:$16 sps:$4 sm:$0xff]  }
 0x657   : > { %v10003_v32 = vcombine.high %v9995_v43, %v9995_v43  ;;  %v17338_v40 = vld [vmem:[%s18533_s30 + $0x1c8] ss:$16 sps:$4 sm:$0xff]   ;;  %v17339_v15 = vld [vmem:[%s18533_s30 + $0x1e4] ss:$16 sps:$4 sm:$0xff]   ;;  %v17341_v17 = vld [vmem:[%s18533_s30 + $0x1ec] ss:$16 sps:$4 sm:$0xff]   ;;  %v10004_v7 = vcombine.high %v20608_v62, %v20608_v62  ;;  %v10038_v27 = vpack.c.bf16 %v9995_v43, %v9995_v43 }
 0x658   : > { %11808 = vmatpush1.bf16.msra.mxu0 %v17283_v56  ;;  %12013 = vmatpush1.bf16.msra.mxu1 %v17284_v2  ;;  %v17343_v26 = vld [vmem:[%s18533_s30 + $0x1e0] ss:$16 sps:$4 sm:$0xff]   ;;  %v17344_v28 = vld [vmem:[%s18533_s30 + $0x1e8] ss:$16 sps:$4 sm:$0xff]   ;;  %v17348_v46 = vld [vmem:[%s18533_s30 + $0x204] ss:$16 sps:$4 sm:$0xff]  }
 0x659   : > { %11809 = vmatprep.subr.bf16.mxu0 %v17285_v9  ;;  %12014 = vmatprep.subr.bf16.mxu1 %v17287_v29  ;;  %v10039_v36 = vpack.c.bf16 %v10003_v32, %v10003_v32  ;;  %v17351_v25 = vld [vmem:[%s18533_s30 + $0x20c] ss:$16 sps:$4 sm:$0xff]   ;;  %v17346_v12 = vld [vmem:[%s18533_s30 + $0x200] ss:$16 sps:$4 sm:$0xff]   ;;  %v17349_v60 = vld [vmem:[%s18533_s30 + $0x208] ss:$16 sps:$4 sm:$0xff]   ;;  %v10041_v54 = vpack.c.bf16 %v10004_v7, %v10004_v7 }
 0x65a   : > { %v17354_v45 = vld [vmem:[%s18533_s30 + $0x224] ss:$16 sps:$4 sm:$0xff]   ;;  %v17357_v5 = vld [vmem:[%s18533_s30 + $0x22c] ss:$16 sps:$4 sm:$0xff]   ;;  %v17352_v55 = vld [vmem:[%s18533_s30 + $0x220] ss:$16 sps:$4 sm:$0xff]  }
 0x65b   : > { %11829 = vmatprep.mubr.bf16.mxu0 %v10039_v36  ;;  %12034 = vmatprep.mubr.bf16.mxu1 %v10039_v36  ;;  %v17355_v56 = vld [vmem:[%s18533_s30 + $0x228] ss:$16 sps:$4 sm:$0xff]   ;;  %v17360_v2 = vld [vmem:[%s18533_s30 + $0x244] ss:$16 sps:$4 sm:$0xff]   ;;  %v17363_v9 = vld [vmem:[%s18533_s30 + $0x24c] ss:$16 sps:$4 sm:$0xff]  }
 0x65c   : > { %11810 = vmatpush1.bf16.msra.mxu0 %v17289_v18  ;;  %12015 = vmatpush1.bf16.msra.mxu1 %v17290_v47  ;;  %v17358_v29 = vld [vmem:[%s18533_s30 + $0x240] ss:$16 sps:$4 sm:$0xff]   ;;  %v17361_v18 = vld [vmem:[%s18533_s30 + $0x248] ss:$16 sps:$4 sm:$0xff]   ;;  %v17366_v47 = vld [vmem:[%s18533_s30 + $0x264] ss:$16 sps:$4 sm:$0xff]  }
 0x65d   : > { %11811 = vmatprep.subr.bf16.mxu0 %v17291_v20  ;;  %12016 = vmatprep.subr.bf16.mxu1 %v17293_v21  ;;  %v17369_v20 = vld [vmem:[%s18533_s30 + $0x26c] ss:$16 sps:$4 sm:$0xff]   ;;  %v17364_v21 = vld [vmem:[%s18533_s30 + $0x260] ss:$16 sps:$4 sm:$0xff]   ;;  %v17379_v24 = vld [vmem:[%s18533_s30 + $0x2a8] ss:$16 sps:$4 sm:$0xff]  }
 0x65e   : > { %v17381_v35 = vld [vmem:[%s18533_s30 + $0x2ac] ss:$16 sps:$4 sm:$0xff]   ;;  %v17376_v4 = vld [vmem:[%s18533_s30 + $0x2a0] ss:$16 sps:$4 sm:$0xff]   ;;  %v17385_v57 = vld [vmem:[%s18533_s30 + $0x2c8] ss:$16 sps:$4 sm:$0xff]  }
 0x65f   : > { %v17397_v53 = vld [vmem:[%s18533_s30 + $0x308] ss:$16 sps:$4 sm:$0xff]   ;;  %v17405_v43 = vld [vmem:[%s18533_s30 + $0x32c] ss:$16 sps:$4 sm:$0xff]   ;;  %v17438_v7 = vld [vmem:[%s18533_s30 + $0x3e4] ss:$16 sps:$4 sm:$0xff]  }
 0x660   : > { %11812 = vmatpush1.bf16.msra.mxu0 %v17295_v13  ;;  %12017 = vmatpush1.bf16.msra.mxu1 %v17296_v30  ;;  %v17367_v13 = vld [vmem:[%s18533_s30 + $0x268] ss:$16 sps:$4 sm:$0xff]   ;;  %v17372_v30 = vld [vmem:[%s18533_s30 + $0x284] ss:$16 sps:$4 sm:$0xff]   ;;  %v17411_v32 = vld [vmem:[%s18533_s30 + $0x34c] ss:$16 sps:$4 sm:$0xff]  }
 0x661   : > { %11813 = vmatprep.subr.bf16.mxu0 %v17297_v3  ;;  %12018 = vmatprep.subr.bf16.mxu1 %v17299_v8  ;;  %v17375_v3 = vld [vmem:[%s18533_s30 + $0x28c] ss:$16 sps:$4 sm:$0xff]   ;;  %v17370_v8 = vld [vmem:[%s18533_s30 + $0x280] ss:$16 sps:$4 sm:$0xff]   ;;  %v17409_v36 = vld [vmem:[%s18533_s30 + $0x348] ss:$16 sps:$4 sm:$0xff]  }
 0x662   : > { %v17421_v34 = vld [vmem:[%s18533_s30 + $0x388] ss:$16 sps:$4 sm:$0xff]  }
 0x664   : > { %11814 = vmatpush1.bf16.msra.mxu0 %v17301_v50  ;;  %12019 = vmatpush1.bf16.msra.mxu1 %v17302_v14  ;;  %v17373_v50 = vld [vmem:[%s18533_s30 + $0x288] ss:$16 sps:$4 sm:$0xff]   ;;  %v17378_v14 = vld [vmem:[%s18533_s30 + $0x2a4] ss:$16 sps:$4 sm:$0xff]  }
 0x665   : > { %11815 = vmatprep.subr.bf16.mxu0 %v17303_v23  ;;  %12020 = vmatprep.subr.bf16.mxu1 %v17305_v11  ;;  %v17384_v23 = vld [vmem:[%s18533_s30 + $0x2c4] ss:$16 sps:$4 sm:$0xff]   ;;  %v17387_v11 = vld [vmem:[%s18533_s30 + $0x2cc] ss:$16 sps:$4 sm:$0xff]  }
 0x668   : > { %11816 = vmatpush1.bf16.msra.mxu0 %v17307_v16  ;;  %12021 = vmatpush1.bf16.msra.mxu1 %v17308_v51  ;;  %v17382_v16 = vld [vmem:[%s18533_s30 + $0x2c0] ss:$16 sps:$4 sm:$0xff]   ;;  %v17390_v51 = vld [vmem:[%s18533_s30 + $0x2e4] ss:$16 sps:$4 sm:$0xff]  }
 0x669   : > { %11817 = vmatprep.subr.bf16.mxu0 %v17309_v10  ;;  %12022 = vmatprep.subr.bf16.mxu1 %v17311_v19  ;;  %v17393_v10 = vld [vmem:[%s18533_s30 + $0x2ec] ss:$16 sps:$4 sm:$0xff]   ;;  %v17388_v19 = vld [vmem:[%s18533_s30 + $0x2e0] ss:$16 sps:$4 sm:$0xff]  }
 0x66c   : > { %11818 = vmatpush1.bf16.msra.mxu0 %v17313_v58  ;;  %12023 = vmatpush1.bf16.msra.mxu1 %v17314_v41  ;;  %v17391_v58 = vld [vmem:[%s18533_s30 + $0x2e8] ss:$16 sps:$4 sm:$0xff]   ;;  %v17396_v41 = vld [vmem:[%s18533_s30 + $0x304] ss:$16 sps:$4 sm:$0xff]  }
 0x66d   : > { %11819 = vmatprep.subr.bf16.mxu0 %v17315_v22  ;;  %12024 = vmatprep.subr.bf16.mxu1 %v17317_v48  ;;  %v17399_v22 = vld [vmem:[%s18533_s30 + $0x30c] ss:$16 sps:$4 sm:$0xff]   ;;  %v17394_v48 = vld [vmem:[%s18533_s30 + $0x300] ss:$16 sps:$4 sm:$0xff]  }
 0x670   : > { %11820 = vmatpush1.bf16.msra.mxu0 %v17319_v37  ;;  %12025 = vmatpush1.bf16.msra.mxu1 %v17320_v39  ;;  %v17402_v37 = vld [vmem:[%s18533_s30 + $0x324] ss:$16 sps:$4 sm:$0xff]   ;;  %v17400_v39 = vld [vmem:[%s18533_s30 + $0x320] ss:$16 sps:$4 sm:$0xff]  }
 0x671   : > { %11821 = vmatprep.subr.bf16.mxu0 %v17321_v44  ;;  %12026 = vmatprep.subr.bf16.mxu1 %v17323_v1  ;;  %v17403_v44 = vld [vmem:[%s18533_s30 + $0x328] ss:$16 sps:$4 sm:$0xff]   ;;  %v17408_v1 = vld [vmem:[%s18533_s30 + $0x344] ss:$16 sps:$4 sm:$0xff]  }
 0x674   : > { %11822 = vmatpush1.bf16.msra.mxu0 %v17325_v6  ;;  %12027 = vmatpush1.bf16.msra.mxu1 %v17326_v49  ;;  %v17406_v6 = vld [vmem:[%s18533_s30 + $0x340] ss:$16 sps:$4 sm:$0xff]   ;;  %v17414_v49 = vld [vmem:[%s18533_s30 + $0x364] ss:$16 sps:$4 sm:$0xff]  }
 0x675   : > { %11823 = vmatprep.subr.bf16.mxu0 %v17327_v42  ;;  %12028 = vmatprep.subr.bf16.mxu1 %v17329_v52  ;;  %v17417_v42 = vld [vmem:[%s18533_s30 + $0x36c] ss:$16 sps:$4 sm:$0xff]   ;;  %v17412_v52 = vld [vmem:[%s18533_s30 + $0x360] ss:$16 sps:$4 sm:$0xff]  }
 0x678   : > { %11824 = vmatpush1.bf16.msra.mxu0 %v17331_v33  ;;  %12029 = vmatpush1.bf16.msra.mxu1 %v17332_v0  ;;  %v17415_v33 = vld [vmem:[%s18533_s30 + $0x368] ss:$16 sps:$4 sm:$0xff]   ;;  %v17420_v0 = vld [vmem:[%s18533_s30 + $0x384] ss:$16 sps:$4 sm:$0xff]  }
 0x679   : > { %11825 = vmatprep.subr.bf16.mxu0 %v17333_v31  ;;  %12030 = vmatprep.subr.bf16.mxu1 %v17335_v63  ;;  %v17423_v31 = vld [vmem:[%s18533_s30 + $0x38c] ss:$16 sps:$4 sm:$0xff]   ;;  %v17418_v63 = vld [vmem:[%s18533_s30 + $0x380] ss:$16 sps:$4 sm:$0xff]  }
 0x67c   : > { %11826 = vmatpush1.bf16.msra.mxu0 %v17337_v38  ;;  %12031 = vmatpush1.bf16.msra.mxu1 %v17338_v40  ;;  %v17426_v38 = vld [vmem:[%s18533_s30 + $0x3a4] ss:$16 sps:$4 sm:$0xff]   ;;  %v17429_v40 = vld [vmem:[%s18533_s30 + $0x3ac] ss:$16 sps:$4 sm:$0xff]  }
 0x67d   : > { %11827 = vmatprep.subr.bf16.mxu0 %v17339_v15  ;;  %12032 = vmatprep.subr.bf16.mxu1 %v17341_v17  ;;  %v17424_v15 = vld [vmem:[%s18533_s30 + $0x3a0] ss:$16 sps:$4 sm:$0xff]   ;;  %v17427_v17 = vld [vmem:[%s18533_s30 + $0x3a8] ss:$16 sps:$4 sm:$0xff]  }
 0x680   : > { %11828 = vmatpush1.bf16.msra.mxu0 %v17343_v26  ;;  %12033 = vmatpush1.bf16.msra.mxu1 %v17344_v28  ;;  %v17432_v26 = vld [vmem:[%s18533_s30 + $0x3c4] ss:$16 sps:$4 sm:$0xff]   ;;  %v17435_v28 = vld [vmem:[%s18533_s30 + $0x3cc] ss:$16 sps:$4 sm:$0xff]  }
 0x681   : > { %11838 = vmatprep.subr.bf16.mxu0 %v17348_v46  ;;  %12043 = vmatprep.subr.bf16.mxu1 %v17351_v25  ;;  %v17430_v46 = vld [vmem:[%s18533_s30 + $0x3c0] ss:$16 sps:$4 sm:$0xff]   ;;  %v17433_v25 = vld [vmem:[%s18533_s30 + $0x3c8] ss:$16 sps:$4 sm:$0xff]  }
 0x683   : > { %11830 = vmatmul.mubr.bf16.vlgmr.msra.gmra.mrb[0].mxu0 %v10038_v27  ;;  %12035 = vmatmul.mubr.bf16.vlgmr.msra.gmra.mrb[0].mxu1 %v10038_v27  ;;  %v17436_v27 = vld [vmem:[%s18533_s30 + $0x3e0] ss:$16 sps:$4 sm:$0xff]  }
 0x684   : > { %11839 = vmatpush1.bf16.msra.mxu0 %v17346_v12  ;;  %12044 = vmatpush1.bf16.msra.mxu1 %v17349_v60  ;;  %v17441_v12 = vld [vmem:[%s18533_s30 + $0x3ec] ss:$16 sps:$4 sm:$0xff]   ;;  %v17439_v60 = vld [vmem:[%s18533_s30 + $0x3e8] ss:$16 sps:$4 sm:$0xff]  }
 0x685   : > { %11840 = vmatprep.subr.bf16.mxu0 %v17354_v45  ;;  %12045 = vmatprep.subr.bf16.mxu1 %v17357_v5  ;;  %v17444_v45 = vld [vmem:[%s18533_s30 + $0x404] ss:$16 sps:$4 sm:$0xff]   ;;  %v17447_v5 = vld [vmem:[%s18533_s30 + $0x40c] ss:$16 sps:$4 sm:$0xff]  }
 0x686   : > { %11870 = vmatprep.mubr.bf16.mxu0 %v10041_v54  ;;  %12075 = vmatprep.mubr.bf16.mxu1 %v10041_v54  ;;  %v17442_v54 = vld [vmem:[%s18533_s30 + $0x400] ss:$16 sps:$4 sm:$0xff]  }
 0x688   : > { %11841 = vmatpush1.bf16.msra.mxu0 %v17352_v55  ;;  %12046 = vmatpush1.bf16.msra.mxu1 %v17355_v56  ;;  %v10040_v55 = vpack.c.bf16 %v20608_v62, %v20608_v62  ;;  %v17445_v56 = vld [vmem:[%s18533_s30 + $0x408] ss:$16 sps:$4 sm:$0xff]  }
 0x689   : > { %11842 = vmatprep.subr.bf16.mxu0 %v17360_v2  ;;  %12047 = vmatprep.subr.bf16.mxu1 %v17363_v9  ;;  %v20684_v2 = vld [vmem:[#allocation5 + $0x8] sm:$0xff] }
 0x68a   : > { %v17450_v9 = vld [vmem:[%s18533_s30 + $0x424] ss:$16 sps:$4 sm:$0xff]  }
 0x68c   : > { %11843 = vmatpush1.bf16.msra.mxu0 %v17358_v29  ;;  %12048 = vmatpush1.bf16.msra.mxu1 %v17361_v18  ;;  %v17453_v29 = vld [vmem:[%s18533_s30 + $0x42c] ss:$16 sps:$4 sm:$0xff]   ;;  %v20690_v18 = vrot.slane %v20684_v2, %v20586_v61 }
 0x68d   : > { %11844 = vmatprep.subr.bf16.mxu0 %v17366_v47  ;;  %12049 = vmatprep.subr.bf16.mxu1 %v17369_v20  ;;  %v17448_v47 = vld [vmem:[%s18533_s30 + $0x420] ss:$16 sps:$4 sm:$0xff]   ;;  %v17451_v20 = vld [vmem:[%s18533_s30 + $0x428] ss:$16 sps:$4 sm:$0xff]  }
 0x68e   : > { %v10020_v62 = vcombine.high %v20690_v18, %v20690_v18 }
 0x690   : > { %11845 = vmatpush1.bf16.msra.mxu0 %v17364_v21  ;;  %12050 = vmatpush1.bf16.msra.mxu1 %v17367_v13  ;;  %v17456_v21 = vld [vmem:[%s18533_s30 + $0x444] ss:$16 sps:$4 sm:$0xff]   ;;  %v17459_v13 = vld [vmem:[%s18533_s30 + $0x44c] ss:$16 sps:$4 sm:$0xff]  }
 0x691   : > { %11846 = vmatprep.subr.bf16.mxu0 %v17372_v30  ;;  %12051 = vmatprep.subr.bf16.mxu1 %v17375_v3  ;;  %v10043_v30 = vpack.c.bf16 %v10020_v62, %v10020_v62  ;;  %v17454_v3 = vld [vmem:[%s18533_s30 + $0x440] ss:$16 sps:$4 sm:$0xff]   ;;  %v17535_v62 = vld [vmem:[%s18533_s30 + $0x5e8] ss:$16 sps:$4 sm:$0xff]  }
 0x694   : > { %11847 = vmatpush1.bf16.msra.mxu0 %v17370_v8  ;;  %12052 = vmatpush1.bf16.msra.mxu1 %v17373_v50  ;;  %v17457_v8 = vld [vmem:[%s18533_s30 + $0x448] ss:$16 sps:$4 sm:$0xff]   ;;  %v17462_v50 = vld [vmem:[%s18533_s30 + $0x464] ss:$16 sps:$4 sm:$0xff]  }
 0x695   : > { %11848 = vmatprep.subr.bf16.mxu0 %v17378_v14  ;;  %12053 = vmatprep.subr.bf16.mxu1 %v17381_v35  ;;  %v17465_v14 = vld [vmem:[%s18533_s30 + $0x46c] ss:$16 sps:$4 sm:$0xff]   ;;  %v17460_v35 = vld [vmem:[%s18533_s30 + $0x460] ss:$16 sps:$4 sm:$0xff]  }
 0x698   : > { %11849 = vmatpush1.bf16.msra.mxu0 %v17376_v4  ;;  %12054 = vmatpush1.bf16.msra.mxu1 %v17379_v24  ;;  %v17463_v4 = vld [vmem:[%s18533_s30 + $0x468] ss:$16 sps:$4 sm:$0xff]   ;;  %v17468_v24 = vld [vmem:[%s18533_s30 + $0x484] ss:$16 sps:$4 sm:$0xff]  }
 0x699   : > { %11850 = vmatprep.subr.bf16.mxu0 %v17384_v23  ;;  %12055 = vmatprep.subr.bf16.mxu1 %v17387_v11  ;;  %v17471_v23 = vld [vmem:[%s18533_s30 + $0x48c] ss:$16 sps:$4 sm:$0xff]   ;;  %v17466_v11 = vld [vmem:[%s18533_s30 + $0x480] ss:$16 sps:$4 sm:$0xff]  }
 0x69c   : > { %11851 = vmatpush1.bf16.msra.mxu0 %v17382_v16  ;;  %12056 = vmatpush1.bf16.msra.mxu1 %v17385_v57  ;;  %v17469_v16 = vld [vmem:[%s18533_s30 + $0x488] ss:$16 sps:$4 sm:$0xff]   ;;  %v17474_v57 = vld [vmem:[%s18533_s30 + $0x4a4] ss:$16 sps:$4 sm:$0xff]  }
 0x69d   : > { %11852 = vmatprep.subr.bf16.mxu0 %v17390_v51  ;;  %12057 = vmatprep.subr.bf16.mxu1 %v17393_v10  ;;  %v17477_v51 = vld [vmem:[%s18533_s30 + $0x4ac] ss:$16 sps:$4 sm:$0xff]   ;;  %v17472_v10 = vld [vmem:[%s18533_s30 + $0x4a0] ss:$16 sps:$4 sm:$0xff]  }
 0x6a0   : > { %11853 = vmatpush1.bf16.msra.mxu0 %v17388_v19  ;;  %12058 = vmatpush1.bf16.msra.mxu1 %v17391_v58  ;;  %v17475_v19 = vld [vmem:[%s18533_s30 + $0x4a8] ss:$16 sps:$4 sm:$0xff]   ;;  %v17480_v58 = vld [vmem:[%s18533_s30 + $0x4c4] ss:$16 sps:$4 sm:$0xff]  }
 0x6a1   : > { %11854 = vmatprep.subr.bf16.mxu0 %v17396_v41  ;;  %12059 = vmatprep.subr.bf16.mxu1 %v17399_v22  ;;  %v17483_v41 = vld [vmem:[%s18533_s30 + $0x4cc] ss:$16 sps:$4 sm:$0xff]   ;;  %v17478_v22 = vld [vmem:[%s18533_s30 + $0x4c0] ss:$16 sps:$4 sm:$0xff]  }
 0x6a4   : > { %11855 = vmatpush1.bf16.msra.mxu0 %v17394_v48  ;;  %12060 = vmatpush1.bf16.msra.mxu1 %v17397_v53  ;;  %v17481_v48 = vld [vmem:[%s18533_s30 + $0x4c8] ss:$16 sps:$4 sm:$0xff]   ;;  %v17486_v53 = vld [vmem:[%s18533_s30 + $0x4e4] ss:$16 sps:$4 sm:$0xff]  }
 0x6a5   : > { %11856 = vmatprep.subr.bf16.mxu0 %v17402_v37  ;;  %12061 = vmatprep.subr.bf16.mxu1 %v17405_v43  ;;  %v17489_v37 = vld [vmem:[%s18533_s30 + $0x4ec] ss:$16 sps:$4 sm:$0xff]   ;;  %v17484_v43 = vld [vmem:[%s18533_s30 + $0x4e0] ss:$16 sps:$4 sm:$0xff]  }
 0x6a8   : > { %11857 = vmatpush1.bf16.msra.mxu0 %v17400_v39  ;;  %12062 = vmatpush1.bf16.msra.mxu1 %v17403_v44  ;;  %v17487_v39 = vld [vmem:[%s18533_s30 + $0x4e8] ss:$16 sps:$4 sm:$0xff]   ;;  %v17492_v44 = vld [vmem:[%s18533_s30 + $0x504] ss:$16 sps:$4 sm:$0xff]  }
 0x6a9   : > { %11858 = vmatprep.subr.bf16.mxu0 %v17408_v1  ;;  %12063 = vmatprep.subr.bf16.mxu1 %v17411_v32  ;;  %v17495_v1 = vld [vmem:[%s18533_s30 + $0x50c] ss:$16 sps:$4 sm:$0xff]   ;;  %v17490_v32 = vld [vmem:[%s18533_s30 + $0x500] ss:$16 sps:$4 sm:$0xff]  }
 0x6ac   : > { %11859 = vmatpush1.bf16.msra.mxu0 %v17406_v6  ;;  %12064 = vmatpush1.bf16.msra.mxu1 %v17409_v36  ;;  %v17493_v6 = vld [vmem:[%s18533_s30 + $0x508] ss:$16 sps:$4 sm:$0xff]   ;;  %v17498_v36 = vld [vmem:[%s18533_s30 + $0x524] ss:$16 sps:$4 sm:$0xff]  }
 0x6ad   : > { %11860 = vmatprep.subr.bf16.mxu0 %v17414_v49  ;;  %12065 = vmatprep.subr.bf16.mxu1 %v17417_v42  ;;  %v17501_v49 = vld [vmem:[%s18533_s30 + $0x52c] ss:$16 sps:$4 sm:$0xff]   ;;  %v17496_v42 = vld [vmem:[%s18533_s30 + $0x520] ss:$16 sps:$4 sm:$0xff]  }
 0x6b0   : > { %11861 = vmatpush1.bf16.msra.mxu0 %v17412_v52  ;;  %12066 = vmatpush1.bf16.msra.mxu1 %v17415_v33  ;;  %v17499_v52 = vld [vmem:[%s18533_s30 + $0x528] ss:$16 sps:$4 sm:$0xff]   ;;  %v17504_v33 = vld [vmem:[%s18533_s30 + $0x544] ss:$16 sps:$4 sm:$0xff]  }
 0x6b1   : > { %11862 = vmatprep.subr.bf16.mxu0 %v17420_v0  ;;  %12067 = vmatprep.subr.bf16.mxu1 %v17423_v31  ;;  %v17507_v0 = vld [vmem:[%s18533_s30 + $0x54c] ss:$16 sps:$4 sm:$0xff]   ;;  %v17502_v31 = vld [vmem:[%s18533_s30 + $0x540] ss:$16 sps:$4 sm:$0xff]  }
 0x6b4   : > { %11863 = vmatpush1.bf16.msra.mxu0 %v17418_v63  ;;  %12068 = vmatpush1.bf16.msra.mxu1 %v17421_v34  ;;  %v17505_v63 = vld [vmem:[%s18533_s30 + $0x548] ss:$16 sps:$4 sm:$0xff]   ;;  %v17510_v34 = vld [vmem:[%s18533_s30 + $0x564] ss:$16 sps:$4 sm:$0xff]  }
 0x6b5   : > { %11864 = vmatprep.subr.bf16.mxu0 %v17426_v38  ;;  %12069 = vmatprep.subr.bf16.mxu1 %v17429_v40  ;;  %v17513_v38 = vld [vmem:[%s18533_s30 + $0x56c] ss:$16 sps:$4 sm:$0xff]   ;;  %v17508_v40 = vld [vmem:[%s18533_s30 + $0x560] ss:$16 sps:$4 sm:$0xff]  }
 0x6b8   : > { %11865 = vmatpush1.bf16.msra.mxu0 %v17424_v15  ;;  %12070 = vmatpush1.bf16.msra.mxu1 %v17427_v17  ;;  %v17511_v15 = vld [vmem:[%s18533_s30 + $0x568] ss:$16 sps:$4 sm:$0xff]   ;;  %v17516_v17 = vld [vmem:[%s18533_s30 + $0x584] ss:$16 sps:$4 sm:$0xff]  }
 0x6b9   : > { %11866 = vmatprep.subr.bf16.mxu0 %v17432_v26  ;;  %12071 = vmatprep.subr.bf16.mxu1 %v17435_v28  ;;  %v17519_v26 = vld [vmem:[%s18533_s30 + $0x58c] ss:$16 sps:$4 sm:$0xff]   ;;  %v17514_v28 = vld [vmem:[%s18533_s30 + $0x580] ss:$16 sps:$4 sm:$0xff]  }
 0x6bc   : > { %11867 = vmatpush1.bf16.msra.mxu0 %v17430_v46  ;;  %12072 = vmatpush1.bf16.msra.mxu1 %v17433_v25  ;;  %v17517_v46 = vld [vmem:[%s18533_s30 + $0x588] ss:$16 sps:$4 sm:$0xff]   ;;  %v17522_v25 = vld [vmem:[%s18533_s30 + $0x5a4] ss:$16 sps:$4 sm:$0xff]  }
 0x6bd   : > { %11868 = vmatprep.subr.bf16.mxu0 %v17438_v7  ;;  %12073 = vmatprep.subr.bf16.mxu1 %v17441_v12  ;;  %v17525_v7 = vld [vmem:[%s18533_s30 + $0x5ac] ss:$16 sps:$4 sm:$0xff]   ;;  %v17520_v12 = vld [vmem:[%s18533_s30 + $0x5a0] ss:$16 sps:$4 sm:$0xff]  }
 0x6c0   : > { %11869 = vmatpush1.bf16.msra.mxu0 %v17436_v27  ;;  %12074 = vmatpush1.bf16.msra.mxu1 %v17439_v60  ;;  %v17523_v27 = vld [vmem:[%s18533_s30 + $0x5a8] ss:$16 sps:$4 sm:$0xff]   ;;  %v17528_v60 = vld [vmem:[%s18533_s30 + $0x5c4] ss:$16 sps:$4 sm:$0xff]  }
 0x6c1   : > { %11879 = vmatprep.subr.bf16.mxu0 %v17444_v45  ;;  %12084 = vmatprep.subr.bf16.mxu1 %v17447_v5  ;;  %v17531_v45 = vld [vmem:[%s18533_s30 + $0x5cc] ss:$16 sps:$4 sm:$0xff]   ;;  %v10005_v5 = vcombine.high %v20684_v2, %v20684_v2  ;;  %v17532_v2 = vld [vmem:[%s18533_s30 + $0x5e0] ss:$16 sps:$4 sm:$0xff]  }
 0x6c3   : > { %11871 = vmatmul.mubr.bf16.vlgmr.msra.gmra.mrb[0].mxu0 %v10040_v55  ;;  %12076 = vmatmul.mubr.bf16.vlgmr.msra.gmra.mrb[0].mxu1 %v10040_v55  ;;  %v17529_v55 = vld [vmem:[%s18533_s30 + $0x5c8] ss:$16 sps:$4 sm:$0xff]  }
 0x6c4   : > { %11880 = vmatpush1.bf16.msra.mxu0 %v17442_v54  ;;  %12085 = vmatpush1.bf16.msra.mxu1 %v17445_v56  ;;  %v17526_v54 = vld [vmem:[%s18533_s30 + $0x5c0] ss:$16 sps:$4 sm:$0xff]   ;;  %v17534_v56 = vld [vmem:[%s18533_s30 + $0x5e4] ss:$16 sps:$4 sm:$0xff]  }
 0x6c5   : > { %11881 = vmatprep.subr.bf16.mxu0 %v17450_v9  ;;  %12086 = vmatprep.subr.bf16.mxu1 %v17453_v29  ;;  %v17537_v9 = vld [vmem:[%s18533_s30 + $0x5ec] ss:$16 sps:$4 sm:$0xff]   ;;  %v20753_v29 = vrot.slane %v10005_v5, %v20586_v61  ;;  %v17538_v61 = vld [vmem:[%s18533_s30 + $0x600] ss:$16 sps:$4 sm:$0xff]   ;;  %v17618_v5 = vld [vmem:[%s18533_s30 + $0x7a4] ss:$16 sps:$4 sm:$0xff]  }
 0x6c6   : > { %11911 = vmatprep.mubr.bf16.mxu0 %v10043_v30  ;;  %12116 = vmatprep.mubr.bf16.mxu1 %v10043_v30  ;;  %v17541_v30 = vld [vmem:[%s18533_s30 + $0x608] ss:$16 sps:$4 sm:$0xff]  }
 0x6c8   : > { %11882 = vmatpush1.bf16.msra.mxu0 %v17448_v47  ;;  %12087 = vmatpush1.bf16.msra.mxu1 %v17451_v20  ;;  %v17540_v47 = vld [vmem:[%s18533_s30 + $0x604] ss:$16 sps:$4 sm:$0xff]   ;;  %v17543_v20 = vld [vmem:[%s18533_s30 + $0x60c] ss:$16 sps:$4 sm:$0xff]  }
 0x6c9   : > { %11883 = vmatprep.subr.bf16.mxu0 %v17456_v21  ;;  %12088 = vmatprep.subr.bf16.mxu1 %v17459_v13  ;;  %v10021_v21 = vcombine.high %v20753_v29, %v20753_v29  ;;  %v10042_v13 = vpack.c.bf16 %v20690_v18, %v20690_v18  ;;  %v17552_v18 = vld [vmem:[%s18533_s30 + $0x644] ss:$16 sps:$4 sm:$0xff]  }
 0x6cc   : > { %11884 = vmatpush1.bf16.msra.mxu0 %v17454_v3  ;;  %12089 = vmatpush1.bf16.msra.mxu1 %v17457_v8  ;;  %v17546_v3 = vld [vmem:[%s18533_s30 + $0x624] ss:$16 sps:$4 sm:$0xff]   ;;  %v17549_v8 = vld [vmem:[%s18533_s30 + $0x62c] ss:$16 sps:$4 sm:$0xff]  }
 0x6cd   : > { %11885 = vmatprep.subr.bf16.mxu0 %v17462_v50  ;;  %12090 = vmatprep.subr.bf16.mxu1 %v17465_v14  ;;  %v17544_v50 = vld [vmem:[%s18533_s30 + $0x620] ss:$16 sps:$4 sm:$0xff]   ;;  %v10045_v14 = vpack.c.bf16 %v10021_v21, %v10021_v21  ;;  %v17633_v21 = vld [vmem:[%s18533_s30 + $0x7ec] ss:$16 sps:$4 sm:$0xff]  }
 0x6d0   : > { %11886 = vmatpush1.bf16.msra.mxu0 %v17460_v35  ;;  %12091 = vmatpush1.bf16.msra.mxu1 %v17463_v4  ;;  %v17547_v35 = vld [vmem:[%s18533_s30 + $0x628] ss:$16 sps:$4 sm:$0xff]   ;;  %v17555_v4 = vld [vmem:[%s18533_s30 + $0x64c] ss:$16 sps:$4 sm:$0xff]  }
 0x6d1   : > { %11887 = vmatprep.subr.bf16.mxu0 %v17468_v24  ;;  %12092 = vmatprep.subr.bf16.mxu1 %v17471_v23  ;;  %v17550_v24 = vld [vmem:[%s18533_s30 + $0x640] ss:$16 sps:$4 sm:$0xff]   ;;  %v17553_v23 = vld [vmem:[%s18533_s30 + $0x648] ss:$16 sps:$4 sm:$0xff]  }
 0x6d4   : > { %11888 = vmatpush1.bf16.msra.mxu0 %v17466_v11  ;;  %12093 = vmatpush1.bf16.msra.mxu1 %v17469_v16  ;;  %v17558_v11 = vld [vmem:[%s18533_s30 + $0x664] ss:$16 sps:$4 sm:$0xff]   ;;  %v17561_v16 = vld [vmem:[%s18533_s30 + $0x66c] ss:$16 sps:$4 sm:$0xff]  }
 0x6d5   : > { %11889 = vmatprep.subr.bf16.mxu0 %v17474_v57  ;;  %12094 = vmatprep.subr.bf16.mxu1 %v17477_v51  ;;  %v17556_v57 = vld [vmem:[%s18533_s30 + $0x660] ss:$16 sps:$4 sm:$0xff]   ;;  %v17559_v51 = vld [vmem:[%s18533_s30 + $0x668] ss:$16 sps:$4 sm:$0xff]  }
 0x6d8   : > { %11890 = vmatpush1.bf16.msra.mxu0 %v17472_v10  ;;  %12095 = vmatpush1.bf16.msra.mxu1 %v17475_v19  ;;  %v17564_v10 = vld [vmem:[%s18533_s30 + $0x684] ss:$16 sps:$4 sm:$0xff]   ;;  %v17567_v19 = vld [vmem:[%s18533_s30 + $0x68c] ss:$16 sps:$4 sm:$0xff]  }
 0x6d9   : > { %11891 = vmatprep.subr.bf16.mxu0 %v17480_v58  ;;  %12096 = vmatprep.subr.bf16.mxu1 %v17483_v41  ;;  %v17562_v58 = vld [vmem:[%s18533_s30 + $0x680] ss:$16 sps:$4 sm:$0xff]   ;;  %v17565_v41 = vld [vmem:[%s18533_s30 + $0x688] ss:$16 sps:$4 sm:$0xff]  }
 0x6dc   : > { %11892 = vmatpush1.bf16.msra.mxu0 %v17478_v22  ;;  %12097 = vmatpush1.bf16.msra.mxu1 %v17481_v48  ;;  %v17570_v22 = vld [vmem:[%s18533_s30 + $0x6a4] ss:$16 sps:$4 sm:$0xff]   ;;  %v17573_v48 = vld [vmem:[%s18533_s30 + $0x6ac] ss:$16 sps:$4 sm:$0xff]  }
 0x6dd   : > { %11893 = vmatprep.subr.bf16.mxu0 %v17486_v53  ;;  %12098 = vmatprep.subr.bf16.mxu1 %v17489_v37  ;;  %v17568_v53 = vld [vmem:[%s18533_s30 + $0x6a0] ss:$16 sps:$4 sm:$0xff]   ;;  %v17571_v37 = vld [vmem:[%s18533_s30 + $0x6a8] ss:$16 sps:$4 sm:$0xff]  }
 0x6e0   : > { %11894 = vmatpush1.bf16.msra.mxu0 %v17484_v43  ;;  %12099 = vmatpush1.bf16.msra.mxu1 %v17487_v39  ;;  %v17576_v43 = vld [vmem:[%s18533_s30 + $0x6c4] ss:$16 sps:$4 sm:$0xff]   ;;  %v17579_v39 = vld [vmem:[%s18533_s30 + $0x6cc] ss:$16 sps:$4 sm:$0xff]  }
 0x6e1   : > { %11895 = vmatprep.subr.bf16.mxu0 %v17492_v44  ;;  %12100 = vmatprep.subr.bf16.mxu1 %v17495_v1  ;;  %v17574_v44 = vld [vmem:[%s18533_s30 + $0x6c0] ss:$16 sps:$4 sm:$0xff]   ;;  %v17577_v1 = vld [vmem:[%s18533_s30 + $0x6c8] ss:$16 sps:$4 sm:$0xff]  }
 0x6e4   : > { %11896 = vmatpush1.bf16.msra.mxu0 %v17490_v32  ;;  %12101 = vmatpush1.bf16.msra.mxu1 %v17493_v6  ;;  %v17582_v32 = vld [vmem:[%s18533_s30 + $0x6e4] ss:$16 sps:$4 sm:$0xff]   ;;  %v17585_v6 = vld [vmem:[%s18533_s30 + $0x6ec] ss:$16 sps:$4 sm:$0xff]  }
 0x6e5   : > { %11897 = vmatprep.subr.bf16.mxu0 %v17498_v36  ;;  %12102 = vmatprep.subr.bf16.mxu1 %v17501_v49  ;;  %v17580_v36 = vld [vmem:[%s18533_s30 + $0x6e0] ss:$16 sps:$4 sm:$0xff]   ;;  %v17583_v49 = vld [vmem:[%s18533_s30 + $0x6e8] ss:$16 sps:$4 sm:$0xff]  }
 0x6e8   : > { %11898 = vmatpush1.bf16.msra.mxu0 %v17496_v42  ;;  %12103 = vmatpush1.bf16.msra.mxu1 %v17499_v52  ;;  %v17588_v42 = vld [vmem:[%s18533_s30 + $0x704] ss:$16 sps:$4 sm:$0xff]   ;;  %v17591_v52 = vld [vmem:[%s18533_s30 + $0x70c] ss:$16 sps:$4 sm:$0xff]  }
 0x6e9   : > { %11899 = vmatprep.subr.bf16.mxu0 %v17504_v33  ;;  %12104 = vmatprep.subr.bf16.mxu1 %v17507_v0  ;;  %v17586_v33 = vld [vmem:[%s18533_s30 + $0x700] ss:$16 sps:$4 sm:$0xff]   ;;  %v17589_v0 = vld [vmem:[%s18533_s30 + $0x708] ss:$16 sps:$4 sm:$0xff]  }
 0x6ec   : > { %11900 = vmatpush1.bf16.msra.mxu0 %v17502_v31  ;;  %12105 = vmatpush1.bf16.msra.mxu1 %v17505_v63  ;;  %v17594_v31 = vld [vmem:[%s18533_s30 + $0x724] ss:$16 sps:$4 sm:$0xff]   ;;  %v17597_v63 = vld [vmem:[%s18533_s30 + $0x72c] ss:$16 sps:$4 sm:$0xff]  }
 0x6ed   : > { %11901 = vmatprep.subr.bf16.mxu0 %v17510_v34  ;;  %12106 = vmatprep.subr.bf16.mxu1 %v17513_v38  ;;  %v17592_v34 = vld [vmem:[%s18533_s30 + $0x720] ss:$16 sps:$4 sm:$0xff]   ;;  %v17595_v38 = vld [vmem:[%s18533_s30 + $0x728] ss:$16 sps:$4 sm:$0xff]  }
 0x6f0   : > { %11902 = vmatpush1.bf16.msra.mxu0 %v17508_v40  ;;  %12107 = vmatpush1.bf16.msra.mxu1 %v17511_v15  ;;  %v17600_v40 = vld [vmem:[%s18533_s30 + $0x744] ss:$16 sps:$4 sm:$0xff]   ;;  %v17603_v15 = vld [vmem:[%s18533_s30 + $0x74c] ss:$16 sps:$4 sm:$0xff]  }
 0x6f1   : > { %11903 = vmatprep.subr.bf16.mxu0 %v17516_v17  ;;  %12108 = vmatprep.subr.bf16.mxu1 %v17519_v26  ;;  %v17598_v17 = vld [vmem:[%s18533_s30 + $0x740] ss:$16 sps:$4 sm:$0xff]   ;;  %v17601_v26 = vld [vmem:[%s18533_s30 + $0x748] ss:$16 sps:$4 sm:$0xff]  }
 0x6f4   : > { %11904 = vmatpush1.bf16.msra.mxu0 %v17514_v28  ;;  %12109 = vmatpush1.bf16.msra.mxu1 %v17517_v46  ;;  %v17606_v28 = vld [vmem:[%s18533_s30 + $0x764] ss:$16 sps:$4 sm:$0xff]   ;;  %v17609_v46 = vld [vmem:[%s18533_s30 + $0x76c] ss:$16 sps:$4 sm:$0xff]  }
 0x6f5   : > { %11905 = vmatprep.subr.bf16.mxu0 %v17522_v25  ;;  %12110 = vmatprep.subr.bf16.mxu1 %v17525_v7  ;;  %v17604_v25 = vld [vmem:[%s18533_s30 + $0x760] ss:$16 sps:$4 sm:$0xff]   ;;  %v17607_v7 = vld [vmem:[%s18533_s30 + $0x768] ss:$16 sps:$4 sm:$0xff]  }
 0x6f8   : > { %11906 = vmatpush1.bf16.msra.mxu0 %v17520_v12  ;;  %12111 = vmatpush1.bf16.msra.mxu1 %v17523_v27  ;;  %v17612_v12 = vld [vmem:[%s18533_s30 + $0x784] ss:$16 sps:$4 sm:$0xff]   ;;  %v17615_v27 = vld [vmem:[%s18533_s30 + $0x78c] ss:$16 sps:$4 sm:$0xff]  }
 0x6f9   : > { %11907 = vmatprep.subr.bf16.mxu0 %v17528_v60  ;;  %12112 = vmatprep.subr.bf16.mxu1 %v17531_v45  ;;  %v17610_v60 = vld [vmem:[%s18533_s30 + $0x780] ss:$16 sps:$4 sm:$0xff]   ;;  %v17613_v45 = vld [vmem:[%s18533_s30 + $0x788] ss:$16 sps:$4 sm:$0xff]  }
 0x6fc   : > { %11908 = vmatpush1.bf16.msra.mxu0 %v17526_v54  ;;  %12113 = vmatpush1.bf16.msra.mxu1 %v17529_v55  ;;  %v17621_v54 = vld [vmem:[%s18533_s30 + $0x7ac] ss:$16 sps:$4 sm:$0xff]   ;;  %v17616_v55 = vld [vmem:[%s18533_s30 + $0x7a0] ss:$16 sps:$4 sm:$0xff]  }
 0x6fd   : > { %11909 = vmatprep.subr.bf16.mxu0 %v17534_v56  ;;  %12114 = vmatprep.subr.bf16.mxu1 %v17537_v9  ;;  %v17619_v56 = vld [vmem:[%s18533_s30 + $0x7a8] ss:$16 sps:$4 sm:$0xff]   ;;  %v17624_v9 = vld [vmem:[%s18533_s30 + $0x7c4] ss:$16 sps:$4 sm:$0xff]  }
 0x700   : > { %11910 = vmatpush1.bf16.msra.mxu0 %v17532_v2  ;;  %12115 = vmatpush1.bf16.msra.mxu1 %v17535_v62  ;;  %v17627_v2 = vld [vmem:[%s18533_s30 + $0x7cc] ss:$16 sps:$4 sm:$0xff]   ;;  %v17622_v62 = vld [vmem:[%s18533_s30 + $0x7c0] ss:$16 sps:$4 sm:$0xff]  }
 0x701   : > { %11920 = vmatprep.subr.bf16.mxu0 %v17540_v47  ;;  %12125 = vmatprep.subr.bf16.mxu1 %v17543_v20  ;;  %v17625_v47 = vld [vmem:[%s18533_s30 + $0x7c8] ss:$16 sps:$4 sm:$0xff]   ;;  %v17630_v20 = vld [vmem:[%s18533_s30 + $0x7e4] ss:$16 sps:$4 sm:$0xff]  }
 0x703   : > { %11912 = vmatmul.mubr.bf16.vlgmr.msra.gmra.mrb[0].mxu0 %v10042_v13  ;;  %12117 = vmatmul.mubr.bf16.vlgmr.msra.gmra.mrb[0].mxu1 %v10042_v13  ;;  %v17628_v13 = vld [vmem:[%s18533_s30 + $0x7e0] ss:$16 sps:$4 sm:$0xff]  }
 0x704   : > { %11921 = vmatpush1.bf16.msra.mxu0 %v17538_v61  ;;  %12126 = vmatpush1.bf16.msra.mxu1 %v17541_v30  ;;  %v17631_v61 = vld [vmem:[%s18533_s30 + $0x7e8] ss:$16 sps:$4 sm:$0xff]   ;;  %v17637_v30 = vld [vmem:[%s18533_s30 + $0x804] ss:$16 sps:$4 sm:$0xff]  }
 0x705   : > { %11922 = vmatprep.subr.bf16.mxu0 %v17546_v3  ;;  %12127 = vmatprep.subr.bf16.mxu1 %v17549_v8  ;;  %v17640_v3 = vld [vmem:[%s18533_s30 + $0x80c] ss:$16 sps:$4 sm:$0xff]   ;;  %v10044_v8 = vpack.c.bf16 %v20753_v29, %v20753_v29  ;;  %v17644_v29 = vld [vmem:[%s18533_s30 + $0x828] ss:$16 sps:$4 sm:$0xff]  }
 0x706   : > { %11952 = vmatprep.mubr.bf16.mxu0 %v10045_v14  ;;  %12157 = vmatprep.mubr.bf16.mxu1 %v10045_v14  ;;  %v17638_v14 = vld [vmem:[%s18533_s30 + $0x808] ss:$16 sps:$4 sm:$0xff]  }
 0x708   : > { %11923 = vmatpush1.bf16.msra.mxu0 %v17544_v50  ;;  %12128 = vmatpush1.bf16.msra.mxu1 %v17547_v35  ;;  %v17635_v50 = vld [vmem:[%s18533_s30 + $0x800] ss:$16 sps:$4 sm:$0xff]   ;;  %v17643_v35 = vld [vmem:[%s18533_s30 + $0x824] ss:$16 sps:$4 sm:$0xff]  }
 0x709   : > { %11924 = vmatprep.subr.bf16.mxu0 %v17552_v18  ;;  %12129 = vmatprep.subr.bf16.mxu1 %v17555_v4  ;;  %v17646_v18 = vld [vmem:[%s18533_s30 + $0x82c] ss:$16 sps:$4 sm:$0xff]   ;;  %v17641_v4 = vld [vmem:[%s18533_s30 + $0x820] ss:$16 sps:$4 sm:$0xff]  }
 0x70c   : > { %11925 = vmatpush1.bf16.msra.mxu0 %v17550_v24  ;;  %12130 = vmatpush1.bf16.msra.mxu1 %v17553_v23  ;;  %v17649_v24 = vld [vmem:[%s18533_s30 + $0x844] ss:$16 sps:$4 sm:$0xff]   ;;  %v17652_v23 = vld [vmem:[%s18533_s30 + $0x84c] ss:$16 sps:$4 sm:$0xff]  }
 0x70d   : > { %11926 = vmatprep.subr.bf16.mxu0 %v17558_v11  ;;  %12131 = vmatprep.subr.bf16.mxu1 %v17561_v16  ;;  %v17814_v11 = vmov 0   ;;  %v17647_v16 = vld [vmem:[%s18533_s30 + $0x840] ss:$16 sps:$4 sm:$0xff]  }
 0x710   : > { %11927 = vmatpush1.bf16.msra.mxu0 %v17556_v57  ;;  %12132 = vmatpush1.bf16.msra.mxu1 %v17559_v51  ;;  %v17650_v57 = vld [vmem:[%s18533_s30 + $0x848] ss:$16 sps:$4 sm:$0xff]   ;;  %v17655_v51 = vld [vmem:[%s18533_s30 + $0x864] ss:$16 sps:$4 sm:$0xff]  }
 0x711   : > { %11928 = vmatprep.subr.bf16.mxu0 %v17564_v10  ;;  %12133 = vmatprep.subr.bf16.mxu1 %v17567_v19  ;;  %v17658_v10 = vld [vmem:[%s18533_s30 + $0x86c] ss:$16 sps:$4 sm:$0xff]   ;;  %v17653_v19 = vld [vmem:[%s18533_s30 + $0x860] ss:$16 sps:$4 sm:$0xff]  }
 0x714   : > { %11929 = vmatpush1.bf16.msra.mxu0 %v17562_v58  ;;  %12134 = vmatpush1.bf16.msra.mxu1 %v17565_v41  ;;  %v17656_v58 = vld [vmem:[%s18533_s30 + $0x868] ss:$16 sps:$4 sm:$0xff]   ;;  %v17661_v41 = vld [vmem:[%s18533_s30 + $0x884] ss:$16 sps:$4 sm:$0xff]  }
 0x715   : > { %11930 = vmatprep.subr.bf16.mxu0 %v17570_v22  ;;  %12135 = vmatprep.subr.bf16.mxu1 %v17573_v48  ;;  %v17664_v22 = vld [vmem:[%s18533_s30 + $0x88c] ss:$16 sps:$4 sm:$0xff]   ;;  %v17659_v48 = vld [vmem:[%s18533_s30 + $0x880] ss:$16 sps:$4 sm:$0xff]  }
 0x718   : > { %11931 = vmatpush1.bf16.msra.mxu0 %v17568_v53  ;;  %12136 = vmatpush1.bf16.msra.mxu1 %v17571_v37  ;;  %v17662_v53 = vld [vmem:[%s18533_s30 + $0x888] ss:$16 sps:$4 sm:$0xff]   ;;  %v17667_v37 = vld [vmem:[%s18533_s30 + $0x8a4] ss:$16 sps:$4 sm:$0xff]  }
 0x719   : > { %11932 = vmatprep.subr.bf16.mxu0 %v17576_v43  ;;  %12137 = vmatprep.subr.bf16.mxu1 %v17579_v39  ;;  %v17670_v43 = vld [vmem:[%s18533_s30 + $0x8ac] ss:$16 sps:$4 sm:$0xff]   ;;  %v17665_v39 = vld [vmem:[%s18533_s30 + $0x8a0] ss:$16 sps:$4 sm:$0xff]  }
 0x71c   : > { %11933 = vmatpush1.bf16.msra.mxu0 %v17574_v44  ;;  %12138 = vmatpush1.bf16.msra.mxu1 %v17577_v1  ;;  %v17668_v44 = vld [vmem:[%s18533_s30 + $0x8a8] ss:$16 sps:$4 sm:$0xff]   ;;  %v17673_v1 = vld [vmem:[%s18533_s30 + $0x8c4] ss:$16 sps:$4 sm:$0xff]  }
 0x71d   : > { %11934 = vmatprep.subr.bf16.mxu0 %v17582_v32  ;;  %12139 = vmatprep.subr.bf16.mxu1 %v17585_v6  ;;  %v17676_v32 = vld [vmem:[%s18533_s30 + $0x8cc] ss:$16 sps:$4 sm:$0xff]   ;;  %v17671_v6 = vld [vmem:[%s18533_s30 + $0x8c0] ss:$16 sps:$4 sm:$0xff]  }
 0x720   : > { %11935 = vmatpush1.bf16.msra.mxu0 %v17580_v36  ;;  %12140 = vmatpush1.bf16.msra.mxu1 %v17583_v49  ;;  %v17674_v36 = vld [vmem:[%s18533_s30 + $0x8c8] ss:$16 sps:$4 sm:$0xff]   ;;  %v17679_v49 = vld [vmem:[%s18533_s30 + $0x8e4] ss:$16 sps:$4 sm:$0xff]  }
 0x721   : > { %11936 = vmatprep.subr.bf16.mxu0 %v17588_v42  ;;  %12141 = vmatprep.subr.bf16.mxu1 %v17591_v52  ;;  %v17682_v42 = vld [vmem:[%s18533_s30 + $0x8ec] ss:$16 sps:$4 sm:$0xff]   ;;  %v17677_v52 = vld [vmem:[%s18533_s30 + $0x8e0] ss:$16 sps:$4 sm:$0xff]  }
 0x724   : > { %11937 = vmatpush1.bf16.msra.mxu0 %v17586_v33  ;;  %12142 = vmatpush1.bf16.msra.mxu1 %v17589_v0  ;;  %v17680_v33 = vld [vmem:[%s18533_s30 + $0x8e8] ss:$16 sps:$4 sm:$0xff]   ;;  %v13881_v0 = vld.sshfl [vmem:[#allocation5 + $0x10] sm:$0x3 pattern:$0x76325410] }
 0x725   : > { %11938 = vmatprep.subr.bf16.mxu0 %v17594_v31  ;;  %12143 = vmatprep.subr.bf16.mxu1 %v17597_v63  ;;  %v17683_v31 = vld [vmem:[%s18535_s29 + $0x40] sm:$0xff]  }
 0x726   : > { %v17684_v63 = vld [vmem:[%s18535_s29 + $0xc0] sm:$0xff]  }
 0x728   : > { %11939 = vmatpush1.bf16.msra.mxu0 %v17592_v34  ;;  %12144 = vmatpush1.bf16.msra.mxu1 %v17595_v38  ;;  %v10046_v34 = vpack.c.bf16 %v13881_v0, %v13881_v0  ;;  %v17685_v38 = vld [vmem:[%s18535_s29] sm:$0xff]  }
 0x729   : > { %11940 = vmatprep.subr.bf16.mxu0 %v17600_v40  ;;  %12145 = vmatprep.subr.bf16.mxu1 %v17603_v15  ;;  %v17686_v40 = vld [vmem:[%s18535_s29 + $0x80] sm:$0xff]   ;;  %v17687_v15 = vld [vmem:[%s18535_s29 + $0x48] sm:$0xff]  }
 0x72c   : > { %11941 = vmatpush1.bf16.msra.mxu0 %v17598_v17  ;;  %12146 = vmatpush1.bf16.msra.mxu1 %v17601_v26  ;;  %v17688_v17 = vld [vmem:[%s18535_s29 + $0xc8] sm:$0xff]  }
 0x72d   : > { %11942 = vmatprep.subr.bf16.mxu0 %v17606_v28  ;;  %12147 = vmatprep.subr.bf16.mxu1 %v17609_v46  ;;  %v17689_v26 = vld [vmem:[%s18535_s29 + $0x8] sm:$0xff]   ;;  %v17691_v46 = vld [vmem:[%s18535_s29 + $0x50] sm:$0xff]  }
 0x72e   : > { %v17690_v28 = vld [vmem:[%s18535_s29 + $0x88] sm:$0xff]  }
 0x730   : > { %11943 = vmatpush1.bf16.msra.mxu0 %v17604_v25  ;;  %12148 = vmatpush1.bf16.msra.mxu1 %v17607_v7  ;;  %v17692_v25 = vld [vmem:[%s18535_s29 + $0xd0] sm:$0xff]  }
 0x731   : > { %11944 = vmatprep.subr.bf16.mxu0 %v17612_v12  ;;  %12149 = vmatprep.subr.bf16.mxu1 %v17615_v27  ;;  %v17693_v7 = vld [vmem:[%s18535_s29 + $0x10] sm:$0xff]   ;;  %v17695_v27 = vld [vmem:[%s18535_s29 + $0x58] sm:$0xff]  }
 0x732   : > { %v17694_v12 = vld [vmem:[%s18535_s29 + $0x90] sm:$0xff]  }
 0x734   : > { %11945 = vmatpush1.bf16.msra.mxu0 %v17610_v60  ;;  %12150 = vmatpush1.bf16.msra.mxu1 %v17613_v45  ;;  %v17696_v60 = vld [vmem:[%s18535_s29 + $0xd8] sm:$0xff]  }
 0x735   : > { %11946 = vmatprep.subr.bf16.mxu0 %v17618_v5  ;;  %12151 = vmatprep.subr.bf16.mxu1 %v17621_v54  ;;  %v17697_v45 = vld [vmem:[%s18535_s29 + $0x18] sm:$0xff]   ;;  %v17699_v54 = vld [vmem:[%s18535_s29 + $0x60] sm:$0xff]  }
 0x736   : > { %v17698_v5 = vld [vmem:[%s18535_s29 + $0x98] sm:$0xff]  }
 0x738   : > { %11947 = vmatpush1.bf16.msra.mxu0 %v17616_v55  ;;  %12152 = vmatpush1.bf16.msra.mxu1 %v17619_v56  ;;  %v17700_v55 = vld [vmem:[%s18535_s29 + $0xe0] sm:$0xff]  }
 0x739   : > { %11948 = vmatprep.subr.bf16.mxu0 %v17624_v9  ;;  %12153 = vmatprep.subr.bf16.mxu1 %v17627_v2  ;;  %v17701_v56 = vld [vmem:[%s18535_s29 + $0x20] sm:$0xff]   ;;  %v17703_v2 = vld [vmem:[%s18535_s29 + $0x68] sm:$0xff]  }
 0x73a   : > { %v17702_v9 = vld [vmem:[%s18535_s29 + $0xa0] sm:$0xff]  }
 0x73c   : > { %11949 = vmatpush1.bf16.msra.mxu0 %v17622_v62  ;;  %12154 = vmatpush1.bf16.msra.mxu1 %v17625_v47  ;;  %v17704_v62 = vld [vmem:[%s18535_s29 + $0xe8] sm:$0xff]  }
 0x73d   : > { %11950 = vmatprep.subr.bf16.mxu0 %v17630_v20  ;;  %12155 = vmatprep.subr.bf16.mxu1 %v17633_v21  ;;  %v17705_v47 = vld [vmem:[%s18535_s29 + $0x28] sm:$0xff]   ;;  %v17707_v21 = vld [vmem:[%s18535_s29 + $0x70] sm:$0xff]  }
 0x73e   : > { %v17706_v20 = vld [vmem:[%s18535_s29 + $0xa8] sm:$0xff]  }
 0x740   : > { %11951 = vmatpush1.bf16.msra.mxu0 %v17628_v13  ;;  %12156 = vmatpush1.bf16.msra.mxu1 %v17631_v61  ;;  %v17708_v13 = vld [vmem:[%s18535_s29 + $0xf0] sm:$0xff]  }
 0x741   : > { %11961 = vmatprep.subr.bf16.mxu0 %v17637_v30  ;;  %12166 = vmatprep.subr.bf16.mxu1 %v17640_v3  ;;  %v17709_v61 = vld [vmem:[%s18535_s29 + $0x30] sm:$0xff]   ;;  %v17711_v3 = vld [vmem:[%s18535_s29 + $0x78] sm:$0xff]  }
 0x742   : > { %v17710_v30 = vld [vmem:[%s18535_s29 + $0xb0] sm:$0xff]  }
 0x743   : > { %11953 = vmatmul.mubr.bf16.vlgmr.msra.gmra.mrb[0].mxu0 %v10044_v8  ;;  %12158 = vmatmul.mubr.bf16.vlgmr.msra.gmra.mrb[0].mxu1 %v10044_v8  ;;  %v17712_v8 = vld [vmem:[%s18535_s29 + $0xf8] sm:$0xff]  }
 0x744   : > { %11962 = vmatpush1.bf16.msra.mxu0 %v17635_v50  ;;  %12167 = vmatpush1.bf16.msra.mxu1 %v17638_v14  ;;  %v17713_v50 = vld [vmem:[%s18535_s29 + $0x38] sm:$0xff]  }
 0x745   : > { %11963 = vmatprep.subr.bf16.mxu0 %v17643_v35  ;;  %12168 = vmatprep.subr.bf16.mxu1 %v17646_v18  ;;  %v17714_v14 = vld [vmem:[%s18535_s29 + $0xb8] sm:$0xff]   ;;  %v10339_v35 = vsub.s32 0, %v20578_v59  ;;  %v10347_v18 = vsub.s32 2, %v20578_v59  ;;  %s17815_s29 = smov [#allocation10]  }
 0x746   : > { %11993 = vmatprep.mubr.bf16.mxu0 %v17814_v11  ;;  %12198 = vmatprep.mubr.bf16.mxu1 %v17814_v11  ;;  %s12557_s18 = sshll.u32 %s17815_s29, 4  ;;  %s12558_s18 = int_to_ptr.vmem [resolvable:$true] %s12557_s18 }
 0x747   : > { %p17750_p7 = scmp.lt.s32.totalorder %s12558_s18, %s12558_s18 }
 0x748   : > { %11964 = vmatpush1.bf16.msra.mxu0 %v17641_v4  ;;  %12169 = vmatpush1.bf16.msra.mxu1 %v17644_v29  ;;  %v10335_v4 = vld [vmem:[%s971_s21] sm:$0xf]  ;;  %v10343_v29 = vsub.s32 1, %v20578_v59  ;;  %s17743_s21 = scalar_lea.vmem %s12558_s18, 32 }
 0x749   : > { %11965 = vmatprep.subr.bf16.mxu0 %v17649_v24  ;;  %12170 = vmatprep.subr.bf16.mxu1 %v17652_v23  ;;  %v10351_v24 = vsub.s32 3, %v20578_v59  ;;  %v10340_v23 = vrot.slane %v10335_v4, %v10339_v35  ;;  %v10348_v11 = vrot.slane %v10335_v4, %v10347_v18  ;;  %p17744_p2 = scmp.ne.s32.totalorder %s12558_s18, %s17743_s21  ;;  %p17751_p8 = scmp.lt.s32.totalorder %s17743_s21, %s17743_s21 }
 0x74b   : > { %p17745_p3 = pnand %p17744_p2, %p16670_p6  ;;  %p17752_p9 = por %p17751_p8, %p17750_p7 }
 0x74c   : > { %11966 = vmatpush1.bf16.msra.mxu0 %v17647_v16  ;;  %12171 = vmatpush1.bf16.msra.mxu1 %v17650_v57  ;;  %v10344_v16 = vrot.slane %v10335_v4, %v10343_v29  ;;  %v10352_v57 = vrot.slane %v10335_v4, %v10351_v24 }
 0x74d   : > { %11967 = vmatprep.subr.bf16.mxu0 %v17655_v51  ;;  %12172 = vmatprep.subr.bf16.mxu1 %v17658_v10  ;;  %p17746_p5 = pneg %p17745_p3 }
 0x74f   : > { %p17753_p11 = pnand %p17752_p9, %p17746_p5 }
 0x750   : > { %11968 = vmatpush1.bf16.msra.mxu0 %v17653_v19  ;;  %12173 = vmatpush1.bf16.msra.mxu1 %v17656_v58 }
 0x751   : > { %11969 = vmatprep.subr.bf16.mxu0 %v17661_v41  ;;  %12174 = vmatprep.subr.bf16.mxu1 %v17664_v22 }
 0x754   : > { %11970 = vmatpush1.bf16.msra.mxu0 %v17659_v48  ;;  %12175 = vmatpush1.bf16.msra.mxu1 %v17662_v53 }
 0x755   : > { %11971 = vmatprep.subr.bf16.mxu0 %v17667_v37  ;;  %12176 = vmatprep.subr.bf16.mxu1 %v17670_v43 }
 0x758   : > { %11972 = vmatpush1.bf16.msra.mxu0 %v17665_v39  ;;  %12177 = vmatpush1.bf16.msra.mxu1 %v17668_v44 }
 0x759   : > { %11973 = vmatprep.subr.bf16.mxu0 %v17673_v1  ;;  %12178 = vmatprep.subr.bf16.mxu1 %v17676_v32 }
 0x75c   : > { %11974 = vmatpush1.bf16.msra.mxu0 %v17671_v6  ;;  %12179 = vmatpush1.bf16.msra.mxu1 %v17674_v36 }
 0x75d   : > { %11975 = vmatprep.subr.bf16.mxu0 %v17679_v49  ;;  %12180 = vmatprep.subr.bf16.mxu1 %v17682_v42 }
 0x760   : > { %11976 = vmatpush1.bf16.msra.mxu0 %v17677_v52  ;;  %12181 = vmatpush1.bf16.msra.mxu1 %v17680_v33 }
 0x761   : > { %14866 = vmatprep.subr.bf16.mxu0 %v17683_v31  ;;  %14888 = vmatprep.subr.bf16.mxu1 %v17684_v63 }
 0x763   : > { %11994 = vmatmul.mubr.bf16.vlgmr.msra.gmra.mrb[0].mxu0 %v10046_v34  ;;  %12199 = vmatmul.mubr.bf16.vlgmr.msra.gmra.mrb[0].mxu1 %v10046_v34 }
 0x764   : > { %14867 = vmatpush3.bf16.msra.mxu0 %v17685_v38  ;;  %14889 = vmatpush3.bf16.msra.mxu1 %v17686_v40  ;;  %v12207_v40 = vld [vmem:[#allocation10] sm:$0x3] }
 0x765   : > { %14868 = vmatprep.subr.bf16.mxu0 %v17687_v15  ;;  %14890 = vmatprep.subr.bf16.mxu1 %v17688_v17 }
 0x768   : > { %14869 = vmatpush3.bf16.msra.mxu0 %v17689_v26  ;;  %14891 = vmatpush3.bf16.msra.mxu1 %v17690_v28 }
 0x769   : > { %14870 = vmatprep.subr.bf16.mxu0 %v17691_v46  ;;  %14892 = vmatprep.subr.bf16.mxu1 %v17692_v25 }
 0x76c   : > { %14871 = vmatpush3.bf16.msra.mxu0 %v17693_v7  ;;  %14893 = vmatpush3.bf16.msra.mxu1 %v17694_v12 }
 0x76d   : > { %14872 = vmatprep.subr.bf16.mxu0 %v17695_v27  ;;  %14894 = vmatprep.subr.bf16.mxu1 %v17696_v60 }
 0x770   : > { %14873 = vmatpush3.bf16.msra.mxu0 %v17697_v45  ;;  %14895 = vmatpush3.bf16.msra.mxu1 %v17698_v5 }
 0x771   : > { %14874 = vmatprep.subr.bf16.mxu0 %v17699_v54  ;;  %14896 = vmatprep.subr.bf16.mxu1 %v17700_v55 }
 0x774   : > { %14875 = vmatpush3.bf16.msra.mxu0 %v17701_v56  ;;  %14897 = vmatpush3.bf16.msra.mxu1 %v17702_v9 }
 0x775   : > { %14876 = vmatprep.subr.bf16.mxu0 %v17703_v2  ;;  %14898 = vmatprep.subr.bf16.mxu1 %v17704_v62 }
 0x778   : > { %14877 = vmatpush3.bf16.msra.mxu0 %v17705_v47  ;;  %14899 = vmatpush3.bf16.msra.mxu1 %v17706_v20 }
 0x779   : > { %14878 = vmatprep.subr.bf16.mxu0 %v17707_v21  ;;  %14900 = vmatprep.subr.bf16.mxu1 %v17708_v13 }
 0x77c   : > { %14879 = vmatpush3.bf16.msra.mxu0 %v17709_v61  ;;  %14901 = vmatpush3.bf16.msra.mxu1 %v17710_v30 }
 0x77d   : > { %14880 = vmatprep.subr.bf16.mxu0 %v17711_v3  ;;  %14902 = vmatprep.subr.bf16.mxu1 %v17712_v8 }
 0x780   : > { %14881 = vmatpush3.bf16.msra.mxu0 %v17713_v50  ;;  %14903 = vmatpush3.bf16.msra.mxu1 %v17714_v14 }
 0x836   : > { %v11995_v51 = vpop.f32.mrb[0].mxu0  ;;  %v12200_v10 = vpop.f32.mrb[0].mxu1 }
 0x837   : > { %v16626_v19 = vadd.f32 %v11995_v51, %v10340_v23  ;;  %v16628_v58 = vadd.f32 %v12200_v10, %v10348_v11  ;;  %v11997_v41 = vpop.f32.mrb[1].mxu0  ;;  %v12202_v22 = vpop.f32.mrb[1].mxu1 }
 0x838   : > { %v16627_v48 = vadd.f32 %v11997_v41, %v10344_v16  ;;  %v16629_v53 = vadd.f32 %v12202_v22, %v10352_v57  ;;  %v11999_v37 = vpop.f32.mrb[2].mxu0  ;;  %v12204_v43 = vpop.f32.mrb[2].mxu1 }
 0x839   : > { %v12000_v39 = vpop.f32.mrb[3].mxu0  ;;  %v12205_v44 = vpop.f32.mrb[3].mxu1  ;;  %v12208_v6 = vpack.c.bf16 %v16626_v19, %v16626_v19  ;;  %v12210_v59 = vpack.c.bf16 %v16628_v58, %v16628_v58 }
 0x83a   : > { %v12209_v1 = vpack.c.bf16 %v16627_v48, %v16627_v48  ;;  %v12211_v32 = vpack.c.bf16 %v16629_v53, %v16629_v53 }
 0x83c   : > { %12500 = vmatprep.mubr.bf16.mxu0 %v12209_v1  ;;  %12540 = vmatprep.mubr.bf16.mxu1 %v12211_v32 }
 0x83d   : > { %12501 = vmatmul.mubr.bf16.vlgmr.msra.gmra.mrb[4].mxu0 %v12208_v6  ;;  %12541 = vmatmul.mubr.bf16.vlgmr.msra.gmra.mrb[4].mxu1 %v12210_v59 }
 0x910   : > { %v14882_v36 = vpop.f32.mrb[4].mxu0  ;;  %v14904_v49 = vpop.f32.mrb[4].mxu1 }
 0x911   : > { %v14883_v42 = vpop.f32.mrb[5].mxu0  ;;  %v14905_v52 = vpop.f32.mrb[5].mxu1 }
 0x912   : > { %v14884_v33 = vadd.f32 %v14883_v42, %v14882_v36  ;;  %v14906_v0 = vadd.f32 %v14905_v52, %v14904_v49  ;;  %v14885_v31 = vpop.f32.mrb[6].mxu0  ;;  %v14907_v63 = vpop.f32.mrb[6].mxu1 }
 0x913   : > { %v14886_v34 = vpop.f32.mrb[7].mxu0  ;;  %v14908_v38 = vpop.f32.mrb[7].mxu1 }
 0x914   : > { %v12543_v15 = vadd.f32 %v14906_v0, %v14884_v33 }
 0x916   : > { %v12548_v17 = vadd.f32 %v12543_v15, %v12207_v40 }
 0x918   : > { %12549 = vst [vmem:[#allocation10] sm:$0x3] %v12548_v17 }
 0x919   : > { %17756 = shalt.err (!%p17753_p11)
}
 0x91a   : > { %s17757_s27 = scalar_lea.hbm %s20945_s9, 32 }
 0x91b   : > { %p17758_p12 = scmp.ne.s32.totalorder %s20945_s9, %s17757_s27  ;;  %p17763_p0 = scmp.lt.u32.totalorder %s17757_s27, %s20945_s9 }
 0x91d   : > { %p17759_p10 = pnand %p17758_p12, %p16670_p6 }
 0x91f   : > { %p17760_p13 = pneg %p17759_p10 }
 0x921   : > { %p17765_p4 = pnand %p17763_p0, %p17760_p13 }
 0x923   : > { %17768 = shalt.err (!%p17765_p4)
}
 0x924   : > { %16667 = dma.vmem_to_hbm [thread:$0]  (%p16670_p6), %s12558_s18, 32, %s20945_s9, [#allocation9]  }
 0x925   : > { %17790 = dma.done.wait (%p16670_p6), [#allocation9], 32  }
 0x926   : > { %17792 = vsyncadd (%p16670_p6), [#allocation9], 4294967264 }
 0x927 PF: > { %p20_p1 = scmp.ge.s32.totalorder %s17888_s14, 6   ;;  %s21110_s30 = smov %s17799_s10 }
 0x928   : > { %s21111_s10 = smov %s17803_s11  ;;  %s21112_s11 = smov %s17898_s17 }
 0x929   : > { %s21113_s12 = smov %s17888_s14  ;;  %22 = sbr.rel (!%p20_p1) target bundleno = 4 (0x4), region = 325 }
 0x930   :  { %12570 = vsyncpa [#allocation8], 1 }
 0x931   :  { %12572 = vsyncpa [#allocation8 + $0x1], 1 }
 0x932   :  { %12573 = vsyncpa [#allocation9], 1 }
 0x933   :  { %12575 = vsyncpa [#allocation9 + $0x1], 1 }

</bundles_post_ra>
